<compile_context>
chip_gen: v6e
topology: v6e:2x2x1
jax: 0.10.0
libtpu: 0.0.40
codegen_flags: <defaults>
</compile_context>

<pallas_src>
import jax
import jax.numpy as jnp
from jax.experimental import pallas as pl
from jax.experimental.pallas import tpu as pltpu

_LRELU_SLOPE = 0.01
_SELU_ALPHA = 1.6732632423543772
_SELU_SCALE = 1.0507009873554805
_BN_EPS = 1e-5


def _leaky_relu(x):
    return jnp.where(x > 0, x, _LRELU_SLOPE * x)


def _selu(x):
    return _SELU_SCALE * jnp.where(x > 0, x, _SELU_ALPHA * (jnp.exp(x) - 1.0))


# --------------------------- Pallas kernel ---------------------------------
def model_kernel(x_ref, w1_ref, w2_ref, w3_ref, w4_ref, w5_ref, w6_ref,
                 aff_ref, o_ref):
    F1 = w1_ref.shape[0]          # 16 * L
    F2 = w2_ref.shape[0]          # 32 * L

    def vec(f, c):                # (f, 1) column of the packed bias array
        return aff_ref[0:f, c:c + 1]

    def mm(w_ref, h):             # weight-stationary MXU matmul, f32 acc
        return jnp.dot(w_ref[...], h.astype(w_ref.dtype),
                       preferred_element_type=jnp.float32)

    x = x_ref[...]                                        # (L, Bt) f32

    h = _leaky_relu(mm(w1_ref, x) + vec(F1, 0))           # conv1 + relu1
    h = _leaky_relu(mm(w2_ref, h) + vec(F2, 1))           # bn1 folded; conv2+relu2; do2=id
    h = _leaky_relu(mm(w3_ref, h) + vec(F2, 2))           # conv3 + relu3; do3 = id
    h = _selu(mm(w4_ref, h) + vec(F2, 3))                 # conv4 + selu
    y = jnp.maximum(mm(w5_ref, h) + vec(64, 4), 0.0)      # bn4 folded; flatten+lin5+relu5
    z = mm(w6_ref, y) + vec(1, 5)                         # bn5 folded; linear6 (f32)
    o_ref[...] = pl.reciprocal(1.0 + jnp.exp(-z), approx=True)   # sigmoid on EUP


def pallas_model(x_ncl, kparams, *, b_tile=None):
    """x_ncl: (B, 1, L) float32 in PyTorch NCL layout. Returns (B, 1)."""
    B, cin, L = x_ncl.shape
    assert cin == 1
    if b_tile is None:
        # grid >= 2 at B=256 keeps both v7x TensorCores busy; wider (256) lane
        # tiles match the 256-wide MXU once there is enough batch.
        b_tile = 256 if B >= 512 else 128
    G = pl.cdiv(B, b_tile)
    B_pad = G * b_tile
    x_lb = jnp.transpose(x_ncl[:, 0, :], (1, 0)).astype(jnp.float32)  # (L, B)
    if B_pad != B:
        x_lb = jnp.pad(x_lb, ((0, 0), (0, B_pad - B)))

    w1, w2, w3, w4, w5, w6, aff = kparams

    def resident(arr):            # constant index_map -> stays in VMEM
        return pl.BlockSpec(arr.shape, lambda g, _n=arr.ndim: (0,) * _n)

    out = pl.pallas_call(
        model_kernel,
        out_shape=jax.ShapeDtypeStruct((1, B_pad), jnp.float32),
        grid=(G,),
        in_specs=[pl.BlockSpec((L, b_tile), lambda g: (0, g)),
                  resident(w1), resident(w2), resident(w3), resident(w4),
                  resident(w5), resident(w6), resident(aff)],
        out_specs=pl.BlockSpec((1, b_tile), lambda g: (0, g)),
        compiler_params=pltpu.CompilerParams(
            dimension_semantics=("parallel",)),
    )(x_lb, w1, w2, w3, w4, w5, w6, aff)
    return out[0, :B].reshape(B, 1)


# ---------------- host-side weight preparation ------------------------------
def conv_toeplitz(W, L):
    """torch-layout conv weight (Cout, Cin, K), 'same' pad -> (L*Cout, L*Cin)."""
    Cout, Cin, K = W.shape
    pad = (K - 1) // 2
    lo = jnp.arange(L)[:, None]                       # output position l
    li = jnp.arange(L)[None, :]                       # input position l'
    k = li - lo + pad                                 # tap index (L, L)
    valid = (k >= 0) & (k < K)
    kc = jnp.clip(k, 0, K - 1)
    taps = jnp.transpose(W, (2, 1, 0))[kc]            # (L, L, Cin, Cout)
    taps = jnp.where(valid[:, :, None, None], taps, 0.0)
    # row index = l*Cout + co ; col index = l'*Cin + ci
    return jnp.transpose(taps, (0, 3, 1, 2)).reshape(
        L * Cout, L * Cin).astype(jnp.float32)


def to_kernel_params(P, L, weight_dtype=jnp.bfloat16):
    def bn_fold(g, be, m, v):
        s = g / jnp.sqrt(v + _BN_EPS)
        return s, be - m * s

    s1, t1 = bn_fold(P["g1"], P["be1"], P["m1"], P["v1"])
    s4, t4 = bn_fold(P["g4"], P["be4"], P["m4"], P["v4"])
    s5, t5 = bn_fold(P["g5"], P["be5"], P["m5"], P["v5"])

    F2 = 32 * L
    W1b = conv_toeplitz(P["W1"], L)                   # (16L, L)
    W2b = conv_toeplitz(P["W2"], L)                   # (32L, 16L)
    W3b = conv_toeplitz(P["W3"], L)                   # (32L, 32L)
    W4b = conv_toeplitz(P["W4"], L)                   # (32L, 32L)
    # torch flatten index is c*L + l ; our feature index is l*32 + c.
    W5e = P["W5"].reshape(64, 32, L).transpose(0, 2, 1).reshape(64, F2)
    W6 = P["W6"].astype(jnp.float32)                  # (1, 64)

    def tile_l(v):                                    # feature index l*C + c
        return jnp.tile(v, L)

    # Fold eval-mode BN affines into the NEXT layer (exact, zero numerical change):
    #   bn1 -> conv2 :  W2b @ (s1*a + t1) + b2 = (W2b*s1) @ a + (W2b@t1 + b2)
    #   bn4 -> lin5  :  analogous with W5e
    #   bn5 -> lin6  :  analogous with W6
    s1f, t1f = tile_l(s1), tile_l(t1)
    s4f, t4f = tile_l(s4), tile_l(t4)
    W2f = W2b * s1f[None, :]
    b2f = W2b @ t1f + tile_l(P["b2"])
    W5f = W5e * s4f[None, :]
    b5f = W5e @ t4f + P["b5"]
    W6f = W6 * s5[None, :]
    b6f = W6 @ t5 + P["b6"]

    cols = [tile_l(P["b1"]), b2f, tile_l(P["b3"]), tile_l(P["b4"]), b5f, b6f]
    aff = jnp.zeros((F2, len(cols)), jnp.float32)
    for i, c in enumerate(cols):
        aff = aff.at[: c.shape[0], i].set(c.astype(jnp.float32))

    wd = weight_dtype
    return [W1b.astype(wd), W2f.astype(wd), W3b.astype(wd), W4b.astype(wd),
            W5f.astype(wd), W6f.astype(jnp.float32), aff]


# ---------------- parameter init (deterministic, synthetic) ----------------
def init_params(key, L):
    ks = jax.random.split(key, 16)

    def u(k, shape, fan_in):
        bound = 1.0 / jnp.sqrt(float(fan_in))
        return jax.random.uniform(k, shape, jnp.float32, -bound, bound)

    P = {}
    P["W1"] = u(ks[0], (16, 1, 5), 1 * 5);    P["b1"] = u(ks[1], (16,), 1 * 5)
    P["W2"] = u(ks[2], (32, 16, 5), 16 * 5);  P["b2"] = u(ks[3], (32,), 16 * 5)
    P["W3"] = u(ks[4], (32, 32, 3), 32 * 3);  P["b3"] = u(ks[5], (32,), 32 * 3)
    P["W4"] = u(ks[6], (32, 32, 3), 32 * 3);  P["b4"] = u(ks[7], (32,), 32 * 3)
    F = 32 * L
    P["W5"] = u(ks[8], (64, F), F);           P["b5"] = u(ks[9], (64,), F)
    P["W6"] = u(ks[10], (1, 64), 64);         P["b6"] = u(ks[11], (1,), 64)
    for name, c, k in (("1", 16, ks[12]), ("4", 32, ks[13]), ("5", 64, ks[14])):
        kg, kb = jax.random.split(k)
        P["g" + name] = jax.random.uniform(kg, (c,), jnp.float32, 0.5, 1.5)
        P["be" + name] = 0.1 * jax.random.normal(kb, (c,), jnp.float32)
        P["m" + name] = jnp.zeros((c,), jnp.float32)   # running mean
        P["v" + name] = jnp.ones((c,), jnp.float32)    # running var
    return P


# ---------------- pure-JAX reference (torch NCL semantics, f32) -------------
def reference_forward(x, P):
    HP = jax.lax.Precision.HIGHEST

    def conv1d(x, W, b):
        K = W.shape[2]
        pad = (K - 1) // 2
        L = x.shape[2]
        xp = jnp.pad(x, ((0, 0), (0, 0), (pad, pad)))
        out = jnp.zeros((x.shape[0], W.shape[0], L), jnp.float32)
        for k in range(K):
            out = out + jnp.einsum("bcl,oc->bol", xp[:, :, k:k + L],
                                   W[:, :, k], precision=HP)
        return out + b[None, :, None]

    def bn(x, g, be, m, v, axis):
        shape = [1] * x.ndim
        shape[axis] = -1
        return ((x - m.reshape(shape)) / jnp.sqrt(v.reshape(shape) + _BN_EPS)
                * g.reshape(shape) + be.reshape(shape))

    h = conv1d(x, P["W1"], P["b1"])
    h = jnp.where(h > 0, h, _LRELU_SLOPE * h)
    h = bn(h, P["g1"], P["be1"], P["m1"], P["v1"], 1)
    h = conv1d(h, P["W2"], P["b2"])
    h = jnp.where(h > 0, h, _LRELU_SLOPE * h)
    h = conv1d(h, P["W3"], P["b3"])
    h = jnp.where(h > 0, h, _LRELU_SLOPE * h)
    h = conv1d(h, P["W4"], P["b4"])
    h = _SELU_SCALE * jnp.where(h > 0, h, _SELU_ALPHA * (jnp.exp(h) - 1.0))
    h = bn(h, P["g4"], P["be4"], P["m4"], P["v4"], 1)
    f = h.reshape(h.shape[0], -1)
    y = jnp.dot(f, P["W5"].T, precision=HP) + P["b5"]
    y = jnp.maximum(y, 0.0)
    y = bn(y, P["g5"], P["be5"], P["m5"], P["v5"], 1)
    y = jnp.dot(y, P["W6"].T, precision=HP) + P["b6"]
    return 1.0 / (1.0 + jnp.exp(-y))


if __name__ == "__main__":
    B, L = 256, 16                  # input: (B, 1, L), torch NCL layout
    key = jax.random.PRNGKey(0)
    kx, kp = jax.random.split(key)
    x = jax.random.normal(kx, (B, 1, L), jnp.float32)
    P = init_params(kp, L)

    out = pallas_model(x, to_kernel_params(P, L))
    out = jax.block_until_ready(out)

    ref = reference_forward(x, P)
    assert out.shape == (B, 1), out.shape
    max_err = float(jnp.max(jnp.abs(out - ref)))
    # bf16 weights/operands (f32 accumulation): tolerance widened accordingly.
    assert jnp.allclose(out, ref, atol=2e-2, rtol=2e-2), max_err
    print("KERNEL_OK")
</pallas_src>

<mosaic_0001>
module attributes {stable_mosaic.version = 11 : i64} {
  func.func @model_kernel(%arg0: i32, %arg1: memref<16x128xf32, #tpu.memory_space<vmem>>, %arg2: memref<256x16xbf16, #tpu.memory_space<vmem>>, %arg3: memref<512x256xbf16, #tpu.memory_space<vmem>>, %arg4: memref<512x512xbf16, #tpu.memory_space<vmem>>, %arg5: memref<512x512xbf16, #tpu.memory_space<vmem>>, %arg6: memref<64x512xbf16, #tpu.memory_space<vmem>>, %arg7: memref<1x64xf32, #tpu.memory_space<vmem>>, %arg8: memref<512x6xf32, #tpu.memory_space<vmem>>, %arg9: memref<1x128xf32, #tpu.memory_space<vmem>>) attributes {dimension_semantics = [#tpu.dimension_semantics<parallel>], iteration_bounds = array<i64: 2>, scalar_prefetch = 0 : i64, scratch_operands = 0 : i64, tpu.core_type = #tpu.core_type<tc>, window_params = [{transform_indices = @transform_0, window_bounds = array<i64: 16, 128>}, {pipeline_mode = #tpu.pipeline_mode<synchronous>, transform_indices = @transform_1, window_bounds = array<i64: 256, 16>}, {pipeline_mode = #tpu.pipeline_mode<synchronous>, transform_indices = @transform_2, window_bounds = array<i64: 512, 256>}, {pipeline_mode = #tpu.pipeline_mode<synchronous>, transform_indices = @transform_3, window_bounds = array<i64: 512, 512>}, {pipeline_mode = #tpu.pipeline_mode<synchronous>, transform_indices = @transform_4, window_bounds = array<i64: 512, 512>}, {pipeline_mode = #tpu.pipeline_mode<synchronous>, transform_indices = @transform_5, window_bounds = array<i64: 64, 512>}, {pipeline_mode = #tpu.pipeline_mode<synchronous>, transform_indices = @transform_6, window_bounds = array<i64: 1, 64>}, {pipeline_mode = #tpu.pipeline_mode<synchronous>, transform_indices = @transform_7, window_bounds = array<i64: 512, 6>}, {transform_indices = @transform_8, window_bounds = array<i64: 1, 128>}]} {
    %c0 = arith.constant 0 : index
    %c0_0 = arith.constant 0 : index
    %0 = vector.load %arg1[%c0, %c0_0] : memref<16x128xf32, #tpu.memory_space<vmem>>, vector<16x128xf32>
    %c0_1 = arith.constant 0 : index
    %c0_2 = arith.constant 0 : index
    %1 = vector.load %arg2[%c0_1, %c0_2] : memref<256x16xbf16, #tpu.memory_space<vmem>>, vector<256x16xbf16>
    %2 = arith.truncf %0 : vector<16x128xf32> to vector<16x128xbf16>
    %cst = arith.constant dense<0.000000e+00> : vector<256x128xf32>
    %3 = tpu.matmul %1, %2, %cst {dimension_numbers = #tpu.dot_dimension_numbers<[1], [0], [0], [1], [0, 0, 1, 1], [], []>} : vector<256x16xbf16>, vector<16x128xbf16>, vector<256x128xf32> -> vector<256x128xf32>
    %c0_3 = arith.constant 0 : index
    %c0_4 = arith.constant 0 : index
    %4 = vector.load %arg8[%c0_3, %c0_4] : memref<512x6xf32, #tpu.memory_space<vmem>>, vector<256x1xf32>
    %5 = vector.broadcast %4 : vector<256x1xf32> to vector<256x128xf32>
    %6 = arith.addf %3, %5 : vector<256x128xf32>
    %cst_5 = arith.constant 0.000000e+00 : f32
    %7 = vector.broadcast %cst_5 : f32 to vector<256x128xf32>
    %8 = arith.cmpf ogt, %6, %7 : vector<256x128xf32>
    %cst_6 = arith.constant 0.00999999977 : f32
    %9 = vector.broadcast %cst_6 : f32 to vector<256x128xf32>
    %10 = arith.mulf %9, %6 : vector<256x128xf32>
    %11 = arith.select %8, %6, %10 : vector<256x128xi1>, vector<256x128xf32>
    %c0_7 = arith.constant 0 : index
    %c0_8 = arith.constant 0 : index
    %12 = vector.load %arg3[%c0_7, %c0_8] : memref<512x256xbf16, #tpu.memory_space<vmem>>, vector<512x256xbf16>
    %13 = arith.truncf %11 : vector<256x128xf32> to vector<256x128xbf16>
    %cst_9 = arith.constant dense<0.000000e+00> : vector<512x128xf32>
    %14 = tpu.matmul %12, %13, %cst_9 {dimension_numbers = #tpu.dot_dimension_numbers<[1], [0], [0], [1], [0, 0, 1, 1], [], []>} : vector<512x256xbf16>, vector<256x128xbf16>, vector<512x128xf32> -> vector<512x128xf32>
    %c0_10 = arith.constant 0 : index
    %c1 = arith.constant 1 : index
    %15 = vector.load %arg8[%c0_10, %c1] : memref<512x6xf32, #tpu.memory_space<vmem>>, vector<512x1xf32>
    %16 = vector.broadcast %15 : vector<512x1xf32> to vector<512x128xf32>
    %17 = arith.addf %14, %16 : vector<512x128xf32>
    %cst_11 = arith.constant 0.000000e+00 : f32
    %18 = vector.broadcast %cst_11 : f32 to vector<512x128xf32>
    %19 = arith.cmpf ogt, %17, %18 : vector<512x128xf32>
    %cst_12 = arith.constant 0.00999999977 : f32
    %20 = vector.broadcast %cst_12 : f32 to vector<512x128xf32>
    %21 = arith.mulf %20, %17 : vector<512x128xf32>
    %22 = arith.select %19, %17, %21 : vector<512x128xi1>, vector<512x128xf32>
    %c0_13 = arith.constant 0 : index
    %c0_14 = arith.constant 0 : index
    %23 = vector.load %arg4[%c0_13, %c0_14] : memref<512x512xbf16, #tpu.memory_space<vmem>>, vector<512x512xbf16>
    %24 = arith.truncf %22 : vector<512x128xf32> to vector<512x128xbf16>
    %cst_15 = arith.constant dense<0.000000e+00> : vector<512x128xf32>
    %25 = tpu.matmul %23, %24, %cst_15 {dimension_numbers = #tpu.dot_dimension_numbers<[1], [0], [0], [1], [0, 0, 1, 1], [], []>} : vector<512x512xbf16>, vector<512x128xbf16>, vector<512x128xf32> -> vector<512x128xf32>
    %c0_16 = arith.constant 0 : index
    %c2 = arith.constant 2 : index
    %26 = vector.load %arg8[%c0_16, %c2] : memref<512x6xf32, #tpu.memory_space<vmem>>, vector<512x1xf32>
    %27 = vector.broadcast %26 : vector<512x1xf32> to vector<512x128xf32>
    %28 = arith.addf %25, %27 : vector<512x128xf32>
    %cst_17 = arith.constant 0.000000e+00 : f32
    %29 = vector.broadcast %cst_17 : f32 to vector<512x128xf32>
    %30 = arith.cmpf ogt, %28, %29 : vector<512x128xf32>
    %cst_18 = arith.constant 0.00999999977 : f32
    %31 = vector.broadcast %cst_18 : f32 to vector<512x128xf32>
    %32 = arith.mulf %31, %28 : vector<512x128xf32>
    %33 = arith.select %30, %28, %32 : vector<512x128xi1>, vector<512x128xf32>
    %c0_19 = arith.constant 0 : index
    %c0_20 = arith.constant 0 : index
    %34 = vector.load %arg5[%c0_19, %c0_20] : memref<512x512xbf16, #tpu.memory_space<vmem>>, vector<512x512xbf16>
    %35 = arith.truncf %33 : vector<512x128xf32> to vector<512x128xbf16>
    %cst_21 = arith.constant dense<0.000000e+00> : vector<512x128xf32>
    %36 = tpu.matmul %34, %35, %cst_21 {dimension_numbers = #tpu.dot_dimension_numbers<[1], [0], [0], [1], [0, 0, 1, 1], [], []>} : vector<512x512xbf16>, vector<512x128xbf16>, vector<512x128xf32> -> vector<512x128xf32>
    %c0_22 = arith.constant 0 : index
    %c3 = arith.constant 3 : index
    %37 = vector.load %arg8[%c0_22, %c3] : memref<512x6xf32, #tpu.memory_space<vmem>>, vector<512x1xf32>
    %38 = vector.broadcast %37 : vector<512x1xf32> to vector<512x128xf32>
    %39 = arith.addf %36, %38 : vector<512x128xf32>
    %cst_23 = arith.constant 0.000000e+00 : f32
    %40 = vector.broadcast %cst_23 : f32 to vector<512x128xf32>
    %41 = arith.cmpf ogt, %39, %40 : vector<512x128xf32>
    %42 = math.exp %39 : vector<512x128xf32>
    %cst_24 = arith.constant 1.000000e+00 : f32
    %43 = vector.broadcast %cst_24 : f32 to vector<512x128xf32>
    %44 = arith.subf %42, %43 : vector<512x128xf32>
    %cst_25 = arith.constant 1.67326319 : f32
    %45 = vector.broadcast %cst_25 : f32 to vector<512x128xf32>
    %46 = arith.mulf %45, %44 : vector<512x128xf32>
    %47 = arith.select %41, %39, %46 : vector<512x128xi1>, vector<512x128xf32>
    %cst_26 = arith.constant 1.05070102 : f32
    %48 = vector.broadcast %cst_26 : f32 to vector<512x128xf32>
    %49 = arith.mulf %48, %47 : vector<512x128xf32>
    %c0_27 = arith.constant 0 : index
    %c0_28 = arith.constant 0 : index
    %50 = vector.load %arg6[%c0_27, %c0_28] : memref<64x512xbf16, #tpu.memory_space<vmem>>, vector<64x512xbf16>
    %51 = arith.truncf %49 : vector<512x128xf32> to vector<512x128xbf16>
    %cst_29 = arith.constant dense<0.000000e+00> : vector<64x128xf32>
    %52 = tpu.matmul %50, %51, %cst_29 {dimension_numbers = #tpu.dot_dimension_numbers<[1], [0], [0], [1], [0, 0, 1, 1], [], []>} : vector<64x512xbf16>, vector<512x128xbf16>, vector<64x128xf32> -> vector<64x128xf32>
    %c0_30 = arith.constant 0 : index
    %c4 = arith.constant 4 : index
    %53 = vector.load %arg8[%c0_30, %c4] : memref<512x6xf32, #tpu.memory_space<vmem>>, vector<64x1xf32>
    %54 = vector.broadcast %53 : vector<64x1xf32> to vector<64x128xf32>
    %55 = arith.addf %52, %54 : vector<64x128xf32>
    %cst_31 = arith.constant 0.000000e+00 : f32
    %56 = vector.broadcast %cst_31 : f32 to vector<64x128xf32>
    %57 = arith.maximumf %55, %56 : vector<64x128xf32>
    %c0_32 = arith.constant 0 : index
    %c0_33 = arith.constant 0 : index
    %58 = vector.load %arg7[%c0_32, %c0_33] : memref<1x64xf32, #tpu.memory_space<vmem>>, vector<1x64xf32>
    %cst_34 = arith.constant dense<0.000000e+00> : vector<1x128xf32>
    %59 = tpu.matmul %58, %57, %cst_34 {dimension_numbers = #tpu.dot_dimension_numbers<[1], [0], [0], [1], [0, 0, 1, 1], [], []>} : vector<1x64xf32>, vector<64x128xf32>, vector<1x128xf32> -> vector<1x128xf32>
    %c0_35 = arith.constant 0 : index
    %c5 = arith.constant 5 : index
    %60 = vector.load %arg8[%c0_35, %c5] : memref<512x6xf32, #tpu.memory_space<vmem>>, vector<1x1xf32>
    %61 = vector.broadcast %60 : vector<1x1xf32> to vector<1x128xf32>
    %62 = arith.addf %59, %61 : vector<1x128xf32>
    %cst_36 = arith.constant 0.000000e+00 : f32
    %63 = vector.broadcast %cst_36 : f32 to vector<1x128xf32>
    %64 = arith.subf %63, %62 : vector<1x128xf32>
    %65 = math.exp %64 : vector<1x128xf32>
    %cst_37 = arith.constant 1.000000e+00 : f32
    %66 = vector.broadcast %cst_37 : f32 to vector<1x128xf32>
    %67 = arith.addf %66, %65 : vector<1x128xf32>
    %68 = tpu.reciprocal %67 {approx = true} : vector<1x128xf32> -> vector<1x128xf32>
    %c0_38 = arith.constant 0 : index
    %c0_39 = arith.constant 0 : index
    %69 = vector.load %arg9[%c0_38, %c0_39] : memref<1x128xf32, #tpu.memory_space<vmem>>, vector<1x128xf32>
    tpu.vector_store %arg9[%c0_38, %c0_39], %68 {strides = array<i32>} : memref<1x128xf32, #tpu.memory_space<vmem>>, vector<1x128xf32>,
    return
  }
  func.func @transform_0(%arg0: i32) -> (i32, i32) {
    %c0_i32 = arith.constant 0 : i32
    %c0_i32_0 = arith.constant 0 : i32
    return %c0_i32, %arg0 : i32, i32
  }
  func.func @transform_1(%arg0: i32) -> (i32, i32) {
    %c0_i32 = arith.constant 0 : i32
    %c0_i32_0 = arith.constant 0 : i32
    %c0_i32_1 = arith.constant 0 : i32
    return %c0_i32, %c0_i32_0 : i32, i32
  }
  func.func @transform_2(%arg0: i32) -> (i32, i32) {
    %c0_i32 = arith.constant 0 : i32
    %c0_i32_0 = arith.constant 0 : i32
    %c0_i32_1 = arith.constant 0 : i32
    return %c0_i32, %c0_i32_0 : i32, i32
  }
  func.func @transform_3(%arg0: i32) -> (i32, i32) {
    %c0_i32 = arith.constant 0 : i32
    %c0_i32_0 = arith.constant 0 : i32
    %c0_i32_1 = arith.constant 0 : i32
    return %c0_i32, %c0_i32_0 : i32, i32
  }
  func.func @transform_4(%arg0: i32) -> (i32, i32) {
    %c0_i32 = arith.constant 0 : i32
    %c0_i32_0 = arith.constant 0 : i32
    %c0_i32_1 = arith.constant 0 : i32
    return %c0_i32, %c0_i32_0 : i32, i32
  }
  func.func @transform_5(%arg0: i32) -> (i32, i32) {
    %c0_i32 = arith.constant 0 : i32
    %c0_i32_0 = arith.constant 0 : i32
    %c0_i32_1 = arith.constant 0 : i32
    return %c0_i32, %c0_i32_0 : i32, i32
  }
  func.func @transform_6(%arg0: i32) -> (i32, i32) {
    %c0_i32 = arith.constant 0 : i32
    %c0_i32_0 = arith.constant 0 : i32
    %c0_i32_1 = arith.constant 0 : i32
    return %c0_i32, %c0_i32_0 : i32, i32
  }
  func.func @transform_7(%arg0: i32) -> (i32, i32) {
    %c0_i32 = arith.constant 0 : i32
    %c0_i32_0 = arith.constant 0 : i32
    %c0_i32_1 = arith.constant 0 : i32
    return %c0_i32, %c0_i32_0 : i32, i32
  }
  func.func @transform_8(%arg0: i32) -> (i32, i32) {
    %c0_i32 = arith.constant 0 : i32
    %c0_i32_0 = arith.constant 0 : i32
    return %c0_i32, %arg0 : i32, i32
  }
}

</mosaic_0001>

<bundles_post_ra>
// kernel: tpu_custom_call.1
= control target key start
LH: loop header
LB: loop body
LE: loop exit
PB: predicated region body
PF: predicated region fallthrough
CT: control target
= control target key end

     0   :  { %s11666_s0 = inlined_call_operand.hbm [shape: f32[16,256], index: 0, kind: input, shape index: {}]   ;;  %s11667_s1 = inlined_call_operand.vmem [shape: bf16[256,16], index: 1, kind: input, shape index: {}]   ;;  %s11668_s2 = inlined_call_operand.vmem [shape: bf16[512,256], index: 2, kind: input, shape index: {}]   ;;  %s11669_s3 = inlined_call_operand.hbm [shape: bf16[512,512], index: 3, kind: input, shape index: {}]   ;;  %s11670_s4 = inlined_call_operand.hbm [shape: bf16[512,512], index: 4, kind: input, shape index: {}]   ;;  %s11671_s5 = inlined_call_operand.vmem [shape: bf16[64,512], index: 5, kind: input, shape index: {}]   ;;  %s11672_s6 = inlined_call_operand.vmem [shape: f32[1,64], index: 6, kind: input, shape index: {}]   ;;  %s11673_s7 = inlined_call_operand.vmem [shape: f32[512,6], index: 7, kind: input, shape index: {}]   ;;  %s11674_s8 = inlined_call_operand.hbm [shape: f32[1,256], index: 8, kind: output, shape index: {}]  }
   0x1   :  { %11696 = sst [smem:[#allocation63_spill]] %s11669_s3 }
   0x2   :  { %13 = vsyncpa [#allocation3], 0 }
   0x3   :  { %15 = vsyncpa [#allocation3 + $0x1], 0 }
   0x4   :  { %16 = vsyncpa [#allocation6], 0 }
   0x5   :  { %17 = vsyncpa [#allocation4], 0 }
   0x6   :  { %19 = vsyncpa [#allocation4 + $0x1], 0  ;;  %s8356_s27 = smov 0   ;;  %s8358_s28 = smov 0  }
   0x7   :  { %s8360_s29 = smov 0   ;;  %s8362_s30 = smov 0  }
   0x8 LB: > { %s8377_s9 = sadd.s32 4294967295, %s8293_s30   ;;  %s6637_s10 = sadd.s32 4294967294, %s8293_s30   ;;  %s8293_s30 = sphi %s8362_s30, %s11957_s30   ;;  %s8289_s29 = sphi %s8360_s29, %s11961_s29   ;;  %s8285_s28 = sphi %s8358_s28, %s11960_s28   ;;  %s8281_s27 = sphi %s8356_s27, %s11959_s27  }
   0x9   : > { %s8381_s11 = sadd.s32 1, %s8293_s30   ;;  %s32_s12 = sadd.s32 1, %s8289_s29 }
   0xa   : > { %11697 = sst [smem:[#allocation12_spill]] %s8381_s11  ;;  %s29_s13 = ssub.s32 %s8293_s30, %s8381_s11 }
   0xb   : > { %p39_p0 = scmp.ne.s32.totalorder %s8289_s29, %s8285_s28  ;;  %p30_p1 = scmp.eq.s32.totalorder %s29_s13, 0 }
   0xc   : > { %p40_p2 = scmp.eq.s32.totalorder %s8293_s30, 0  ;;  %p45_p3 = scmp.ne.s32.totalorder %s8285_s28, %s8281_s27 }
   0xd   : > { %p11676_p4 = scmp.eq.s32.totalorder %s8377_s9, 0  ;;  %p216_p7 = scmp.eq.s32.totalorder %s8377_s9, 1 }
   0xe   : > { %s8393_s14 = scalar_select %p30_p1, %s8289_s29, %s32_s12  }
   0xf   : > { %p8395_p5 = por %p40_p2, %p39_p0  ;;  %p8401_p6 = por %p11676_p4, %p45_p3 }
  0x10   : > { %11698 = sst [smem:[#allocation13_spill]] %s8393_s14  ;;  %p222_p8 = scmp.eq.s32.totalorder %s6637_s10, 1 }
  0x11   : > { %s11700_s16 = scalar_select %p8401_p6, 1, 0 }
  0x12   : > { %p6638_p9 = scmp.ge.s32.totalorder %s8293_s30, 1  ;;  %p229_p10 = scmp.lt.s32.totalorder %s8293_s30, 3 }
  0x13   : > { %p8408_p11 = por %p216_p7, %p39_p0  ;;  %p8412_p12 = por %p222_p8, %p45_p3 }
  0x14   : > { %p8416_p13 = pnand %p6638_p9, %p229_p10  ;;  %s8295_s20 = smov [#allocation5]  }
  0x15   : > { %s11701_s17 = scalar_select %p8408_p11, 1, 0 }
  0x16   : > { %s11702_s18 = scalar_select %p8412_p12, 1, 0 }
  0x17   : > { %s11703_s19 = scalar_select %p8416_p13, 1, 0 }
  0x18   : > { %p7287_p1 = pneg %p8416_p13  ;;  %s247_s21 = sshll.u32 %s8295_s20, 4  ;;  %s248_s21 = int_to_ptr.vmem [resolvable:$true] %s247_s21 }
  0x19   : > { %p7304_p3 = scmp.lt.s32.totalorder %s8293_s30, 2  ;;  %s8296_s23 = smov [#allocation7]  }
  0x1a   : > { %p8424_p2 = pnand %p7287_p1, %p11676_p4  ;;  %s260_s24 = sshll.u32 %s8296_s23, 4  ;;  %s261_s24 = int_to_ptr.vmem [resolvable:$true] %s260_s24 }
  0x1b   : > { %s8156_s25 = scalar_lea.vmem %s248_s21, 16384  ;;  %p8164_p12 = scmp.lt.s32.totalorder %s248_s21, %s248_s21 }
  0x1c   : > { %p8147_p7 = pneg %p8424_p2  ;;  %p8157_p8 = scmp.ne.s32.totalorder %s248_s21, %s8156_s25 }
  0x1d   : > { %p8165_p11 = scmp.lt.s32.totalorder %s8156_s25, %s8156_s25 }
  0x1e   : > { %p8159_p9 = pnand %p8157_p8, %p8147_p7 }
  0x1f   : > { %p8166_p1 = por %p8165_p11, %p8164_p12 }
  0x20   : > { %p8160_p10 = pneg %p8159_p9 }
  0x22   : > { %p8167_p4 = pnand %p8166_p1, %p8160_p10 }
  0x24   : > { %8170 = shalt.err (!%p8167_p4)
}
  0x25   : > { %s8297_s26 = smov 256   ;;  %s8298_s10 = smov 16  }
  0x26   : > { %s11705_s3 = sld [smem:[#allocation63_spill]]  ;;  %p8446_p8 = pnand %p7304_p3, %p8395_p5 }
  0x27   : > { %s8182_s23 = scalar_lea.vmem %s261_s24, 16384  ;;  %p8190_p9 = scmp.lt.s32.totalorder %s261_s24, %s261_s24 }
  0x28   : > { %p8183_p4 = scmp.ne.s32.totalorder %s261_s24, %s8182_s23  ;;  %p8191_p10 = scmp.lt.s32.totalorder %s8182_s23, %s8182_s23 }
  0x2a   : > { %p8185_p11 = pnand %p8183_p4, %p8147_p7  ;;  %p8192_p1 = por %p8191_p10, %p8190_p9 }
  0x2c   : > { %7290 = dma.hbm_to_vmem [thread:$0]  (!%p8424_p2), %s11705_s3, 16384, %s248_s21, [#allocation6], %s8297_s26, %s8297_s26, %s8298_s10  }
  0x2d   : > { %p8186_p12 = pneg %p8185_p11 }
  0x2f   : > { %p8193_p0 = pnand %p8192_p1, %p8186_p12 }
  0x31   : > { %8196 = shalt.err (!%p8193_p0)
}
  0x32   : > { %7293 = dma.hbm_to_vmem [thread:$0]  (!%p8424_p2), %s11670_s4, 16384, %s261_s24, [#allocation6], %s8297_s26, %s8297_s26, %s8298_s10  }
  0x33   : > { %s283_s25 = sand.u32 1, %s8289_s29   ;;  %s6643_s13 = sshll.u32 %s8293_s30, 7 }
  0x34   : > { %s6642_s12 = sshll.u32 %s283_s25, 4  ;;  %s8465_s23 = scalar_lea.hbm %s11666_s0, %s6643_s13 }
  0x35   : > { %s287_s22 = scalar_lea.vmem [#allocation2], %s6642_s12  ;;  %s8469_s15 = scalar_lea.sflag [#allocation3], %s283_s25 }
  0x36   : > { %s293_s11 = sshll.u32 %s287_s22, 4  ;;  %s8197_s21 = scalar_lea.hbm %s8465_s23, 256  ;;  %s8467_s11 = int_to_ptr.vmem [resolvable:$true] %s293_s11 }
  0x37   : > { %p8198_p5 = scmp.ne.s32.totalorder %s8465_s23, %s8197_s21  ;;  %p8199_p2 = pneg %p8446_p8 }
  0x38   : > { %s8202_s3 = scalar_lea.hbm %s11666_s0, 512  ;;  %p8203_p7 = scmp.lt.s32.totalorder %s8465_s23, %s11666_s0 }
  0x39   : > { %p8200_p0 = pnand %p8199_p2, %p8198_p5  ;;  %p8204_p4 = scmp.lt.s32.totalorder %s8202_s3, %s8197_s21 }
  0x3b   : > { %p8201_p3 = pneg %p8200_p0  ;;  %p8205_p11 = por %p8204_p4, %p8203_p7 }
  0x3d   : > { %p8206_p12 = pnand %p8205_p11, %p8201_p3 }
  0x3f   : > { %8209 = shalt.err (!%p8206_p12)
}
  0x40   : > { %s8210_s25 = scalar_lea.vmem %s8467_s11, 256  ;;  %s8299_s12 = smov [#allocation2]  }
  0x41   : > { %p8211_p9 = scmp.ne.s32.totalorder %s8467_s11, %s8210_s25  ;;  %s8215_s22 = sshll.u32 %s8299_s12, 4  ;;  %s8216_s22 = int_to_ptr.vmem [resolvable:$false] %s8215_s22 }
  0x42   : > { %s8217_s24 = scalar_lea.vmem %s8216_s22, 512  ;;  %p8218_p5 = scmp.lt.s32.totalorder %s8467_s11, %s8216_s22 }
  0x43   : > { %p8213_p10 = pnand %p8211_p9, %p8199_p2  ;;  %p8219_p0 = scmp.lt.s32.totalorder %s8217_s24, %s8210_s25 }
  0x45   : > { %p8214_p1 = pneg %p8213_p10  ;;  %p8220_p6 = por %p8219_p0, %p8218_p5 }
  0x47   : > { %p8221_p13 = pnand %p8220_p6, %p8214_p1 }
  0x49   : > { %8224 = shalt.err (!%p8221_p13)
}
  0x4a   : > { %s8300_s21 = smov 128   ;;  %s8301_s10 = smov 8  }
  0x4b   : > { %7297 = dma.hbm_to_vmem [thread:$0]  (!%p8446_p8), %s8465_s23, 256, %s8467_s11, %s8469_s15, %s8297_s26, %s8300_s21, %s8301_s10  }
  0x4c   : > { %p11707_p2 = scmp.ne.s32.totalorder %s11703_s19, 0 }
  0x4e   : > { %305 = sbr.rel (%p11707_p2) target bundleno = 2256 (0x8d0), region = 52 }
  0x53   : > { %s8494_s3 = sand.u32 1, %s8285_s28   ;;  %p11708_p6 = scmp.ne.s32.totalorder %s11700_s16, 0 }
  0x54   : > { %s6645_s14 = sshll.u32 %s8494_s3, 4  ;;  %s308_s13 = scalar_lea.sflag [#allocation3], %s8494_s3 }
  0x55   : > { %s311_s25 = scalar_lea.vmem [#allocation2], %s6645_s14 }
  0x56   : > { %8268 = dma.done.wait (%p11708_p6), %s308_s13, 256  }
  0x57   : > { %8270 = vsyncadd (%p11708_p6), %s308_s13, 4294967040  ;;  %p11709_p13 = scmp.eq.s32.totalorder %s8377_s9, 0 }
  0x59   : > { %8272 = dma.done.wait (%p11709_p13), [#allocation6], 32768   ;;  %p11710_p8 = pmov %p11709_p13 }
  0x5a   : > { %v11681_v0 = vmov 0   ;;  %v352_v1 = vld [vmem:[%s311_s25] sm:$0xff]  ;;  %v353_v2 = vld [vmem:[%s311_s25 + $0x8] sm:$0xff]  ;;  %vm659_vm0 = vcmask 130048   ;;  %v8303_v52 = vmov 1   ;;  %s7081_s22 = sshll.u32 %s8377_s9, 4 }
  0x5b   : > { %8274 = vsyncadd (%p11710_p8), [#allocation6], 4294934528  ;;  %7354 = vset.pattern.permute.xlu0 %v11681_v0  ;;  %7355 = vset.pattern.permute.xlu1 %v11681_v0  ;;  %v386_v3 = vpack.c.bf16 %v353_v2, %v352_v1  ;;  %v7365_v4 = vld [vmem:[%s11667_s1] sm:$0xff]   ;;  %v7366_v5 = vld [vmem:[%s11667_s1 + $0x8] sm:$0xff]   ;;  %s350_s24 = scalar_lea.vmem [#allocation8], %s8494_s3  ;;  %s11629_s13 = scalar_lea.hbm %s11674_s8, %s7081_s22 }
  0x5c   : > { %7243 = vmatprep.subr.bf16.mxu1 %v11681_v0  ;;  %7192 = vmatprep.mubr.msk.bf16.mxu0 %vm659_vm0, %v7365_v4  ;;  %v7367_v6 = vld [vmem:[%s11667_s1 + $0x10] sm:$0xff]   ;;  %v7368_v7 = vld [vmem:[%s11667_s1 + $0x18] sm:$0xff]   ;;  %v7369_v9 = vld [vmem:[%s11667_s1 + $0x20] sm:$0xff]   ;;  %s6552_s21 = sshll.u32 %s350_s24, 4  ;;  %s6540_s25 = scalar_lea.sflag [#allocation4], %s8494_s3  ;;  %s6553_s21 = int_to_ptr.vmem [resolvable:$true] %s6552_s21 }
  0x5d   : > { %7190 = vmatprep.subr.bf16.mxu0 %v386_v3  ;;  %v8528_v8 = vld [vmem:[%s11673_s7 + $0x70] sm:$0xff]  ;;  %v8537_v10 = vld [vmem:[%s11673_s7 + $0x60] sm:$0xff]  ;;  %v8542_v11 = vld [vmem:[%s11673_s7 + $0x78] sm:$0xff]  ;;  %s8225_s11 = scalar_lea.vmem %s6553_s21, 16  ;;  %p11954_p7 = scmp.ne.s32.totalorder %s11701_s17, 0 }
  0x5e   : > { %7191 = vmatpush3.bf16.msra.mxu0 %v386_v3  ;;  %491 = vperm.xlu0 %7354, %v8528_v8   ;;  %v8548_v12 = vld [vmem:[%s11673_s7 + $0x68] sm:$0xff]  ;;  %v8557_v13 = vld [vmem:[%s11673_s7 + $0x50] sm:$0xff]  ;;  %v8562_v14 = vld [vmem:[%s11673_s7 + $0x58] sm:$0xff]  ;;  %p8226_p3 = scmp.ne.s32.totalorder %s6553_s21, %s8225_s11  ;;  %s8310_s16 = smov [#allocation8]  }
  0x5f   : > { %1749 = vmatprep.subr.bf16.mxu0 %v11681_v0  ;;  %481 = vperm.xlu1 %7355, %v8537_v10   ;;  %v7370_v15 = vld [vmem:[%s11667_s1 + $0x28] sm:$0xff]   ;;  %v7371_v16 = vld [vmem:[%s11667_s1 + $0x30] sm:$0xff]   ;;  %v8575_v17 = vld [vmem:[%s11673_s7 + $0x40] sm:$0xff]  ;;  %s8229_s19 = sshll.u32 %s8310_s16, 4  ;;  %s8230_s19 = int_to_ptr.vmem [resolvable:$false] %s8229_s19 }
  0x60   : > { %v8580_v18 = vld [vmem:[%s11673_s7 + $0x48] sm:$0xff]  ;;  %v8589_v19 = vld [vmem:[%s11673_s7 + $0x30] sm:$0xff]  ;;  %v8594_v20 = vld [vmem:[%s11673_s7 + $0x38] sm:$0xff]  ;;  %p8227_p4 = pnand %p8226_p3, %p11954_p7  ;;  %s8231_s9 = scalar_lea.vmem %s8230_s19, 32 }
  0x61   : > { %7193 = vmatmul.mubr.msk.bf16.vlgmr.msra.gmra.mxu0 %vm659_vm0, %v7366_v5  ;;  %v7372_v21 = vld [vmem:[%s11667_s1 + $0x38] sm:$0xff]   ;;  %v7373_v22 = vld [vmem:[%s11667_s1 + $0x40] sm:$0xff]   ;;  %v8611_v24 = vld [vmem:[%s11673_s7 + $0x28] sm:$0xff]  ;;  %p8232_p12 = scmp.lt.s32.totalorder %s6553_s21, %s8230_s19  ;;  %p8233_p9 = scmp.lt.s32.totalorder %s8231_s9, %s8225_s11 }
  0x62   : > { %7196 = vmatprep.mubr.msk.bf16.mxu0 %vm659_vm0, %v7367_v6  ;;  %496 = vperm.xlu0 %7354, %v8542_v11   ;;  %v8605_v23 = vld [vmem:[%s11673_s7 + $0x20] sm:$0xff]  ;;  %v8617_v25 = vld [vmem:[%s11673_s7 + $0x10] sm:$0xff]  ;;  %v8624_v26 = vld [vmem:[%s11673_s7 + $0x18] sm:$0xff]  ;;  %p8228_p11 = pneg %p8227_p4 }
  0x63   : > { %486 = vperm.xlu1 %7355, %v8548_v12   ;;  %v7374_v27 = vld [vmem:[%s11667_s1 + $0x48] sm:$0xff]   ;;  %v7375_v28 = vld [vmem:[%s11667_s1 + $0x50] sm:$0xff]   ;;  %v8637_v29 = vld [vmem:[%s11673_s7] sm:$0xff]  ;;  %p8234_p10 = por %p8233_p9, %p8232_p12 }
  0x64   : > { %v8643_v30 = vld [vmem:[%s11673_s7 + $0x8] sm:$0xff]  ;;  %v8649_v31 = vld [vmem:[%s11673_s7 + $0xf0] sm:$0xff]  ;;  %v8656_v32 = vld [vmem:[%s11673_s7 + $0xf8] sm:$0xff] }
  0x65   : > { %v7376_v33 = vld [vmem:[%s11667_s1 + $0x58] sm:$0xff]   ;;  %v7377_v34 = vld [vmem:[%s11667_s1 + $0x60] sm:$0xff]   ;;  %v8675_v36 = vld [vmem:[%s11673_s7 + $0xe8] sm:$0xff]  ;;  %p8235_p1 = pnand %p8234_p10, %p8228_p11 }
  0x66   : > { %471 = vperm.xlu0 %7354, %v8557_v13   ;;  %v8669_v35 = vld [vmem:[%s11673_s7 + $0xe0] sm:$0xff]  ;;  %v8681_v37 = vld [vmem:[%s11673_s7 + $0xd0] sm:$0xff]  ;;  %v8688_v38 = vld [vmem:[%s11673_s7 + $0xd8] sm:$0xff] }
  0x67   : > { %476 = vperm.xlu1 %7355, %v8562_v14   ;;  %v7378_v39 = vld [vmem:[%s11667_s1 + $0x68] sm:$0xff]   ;;  %v7379_v40 = vld [vmem:[%s11667_s1 + $0x70] sm:$0xff]   ;;  %v8701_v41 = vld [vmem:[%s11673_s7 + $0xc0] sm:$0xff] }
  0x68   : > { %v8707_v42 = vld [vmem:[%s11673_s7 + $0xc8] sm:$0xff]  ;;  %v8713_v43 = vld [vmem:[%s11673_s7 + $0xb0] sm:$0xff]  ;;  %v8720_v44 = vld [vmem:[%s11673_s7 + $0xb8] sm:$0xff] }
  0x69   : > { %7197 = vmatmul.mubr.msk.bf16.gmra.mxu0 %vm659_vm0, %v7368_v7  ;;  %v7380_v45 = vld [vmem:[%s11667_s1 + $0x78] sm:$0xff]   ;;  %v407_v46 = vld [vmem:[%s11673_s7 + $0xa0] sm:$0xff]  ;;  %v408_v47 = vld [vmem:[%s11673_s7 + $0xa8] sm:$0xff] }
  0x6a   : > { %7200 = vmatprep.mubr.msk.bf16.mxu0 %vm659_vm0, %v7369_v9  ;;  %461 = vperm.xlu0 %7354, %v8575_v17   ;;  %v405_v48 = vld [vmem:[%s11673_s7 + $0x90] sm:$0xff]  ;;  %v406_v49 = vld [vmem:[%s11673_s7 + $0x98] sm:$0xff]  ;;  %v403_v50 = vld [vmem:[%s11673_s7 + $0x80] sm:$0xff] }
  0x6b   : > { %466 = vperm.xlu1 %7355, %v8580_v18   ;;  %v404_v51 = vld [vmem:[%s11673_s7 + $0x88] sm:$0xff]  ;;  %v1091_v53 = vld [vmem:[%s11673_s7 + $0x170] sm:$0xff]  ;;  %v1092_v54 = vld [vmem:[%s11673_s7 + $0x178] sm:$0xff] }
  0x6c   : > { %v1089_v55 = vld [vmem:[%s11673_s7 + $0x160] sm:$0xff]  ;;  %v1090_v56 = vld [vmem:[%s11673_s7 + $0x168] sm:$0xff]  ;;  %v1087_v57 = vld [vmem:[%s11673_s7 + $0x150] sm:$0xff] }
  0x6d   : > { %v1088_v58 = vld [vmem:[%s11673_s7 + $0x158] sm:$0xff]  ;;  %v7383_v59 = vld [vmem:[%s11668_s2 + $0x4] ss:$8 sps:$4 sm:$0xff]   ;;  %v1083_v63 = vld [vmem:[%s11673_s7 + $0x130] sm:$0xff] }
  0x6e   : > { %451 = vperm.xlu0 %7354, %v8589_v19   ;;  %v7386_v60 = vld [vmem:[%s11668_s2 + $0xb4] ss:$8 sps:$4 sm:$0xff]   ;;  %v1085_v61 = vld [vmem:[%s11673_s7 + $0x140] sm:$0xff]  ;;  %v1086_v62 = vld [vmem:[%s11673_s7 + $0x148] sm:$0xff] }
  0x6f   : > { %456 = vperm.xlu1 %7355, %v8594_v20   ;;  %1869 = vmatprep.mubr.bf16.mxu1 %v7386_v60  ;;  %v1084_v1 = vld [vmem:[%s11673_s7 + $0x138] sm:$0xff]  ;;  %v1081_v2 = vld [vmem:[%s11673_s7 + $0x120] sm:$0xff]  ;;  %v1082_v3 = vld [vmem:[%s11673_s7 + $0x128] sm:$0xff] }
  0x70   : > { %v1079_v6 = vld [vmem:[%s11673_s7 + $0x110] sm:$0xff]  ;;  %v1080_v7 = vld [vmem:[%s11673_s7 + $0x118] sm:$0xff] }
  0x71   : > { %7201 = vmatmul.mubr.msk.bf16.gmra.mxu0 %vm659_vm0, %v7370_v15 }
  0x72   : > { %7204 = vmatprep.mubr.msk.bf16.mxu0 %vm659_vm0, %v7371_v16  ;;  %441 = vperm.xlu0 %7354, %v8605_v23  }
  0x73   : > { %446 = vperm.xlu1 %7355, %v8611_v24  }
  0x76   : > { %431 = vperm.xlu0 %7354, %v8617_v25  }
  0x77   : > { %436 = vperm.xlu1 %7355, %v8624_v26  }
  0x79   : > { %7205 = vmatmul.mubr.msk.bf16.gmra.mxu0 %vm659_vm0, %v7372_v21  ;;  %v1107_v21 = vld [vmem:[%s11673_s7 + $0x1f0] sm:$0xff] }
  0x7a   : > { %7208 = vmatprep.mubr.msk.bf16.mxu0 %vm659_vm0, %v7373_v22  ;;  %421 = vperm.xlu0 %7354, %v8637_v29   ;;  %v1108_v22 = vld [vmem:[%s11673_s7 + $0x1f8] sm:$0xff] }
  0x7b   : > { %426 = vperm.xlu1 %7355, %v8643_v30  }
  0x7e   : > { %571 = vperm.xlu0 %7354, %v8649_v31  }
  0x7f   : > { %576 = vperm.xlu1 %7355, %v8656_v32  }
  0x81   : > { %7209 = vmatmul.mubr.msk.bf16.gmra.mxu0 %vm659_vm0, %v7374_v27 }
  0x82   : > { %7212 = vmatprep.mubr.msk.bf16.mxu0 %vm659_vm0, %v7375_v28  ;;  %561 = vperm.xlu0 %7354, %v8669_v35  }
  0x83   : > { %566 = vperm.xlu1 %7355, %v8675_v36  }
  0x86   : > { %551 = vperm.xlu0 %7354, %v8681_v37  }
  0x87   : > { %556 = vperm.xlu1 %7355, %v8688_v38  }
  0x89   : > { %7213 = vmatmul.mubr.msk.bf16.gmra.mxu0 %vm659_vm0, %v7376_v33 }
  0x8a   : > { %7216 = vmatprep.mubr.msk.bf16.mxu0 %vm659_vm0, %v7377_v34  ;;  %541 = vperm.xlu0 %7354, %v8701_v41  }
  0x8b   : > { %546 = vperm.xlu1 %7355, %v8707_v42  }
  0x8e   : > { %531 = vperm.xlu0 %7354, %v8713_v43  }
  0x8f   : > { %536 = vperm.xlu1 %7355, %v8720_v44  }
  0x91   : > { %7217 = vmatmul.mubr.msk.bf16.gmra.mxu0 %vm659_vm0, %v7378_v39 }
  0x92   : > { %7220 = vmatprep.mubr.msk.bf16.mxu0 %vm659_vm0, %v7379_v40  ;;  %521 = vperm.xlu0 %7354, %v407_v46   ;;  %v1104_v46 = vld [vmem:[%s11673_s7 + $0x1d8] sm:$0xff] }
  0x93   : > { %526 = vperm.xlu1 %7355, %v408_v47  }
  0x96   : > { %511 = vperm.xlu0 %7354, %v405_v48  }
  0x97   : > { %516 = vperm.xlu1 %7355, %v406_v49  }
  0x99   : > { %7221 = vmatmul.mubr.msk.bf16.gmra.mxu0 %vm659_vm0, %v7380_v45  ;;  %v1103_v45 = vld [vmem:[%s11673_s7 + $0x1d0] sm:$0xff] }
  0x9a   : > { %501 = vperm.xlu0 %7354, %v403_v50   ;;  %1781 = vmatprep.mubr.bf16.mxu0 %v7383_v59 }
  0x9b   : > { %506 = vperm.xlu1 %7355, %v404_v51  }
  0x9e   : > { %7356 = vset.pattern.permute.xlu0 %v8303_v52 }
  0x9f   : > { %7357 = vset.pattern.permute.xlu1 %v8303_v52  ;;  %1181 = vperm.xlu0 %7356, %v8528_v8  }
  0xa0   : > { %1186 = vperm.xlu1 %7357, %v8542_v11  }
  0xa3   : > { %1346 = vperm.xlu0 %7356, %v1092_v54  }
  0xa4   : > { %1341 = vperm.xlu1 %7357, %v1091_v53  }
  0xa7   : > { %1176 = vperm.xlu0 %7356, %v8548_v12   ;;  %v1077_v12 = vld [vmem:[%s11673_s7 + $0x100] sm:$0xff] }
  0xa8   : > { %1171 = vperm.xlu1 %7357, %v8537_v10  }
  0xab   : > { %1336 = vperm.xlu0 %7356, %v1090_v56  }
  0xac   : > { %1331 = vperm.xlu1 %7357, %v1089_v55  }
  0xaf   : > { %1166 = vperm.xlu0 %7356, %v8562_v14  }
  0xb0   : > { %1161 = vperm.xlu1 %7357, %v8557_v13   ;;  %v1078_v13 = vld [vmem:[%s11673_s7 + $0x108] sm:$0xff] }
  0xb3   : > { %1326 = vperm.xlu0 %7356, %v1088_v58  }
  0xb4   : > { %1321 = vperm.xlu1 %7357, %v1087_v57  }
  0xb7   : > { %1156 = vperm.xlu0 %7356, %v8580_v18  }
  0xb8   : > { %1151 = vperm.xlu1 %7357, %v8575_v17  }
  0xbb   : > { %1316 = vperm.xlu0 %7356, %v1086_v62  }
  0xbc   : > { %1311 = vperm.xlu1 %7357, %v1085_v61  }
  0xbf   : > { %1146 = vperm.xlu0 %7356, %v8594_v20  }
  0xc0   : > { %1141 = vperm.xlu1 %7357, %v8589_v19  }
  0xc3   : > { %1306 = vperm.xlu0 %7356, %v1084_v1  }
  0xc4   : > { %1301 = vperm.xlu1 %7357, %v1083_v63  }
  0xc7   : > { %1136 = vperm.xlu0 %7356, %v8611_v24  }
  0xc8   : > { %1131 = vperm.xlu1 %7357, %v8605_v23  }
  0xcb   : > { %1296 = vperm.xlu0 %7356, %v1082_v3  }
  0xcc   : > { %1291 = vperm.xlu1 %7357, %v1081_v2  }
  0xcf   : > { %1126 = vperm.xlu0 %7356, %v8624_v26  }
  0xd0   : > { %1121 = vperm.xlu1 %7357, %v8617_v25  }
  0xd3   : > { %1286 = vperm.xlu0 %7356, %v1080_v7  }
  0xd4   : > { %1281 = vperm.xlu1 %7357, %v1079_v6  }
  0xd7   : > { %1116 = vperm.xlu0 %7356, %v8643_v30   ;;  %v1105_v30 = vld [vmem:[%s11673_s7 + $0x1e0] sm:$0xff] }
  0xd8   : > { %1111 = vperm.xlu1 %7357, %v8637_v29  }
  0xd9   : > { %v492_v5 = vpop.permute.xlu0 %491 }
  0xda   : > { %v482_v4 = vpop.permute.xlu1 %481 }
  0xdb   : > { %1276 = vperm.xlu0 %7356, %v1078_v13  }
  0xdc   : > { %1271 = vperm.xlu1 %7357, %v1077_v12  }
  0xdd   : > { %v497_v9 = vpop.permute.xlu0 %496 }
  0xde   : > { %v487_v8 = vpop.permute.xlu1 %486 }
  0xdf   : > { %1266 = vperm.xlu0 %7356, %v8656_v32  }
  0xe0   : > { %1261 = vperm.xlu1 %7357, %v8649_v31   ;;  %v1106_v31 = vld [vmem:[%s11673_s7 + $0x1e8] sm:$0xff] }
  0xe1   : > { %v472_v16 = vpop.permute.xlu0 %471 }
  0xe2   : > { %v477_v14 = vpop.permute.xlu1 %476 }
  0xe3   : > { %1426 = vperm.xlu0 %7356, %v1108_v22  }
  0xe4   : > { %1421 = vperm.xlu1 %7357, %v1107_v21  }
  0xe5   : > { %v8838_v23 = vpop.permute.xlu0 %461 }
  0xe6   : > { %v467_v19 = vpop.permute.xlu1 %466 }
  0xe7   : > { %1256 = vperm.xlu0 %7356, %v8675_v36  }
  0xe8   : > { %1251 = vperm.xlu1 %7357, %v8669_v35  }
  0xe9   : > { %v8847_v28 = vpop.permute.xlu0 %451 }
  0xea   : > { %v8844_v26 = vpop.permute.xlu1 %456 }
  0xeb   : > { %1416 = vperm.xlu0 %7356, %v1106_v31  }
  0xec   : > { %1411 = vperm.xlu1 %7357, %v1105_v30  }
  0xed   : > { %v8858_v35 = vpop.permute.xlu0 %441 }
  0xee   : > { %v8856_v33 = vpop.permute.xlu1 %446 }
  0xef   : > { %1246 = vperm.xlu0 %7356, %v8688_v38  }
  0xf0   : > { %1241 = vperm.xlu1 %7357, %v8681_v37  }
  0xf1   : > { %v8870_v51 = vpop.permute.xlu0 %431 }
  0xf2   : > { %v8868_v47 = vpop.permute.xlu1 %436 }
  0xf3   : > { %1406 = vperm.xlu0 %7356, %v1104_v46  }
  0xf4   : > { %1401 = vperm.xlu1 %7357, %v1103_v45  }
  0xf6   : > { %v8875_v61 = vpop.permute.xlu1 %426 }
  0xf7   : > { %1236 = vperm.xlu0 %7356, %v8707_v42  }
  0xf8   : > { %1231 = vperm.xlu1 %7357, %v8701_v41   ;;  %v1102_v41 = vld [vmem:[%s11673_s7 + $0x1c8] sm:$0xff] }
  0xfb   : > { %1396 = vperm.xlu0 %7356, %v1102_v41  }
  0xff   : > { %1226 = vperm.xlu0 %7356, %v8720_v44  }
 0x121   : > { %v8810_v10 = vpop.f32.mrf.mxu0 }
 0x123   : > { %v8813_v11 = vpop.f32.mrf.mxu0 }
 0x125   : > { %v8822_v15 = vpop.f32.mrf.mxu0 }
 0x127   : > { %v8824_v17 = vpop.f32.mrf.mxu0 }
 0x129   : > { %v8826_v18 = vpop.f32.mrf.mxu0 }
 0x12a   : > { %v767_v22 = vadd.f32 %v8826_v18, %v8847_v28 }
 0x12b   : > { %v8829_v20 = vpop.f32.mrf.mxu0 }
 0x12c   : > { %vm875_vm10 = vcmp.gt.f32.partialorder %v767_v22, 0.0 }
 0x12d   : > { %v8840_v24 = vpop.f32.mrf.mxu0 }
 0x12e   : > { %v770_v13 = vadd.f32 %v8840_v24, %v8844_v26 }
 0x12f   : > { %v8842_v25 = vpop.f32.mrf.mxu0 }
 0x130   : > { %v908_v30 = vmul.f32 0.01, %v770_v13  ;;  %v762_v18 = vadd.f32 %v8842_v25, %v8856_v33  ;;  %vm876_vm9 = vcmp.gt.f32.partialorder %v770_v13, 0.0  ;;  %v754_v33 = vadd.f32 %v8822_v15, %v8868_v47 }
 0x131   : > { %v7202_v27 = vpop.f32.mrf.mxu0  ;;  %v746_v47 = vadd.f32 %v8824_v17, %v8875_v61 }
 0x132   : > { %v783_v55 = vadd.f32 %v7202_v27, %v472_v16  ;;  %vm874_vm11 = vcmp.gt.f32.partialorder %v762_v18, 0.0  ;;  %v904_v15 = vmul.f32 0.01, %v754_v33  ;;  %vm872_vm13 = vcmp.gt.f32.partialorder %v754_v33, 0.0 }
 0x133   : > { %v774_v29 = vpop.f32.mrf.mxu0  ;;  %vm870_vm15 = vcmp.gt.f32.partialorder %v746_v47, 0.0 }
 0x134   : > { %v911_v7 = vmul.f32 0.01, %v783_v55  ;;  %v775_v42 = vadd.f32 %v774_v29, %v8838_v23  ;;  %vm879_vm6 = vcmp.gt.f32.partialorder %v783_v55, 0.0  ;;  %v936_v17 = vsel %vm872_vm13, %v754_v33, %v904_v15 }
 0x135   : > { %v7203_v32 = vpop.f32.mrf.mxu0 }
 0x136   : > { %v786_v38 = vadd.f32 %v7203_v32, %v477_v14  ;;  %v943_v23 = vsel %vm879_vm6, %v783_v55, %v911_v7  ;;  %v909_v27 = vmul.f32 0.01, %v775_v42  ;;  %vm877_vm8 = vcmp.gt.f32.partialorder %v775_v42, 0.0 }
 0x137   : > { %v777_v34 = vpop.f32.mrf.mxu0  ;;  %v907_v32 = vmul.f32 0.01, %v767_v22 }
 0x138   : > { %v912_v1 = vmul.f32 0.01, %v786_v38  ;;  %v778_v2 = vadd.f32 %v777_v34, %v467_v19  ;;  %vm880_vm5 = vcmp.gt.f32.partialorder %v786_v38, 0.0  ;;  %v8898_v19 = vpop.permute.xlu1 %576  ;;  %v759_v34 = vadd.f32 %v8829_v20, %v8858_v35 }
 0x139   : > { %v7206_v39 = vpop.f32.mrf.mxu0  ;;  %v751_v20 = vadd.f32 %v8810_v10, %v8870_v51  ;;  %v939_v35 = vsel %vm875_vm10, %v767_v22, %v907_v32 }
 0x13a   : > { %v799_v36 = vadd.f32 %v7206_v39, %v492_v5  ;;  %v8886_v5 = vpop.permute.xlu0 %421  ;;  %v944_v14 = vsel %vm880_vm5, %v786_v38, %v912_v1  ;;  %v910_v16 = vmul.f32 0.01, %v778_v2  ;;  %vm878_vm7 = vcmp.gt.f32.partialorder %v778_v2, 0.0 }
 0x13b   : > { %v790_v40 = vpop.f32.mrf.mxu0  ;;  %v1034_v24 = vpack.c.bf16 %v944_v14, %v943_v23  ;;  %v941_v39 = vsel %vm877_vm8, %v775_v42, %v909_v27  ;;  %vm873_vm12 = vcmp.gt.f32.partialorder %v759_v34, 0.0  ;;  %v903_v10 = vmul.f32 0.01, %v751_v20 }
 0x13c   : > { %v915_v48 = vmul.f32 0.01, %v799_v36  ;;  %vm883_vm1 = vcmp.gt.f32.partialorder %v799_v36, 0.0  ;;  %v791_v50 = vadd.f32 %v790_v40, %v482_v4  ;;  %v1101_v4 = vld [vmem:[%s11673_s7 + $0x1c0] sm:$0xff]  ;;  %v942_v28 = vsel %vm878_vm7, %v778_v2, %v910_v16 }
 0x13d   : > { %v7207_v49 = vpop.f32.mrf.mxu0  ;;  %1391 = vperm.xlu1 %7357, %v1101_v4   ;;  %v1033_v44 = vpack.c.bf16 %v942_v28, %v941_v39  ;;  %v906_v40 = vmul.f32 0.01, %v762_v18  ;;  %v743_v51 = vadd.f32 %v8813_v11, %v8886_v5  ;;  %vm871_vm14 = vcmp.gt.f32.partialorder %v751_v20, 0.0 }
 0x13e   : > { %v802_v37 = vadd.f32 %v7207_v49, %v497_v9  ;;  %v947_v56 = vsel %vm883_vm1, %v799_v36, %v915_v48  ;;  %v913_v58 = vmul.f32 0.01, %v791_v50  ;;  %vm881_vm4 = vcmp.gt.f32.partialorder %v791_v50, 0.0  ;;  %v8906_v29 = vpop.permute.xlu0 %571 }
 0x13f   : > { %v793_v52 = vpop.f32.mrf.mxu0  ;;  %v940_v36 = vsel %vm876_vm9, %v770_v13, %v908_v30  ;;  %v905_v48 = vmul.f32 0.01, %v759_v34  ;;  %v901_v61 = vmul.f32 0.01, %v743_v51  ;;  %vm869_vm0 = vcmp.gt.f32.partialorder %v743_v51, 0.0 }
 0x140   : > { %vm884_vm2 = vcmp.gt.f32.partialorder %v802_v37, 0.0  ;;  %v916_v53 = vmul.f32 0.01, %v802_v37  ;;  %v794_v54 = vadd.f32 %v793_v52, %v487_v8  ;;  %v945_v8 = vsel %vm881_vm4, %v791_v50, %v913_v58 }
 0x141   : > { %v8872_v57 = vpop.f32.mrf.mxu0  ;;  %1221 = vperm.xlu1 %7357, %v8713_v43   ;;  %v8921_v43 = vpop.permute.xlu1 %566  ;;  %v1032_v49 = vpack.c.bf16 %v940_v36, %v939_v35  ;;  %v902_v58 = vmul.f32 0.01, %v746_v47  ;;  %v933_v7 = vsel %vm869_vm0, %v743_v51, %v901_v61 }
 0x142   : > { %v948_v59 = vsel %vm884_vm2, %v802_v37, %v916_v53  ;;  %vm882_vm3 = vcmp.gt.f32.partialorder %v794_v54, 0.0  ;;  %v914_v60 = vmul.f32 0.01, %v794_v54  ;;  %v562_v45 = vpop.permute.xlu0 %561  ;;  %v938_v37 = vsel %vm874_vm11, %v762_v18, %v906_v40 }
 0x143   : > { %v1036_v62 = vpack.c.bf16 %v948_v59, %v947_v56  ;;  %v8877_v63 = vpop.f32.mrf.mxu0  ;;  %v937_v53 = vsel %vm873_vm12, %v759_v34, %v905_v48 }
 0x144   : > { %v946_v3 = vsel %vm882_vm3, %v794_v54, %v914_v60  ;;  %v1031_v55 = vpack.c.bf16 %v938_v37, %v937_v53  ;;  %v935_v60 = vsel %vm871_vm14, %v751_v20, %v903_v10 }
 0x145   : > { %v8888_v6 = vpop.f32.mrf.mxu0  ;;  %1750 = vmatpush1.bf16.msra.mxu0 %v1036_v62  ;;  %7259 = vmatpush1.bf16.msra.mxu1 %v1036_v62  ;;  %v1035_v9 = vpack.c.bf16 %v946_v3, %v945_v8  ;;  %v557_v52 = vpop.permute.xlu1 %556  ;;  %v1030_v11 = vpack.c.bf16 %v936_v17, %v935_v60  ;;  %v934_v3 = vsel %vm870_vm15, %v746_v47, %v902_v58 }
 0x146   : > { %1751 = vmatprep.subr.bf16.mxu0 %v11681_v0  ;;  %7244 = vmatprep.subr.bf16.mxu1 %v11681_v0  ;;  %v552_v54 = vpop.permute.xlu0 %551 }
 0x147   : > { %v8894_v12 = vpop.f32.mrf.mxu0 }
 0x149   : > { %v8900_v21 = vpop.f32.mrf.mxu0  ;;  %1752 = vmatpush1.bf16.msra.mxu0 %v1035_v9  ;;  %7260 = vmatpush1.bf16.msra.mxu1 %v1035_v9  ;;  %v547_v1 = vpop.permute.xlu1 %546  ;;  %v1029_v9 = vpack.c.bf16 %v934_v3, %v933_v7  ;;  %v1066_v7 = vld [vmem:[%s11673_s7 + $0xa8] sm:$0xff] }
 0x14a   : > { %1753 = vmatprep.subr.bf16.mxu0 %v11681_v0  ;;  %7245 = vmatprep.subr.bf16.mxu1 %v11681_v0  ;;  %v542_v4 = vpop.permute.xlu0 %541 }
 0x14b   : > { %v8908_v26 = vpop.f32.mrf.mxu0 }
 0x14d   : > { %v8915_v31 = vpop.f32.mrf.mxu0  ;;  %1754 = vmatpush1.bf16.msra.mxu0 %v1034_v24  ;;  %7261 = vmatpush1.bf16.msra.mxu1 %v1034_v24  ;;  %v537_v23 = vpop.permute.xlu1 %536 }
 0x14e   : > { %1755 = vmatprep.subr.bf16.mxu0 %v11681_v0  ;;  %7246 = vmatprep.subr.bf16.mxu1 %v11681_v0  ;;  %v532_v18 = vpop.permute.xlu0 %531 }
 0x14f   : > { %v8923_v25 = vpop.f32.mrf.mxu0  ;;  %v831_v48 = vadd.f32 %v8900_v21, %v532_v18  ;;  %v1095_v18 = vld [vmem:[%s11673_s7 + $0x190] sm:$0xff] }
 0x151   : > { %v7218_v46 = vpop.f32.mrf.mxu0  ;;  %1756 = vmatpush1.bf16.msra.mxu0 %v1033_v44  ;;  %7262 = vmatpush1.bf16.msra.mxu1 %v1033_v44  ;;  %v527_v36 = vpop.permute.xlu1 %526  ;;  %vm891_vm10 = vcmp.gt.f32.partialorder %v831_v48, 0.0 }
 0x152   : > { %1757 = vmatprep.subr.bf16.mxu0 %v11681_v0  ;;  %7247 = vmatprep.subr.bf16.mxu1 %v11681_v0  ;;  %v847_v27 = vadd.f32 %v7218_v46, %v552_v54  ;;  %v522_v35 = vpop.permute.xlu0 %521  ;;  %v826_v37 = vadd.f32 %v8923_v25, %v527_v36  ;;  %v1093_v36 = vld [vmem:[%s11673_s7 + $0x180] sm:$0xff] }
 0x153   : > { %v8931_v50 = vpop.f32.mrf.mxu0  ;;  %v823_v10 = vadd.f32 %v8908_v26, %v522_v35  ;;  %v7401_v35 = vld [vmem:[%s11668_s2 + $0xe4] ss:$8 sps:$4 sm:$0xff]  }
 0x154   : > { %v839_v44 = vadd.f32 %v8931_v50, %v542_v4  ;;  %vm895_vm6 = vcmp.gt.f32.partialorder %v847_v27, 0.0  ;;  %v922_v25 = vmul.f32 0.01, %v826_v37  ;;  %vm890_vm11 = vcmp.gt.f32.partialorder %v826_v37, 0.0 }
 0x155   : > { %v7219_v38 = vpop.f32.mrf.mxu0  ;;  %1758 = vmatpush1.bf16.msra.mxu0 %v1032_v49  ;;  %7263 = vmatpush1.bf16.msra.mxu1 %v1032_v49  ;;  %v921_v58 = vmul.f32 0.01, %v823_v10  ;;  %vm889_vm12 = vcmp.gt.f32.partialorder %v823_v10, 0.0 }
 0x156   : > { %1759 = vmatprep.subr.bf16.mxu0 %v11681_v0  ;;  %7248 = vmatprep.subr.bf16.mxu1 %v11681_v0  ;;  %v850_v14 = vadd.f32 %v7219_v38, %v557_v52  ;;  %v925_v50 = vmul.f32 0.01, %v839_v44  ;;  %vm893_vm8 = vcmp.gt.f32.partialorder %v839_v44, 0.0  ;;  %v517_v52 = vpop.permute.xlu1 %516  ;;  %v923_v38 = vmul.f32 0.01, %v831_v48  ;;  %v512_v51 = vpop.permute.xlu0 %511 }
 0x157   : > { %v841_v56 = vpop.f32.mrf.mxu0  ;;  %v818_v54 = vadd.f32 %v8888_v6, %v517_v52  ;;  %v954_v6 = vsel %vm890_vm11, %v826_v37, %v922_v25  ;;  %v953_v3 = vsel %vm889_vm12, %v823_v10, %v921_v58  ;;  %v7410_v37 = vld [vmem:[%s11668_s2 + $0xf0] ss:$8 sps:$4 sm:$0xff]   ;;  %v7413_v52 = vld [vmem:[%s11668_s2 + $0x104] ss:$8 sps:$4 sm:$0xff]   ;;  %v7416_v10 = vld [vmem:[%s11668_s2 + $0x100] ss:$8 sps:$4 sm:$0xff]  }
 0x158   : > { %v928_v32 = vmul.f32 0.01, %v850_v14  ;;  %v842_v34 = vadd.f32 %v841_v56, %v547_v1  ;;  %vm896_vm5 = vcmp.gt.f32.partialorder %v850_v14, 0.0  ;;  %v957_v21 = vsel %vm893_vm8, %v839_v44, %v925_v50  ;;  %v7393_v44 = vld [vmem:[%s11668_s2 + $0x24] ss:$8 sps:$4 sm:$0xff]  }
 0x159   : > { %v7222_v59 = vpop.f32.mrf.mxu0  ;;  %1760 = vmatpush1.bf16.msra.mxu0 %v1031_v55  ;;  %7264 = vmatpush1.bf16.msra.mxu1 %v1031_v55  ;;  %v815_v56 = vadd.f32 %v8872_v57, %v512_v51  ;;  %v955_v17 = vsel %vm891_vm10, %v831_v48, %v923_v38  ;;  %v920_v60 = vmul.f32 0.01, %v818_v54  ;;  %v1100_v57 = vld [vmem:[%s11673_s7 + $0x1b8] sm:$0xff]  ;;  %vm888_vm13 = vcmp.gt.f32.partialorder %v818_v54, 0.0  ;;  %v7405_v50 = vld [vmem:[%s11668_s2 + $0x44] ss:$8 sps:$4 sm:$0xff]  }
 0x15a   : > { %v863_v62 = vadd.f32 %v7222_v59, %v8906_v29  ;;  %1761 = vmatprep.subr.bf16.mxu0 %v11681_v0  ;;  %7249 = vmatprep.subr.bf16.mxu1 %v11681_v0  ;;  %v960_v46 = vsel %vm896_vm5, %v850_v14, %v928_v32  ;;  %v926_v20 = vmul.f32 0.01, %v842_v34  ;;  %vm894_vm7 = vcmp.gt.f32.partialorder %v842_v34, 0.0  ;;  %v507_v26 = vpop.permute.xlu1 %506  ;;  %v1098_v14 = vld [vmem:[%s11673_s7 + $0x1a8] sm:$0xff]  ;;  %v7391_v32 = vld [vmem:[%s11668_s2 + $0x10] ss:$8 sps:$4 sm:$0xff]  }
 0x15b   : > { %v854_v2 = vpop.f32.mrf.mxu0  ;;  %v810_v61 = vadd.f32 %v8894_v12, %v507_v26  ;;  %v919_v1 = vmul.f32 0.01, %v815_v56  ;;  %vm887_vm14 = vcmp.gt.f32.partialorder %v815_v56, 0.0  ;;  %v1039_v12 = vpack.c.bf16 %v954_v6, %v953_v3  ;;  %1386 = vperm.xlu0 %7356, %v1100_v57   ;;  %v7403_v48 = vld [vmem:[%s11668_s2 + $0x30] ss:$8 sps:$4 sm:$0xff]  }
 0x15c   : > { %v931_v41 = vmul.f32 0.01, %v863_v62  ;;  %vm899_vm1 = vcmp.gt.f32.partialorder %v863_v62, 0.0  ;;  %v855_v42 = vadd.f32 %v854_v2, %v562_v45  ;;  %v834_v45 = vadd.f32 %v8915_v31, %v537_v23  ;;  %v7381_v23 = vld [vmem:[%s11668_s2] ss:$8 sps:$4 sm:$0xff]  }
 0x15d   : > { %v7223_v5 = vpop.f32.mrf.mxu0  ;;  %1762 = vmatpush1.bf16.msra.mxu0 %v1030_v11  ;;  %7265 = vmatpush1.bf16.msra.mxu1 %v1030_v11  ;;  %v958_v31 = vsel %vm894_vm7, %v842_v34, %v926_v20  ;;  %v502_v11 = vpop.permute.xlu0 %501  ;;  %v952_v4 = vsel %vm888_vm13, %v818_v54, %v920_v60  ;;  %vm886_vm15 = vcmp.gt.f32.partialorder %v810_v61, 0.0  ;;  %v7392_v34 = vld [vmem:[%s11668_s2 + $0xc0] ss:$8 sps:$4 sm:$0xff]   ;;  %v7399_v20 = vld [vmem:[%s11668_s2 + $0x34] ss:$8 sps:$4 sm:$0xff]  }
 0x15e   : > { %v866_v8 = vadd.f32 %v7223_v5, %v8898_v19  ;;  %1763 = vmatprep.subr.bf16.mxu0 %v11681_v0  ;;  %7250 = vmatprep.subr.bf16.mxu1 %v11681_v0  ;;  %v963_v29 = vsel %vm899_vm1, %v863_v62, %v931_v41  ;;  %v929_v24 = vmul.f32 0.01, %v855_v42  ;;  %vm897_vm4 = vcmp.gt.f32.partialorder %v855_v42, 0.0  ;;  %v1099_v62 = vld [vmem:[%s11673_s7 + $0x1b0] sm:$0xff]  ;;  %v1065_v5 = vld [vmem:[%s11673_s7 + $0xa0] sm:$0xff] }
 0x15f   : > { %v857_v13 = vpop.f32.mrf.mxu0  ;;  %v924_v47 = vmul.f32 0.01, %v834_v45  ;;  %vm892_vm9 = vcmp.gt.f32.partialorder %v834_v45, 0.0  ;;  %v1041_v53 = vpack.c.bf16 %v958_v31, %v957_v21  ;;  %v807_v2 = vadd.f32 %v8877_v63, %v502_v11  ;;  %1381 = vperm.xlu1 %7357, %v1099_v62   ;;  %1216 = vperm.xlu0 %7356, %v1066_v7   ;;  %v7411_v31 = vld [vmem:[%s11668_s2 + $0x54] ss:$8 sps:$4 sm:$0xff]  }
 0x160   : > { %vm900_vm2 = vcmp.gt.f32.partialorder %v866_v8, 0.0  ;;  %v932_v16 = vmul.f32 0.01, %v866_v8  ;;  %v858_v22 = vadd.f32 %v857_v13, %v8921_v43  ;;  %v927_v43 = vmul.f32 0.01, %v847_v27  ;;  %v1097_v13 = vld [vmem:[%s11673_s7 + $0x1a0] sm:$0xff] }
 0x161   : > { %1764 = vmatpush1.bf16.msra.mxu0 %v1029_v9  ;;  %7266 = vmatpush1.bf16.msra.mxu1 %v1029_v9  ;;  %v961_v33 = vsel %vm897_vm4, %v855_v42, %v929_v24  ;;  %v956_v55 = vsel %vm892_vm9, %v834_v45, %v924_v47  ;;  %v918_v41 = vmul.f32 0.01, %v810_v61  ;;  %v951_v63 = vsel %vm887_vm14, %v815_v56, %v919_v1  ;;  %v1064_v24 = vld [vmem:[%s11673_s7 + $0x98] sm:$0xff]  ;;  %v7397_v45 = vld [vmem:[%s11668_s2 + $0x20] ss:$8 sps:$4 sm:$0xff]   ;;  %v9099_v56 = vpop.permute.xlu1 %1186 }
 0x162   : > { %v964_v30 = vsel %vm900_vm2, %v866_v8, %v932_v16  ;;  %vm898_vm3 = vcmp.gt.f32.partialorder %v858_v22, 0.0  ;;  %v930_v19 = vmul.f32 0.01, %v858_v22  ;;  %1765 = vmatprep.subr.bf16.mxu0 %v11681_v0  ;;  %7251 = vmatprep.subr.bf16.mxu1 %v11681_v0  ;;  %v959_v49 = vsel %vm895_vm6, %v847_v27, %v927_v43  ;;  %v7384_v27 = vld [vmem:[%s11668_s2 + $0xb0] ss:$8 sps:$4 sm:$0xff]   ;;  %v1062_v43 = vld [vmem:[%s11673_s7 + $0x88] sm:$0xff] }
 0x163   : > { %v1044_v28 = vpack.c.bf16 %v964_v30, %v963_v29  ;;  %v1042_v15 = vpack.c.bf16 %v960_v46, %v959_v49  ;;  %v1040_v59 = vpack.c.bf16 %v956_v55, %v955_v17  ;;  %v917_v42 = vmul.f32 0.01, %v807_v2  ;;  %1211 = vperm.xlu1 %7357, %v1065_v5   ;;  %1376 = vperm.xlu0 %7356, %v1098_v14   ;;  %v1063_v29 = vld [vmem:[%s11673_s7 + $0x90] sm:$0xff]  ;;  %v7404_v49 = vld [vmem:[%s11668_s2 + $0xe0] ss:$8 sps:$4 sm:$0xff]   ;;  %v9101_v17 = vpop.permute.xlu0 %1181 }
 0x164   : > { %v962_v39 = vsel %vm898_vm3, %v858_v22, %v930_v19  ;;  %vm885_vm0 = vcmp.gt.f32.partialorder %v807_v2, 0.0  ;;  %v1038_v8 = vpack.c.bf16 %v952_v4, %v951_v63  ;;  %v950_v9 = vsel %vm886_vm15, %v810_v61, %v918_v41  ;;  %v7387_v30 = vld [vmem:[%s11668_s2 + $0x14] ss:$8 sps:$4 sm:$0xff]   ;;  %v7389_v19 = vld [vmem:[%s11668_s2 + $0xc4] ss:$8 sps:$4 sm:$0xff]  }
 0x165   : > { %1766 = vmatpush2.bf16.msra.mxu0 %v1044_v28  ;;  %7267 = vmatpush2.bf16.msra.mxu1 %v1044_v28  ;;  %v1043_v40 = vpack.c.bf16 %v962_v39, %v961_v33  ;;  %v949_v16 = vsel %vm885_vm0, %v807_v2, %v917_v42  ;;  %v1096_v28 = vld [vmem:[%s11673_s7 + $0x198] sm:$0xff]  ;;  %v1061_v39 = vld [vmem:[%s11673_s7 + $0x80] sm:$0xff] }
 0x166   : > { %1767 = vmatprep.subr.bf16.mxu0 %v11681_v0  ;;  %7252 = vmatprep.subr.bf16.mxu1 %v11681_v0  ;;  %v1037_v22 = vpack.c.bf16 %v950_v9, %v949_v16  ;;  %v7395_v33 = vld [vmem:[%s11668_s2 + $0xd4] ss:$8 sps:$4 sm:$0xff]   ;;  %v7398_v46 = vld [vmem:[%s11668_s2 + $0xd0] ss:$8 sps:$4 sm:$0xff]   ;;  %v7409_v47 = vld [vmem:[%s11668_s2 + $0x40] ss:$8 sps:$4 sm:$0xff]  }
 0x167   : > { %1371 = vperm.xlu1 %7357, %v1097_v13   ;;  %1206 = vperm.xlu0 %7356, %v1064_v24   ;;  %v7415_v38 = vld [vmem:[%s11668_s2 + $0x50] ss:$8 sps:$4 sm:$0xff]   ;;  %v7417_v21 = vld [vmem:[%s11668_s2 + $0x64] ss:$8 sps:$4 sm:$0xff]   ;;  %v7419_v51 = vld [vmem:[%s11668_s2 + $0x114] ss:$8 sps:$4 sm:$0xff]   ;;  %v9117_v6 = vpop.permute.xlu0 %1346 }
 0x168   : > { %v7422_v54 = vld [vmem:[%s11668_s2 + $0x110] ss:$8 sps:$4 sm:$0xff]   ;;  %v7423_v55 = vld [vmem:[%s11668_s2 + $0x74] ss:$8 sps:$4 sm:$0xff]   ;;  %v7425_v25 = vld [vmem:[%s11668_s2 + $0x124] ss:$8 sps:$4 sm:$0xff]  }
 0x169   : > { %1768 = vmatpush2.bf16.msra.mxu0 %v1043_v40  ;;  %7268 = vmatpush2.bf16.msra.mxu1 %v1043_v40  ;;  %v1094_v40 = vld [vmem:[%s11673_s7 + $0x188] sm:$0xff]  ;;  %v7427_v58 = vld [vmem:[%s11668_s2 + $0x70] ss:$8 sps:$4 sm:$0xff]   ;;  %v7431_v61 = vld [vmem:[%s11668_s2 + $0x134] ss:$8 sps:$4 sm:$0xff]  }
 0x16a   : > { %1769 = vmatprep.subr.bf16.mxu0 %v11681_v0  ;;  %7253 = vmatprep.subr.bf16.mxu1 %v11681_v0  ;;  %v7428_v26 = vld [vmem:[%s11668_s2 + $0x120] ss:$8 sps:$4 sm:$0xff]   ;;  %v7429_v60 = vld [vmem:[%s11668_s2 + $0x84] ss:$8 sps:$4 sm:$0xff]   ;;  %v7434_v11 = vld [vmem:[%s11668_s2 + $0x130] ss:$8 sps:$4 sm:$0xff]  }
 0x16b   : > { %1201 = vperm.xlu1 %7357, %v1063_v29   ;;  %1366 = vperm.xlu0 %7356, %v1096_v28   ;;  %v7433_v57 = vld [vmem:[%s11668_s2 + $0x80] ss:$8 sps:$4 sm:$0xff]   ;;  %v7435_v1 = vld [vmem:[%s11668_s2 + $0x94] ss:$8 sps:$4 sm:$0xff]   ;;  %v7437_v2 = vld [vmem:[%s11668_s2 + $0x144] ss:$8 sps:$4 sm:$0xff]   ;;  %v9133_v3 = vpop.permute.xlu0 %1176 }
 0x16c   : > { %v7439_v41 = vld [vmem:[%s11668_s2 + $0x90] ss:$8 sps:$4 sm:$0xff]   ;;  %v7440_v5 = vld [vmem:[%s11668_s2 + $0x140] ss:$8 sps:$4 sm:$0xff]   ;;  %v7441_v7 = vld [vmem:[%s11668_s2 + $0xa4] ss:$8 sps:$4 sm:$0xff]  }
 0x16d   : > { %1770 = vmatpush2.bf16.msra.mxu0 %v1042_v15  ;;  %7269 = vmatpush2.bf16.msra.mxu1 %v1042_v15  ;;  %v7407_v15 = vld [vmem:[%s11668_s2 + $0xf4] ss:$8 sps:$4 sm:$0xff]   ;;  %v7445_v9 = vld [vmem:[%s11668_s2 + $0xa0] ss:$8 sps:$4 sm:$0xff]   ;;  %v7446_v13 = vld [vmem:[%s11668_s2 + $0x150] ss:$8 sps:$4 sm:$0xff]  }
 0x16e   : > { %1771 = vmatprep.subr.bf16.mxu0 %v11681_v0  ;;  %7254 = vmatprep.subr.bf16.mxu1 %v11681_v0  ;;  %v7443_v63 = vld [vmem:[%s11668_s2 + $0x154] ss:$8 sps:$4 sm:$0xff]   ;;  %v7447_v16 = vld [vmem:[%s11668_s2 + $0x164] ss:$8 sps:$4 sm:$0xff]  }
 0x16f   : > { %1361 = vperm.xlu1 %7357, %v1095_v18   ;;  %1196 = vperm.xlu0 %7356, %v1062_v43   ;;  %v9137_v4 = vpop.permute.xlu0 %1336  ;;  %v7450_v29 = vld [vmem:[%s11668_s2 + $0x174] ss:$8 sps:$4 sm:$0xff]   ;;  %v7452_v18 = vld [vmem:[%s11668_s2 + $0x170] ss:$8 sps:$4 sm:$0xff]   ;;  %v7453_v28 = vld [vmem:[%s11668_s2 + $0x184] ss:$8 sps:$4 sm:$0xff]  }
 0x171   : > { %1772 = vmatpush2.bf16.msra.mxu0 %v1041_v53  ;;  %7270 = vmatpush2.bf16.msra.mxu1 %v1041_v53  ;;  %v7421_v53 = vld [vmem:[%s11668_s2 + $0x60] ss:$8 sps:$4 sm:$0xff]  }
 0x172   : > { %1773 = vmatprep.subr.bf16.mxu0 %v11681_v0  ;;  %7255 = vmatprep.subr.bf16.mxu1 %v11681_v0 }
 0x173   : > { %1191 = vperm.xlu1 %7357, %v1061_v39   ;;  %1356 = vperm.xlu0 %7356, %v1094_v40   ;;  %v7455_v39 = vld [vmem:[%s11668_s2 + $0x180] ss:$8 sps:$4 sm:$0xff]   ;;  %v7458_v40 = vld [vmem:[%s11668_s2 + $0x190] ss:$8 sps:$4 sm:$0xff]  }
 0x175   : > { %1774 = vmatpush2.bf16.msra.mxu0 %v1040_v59  ;;  %7271 = vmatpush2.bf16.msra.mxu1 %v1040_v59  ;;  %v9109_v59 = vpop.permute.xlu1 %1341 }
 0x176   : > { %1775 = vmatprep.subr.bf16.mxu0 %v11681_v0  ;;  %7256 = vmatprep.subr.bf16.mxu1 %v11681_v0 }
 0x177   : > { %1351 = vperm.xlu1 %7357, %v1093_v36  }
 0x179   : > { %1776 = vmatpush2.bf16.msra.mxu0 %v1039_v12  ;;  %7272 = vmatpush2.bf16.msra.mxu1 %v1039_v12  ;;  %v9119_v62 = vpop.permute.xlu1 %1171 }
 0x17a   : > { %1777 = vmatprep.subr.bf16.mxu0 %v11681_v0  ;;  %7257 = vmatprep.subr.bf16.mxu1 %v11681_v0 }
 0x17d   : > { %1778 = vmatpush2.bf16.msra.mxu0 %v1038_v8  ;;  %7273 = vmatpush2.bf16.msra.mxu1 %v1038_v8  ;;  %v9135_v12 = vpop.permute.xlu1 %1331  ;;  %v9153_v8 = vpop.permute.xlu0 %1166 }
 0x17e   : > { %1779 = vmatprep.subr.bf16.mxu0 %v11681_v0  ;;  %7258 = vmatprep.subr.bf16.mxu1 %v11681_v0 }
 0x181   : > { %1780 = vmatpush2.bf16.msra.mxu0 %v1037_v22  ;;  %7274 = vmatpush2.bf16.msra.mxu1 %v1037_v22  ;;  %v9151_v42 = vpop.permute.xlu1 %1161  ;;  %v9166_v22 = vpop.permute.xlu0 %1326 }
 0x182   : > { %3286 = vmatprep.subr.bf16.mxu0 %v11681_v0  ;;  %3575 = vmatprep.subr.bf16.mxu1 %v11681_v0 }
 0x184   : > { %1782 = vmatmul.mubr.bf16.vlgmr.msra.gmra.mxu0 %v7381_v23  ;;  %1870 = vmatmul.mubr.bf16.vlgmr.msra.gmra.mxu1 %v7384_v27  ;;  %v7449_v27 = vld [vmem:[%s11668_s2 + $0x160] ss:$8 sps:$4 sm:$0xff]  }
 0x185   : > { %1789 = vmatprep.mubr.bf16.mxu0 %v7387_v30  ;;  %1877 = vmatprep.mubr.bf16.mxu1 %v7389_v19  ;;  %v9161_v14 = vpop.permute.xlu1 %1321  ;;  %v9176_v24 = vpop.permute.xlu0 %1156 }
 0x189   : > { %v9168_v23 = vpop.permute.xlu1 %1151  ;;  %v9180_v19 = vpop.permute.xlu0 %1316 }
 0x18c   : > { %1790 = vmatmul.mubr.bf16.gmra.mxu0 %v7391_v32  ;;  %1878 = vmatmul.mubr.bf16.gmra.mxu1 %v7392_v34 }
 0x18d   : > { %1797 = vmatprep.mubr.bf16.mxu0 %v7393_v44  ;;  %1885 = vmatprep.mubr.bf16.mxu1 %v7395_v33  ;;  %v9178_v30 = vpop.permute.xlu1 %1311  ;;  %v9190_v34 = vpop.permute.xlu0 %1146  ;;  %v7456_v44 = vld [vmem:[%s11668_s2 + $0x194] ss:$8 sps:$4 sm:$0xff]  }
 0x191   : > { %v9188_v32 = vpop.permute.xlu1 %1141  ;;  %v9200_v33 = vpop.permute.xlu0 %1306 }
 0x194   : > { %1798 = vmatmul.mubr.bf16.gmra.mxu0 %v7397_v45  ;;  %1886 = vmatmul.mubr.bf16.gmra.mxu1 %v7398_v46  ;;  %v7459_v45 = vld [vmem:[%s11668_s2 + $0x1a4] ss:$8 sps:$4 sm:$0xff]  }
 0x195   : > { %1805 = vmatprep.mubr.bf16.mxu0 %v7399_v20  ;;  %1893 = vmatprep.mubr.bf16.mxu1 %v7401_v35  ;;  %v9195_v43 = vpop.permute.xlu1 %1301  ;;  %v9210_v46 = vpop.permute.xlu0 %1136 }
 0x199   : > { %v9202_v36 = vpop.permute.xlu1 %1131  ;;  %v9214_v35 = vpop.permute.xlu0 %1296 }
 0x19c   : > { %1806 = vmatmul.mubr.bf16.gmra.mxu0 %v7403_v48  ;;  %1894 = vmatmul.mubr.bf16.gmra.mxu1 %v7404_v49  ;;  %v7461_v48 = vld [vmem:[%s11668_s2 + $0x1a0] ss:$8 sps:$4 sm:$0xff]   ;;  %v7462_v49 = vld [vmem:[%s11668_s2 + $0x1b4] ss:$8 sps:$4 sm:$0xff]  }
 0x19d   : > { %1813 = vmatprep.mubr.bf16.mxu0 %v7405_v50  ;;  %1901 = vmatprep.mubr.bf16.mxu1 %v7407_v15  ;;  %v9212_v20 = vpop.permute.xlu1 %1291  ;;  %v9224_v15 = vpop.permute.xlu0 %1126 }
 0x1a1   : > { %v9222_v50 = vpop.permute.xlu1 %1121 }
 0x1a4   : > { %1814 = vmatmul.mubr.bf16.gmra.mxu0 %v7409_v47  ;;  %1902 = vmatmul.mubr.bf16.gmra.mxu1 %v7410_v37  ;;  %v7464_v47 = vld [vmem:[%s11668_s2 + $0x1b0] ss:$8 sps:$4 sm:$0xff]  }
 0x1a5   : > { %1821 = vmatprep.mubr.bf16.mxu0 %v7411_v31  ;;  %1909 = vmatprep.mubr.bf16.mxu1 %v7413_v52  ;;  %v9229_v37 = vpop.permute.xlu1 %1281  ;;  %v7465_v31 = vld [vmem:[%s11668_s2 + $0x1c4] ss:$8 sps:$4 sm:$0xff]   ;;  %v9234_v52 = vpop.permute.xlu0 %1286 }
 0x1ac   : > { %1822 = vmatmul.mubr.bf16.gmra.mxu0 %v7415_v38  ;;  %1910 = vmatmul.mubr.bf16.gmra.mxu1 %v7416_v10  ;;  %v1112_v38 = vpop.permute.xlu1 %1111  ;;  %v7467_v10 = vld [vmem:[%s11668_s2 + $0x1c0] ss:$8 sps:$4 sm:$0xff]  }
 0x1ad   : > { %1829 = vmatprep.mubr.bf16.mxu0 %v7417_v21  ;;  %1917 = vmatprep.mubr.bf16.mxu1 %v7419_v51  ;;  %v7468_v21 = vld [vmem:[%s11668_s2 + $0x1d4] ss:$8 sps:$4 sm:$0xff]   ;;  %v1117_v51 = vpop.permute.xlu0 %1116 }
 0x1b4   : > { %1830 = vmatmul.mubr.bf16.gmra.mxu0 %v7421_v53  ;;  %1918 = vmatmul.mubr.bf16.gmra.mxu1 %v7422_v54  ;;  %v9242_v53 = vpop.permute.xlu1 %1271  ;;  %v9244_v54 = vpop.permute.xlu0 %1276 }
 0x1b5   : > { %1837 = vmatprep.mubr.bf16.mxu0 %v7423_v55  ;;  %1925 = vmatprep.mubr.bf16.mxu1 %v7425_v25  ;;  %v7470_v55 = vld [vmem:[%s11668_s2 + $0x1d0] ss:$8 sps:$4 sm:$0xff]   ;;  %v7471_v25 = vld [vmem:[%s11668_s2 + $0x1e4] ss:$8 sps:$4 sm:$0xff]  }
 0x1bc   : > { %1838 = vmatmul.mubr.bf16.gmra.mxu0 %v7427_v58  ;;  %1926 = vmatmul.mubr.bf16.gmra.mxu1 %v7428_v26  ;;  %v9252_v58 = vpop.permute.xlu1 %1261  ;;  %v9254_v26 = vpop.permute.xlu0 %1266 }
 0x1bd   : > { %1845 = vmatprep.mubr.bf16.mxu0 %v7429_v60  ;;  %1933 = vmatprep.mubr.bf16.mxu1 %v7431_v61  ;;  %v7473_v60 = vld [vmem:[%s11668_s2 + $0x1e0] ss:$8 sps:$4 sm:$0xff]  }
 0x1c0   : > { %v9259_v61 = vpop.permute.xlu1 %1421 }
 0x1c1   : > { %11711 = vst [vmem:[#allocation14_spill] sm:$0xff] %v9259_v61 }
 0x1c4   : > { %1846 = vmatmul.mubr.bf16.gmra.mxu0 %v7433_v57  ;;  %1934 = vmatmul.mubr.bf16.gmra.mxu1 %v7434_v11  ;;  %v7474_v57 = vld [vmem:[%s11668_s2 + $0x1f4] ss:$8 sps:$4 sm:$0xff]   ;;  %v9264_v11 = vpop.permute.xlu0 %1426 }
 0x1c5   : > { %1853 = vmatprep.mubr.bf16.mxu0 %v7435_v1  ;;  %1941 = vmatprep.mubr.bf16.mxu1 %v7437_v2  ;;  %11712 = vst [vmem:[#allocation15_spill] sm:$0xff] %v9264_v11  ;;  %v9266_v1 = vpop.permute.xlu1 %1251  ;;  %v7476_v2 = vld [vmem:[%s11668_s2 + $0x1f0] ss:$8 sps:$4 sm:$0xff]  }
 0x1cc   : > { %1854 = vmatmul.mubr.bf16.gmra.mxu0 %v7439_v41  ;;  %1942 = vmatmul.mubr.bf16.gmra.mxu1 %v7440_v5  ;;  %v9271_v41 = vpop.permute.xlu0 %1256  ;;  %v9273_v5 = vpop.permute.xlu1 %1411 }
 0x1cd   : > { %1861 = vmatprep.mubr.bf16.mxu0 %v7441_v7  ;;  %1949 = vmatprep.mubr.bf16.mxu1 %v7443_v63  ;;  %11713 = vst [vmem:[#allocation16_spill] sm:$0xff] %v9273_v5 }
 0x1d0   : > { %v9275_v7 = vpop.permute.xlu0 %1416  ;;  %v9277_v63 = vpop.permute.xlu1 %1241 }
 0x1d1   : > { %11714 = vst [vmem:[#allocation17_spill] sm:$0xff] %v9275_v7 }
 0x1d4   : > { %1862 = vmatmul.mubr.bf16.gmra.mxu0 %v7445_v9  ;;  %1950 = vmatmul.mubr.bf16.gmra.mxu1 %v7446_v13  ;;  %v9279_v9 = vpop.permute.xlu0 %1246  ;;  %v9281_v13 = vpop.permute.xlu1 %1401 }
 0x1d5   : > { %1957 = vmatprep.mubr.bf16.mxu1 %v7447_v16  ;;  %11715 = vst [vmem:[#allocation18_spill] sm:$0xff] %v9281_v13 }
 0x1d8   : > { %v9283_v16 = vpop.permute.xlu0 %1406 }
 0x1d9   : > { %11716 = vst [vmem:[#allocation19_spill] sm:$0xff] %v9283_v16 }
 0x1dc   : > { %1958 = vmatmul.mubr.bf16.gmra.mxu1 %v7449_v27  ;;  %v1232_v27 = vpop.permute.xlu1 %1231 }
 0x1dd   : > { %1965 = vmatprep.mubr.bf16.mxu1 %v7450_v29  ;;  %v1237_v29 = vpop.permute.xlu0 %1236 }
 0x1e4   : > { %1966 = vmatmul.mubr.bf16.gmra.mxu1 %v7452_v18  ;;  %v9285_v18 = vpop.permute.xlu1 %1391 }
 0x1e5   : > { %1973 = vmatprep.mubr.bf16.mxu1 %v7453_v28  ;;  %11717 = vst [vmem:[#allocation20_spill] sm:$0xff] %v9285_v18  ;;  %v9287_v28 = vpop.permute.xlu0 %1396 }
 0x1e6   : > { %11718 = vst [vmem:[#allocation21_spill] sm:$0xff] %v9287_v28 }
 0x1ec   : > { %1974 = vmatmul.mubr.bf16.gmra.mxu1 %v7455_v39  ;;  %v1222_v39 = vpop.permute.xlu1 %1221 }
 0x1ed   : > { %1981 = vmatprep.mubr.bf16.mxu1 %v7456_v44 }
 0x1f4   : > { %1982 = vmatmul.mubr.bf16.gmra.mxu1 %v7458_v40 }
 0x1f5   : > { %1989 = vmatprep.mubr.bf16.mxu1 %v7459_v45  ;;  %v7479_v45 = vld [vmem:[#allocation5 + $0x4] ss:$16 sps:$4 sm:$0xff]  }
 0x1f6   : > { %3318 = vmatprep.mubr.bf16.mxu0 %v7479_v45 }
 0x1fc   : > { %1990 = vmatmul.mubr.bf16.gmra.mxu1 %v7461_v48 }
 0x1fd   : > { %1997 = vmatprep.mubr.bf16.mxu1 %v7462_v49 }
 0x204   : > { %1998 = vmatmul.mubr.bf16.gmra.mxu1 %v7464_v47  ;;  %v1227_v47 = vpop.permute.xlu0 %1226 }
 0x205   : > { %2005 = vmatprep.mubr.bf16.mxu1 %v7465_v31 }
 0x20c   : > { %2006 = vmatmul.mubr.bf16.gmra.mxu1 %v7467_v10 }
 0x20d   : > { %2013 = vmatprep.mubr.bf16.mxu1 %v7468_v21 }
 0x214   : > { %2014 = vmatmul.mubr.bf16.gmra.mxu1 %v7470_v55 }
 0x215   : > { %2021 = vmatprep.mubr.bf16.mxu1 %v7471_v25 }
 0x21c   : > { %2022 = vmatmul.mubr.bf16.gmra.mxu1 %v7473_v60 }
 0x21d   : > { %2029 = vmatprep.mubr.bf16.mxu1 %v7474_v57 }
 0x224   : > { %2030 = vmatmul.mubr.bf16.gmra.mxu1 %v7476_v2 }
 0x244   : > { %v1783_v44 = vpop.f32.mrf.mxu0  ;;  %v1871_v40 = vpop.f32.mrf.mxu1 }
 0x245   : > { %v1784_v48 = vadd.f32 %v1783_v44, %v1112_v38  ;;  %v1872_v49 = vadd.f32 %v1871_v40, %v1222_v39 }
 0x246   : > { %v1785_v31 = vpop.f32.mrf.mxu0  ;;  %v1873_v10 = vpop.f32.mrf.mxu1 }
 0x247   : > { %vm2038_vm1 = vcmp.gt.f32.partialorder %v1784_v48, 0.0  ;;  %v2102_v21 = vmul.f32 0.01, %v1784_v48  ;;  %v2124_v55 = vmul.f32 0.01, %v1872_v49  ;;  %vm2060_vm2 = vcmp.gt.f32.partialorder %v1872_v49, 0.0 }
 0x248   : > { %v1786_v25 = vpop.f32.mrf.mxu0  ;;  %v1874_v60 = vpop.f32.mrf.mxu1 }
 0x249   : > { %v1787_v57 = vadd.f32 %v1786_v25, %v1117_v51  ;;  %v1875_v2 = vadd.f32 %v1874_v60, %v1227_v47  ;;  %v9289_v0 = vsel %vm2038_vm1, %v1784_v48, %v2102_v21  ;;  %v9291_v39 = vsel %vm2060_vm2, %v1872_v49, %v2124_v55 }
 0x24a   : > { %v1788_v18 = vpop.f32.mrf.mxu0  ;;  %v1876_v28 = vpop.f32.mrf.mxu1  ;;  %11719 = vst [vmem:[#allocation22_spill] sm:$0xff] %v9291_v39 }
 0x24b   : > { %vm2039_vm3 = vcmp.gt.f32.partialorder %v1787_v57, 0.0  ;;  %v2103_v13 = vmul.f32 0.01, %v1787_v57  ;;  %vm2061_vm4 = vcmp.gt.f32.partialorder %v1875_v2, 0.0  ;;  %v2125_v38 = vmul.f32 0.01, %v1875_v2 }
 0x24c   : > { %v1791_v44 = vpop.f32.mrf.mxu0  ;;  %v1879_v40 = vpop.f32.mrf.mxu1 }
 0x24d   : > { %v9293_v45 = vsel %vm2039_vm3, %v1787_v57, %v2103_v13  ;;  %v9295_v31 = vsel %vm2061_vm4, %v1875_v2, %v2125_v38  ;;  %v1792_v10 = vadd.f32 %v1791_v44, %v9222_v50  ;;  %v1880_v51 = vadd.f32 %v1879_v40, %v1232_v27 }
 0x24e   : > { %11720 = vst [vmem:[#allocation23_spill] sm:$0xff] %v9295_v31  ;;  %v1793_v28 = vpop.f32.mrf.mxu0  ;;  %v1881_v47 = vpop.f32.mrf.mxu1 }
 0x24f   : > { %vm2040_vm5 = vcmp.gt.f32.partialorder %v1792_v10, 0.0  ;;  %v2104_v49 = vmul.f32 0.01, %v1792_v10  ;;  %v2126_v25 = vmul.f32 0.01, %v1880_v51  ;;  %vm2062_vm6 = vcmp.gt.f32.partialorder %v1880_v51, 0.0 }
 0x250   : > { %v1794_v21 = vpop.f32.mrf.mxu0  ;;  %v1882_v55 = vpop.f32.mrf.mxu1 }
 0x251   : > { %v1795_v13 = vadd.f32 %v1794_v21, %v9224_v15  ;;  %v1883_v60 = vadd.f32 %v1882_v55, %v1237_v29  ;;  %v9303_v57 = vsel %vm2040_vm5, %v1792_v10, %v2104_v49  ;;  %v9307_v28 = vsel %vm2062_vm6, %v1880_v51, %v2126_v25 }
 0x252   : > { %v1796_v50 = vpop.f32.mrf.mxu0  ;;  %v1884_v27 = vpop.f32.mrf.mxu1  ;;  %11721 = vst [vmem:[#allocation24_spill] sm:$0xff] %v9307_v28 }
 0x253   : > { %vm2041_vm7 = vcmp.gt.f32.partialorder %v1795_v13, 0.0  ;;  %v2105_v2 = vmul.f32 0.01, %v1795_v13  ;;  %vm2063_vm8 = vcmp.gt.f32.partialorder %v1883_v60, 0.0  ;;  %v2127_v38 = vmul.f32 0.01, %v1883_v60 }
 0x254   : > { %v9305_v44 = vpop.f32.mrf.mxu0  ;;  %v1887_v40 = vpop.f32.mrf.mxu1 }
 0x255   : > { %v9309_v47 = vsel %vm2041_vm7, %v1795_v13, %v2105_v2  ;;  %v9311_v18 = vsel %vm2063_vm8, %v1883_v60, %v2127_v38  ;;  %v1888_v15 = vadd.f32 %v1887_v40, %v9277_v63 }
 0x256   : > { %11722 = vst [vmem:[#allocation25_spill] sm:$0xff] %v9311_v18  ;;  %v1801_v49 = vpop.f32.mrf.mxu0  ;;  %v1889_v21 = vpop.f32.mrf.mxu1 }
 0x257   : > { %v2128_v27 = vmul.f32 0.01, %v1888_v15  ;;  %vm2064_vm9 = vcmp.gt.f32.partialorder %v1888_v15, 0.0 }
 0x258   : > { %v9318_v55 = vpop.f32.mrf.mxu0  ;;  %v1890_v50 = vpop.f32.mrf.mxu1 }
 0x259   : > { %v1891_v51 = vadd.f32 %v1890_v50, %v9279_v9  ;;  %v9323_v38 = vsel %vm2064_vm9, %v1888_v15, %v2128_v27 }
 0x25a   : > { %v1804_v25 = vpop.f32.mrf.mxu0  ;;  %v1892_v13 = vpop.f32.mrf.mxu1 }
 0x25b   : > { %vm2065_vm10 = vcmp.gt.f32.partialorder %v1891_v51, 0.0  ;;  %v2129_v60 = vmul.f32 0.01, %v1891_v51 }
 0x25c   : > { %v9321_v63 = vpop.f32.mrf.mxu0  ;;  %v1895_v2 = vpop.f32.mrf.mxu1 }
 0x25d   : > { %v9325_v40 = vsel %vm2065_vm10, %v1891_v51, %v2129_v60  ;;  %v1896_v49 = vadd.f32 %v1895_v2, %v9266_v1 }
 0x25e   : > { %v1809_v10 = vpop.f32.mrf.mxu0  ;;  %v1897_v48 = vpop.f32.mrf.mxu1 }
 0x25f   : > { %v2130_v25 = vmul.f32 0.01, %v1896_v49  ;;  %vm2066_vm11 = vcmp.gt.f32.partialorder %v1896_v49, 0.0 }
 0x260   : > { %v9330_v9 = vpop.f32.mrf.mxu0  ;;  %v1898_v50 = vpop.f32.mrf.mxu1 }
 0x261   : > { %v1899_v13 = vadd.f32 %v1898_v50, %v9271_v41  ;;  %v9337_v1 = vsel %vm2066_vm11, %v1896_v49, %v2130_v25 }
 0x262   : > { %v1812_v29 = vpop.f32.mrf.mxu0  ;;  %v1900_v16 = vpop.f32.mrf.mxu1 }
 0x263   : > { %vm2067_vm12 = vcmp.gt.f32.partialorder %v1899_v13, 0.0  ;;  %v2131_v15 = vmul.f32 0.01, %v1899_v13 }
 0x264   : > { %v9333_v27 = vpop.f32.mrf.mxu0  ;;  %v9335_v51 = vpop.f32.mrf.mxu1 }
 0x265   : > { %v9339_v60 = vsel %vm2067_vm12, %v1899_v13, %v2131_v15 }
 0x266   : > { %v1817_v10 = vpop.f32.mrf.mxu0  ;;  %v1905_v2 = vpop.f32.mrf.mxu1 }
 0x268   : > { %v9343_v21 = vpop.f32.mrf.mxu0  ;;  %v9345_v41 = vpop.f32.mrf.mxu1 }
 0x26a   : > { %v1820_v16 = vpop.f32.mrf.mxu0  ;;  %v1908_v29 = vpop.f32.mrf.mxu1 }
 0x26c   : > { %v1823_v50 = vpop.f32.mrf.mxu0  ;;  %v1911_v11 = vpop.f32.mrf.mxu1 }
 0x26d   : > { %v1912_v5 = vadd.f32 %v1911_v11, %v9242_v53 }
 0x26e   : > { %v1825_v7 = vpop.f32.mrf.mxu0  ;;  %v1913_v49 = vpop.f32.mrf.mxu1 }
 0x26f   : > { %v2134_v15 = vmul.f32 0.01, %v1912_v5  ;;  %vm2070_vm13 = vcmp.gt.f32.partialorder %v1912_v5, 0.0 }
 0x270   : > { %v1826_v25 = vpop.f32.mrf.mxu0  ;;  %v1914_v13 = vpop.f32.mrf.mxu1 }
 0x271   : > { %v1915_v61 = vadd.f32 %v1914_v13, %v9244_v54  ;;  %v9349_v16 = vsel %vm2070_vm13, %v1912_v5, %v2134_v15 }
 0x272   : > { %v1828_v10 = vpop.f32.mrf.mxu0  ;;  %v1916_v2 = vpop.f32.mrf.mxu1  ;;  %11723 = vst [vmem:[#allocation26_spill] sm:$0xff] %v9349_v16 }
 0x273   : > { %vm2071_vm14 = vcmp.gt.f32.partialorder %v1915_v61, 0.0  ;;  %v2135_v48 = vmul.f32 0.01, %v1915_v61 }
 0x274   : > { %v1831_v39 = vpop.f32.mrf.mxu0  ;;  %v1919_v31 = vpop.f32.mrf.mxu1 }
 0x275   : > { %v9351_v29 = vsel %vm2071_vm14, %v1915_v61, %v2135_v48  ;;  %v1920_v53 = vadd.f32 %v1919_v31, %v9229_v37  ;;  %v1832_v61 = vadd.f32 %v1831_v39, %v9119_v62 }
 0x276   : > { %11724 = vst [vmem:[#allocation27_spill] sm:$0xff] %v9351_v29  ;;  %v1833_v7 = vpop.f32.mrf.mxu0  ;;  %v1921_v49 = vpop.f32.mrf.mxu1 }
 0x277   : > { %v2136_v13 = vmul.f32 0.01, %v1920_v53  ;;  %vm2072_vm15 = vcmp.gt.f32.partialorder %v1920_v53, 0.0  ;;  %v2114_v39 = vmul.f32 0.01, %v1832_v61  ;;  %vm2050_vm2 = vcmp.gt.f32.partialorder %v1832_v61, 0.0 }
 0x278   : > { %v1834_v28 = vpop.f32.mrf.mxu0  ;;  %v1922_v54 = vpop.f32.mrf.mxu1 }
 0x279   : > { %v1923_v10 = vadd.f32 %v1922_v54, %v9234_v52  ;;  %v9360_v37 = vsel %vm2072_vm15, %v1920_v53, %v2136_v13  ;;  %v1835_v31 = vadd.f32 %v1834_v28, %v9133_v3  ;;  %v1824_v3 = vadd.f32 %v1823_v50, %v9151_v42 }
 0x27a   : > { %v1836_v2 = vpop.f32.mrf.mxu0  ;;  %v1924_v18 = vpop.f32.mrf.mxu1  ;;  %11725 = vst [vmem:[#allocation28_spill] sm:$0xff] %v9360_v37  ;;  %v1827_v13 = vadd.f32 %v1826_v25, %v9153_v8  ;;  %v1816_v42 = vadd.f32 %v9333_v27, %v9168_v23  ;;  %v1819_v50 = vadd.f32 %v9343_v21, %v9176_v24  ;;  %v1808_v23 = vadd.f32 %v9321_v63, %v9188_v32  ;;  %v7509_v32 = vld [vmem:[#allocation5 + $0xc] ss:$16 sps:$4 sm:$0xff]  }
 0x27b   : > { %vm2073_vm0 = vcmp.gt.f32.partialorder %v1923_v10, 0.0  ;;  %v2137_v5 = vmul.f32 0.01, %v1923_v10  ;;  %v2115_v16 = vmul.f32 0.01, %v1835_v31  ;;  %vm2051_vm3 = vcmp.gt.f32.partialorder %v1835_v31, 0.0  ;;  %v9381_v25 = vpop.permute.xlu1 %1381  ;;  %3607 = vmatprep.mubr.bf16.mxu1 %v7509_v32 }
 0x27c   : > { %v1839_v48 = vpop.f32.mrf.mxu0  ;;  %v9358_v15 = vpop.f32.mrf.mxu1  ;;  %v2112_v8 = vmul.f32 0.01, %v1824_v3  ;;  %vm2048_vm5 = vcmp.gt.f32.partialorder %v1824_v3, 0.0  ;;  %vm2049_vm6 = vcmp.gt.f32.partialorder %v1827_v13, 0.0  ;;  %v1811_v24 = vadd.f32 %v9330_v9, %v9190_v34 }
 0x27d   : > { %v9363_v7 = vsel %vm2073_vm0, %v1923_v10, %v2137_v5  ;;  %v1840_v49 = vadd.f32 %v1839_v48, %v9101_v17  ;;  %v2179_v52 = vsel %vm2051_vm3, %v1835_v31, %v2115_v16  ;;  %v2111_v31 = vmul.f32 0.01, %v1819_v50 }
 0x27e   : > { %v1841_v54 = vpop.f32.mrf.mxu0  ;;  %v1929_v18 = vpop.f32.mrf.mxu1  ;;  %vm2046_vm7 = vcmp.gt.f32.partialorder %v1816_v42, 0.0  ;;  %vm2047_vm8 = vcmp.gt.f32.partialorder %v1819_v50, 0.0  ;;  %v1800_v34 = vadd.f32 %v9305_v44, %v9202_v36  ;;  %v1803_v63 = vadd.f32 %v9318_v55, %v9210_v46 }
 0x27f   : > { %v2116_v2 = vmul.f32 0.01, %v1840_v49  ;;  %vm2052_vm1 = vcmp.gt.f32.partialorder %v1840_v49, 0.0  ;;  %v2178_v18 = vsel %vm2050_vm2, %v1832_v61, %v2114_v39  ;;  %v2110_v61 = vmul.f32 0.01, %v1816_v42 }
 0x280   : > { %v1842_v11 = vpop.f32.mrf.mxu0  ;;  %v9368_v62 = vpop.f32.mrf.mxu1  ;;  %v2176_v39 = vsel %vm2048_vm5, %v1824_v3, %v2112_v8  ;;  %vm2044_vm9 = vcmp.gt.f32.partialorder %v1808_v23, 0.0  ;;  %vm2045_vm10 = vcmp.gt.f32.partialorder %v1811_v24, 0.0  ;;  %v8304_v55 = vmov 2  }
 0x281   : > { %v1843_v53 = vadd.f32 %v1842_v11, %v9099_v56  ;;  %v2180_v10 = vsel %vm2052_vm1, %v1840_v49, %v2116_v2  ;;  %v2113_v49 = vmul.f32 0.01, %v1827_v13  ;;  %v2364_v2 = vpack.c.bf16 %v2179_v52, %v2178_v18  ;;  %7358 = vset.pattern.permute.xlu1 %v8304_v55  ;;  %7359 = vset.pattern.permute.xlu0 %v8304_v55 }
 0x282   : > { %v1844_v28 = vpop.f32.mrf.mxu0  ;;  %v1932_v17 = vpop.f32.mrf.mxu1  ;;  %v2109_v18 = vmul.f32 0.01, %v1811_v24  ;;  %vm2042_vm11 = vcmp.gt.f32.partialorder %v1800_v34, 0.0  ;;  %vm2043_vm12 = vcmp.gt.f32.partialorder %v1803_v63, 0.0  ;;  %v1907_v55 = vadd.f32 %v9345_v41, %v9254_v26 }
 0x283   : > { %vm2053_vm4 = vcmp.gt.f32.partialorder %v1843_v53, 0.0  ;;  %v2117_v5 = vmul.f32 0.01, %v1843_v53  ;;  %v2177_v52 = vsel %vm2049_vm6, %v1827_v13, %v2113_v49 }
 0x284   : > { %v9373_v48 = vpop.f32.mrf.mxu0  ;;  %v9375_v54 = vpop.f32.mrf.mxu1  ;;  %v2363_v9 = vpack.c.bf16 %v2177_v52, %v2176_v39  ;;  %v8018_v39 = vld [vmem:[%s11673_s7 + $0x78] sm:$0xff]  ;;  %v2133_v41 = vmul.f32 0.01, %v1907_v55  ;;  %vm2069_vm13 = vcmp.gt.f32.partialorder %v1907_v55, 0.0 }
 0x285   : > { %v2181_v29 = vsel %vm2053_vm4, %v1843_v53, %v2117_v5  ;;  %v9392_v53 = vpop.permute.xlu0 %1386  ;;  %v2108_v5 = vmul.f32 0.01, %v1808_v23  ;;  %2451 = vperm.xlu0 %7359, %v8018_v39   ;;  %v8023_v39 = vld [vmem:[%s11673_s7 + $0x68] sm:$0xff] }
 0x286   : > { %v2365_v37 = vpack.c.bf16 %v2181_v29, %v2180_v10  ;;  %v1849_v56 = vpop.f32.mrf.mxu0  ;;  %v1937_v11 = vpop.f32.mrf.mxu1  ;;  %v11726_v29 = vmov 0  }
 0x287   : > { %v9398_v10 = vpop.permute.xlu1 %1211  ;;  %v2174_v56 = vsel %vm2046_vm7, %v1816_v42, %v2110_v61  ;;  %v2175_v11 = vsel %vm2047_vm8, %v1819_v50, %v2111_v31  ;;  %v2106_v42 = vmul.f32 0.01, %v1800_v34  ;;  %v2107_v50 = vmul.f32 0.01, %v1803_v63  ;;  %v8017_v31 = vld [vmem:[%s11673_s7 + $0x70] sm:$0xff] }
 0x288   : > { %v9383_v28 = vpop.f32.mrf.mxu0  ;;  %v9385_v16 = vpop.f32.mrf.mxu1  ;;  %3287 = vmatpush1.bf16.msra.mxu0 %v2365_v37  ;;  %v2362_v36 = vpack.c.bf16 %v2175_v11, %v2174_v56  ;;  %2447 = vperm.xlu1 %7358, %v8017_v31   ;;  %v8020_v56 = vld [vmem:[%s11673_s7 + $0x60] sm:$0xff] }
 0x289   : > { %3288 = vmatprep.subr.bf16.mxu0 %v11726_v29  ;;  %2439 = vperm.xlu0 %7359, %v8020_v56   ;;  %v8026_v56 = vld [vmem:[%s11673_s7 + $0x150] sm:$0xff] }
 0x28a   : > { %v1852_v21 = vpop.f32.mrf.mxu0  ;;  %v1940_v27 = vpop.f32.mrf.mxu1 }
 0x28b   : > { %v2172_v21 = vsel %vm2044_vm9, %v1808_v23, %v2108_v5  ;;  %v2173_v27 = vsel %vm2045_vm10, %v1811_v24, %v2109_v18  ;;  %v9412_v61 = vpop.permute.xlu1 %1371  ;;  %v8019_v18 = vld [vmem:[%s11673_s7 + $0x170] sm:$0xff] }
 0x28c   : > { %v9394_v17 = vpop.f32.mrf.mxu0  ;;  %v9396_v37 = vpop.f32.mrf.mxu1  ;;  %3289 = vmatpush1.bf16.msra.mxu0 %v2364_v2  ;;  %v2361_v23 = vpack.c.bf16 %v2173_v27, %v2172_v21  ;;  %2575 = vperm.xlu1 %7358, %v8019_v18   ;;  %v1904_v27 = vadd.f32 %v9335_v51, %v9252_v58  ;;  %v11727_v51 = vpack.c.bf16 %v9309_v47, %v9303_v57  ;;  %v8025_v18 = vld [vmem:[%s11673_s7 + $0x168] sm:$0xff] }
 0x28d   : > { %3290 = vmatprep.subr.bf16.mxu0 %v11726_v29  ;;  %v9409_v2 = vpop.permute.xlu0 %1216  ;;  %v11728_v47 = vpack.c.bf16 %v9293_v45, %v9289_v0  ;;  %v8028_v0 = vld [vmem:[%s11673_s7 + $0x40] sm:$0xff] }
 0x28e   : > { %v1857_v3 = vpop.f32.mrf.mxu0  ;;  %v1945_v13 = vpop.f32.mrf.mxu1  ;;  %vm2068_vm14 = vcmp.gt.f32.partialorder %v1904_v27, 0.0 }
 0x28f   : > { %v2170_v3 = vsel %vm2042_vm11, %v1800_v34, %v2106_v42  ;;  %v2171_v13 = vsel %vm2043_vm12, %v1803_v63, %v2107_v50  ;;  %v8021_v42 = vld [vmem:[%s11673_s7 + $0x178] sm:$0xff]  ;;  %v8022_v50 = vld [vmem:[%s11673_s7 + $0x160] sm:$0xff] }
 0x290   : > { %v9405_v8 = vpop.f32.mrf.mxu0  ;;  %v9407_v49 = vpop.f32.mrf.mxu1  ;;  %3291 = vmatpush1.bf16.msra.mxu0 %v2363_v9  ;;  %v2360_v34 = vpack.c.bf16 %v2171_v13, %v2170_v3  ;;  %2579 = vperm.xlu1 %7358, %v8021_v42   ;;  %v2197_v13 = vsel %vm2069_vm13, %v1907_v55, %v2133_v41  ;;  %v9480_v42 = vadd.f32 %v9368_v62, %v9214_v35 }
 0x291   : > { %3292 = vmatprep.subr.bf16.mxu0 %v11726_v29  ;;  %v9425_v5 = vpop.permute.xlu0 %1376  ;;  %2567 = vperm.xlu0 %7359, %v8022_v50  }
 0x292   : > { %v1860_v46 = vpop.f32.mrf.mxu0  ;;  %v1948_v44 = vpop.f32.mrf.mxu1 }
 0x293   : > { %v9437_v46 = vpop.permute.xlu1 %1201 }
 0x294   : > { %v9420_v52 = vpop.f32.mrf.mxu0  ;;  %v9422_v32 = vpop.f32.mrf.mxu1  ;;  %3293 = vmatpush1.bf16.msra.mxu0 %v2362_v36  ;;  %2443 = vperm.xlu1 %7358, %v8023_v39   ;;  %v8027_v39 = vld [vmem:[%s11673_s7 + $0x58] sm:$0xff] }
 0x295   : > { %3294 = vmatprep.subr.bf16.mxu0 %v11726_v29  ;;  %v9451_v31 = vpop.permute.xlu0 %1206 }
 0x296   : > { %v1865_v24 = vpop.f32.mrf.mxu0  ;;  %v1953_v9 = vpop.f32.mrf.mxu1 }
 0x297   : > { %v9459_v24 = vpop.permute.xlu1 %1361  ;;  %v2132_v9 = vmul.f32 0.01, %v1904_v27 }
 0x298   : > { %v9433_v11 = vpop.f32.mrf.mxu0  ;;  %v9435_v36 = vpop.f32.mrf.mxu1  ;;  %3295 = vmatpush1.bf16.msra.mxu0 %v2361_v23  ;;  %v8024_v23 = vld [vmem:[%s11673_s7 + $0x50] sm:$0xff]  ;;  %2571 = vperm.xlu1 %7358, %v8025_v18  }
 0x299   : > { %3296 = vmatprep.subr.bf16.mxu0 %v11726_v29  ;;  %2431 = vperm.xlu0 %7359, %v8024_v23   ;;  %v9501_v23 = vmul.f32 0.01, %v9480_v42 }
 0x29a   : > { %v1956_v63 = vpop.f32.mrf.mxu1  ;;  %v1868_v44 = vpop.f32.mrf.mxu0 }
 0x29b   : > { %v2196_v63 = vsel %vm2068_vm14, %v1904_v27, %v2132_v9  ;;  %v1192_v50 = vpop.permute.xlu1 %1191  ;;  %v9498_v27 = vadd.f32 %v9358_v15, %v9212_v20  ;;  %v8029_v20 = vld [vmem:[%s11673_s7 + $0x158] sm:$0xff]  ;;  %v8030_v15 = vld [vmem:[%s11673_s7 + $0x140] sm:$0xff] }
 0x29c   : > { %v1959_v21 = vpop.f32.mrf.mxu1  ;;  %3297 = vmatpush1.bf16.msra.mxu0 %v2360_v34  ;;  %v9471_v34 = vpop.permute.xlu0 %1366  ;;  %v2373_v55 = vpack.c.bf16 %v2197_v13, %v2196_v63  ;;  %2435 = vperm.xlu1 %7358, %v8027_v39   ;;  %v8033_v39 = vld [vmem:[%s11673_s7 + $0x148] sm:$0xff] }
 0x29d   : > { %3298 = vmatprep.subr.bf16.mxu0 %v11726_v29  ;;  %2559 = vperm.xlu0 %7359, %v8026_v56   ;;  %v1960_v45 = vadd.f32 %v1959_v21, %v9135_v12  ;;  %v1955_v12 = vadd.f32 %v9435_v36, %v9166_v22  ;;  %v1952_v22 = vadd.f32 %v9422_v32, %v9161_v14  ;;  %vm2074_vm10 = vcmp.gt.f32.partialorder %v9498_v27, 0.0 }
 0x29e   : > { %v1961_v26 = vpop.f32.mrf.mxu1  ;;  %v1947_v14 = vadd.f32 %v9407_v49, %v9180_v19  ;;  %v8032_v19 = vld [vmem:[%s11673_s7 + $0x30] sm:$0xff]  ;;  %v1864_v49 = vadd.f32 %v9420_v52, %v9398_v10 }
 0x29f   : > { %v2146_v13 = vmul.f32 0.01, %v1960_v45  ;;  %vm2082_vm2 = vcmp.gt.f32.partialorder %v1960_v45, 0.0  ;;  %v2145_v63 = vmul.f32 0.01, %v1955_v12  ;;  %vm2081_vm3 = vcmp.gt.f32.partialorder %v1955_v12, 0.0 }
 0x2a0   : > { %v1962_v58 = vpop.f32.mrf.mxu1  ;;  %3299 = vmatpush1.bf16.msra.mxu0 %v11727_v51  ;;  %2563 = vperm.xlu1 %7358, %v8029_v20   ;;  %v1352_v51 = vpop.permute.xlu1 %1351  ;;  %vm2080_vm5 = vcmp.gt.f32.partialorder %v1952_v22, 0.0  ;;  %vm2079_vm8 = vcmp.gt.f32.partialorder %v1947_v14, 0.0  ;;  %vm2058_vm12 = vcmp.gt.f32.partialorder %v1864_v49, 0.0 }
 0x2a1   : > { %3300 = vmatprep.subr.bf16.mxu0 %v11726_v29  ;;  %v1963_v41 = vadd.f32 %v1962_v58, %v9137_v4  ;;  %2423 = vperm.xlu0 %7359, %v8028_v0   ;;  %v1197_v58 = vpop.permute.xlu0 %1196  ;;  %v2209_v52 = vsel %vm2081_vm3, %v1955_v12, %v2145_v63  ;;  %v8034_v0 = vld [vmem:[%s11673_s7 + $0x130] sm:$0xff] }
 0x2a2   : > { %v1964_v3 = vpop.f32.mrf.mxu1  ;;  %v9518_v9 = vadd.f32 %v9383_v28, %v1197_v58  ;;  %v9529_v28 = vadd.f32 %v9385_v16, %v9200_v33  ;;  %v8031_v33 = vld [vmem:[%s11673_s7 + $0x48] sm:$0xff]  ;;  %v2122_v58 = vmul.f32 0.01, %v1864_v49 }
 0x2a3   : > { %v2147_v21 = vmul.f32 0.01, %v1963_v41  ;;  %vm2083_vm1 = vcmp.gt.f32.partialorder %v1963_v41, 0.0  ;;  %v11729_v3 = vpack.c.bf16 %v9339_v60, %v9337_v1  ;;  %v9535_v1 = vadd.f32 %v9394_v17, %v9437_v46 }
 0x2a4   : > { %v1967_v57 = vpop.f32.mrf.mxu1  ;;  %3301 = vmatpush1.bf16.msra.mxu0 %v11728_v47  ;;  %v1867_v60 = vadd.f32 %v9433_v11, %v9409_v2  ;;  %2427 = vperm.xlu1 %7358, %v8031_v33   ;;  %v1944_v17 = vadd.f32 %v9396_v37, %v9178_v30  ;;  %v2144_v2 = vmul.f32 0.01, %v1952_v22  ;;  %v11730_v46 = vpack.c.bf16 %v9325_v40, %v9323_v38 }
 0x2a5   : > { %v1968_v44 = vadd.f32 %v1967_v57, %v9109_v59  ;;  %3302 = vmatprep.subr.bf16.mxu0 %v11726_v29  ;;  %v9491_v59 = vadd.f32 %v9375_v54, %v9195_v43  ;;  %v9504_v43 = vadd.f32 %v9373_v48, %v1192_v50  ;;  %2551 = vperm.xlu0 %7359, %v8030_v15   ;;  %v1357_v16 = vpop.permute.xlu0 %1356  ;;  %v2143_v37 = vmul.f32 0.01, %v1947_v14 }
 0x2a6   : > { %v1969_v26 = vpop.f32.mrf.mxu1  ;;  %v1859_v30 = vadd.f32 %v9405_v8, %v9451_v31  ;;  %v2123_v40 = vmul.f32 0.01, %v1867_v60  ;;  %v2142_v8 = vmul.f32 0.01, %v1944_v17  ;;  %v2208_v31 = vsel %vm2080_vm5, %v1952_v22, %v2144_v2 }
 0x2a7   : > { %v2148_v62 = vmul.f32 0.01, %v1968_v44  ;;  %vm2084_vm15 = vcmp.gt.f32.partialorder %v1968_v44, 0.0  ;;  %v9515_v48 = vmul.f32 0.01, %v9491_v59  ;;  %vm2076_vm4 = vcmp.gt.f32.partialorder %v9491_v59, 0.0 }
 0x2a8   : > { %v1970_v35 = vpop.f32.mrf.mxu1  ;;  %3303 = vmatpush2.bf16.msra.mxu0 %v2373_v55  ;;  %v2210_v55 = vsel %vm2082_vm2, %v1960_v45, %v2146_v13  ;;  %2555 = vperm.xlu1 %7358, %v8033_v39   ;;  %vm2059_vm9 = vcmp.gt.f32.partialorder %v1867_v60, 0.0  ;;  %v11731_v45 = vld [vmem:[#allocation25_spill] sm:$0xff]  ;;  %vm2078_vm11 = vcmp.gt.f32.partialorder %v1944_v17, 0.0  ;;  %v2121_v22 = vmul.f32 0.01, %v1859_v30  ;;  %v8040_v39 = vld [vmem:[%s11673_s7 + $0x10] sm:$0xff] }
 0x2a9   : > { %v1971_v4 = vadd.f32 %v1970_v35, %v9117_v6  ;;  %3304 = vmatprep.subr.bf16.mxu0 %v11726_v29  ;;  %v2212_v18 = vsel %vm2084_vm15, %v1968_v44, %v2148_v62  ;;  %v2211_v44 = vsel %vm2083_vm1, %v1963_v41, %v2147_v21  ;;  %2415 = vperm.xlu0 %7359, %v8032_v19   ;;  %v11732_v62 = vld [vmem:[#allocation24_spill] sm:$0xff]  ;;  %v8036_v13 = vld [vmem:[%s11673_s7 + $0x20] sm:$0xff]  ;;  %vm2077_vm13 = vcmp.gt.f32.partialorder %v9529_v28, 0.0 }
 0x2aa   : > { %v1972_v54 = vpop.f32.mrf.mxu1  ;;  %v2380_v10 = vpack.c.bf16 %v2211_v44, %v2210_v55  ;;  %vm2057_vm14 = vcmp.gt.f32.partialorder %v1859_v30, 0.0  ;;  %v2186_v63 = vsel %vm2058_vm12, %v1864_v49, %v2122_v58  ;;  %vm2056_vm15 = vcmp.gt.f32.partialorder %v9535_v1, 0.0  ;;  %v8043_v58 = vld [vmem:[%s11673_s7 + $0x18] sm:$0xff] }
 0x2ab   : > { %vm2085_vm0 = vcmp.gt.f32.partialorder %v1971_v4, 0.0  ;;  %v2149_v6 = vmul.f32 0.01, %v1971_v4  ;;  %v2138_v55 = vmul.f32 0.01, %v9498_v27  ;;  %vm2075_vm2 = vcmp.gt.f32.partialorder %v9480_v42, 0.0 }
 0x2ac   : > { %v1975_v36 = vpop.f32.mrf.mxu1  ;;  %3305 = vmatpush2.bf16.msra.mxu0 %v11729_v3  ;;  %v8035_v3 = vld [vmem:[%s11673_s7 + $0x38] sm:$0xff]  ;;  %vm2055_vm3 = vcmp.gt.f32.partialorder %v9518_v9, 0.0 }
 0x2ad   : > { %v2213_v56 = vsel %vm2085_vm0, %v1971_v4, %v2149_v6  ;;  %v1976_v57 = vadd.f32 %v1975_v36, %v1352_v51  ;;  %3306 = vmatprep.subr.bf16.mxu0 %v11726_v29  ;;  %2543 = vperm.xlu0 %7359, %v8034_v0   ;;  %v11733_v4 = vpack.c.bf16 %v11731_v45, %v11732_v62  ;;  %v2141_v51 = vmul.f32 0.01, %v9529_v28  ;;  %v8041_v45 = vld [vmem:[%s11673_s7 + $0x128] sm:$0xff]  ;;  %v8042_v62 = vld [vmem:[%s11673_s7 + $0x110] sm:$0xff] }
 0x2ae   : > { %v2381_v32 = vpack.c.bf16 %v2213_v56, %v2212_v18  ;;  %v1977_v47 = vpop.f32.mrf.mxu1  ;;  %v2379_v6 = vpack.c.bf16 %v2209_v52, %v2208_v31  ;;  %v2207_v36 = vsel %vm2079_vm8, %v1947_v14, %v2143_v37  ;;  %2419 = vperm.xlu1 %7358, %v8035_v3   ;;  %v2119_v18 = vmul.f32 0.01, %v9518_v9  ;;  %v11734_v14 = vld [vmem:[#allocation23_spill] sm:$0xff] }
 0x2af   : > { %v2150_v50 = vmul.f32 0.01, %v1976_v57  ;;  %vm2086_vm6 = vcmp.gt.f32.partialorder %v1976_v57, 0.0  ;;  %v2120_v56 = vmul.f32 0.01, %v9535_v1 }
 0x2b0   : > { %v1978_v11 = vpop.f32.mrf.mxu1  ;;  %3307 = vmatpush2.bf16.msra.mxu0 %v11730_v46  ;;  %3576 = vmatpush1.bf16.msra.mxu1 %v2381_v32  ;;  %v11735_v32 = vld [vmem:[#allocation22_spill] sm:$0xff]  ;;  %v2183_v52 = vsel %vm2055_vm3, %v9518_v9, %v2119_v18 }
 0x2b1   : > { %v1979_v26 = vadd.f32 %v1978_v11, %v1357_v16  ;;  %3308 = vmatprep.subr.bf16.mxu0 %v11726_v29  ;;  %3577 = vmatprep.subr.bf16.mxu1 %v11726_v29  ;;  %v9571_v54 = vsel %vm2086_vm6, %v1976_v57, %v2150_v50  ;;  %v11736_v47 = vpack.c.bf16 %v11734_v14, %v11735_v32  ;;  %v8038_v46 = vld [vmem:[%s11673_s7 + $0x120] sm:$0xff]  ;;  %v8047_v32 = vld [vmem:[%s11673_s7 + $0x8] sm:$0xff] }
 0x2b2   : > { %v1980_v38 = vpop.f32.mrf.mxu1  ;;  %2407 = vperm.xlu0 %7359, %v8036_v13   ;;  %v2205_v11 = vsel %vm2077_vm13, %v9529_v28, %v2141_v51  ;;  %v2204_v28 = vsel %vm2076_vm4, %v9491_v59, %v9515_v48  ;;  %vm2054_vm4 = vcmp.gt.f32.partialorder %v9504_v43, 0.0  ;;  %v8044_v51 = vld [vmem:[%s11673_s7] sm:$0xff]  ;;  %v11739_v13 = vld [vmem:[#allocation27_spill] sm:$0xff] }
 0x2b3   : > { %vm2087_vm7 = vcmp.gt.f32.partialorder %v1979_v26, 0.0  ;;  %v2151_v41 = vmul.f32 0.01, %v1979_v26  ;;  %v2377_v59 = vpack.c.bf16 %v2205_v11, %v2204_v28  ;;  %v8053_v28 = vld [vmem:[%s11673_s7 + $0x1f8] sm:$0xff] }
 0x2b4   : > { %v1983_v35 = vpop.f32.mrf.mxu1  ;;  %3309 = vmatpush2.bf16.msra.mxu0 %v11733_v4  ;;  %3578 = vmatpush1.bf16.msra.mxu1 %v2380_v10 }
 0x2b5   : > { %v9573_v12 = vsel %vm2087_vm7, %v1979_v26, %v2151_v41  ;;  %v1984_v21 = vadd.f32 %v1983_v35, %v9459_v24  ;;  %3310 = vmatprep.subr.bf16.mxu0 %v11726_v29  ;;  %3579 = vmatprep.subr.bf16.mxu1 %v11726_v29  ;;  %v2187_v24 = vsel %vm2059_vm9, %v1867_v60, %v2123_v40  ;;  %v2118_v26 = vmul.f32 0.01, %v9504_v43  ;;  %v8039_v41 = vld [vmem:[%s11673_s7 + $0x28] sm:$0xff]  ;;  %v7477_v35 = vld [vmem:[#allocation5] ss:$16 sps:$4 sm:$0xff]  }
 0x2b6   : > { %v2382_v20 = vpack.c.bf16 %v9573_v12, %v9571_v54  ;;  %v1985_v15 = vpop.f32.mrf.mxu1  ;;  %v2206_v60 = vsel %vm2078_vm11, %v1944_v17, %v2142_v8  ;;  %v2368_v16 = vpack.c.bf16 %v2187_v24, %v2186_v63  ;;  %v2185_v17 = vsel %vm2057_vm14, %v1859_v30, %v2121_v22  ;;  %2535 = vperm.xlu0 %7359, %v8038_v46   ;;  %v8045_v24 = vld [vmem:[%s11673_s7 + $0x118] sm:$0xff]  ;;  %v7510_v54 = vld [vmem:[#allocation5 + $0x140] ss:$16 sps:$4 sm:$0xff]  }
 0x2b7   : > { %v2152_v44 = vmul.f32 0.01, %v1984_v21  ;;  %v2378_v19 = vpack.c.bf16 %v2207_v36, %v2206_v60  ;;  %vm2088_vm0 = vcmp.gt.f32.partialorder %v1984_v21, 0.0  ;;  %v2184_v30 = vsel %vm2056_vm15, %v9535_v1, %v2120_v56  ;;  %v7482_v36 = vld [vmem:[#allocation5 + $0x20] ss:$16 sps:$4 sm:$0xff]  }
 0x2b8   : > { %v1986_v57 = vpop.f32.mrf.mxu1  ;;  %3311 = vmatpush2.bf16.msra.mxu0 %v11736_v47  ;;  %3580 = vmatpush1.bf16.msra.mxu1 %v2379_v6  ;;  %v2367_v48 = vpack.c.bf16 %v2185_v17, %v2184_v30  ;;  %v2203_v1 = vsel %vm2075_vm2, %v9480_v42, %v9501_v23  ;;  %v2202_v42 = vsel %vm2074_vm10, %v9498_v27, %v2138_v55  ;;  %v11737_v6 = vld [vmem:[#allocation28_spill] sm:$0xff] }
 0x2b9   : > { %v1987_v33 = vadd.f32 %v1986_v57, %v9471_v34  ;;  %3312 = vmatprep.subr.bf16.mxu0 %v11726_v29  ;;  %3581 = vmatprep.subr.bf16.mxu1 %v11726_v29  ;;  %v8037_v34 = vld [vmem:[%s11673_s7 + $0x138] sm:$0xff]  ;;  %v9626_v37 = vsel %vm2088_vm0, %v1984_v21, %v2152_v44  ;;  %v2182_v23 = vsel %vm2054_vm4, %v9504_v43, %v2118_v26  ;;  %v7480_v43 = vld [vmem:[#allocation5 + $0x24] ss:$16 sps:$4 sm:$0xff]   ;;  %v7485_v44 = vld [vmem:[#allocation5 + $0x40] ss:$16 sps:$4 sm:$0xff]  }
 0x2ba   : > { %v1988_v2 = vpop.f32.mrf.mxu1  ;;  %2547 = vperm.xlu1 %7358, %v8037_v34   ;;  %2399 = vperm.xlu0 %7359, %v8040_v39   ;;  %v2376_v9 = vpack.c.bf16 %v2203_v1, %v2202_v42  ;;  %v2366_v8 = vpack.c.bf16 %v2183_v52, %v2182_v23  ;;  %v11738_v15 = vpack.c.bf16 %v9363_v7, %v11737_v6  ;;  %v11740_v7 = vld [vmem:[#allocation26_spill] sm:$0xff]  ;;  %v8048_v60 = vld [vmem:[%s11673_s7 + $0xf0] sm:$0xff]  ;;  %v8051_v17 = vld [vmem:[%s11673_s7 + $0xf8] sm:$0xff] }
 0x2bb   : > { %vm2089_vm1 = vcmp.gt.f32.partialorder %v1987_v33, 0.0  ;;  %v2153_v49 = vmul.f32 0.01, %v1987_v33  ;;  %v11741_v18 = vpack.c.bf16 %v11739_v13, %v11740_v7  ;;  %v7483_v56 = vld [vmem:[#allocation5 + $0x44] ss:$16 sps:$4 sm:$0xff]   ;;  %v8057_v42 = vld [vmem:[%s11673_s7 + $0x1e8] sm:$0xff] }
 0x2bc   : > { %v9619_v50 = vpop.f32.mrf.mxu1  ;;  %3313 = vmatpush2.bf16.msra.mxu0 %v2368_v16  ;;  %3582 = vmatpush1.bf16.msra.mxu1 %v2378_v19  ;;  %v8046_v57 = vld [vmem:[%s11673_s7 + $0x100] sm:$0xff]  ;;  %v8050_v2 = vld [vmem:[%s11673_s7 + $0x1f0] sm:$0xff]  ;;  %v7515_v12 = vld [vmem:[#allocation5 + $0x28] ss:$16 sps:$4 sm:$0xff]  }
 0x2bd   : > { %v9629_v10 = vsel %vm2089_vm1, %v1987_v33, %v2153_v49  ;;  %3314 = vmatprep.subr.bf16.mxu0 %v11726_v29  ;;  %3583 = vmatprep.subr.bf16.mxu1 %v11726_v29  ;;  %v8049_v33 = vld [vmem:[%s11673_s7 + $0x108] sm:$0xff]  ;;  %v7486_v16 = vld [vmem:[#allocation5 + $0x64] ss:$16 sps:$4 sm:$0xff]   ;;  %v7488_v55 = vld [vmem:[#allocation5 + $0x60] ss:$16 sps:$4 sm:$0xff]  }
 0x2be   : > { %v2383_v38 = vpack.c.bf16 %v9629_v10, %v9626_v37  ;;  %v1993_v40 = vpop.f32.mrf.mxu1  ;;  %2411 = vperm.xlu1 %7358, %v8039_v41   ;;  %2527 = vperm.xlu0 %7359, %v8042_v62   ;;  %v8052_v34 = vld [vmem:[%s11673_s7 + $0xe0] sm:$0xff]  ;;  %v8056_v52 = vld [vmem:[%s11673_s7 + $0xd0] sm:$0xff]  ;;  %v7513_v10 = vld [vmem:[#allocation5 + $0x2c] ss:$16 sps:$4 sm:$0xff]  }
 0x2bf   : > { %v7489_v30 = vld [vmem:[#allocation5 + $0x84] ss:$16 sps:$4 sm:$0xff]   ;;  %v8055_v40 = vld [vmem:[%s11673_s7 + $0xe8] sm:$0xff]  ;;  %v7491_v39 = vld [vmem:[#allocation5 + $0x80] ss:$16 sps:$4 sm:$0xff]  }
 0x2c0   : > { %v9649_v0 = vpop.f32.mrf.mxu1  ;;  %3315 = vmatpush2.bf16.msra.mxu0 %v2367_v48  ;;  %3584 = vmatpush1.bf16.msra.mxu1 %v2377_v59  ;;  %v8054_v59 = vld [vmem:[%s11673_s7 + $0x1e0] sm:$0xff]  ;;  %v11744_v6 = vld [vmem:[#allocation16_spill] sm:$0xff] }
 0x2c1   : > { %3316 = vmatprep.subr.bf16.mxu0 %v11726_v29  ;;  %3585 = vmatprep.subr.bf16.mxu1 %v11726_v29  ;;  %v11743_v62 = vld [vmem:[#allocation17_spill] sm:$0xff]  ;;  %v7512_v37 = vld [vmem:[#allocation5 + $0x144] ss:$16 sps:$4 sm:$0xff]  }
 0x2c2   : > { %v1996_v31 = vpop.f32.mrf.mxu1  ;;  %2539 = vperm.xlu1 %7358, %v8041_v45   ;;  %2391 = vperm.xlu0 %7359, %v8044_v51   ;;  %v7494_v7 = vld [vmem:[#allocation5 + $0xa0] ss:$16 sps:$4 sm:$0xff]  }
 0x2c4   : > { %v9663_v27 = vpop.f32.mrf.mxu1  ;;  %3317 = vmatpush2.bf16.msra.mxu0 %v2366_v8  ;;  %3586 = vmatpush1.bf16.msra.mxu1 %v2376_v9  ;;  %v7492_v9 = vld [vmem:[#allocation5 + $0xa4] ss:$16 sps:$4 sm:$0xff]  }
 0x2c5   : > { %3587 = vmatprep.subr.bf16.mxu1 %v11726_v29  ;;  %5112 = vmatprep.subr.bf16.mxu0 %v11726_v29  ;;  %v11742_v8 = vld [vmem:[#allocation14_spill] sm:$0xff] }
 0x2c6   : > { %v2001_v4 = vpop.f32.mrf.mxu1  ;;  %2403 = vperm.xlu1 %7358, %v8043_v58   ;;  %2519 = vperm.xlu0 %7359, %v8046_v57  }
 0x2c7   : > { %3319 = vmatmul.mubr.bf16.vlgmr.msra.gmra.mxu0 %v7477_v35  ;;  %v8058_v35 = vld [vmem:[%s11673_s7 + $0x1d0] sm:$0xff]  ;;  %v8059_v4 = vld [vmem:[%s11673_s7 + $0xd8] sm:$0xff] }
 0x2c8   : > { %v9670_v21 = vpop.f32.mrf.mxu1  ;;  %3588 = vmatpush1.bf16.msra.mxu1 %v11738_v15  ;;  %3326 = vmatprep.mubr.bf16.mxu0 %v7480_v43 }
 0x2c9   : > { %3589 = vmatprep.subr.bf16.mxu1 %v11726_v29 }
 0x2ca   : > { %v2004_v22 = vpop.f32.mrf.mxu1  ;;  %2531 = vperm.xlu1 %7358, %v8045_v24   ;;  %2511 = vperm.xlu0 %7359, %v8048_v60   ;;  %v8060_v24 = vld [vmem:[%s11673_s7 + $0xc0] sm:$0xff] }
 0x2cb   : > { %v11745_v22 = vld [vmem:[#allocation15_spill] sm:$0xff]  ;;  %v7495_v60 = vld [vmem:[#allocation5 + $0xc4] ss:$16 sps:$4 sm:$0xff]  }
 0x2cc   : > { %v9682_v3 = vpop.f32.mrf.mxu1  ;;  %3590 = vmatpush1.bf16.msra.mxu1 %v11741_v18  ;;  %v11746_v18 = vld [vmem:[#allocation19_spill] sm:$0xff] }
 0x2cd   : > { %3591 = vmatprep.subr.bf16.mxu1 %v11726_v29 }
 0x2ce   : > { %v2009_v14 = vpop.f32.mrf.mxu1  ;;  %2395 = vperm.xlu1 %7358, %v8047_v32   ;;  %2639 = vperm.xlu0 %7359, %v8050_v2   ;;  %v8061_v32 = vld [vmem:[%s11673_s7 + $0x1d8] sm:$0xff] }
 0x2cf   : > { %3327 = vmatmul.mubr.bf16.gmra.mxu0 %v7482_v36 }
 0x2d0   : > { %v9694_v47 = vpop.f32.mrf.mxu1  ;;  %3334 = vmatprep.mubr.bf16.mxu0 %v7483_v56 }
 0x2d2   : > { %v2012_v63 = vpop.f32.mrf.mxu1  ;;  %2523 = vperm.xlu1 %7358, %v8049_v33   ;;  %2503 = vperm.xlu0 %7359, %v8052_v34  }
 0x2d3   : > { %v11747_v63 = vld [vmem:[#allocation18_spill] sm:$0xff] }
 0x2d4   : > { %v2015_v19 = vpop.f32.mrf.mxu1 }
 0x2d6   : > { %v2017_v11 = vpop.f32.mrf.mxu1  ;;  %2515 = vperm.xlu1 %7358, %v8051_v17   ;;  %2631 = vperm.xlu0 %7359, %v8054_v59  }
 0x2d7   : > { %3335 = vmatmul.mubr.bf16.gmra.mxu0 %v7485_v44  ;;  %v2016_v44 = vadd.f32 %v2015_v19, %v11747_v63  ;;  %v8062_v11 = vld [vmem:[%s11673_s7 + $0x1c0] sm:$0xff]  ;;  %v8063_v19 = vld [vmem:[%s11673_s7 + $0xc8] sm:$0xff] }
 0x2d8   : > { %v2018_v49 = vpop.f32.mrf.mxu1  ;;  %3342 = vmatprep.mubr.bf16.mxu0 %v7486_v16  ;;  %v8076_v63 = vld [vmem:[%s11673_s7 + $0x80] sm:$0xff] }
 0x2d9   : > { %v2019_v56 = vadd.f32 %v2018_v49, %v11746_v18  ;;  %v11748_v49 = vld [vmem:[#allocation21_spill] sm:$0xff]  ;;  %vm2096_vm10 = vcmp.gt.f32.partialorder %v2016_v44, 0.0 }
 0x2da   : > { %v2020_v46 = vpop.f32.mrf.mxu1  ;;  %2643 = vperm.xlu1 %7358, %v8053_v28   ;;  %2495 = vperm.xlu0 %7359, %v8056_v52   ;;  %v2011_v34 = vadd.f32 %v9694_v47, %v11748_v49  ;;  %v11749_v28 = vld [vmem:[#allocation20_spill] sm:$0xff] }
 0x2db   : > { %v2161_v46 = vmul.f32 0.01, %v2019_v56  ;;  %vm2097_vm9 = vcmp.gt.f32.partialorder %v2019_v56, 0.0  ;;  %v8064_v47 = vld [vmem:[%s11673_s7 + $0xb0] sm:$0xff] }
 0x2dc   : > { %v2023_v26 = vpop.f32.mrf.mxu1  ;;  %vm2095_vm11 = vcmp.gt.f32.partialorder %v2011_v34, 0.0  ;;  %v7516_v49 = vld [vmem:[#allocation5 + $0x160] ss:$16 sps:$4 sm:$0xff]  }
 0x2dd   : > { %v2024_v15 = vadd.f32 %v2023_v26, %v11744_v6  ;;  %v2008_v26 = vadd.f32 %v9682_v3, %v11749_v28  ;;  %v2225_v52 = vsel %vm2097_vm9, %v2019_v56, %v2161_v46  ;;  %v8065_v3 = vld [vmem:[%s11673_s7 + $0x1c8] sm:$0xff]  ;;  %v8069_v6 = vld [vmem:[%s11673_s7 + $0x1b8] sm:$0xff]  ;;  %v7503_v56 = vld [vmem:[#allocation5 + $0x100] ss:$16 sps:$4 sm:$0xff]  }
 0x2de   : > { %v2025_v48 = vpop.f32.mrf.mxu1  ;;  %2507 = vperm.xlu1 %7358, %v8055_v40   ;;  %2623 = vperm.xlu0 %7359, %v8058_v35   ;;  %v2003_v40 = vadd.f32 %v9670_v21, %v9392_v53  ;;  %v8066_v53 = vld [vmem:[%s11673_s7 + $0x1b0] sm:$0xff]  ;;  %v7527_v28 = vld [vmem:[#allocation5 + $0x68] ss:$16 sps:$4 sm:$0xff]  }
 0x2df   : > { %3343 = vmatmul.mubr.bf16.gmra.mxu0 %v7488_v55  ;;  %v2162_v33 = vmul.f32 0.01, %v2024_v15  ;;  %vm2098_vm8 = vcmp.gt.f32.partialorder %v2024_v15, 0.0  ;;  %vm2094_vm12 = vcmp.gt.f32.partialorder %v2008_v26, 0.0  ;;  %v7524_v46 = vld [vmem:[#allocation5 + $0x184] ss:$16 sps:$4 sm:$0xff]  }
 0x2e0   : > { %v2026_v1 = vpop.f32.mrf.mxu1  ;;  %3350 = vmatprep.mubr.bf16.mxu0 %v7489_v30  ;;  %v2160_v30 = vmul.f32 0.01, %v2016_v44  ;;  %vm2093_vm13 = vcmp.gt.f32.partialorder %v2003_v40, 0.0 }
 0x2e1   : > { %v2027_v43 = vadd.f32 %v2026_v1, %v11743_v62  ;;  %v2226_v59 = vsel %vm2098_vm8, %v2024_v15, %v2162_v33  ;;  %v2159_v1 = vmul.f32 0.01, %v2011_v34  ;;  %v7507_v33 = vld [vmem:[#allocation5 + $0x8] ss:$16 sps:$4 sm:$0xff]  }
 0x2e2   : > { %v2028_v41 = vpop.f32.mrf.mxu1  ;;  %2635 = vperm.xlu1 %7358, %v8057_v42   ;;  %2487 = vperm.xlu0 %7359, %v8060_v24   ;;  %v2000_v42 = vadd.f32 %v9663_v27, %v9381_v25  ;;  %v8067_v25 = vld [vmem:[%s11673_s7 + $0xb8] sm:$0xff]  ;;  %v1992_v27 = vadd.f32 %v9619_v50, %v9412_v61  ;;  %v7501_v61 = vld [vmem:[#allocation5 + $0x104] ss:$16 sps:$4 sm:$0xff]   ;;  %v8071_v24 = vld [vmem:[%s11673_s7 + $0xa8] sm:$0xff] }
 0x2e3   : > { %v2163_v57 = vmul.f32 0.01, %v2027_v43  ;;  %vm2099_vm7 = vcmp.gt.f32.partialorder %v2027_v43, 0.0  ;;  %v7497_v41 = vld [vmem:[#allocation5 + $0xc0] ss:$16 sps:$4 sm:$0xff]   ;;  %v2223_v35 = vsel %vm2095_vm11, %v2011_v34, %v2159_v1 }
 0x2e4   : > { %v2031_v23 = vpop.f32.mrf.mxu1  ;;  %vm2092_vm14 = vcmp.gt.f32.partialorder %v2000_v42, 0.0  ;;  %v2154_v50 = vmul.f32 0.01, %v1992_v27  ;;  %vm2090_vm0 = vcmp.gt.f32.partialorder %v1992_v27, 0.0  ;;  %v7521_v34 = vld [vmem:[#allocation5 + $0x48] ss:$16 sps:$4 sm:$0xff]  }
 0x2e5   : > { %v2032_v31 = vadd.f32 %v2031_v23, %v11742_v8  ;;  %v2227_v55 = vsel %vm2099_vm7, %v2027_v43, %v2163_v57  ;;  %v2158_v23 = vmul.f32 0.01, %v2008_v26  ;;  %v1995_v8 = vadd.f32 %v9649_v0, %v9425_v5  ;;  %v8068_v5 = vld [vmem:[%s11673_s7 + $0xa0] sm:$0xff]  ;;  %v8073_v57 = vld [vmem:[%s11673_s7 + $0x1a8] sm:$0xff] }
 0x2e6   : > { %v2033_v45 = vpop.f32.mrf.mxu1  ;;  %2499 = vperm.xlu1 %7358, %v8059_v4   ;;  %2615 = vperm.xlu0 %7359, %v8062_v11   ;;  %v2388_v48 = vpack.c.bf16 %v2227_v55, %v2226_v59  ;;  %v7519_v11 = vld [vmem:[#allocation5 + $0x4c] ss:$16 sps:$4 sm:$0xff]   ;;  %v7528_v59 = vld [vmem:[#allocation5 + $0x1a0] ss:$16 sps:$4 sm:$0xff]  }
 0x2e7   : > { %3351 = vmatmul.mubr.bf16.gmra.mxu0 %v7491_v39  ;;  %v2164_v51 = vmul.f32 0.01, %v2032_v31  ;;  %vm2100_vm5 = vcmp.gt.f32.partialorder %v2032_v31, 0.0  ;;  %v7498_v39 = vld [vmem:[#allocation5 + $0xe4] ss:$16 sps:$4 sm:$0xff]   ;;  %v2222_v62 = vsel %vm2094_vm12, %v2008_v26, %v2158_v23  ;;  %vm2091_vm15 = vcmp.gt.f32.partialorder %v1995_v8, 0.0 }
 0x2e8   : > { %v2034_v58 = vpop.f32.mrf.mxu1  ;;  %3358 = vmatprep.mubr.bf16.mxu0 %v7492_v9  ;;  %v2224_v9 = vsel %vm2096_vm10, %v2016_v44, %v2160_v30  ;;  %v2156_v45 = vmul.f32 0.01, %v2000_v42  ;;  %v2386_v0 = vpack.c.bf16 %v2223_v35, %v2222_v62  ;;  %v2155_v43 = vmul.f32 0.01, %v1995_v8  ;;  %v7504_v44 = vld [vmem:[#allocation5 + $0x120] ss:$16 sps:$4 sm:$0xff]  }
 0x2e9   : > { %v2035_v36 = vadd.f32 %v2034_v58, %v11745_v22  ;;  %v2228_v16 = vsel %vm2100_vm5, %v2032_v31, %v2164_v51  ;;  %v2387_v21 = vpack.c.bf16 %v2225_v52, %v2224_v9  ;;  %v2157_v31 = vmul.f32 0.01, %v2003_v40  ;;  %v7500_v58 = vld [vmem:[#allocation5 + $0xe0] ss:$16 sps:$4 sm:$0xff]   ;;  %v7525_v55 = vld [vmem:[#allocation5 + $0x6c] ss:$16 sps:$4 sm:$0xff]  }
 0x2ea   : > { %v2036_v13 = vpop.f32.mrf.mxu1  ;;  %2627 = vperm.xlu1 %7358, %v8061_v32   ;;  %2479 = vperm.xlu0 %7359, %v8064_v47   ;;  %v2220_v15 = vsel %vm2092_vm14, %v2000_v42, %v2156_v45  ;;  %v8070_v51 = vld [vmem:[%s11673_s7 + $0x1a0] sm:$0xff]  ;;  %v8074_v32 = vld [vmem:[%s11673_s7 + $0x190] sm:$0xff]  ;;  %v7531_v30 = vld [vmem:[#allocation5 + $0x8c] ss:$16 sps:$4 sm:$0xff]  }
 0x2eb   : > { %vm2101_vm6 = vcmp.gt.f32.partialorder %v2035_v36, 0.0  ;;  %v2165_v14 = vmul.f32 0.01, %v2035_v36  ;;  %v2221_v4 = vsel %vm2093_vm13, %v2003_v40, %v2157_v31  ;;  %v2218_v13 = vsel %vm2090_vm0, %v1992_v27, %v2154_v50  ;;  %v7530_v26 = vld [vmem:[#allocation5 + $0x1a4] ss:$16 sps:$4 sm:$0xff]  }
 0x2ec   : > { %v2385_v22 = vpack.c.bf16 %v2221_v4, %v2220_v15  ;;  %v7533_v47 = vld [vmem:[#allocation5 + $0x88] ss:$16 sps:$4 sm:$0xff]   ;;  %v7537_v40 = vld [vmem:[#allocation5 + $0xac] ss:$16 sps:$4 sm:$0xff]   ;;  %v7534_v1 = vld [vmem:[#allocation5 + $0x1c0] ss:$16 sps:$4 sm:$0xff]  }
 0x2ed   : > { %v2229_v2 = vsel %vm2101_vm6, %v2035_v36, %v2165_v14  ;;  %v2219_v36 = vsel %vm2091_vm15, %v1995_v8, %v2155_v43  ;;  %v7506_v14 = vld [vmem:[#allocation5 + $0x124] ss:$16 sps:$4 sm:$0xff]   ;;  %v7539_v52 = vld [vmem:[#allocation5 + $0xa8] ss:$16 sps:$4 sm:$0xff]   ;;  %v7551_v9 = vld [vmem:[#allocation5 + $0xec] ss:$16 sps:$4 sm:$0xff]  }
 0x2ee   : > { %v2389_v17 = vpack.c.bf16 %v2229_v2, %v2228_v16  ;;  %2491 = vperm.xlu1 %7358, %v8063_v19   ;;  %2607 = vperm.xlu0 %7359, %v8066_v53   ;;  %v2384_v18 = vpack.c.bf16 %v2219_v36, %v2218_v13  ;;  %v8077_v16 = vld [vmem:[%s11673_s7 + $0x198] sm:$0xff]  ;;  %v8079_v2 = vld [vmem:[%s11673_s7 + $0x88] sm:$0xff]  ;;  %v7522_v19 = vld [vmem:[#allocation5 + $0x180] ss:$16 sps:$4 sm:$0xff]  }
 0x2ef   : > { %3359 = vmatmul.mubr.bf16.gmra.mxu0 %v7494_v7  ;;  %v8072_v7 = vld [vmem:[%s11673_s7 + $0x90] sm:$0xff]  ;;  %v7545_v42 = vld [vmem:[#allocation5 + $0xc8] ss:$16 sps:$4 sm:$0xff]   ;;  %v7557_v31 = vld [vmem:[#allocation5 + $0x10c] ss:$16 sps:$4 sm:$0xff]  }
 0x2f0   : > { %3592 = vmatpush2.bf16.msra.mxu1 %v2389_v17  ;;  %3366 = vmatprep.mubr.bf16.mxu0 %v7495_v60  ;;  %v8075_v60 = vld [vmem:[%s11673_s7 + $0x98] sm:$0xff]  ;;  %v8080_v17 = vld [vmem:[%s11673_s7 + $0x188] sm:$0xff]  ;;  %v7548_v23 = vld [vmem:[#allocation5 + $0x204] ss:$16 sps:$4 sm:$0xff]  }
 0x2f1   : > { %3593 = vmatprep.subr.bf16.mxu1 %v11726_v29  ;;  %v7546_v53 = vld [vmem:[#allocation5 + $0x200] ss:$16 sps:$4 sm:$0xff]   ;;  %v7554_v8 = vld [vmem:[#allocation5 + $0x224] ss:$16 sps:$4 sm:$0xff]   ;;  %v7563_v45 = vld [vmem:[#allocation5 + $0x12c] ss:$16 sps:$4 sm:$0xff]  }
 0x2f2   : > { %2619 = vperm.xlu1 %7358, %v8065_v3   ;;  %2471 = vperm.xlu0 %7359, %v8068_v5   ;;  %v7543_v3 = vld [vmem:[#allocation5 + $0xcc] ss:$16 sps:$4 sm:$0xff]   ;;  %v7552_v35 = vld [vmem:[#allocation5 + $0x220] ss:$16 sps:$4 sm:$0xff]   ;;  %v7560_v27 = vld [vmem:[#allocation5 + $0x244] ss:$16 sps:$4 sm:$0xff]  }
 0x2f3   : > { %v7558_v62 = vld [vmem:[#allocation5 + $0x240] ss:$16 sps:$4 sm:$0xff]   ;;  %v7561_v5 = vld [vmem:[#allocation5 + $0x128] ss:$16 sps:$4 sm:$0xff]   ;;  %v7569_v43 = vld [vmem:[#allocation5 + $0x14c] ss:$16 sps:$4 sm:$0xff]  }
 0x2f4   : > { %3594 = vmatpush2.bf16.msra.mxu1 %v2388_v48  ;;  %v7536_v48 = vld [vmem:[#allocation5 + $0x1c4] ss:$16 sps:$4 sm:$0xff]   ;;  %v7567_v50 = vld [vmem:[#allocation5 + $0x148] ss:$16 sps:$4 sm:$0xff]  }
 0x2f5   : > { %3595 = vmatprep.subr.bf16.mxu1 %v11726_v29  ;;  %v7572_v15 = vld [vmem:[#allocation5 + $0x284] ss:$16 sps:$4 sm:$0xff]   ;;  %v7573_v13 = vld [vmem:[#allocation5 + $0x168] ss:$16 sps:$4 sm:$0xff]  }
 0x2f6   : > { %2483 = vperm.xlu1 %7358, %v8067_v25   ;;  %2599 = vperm.xlu0 %7359, %v8070_v51   ;;  %v7555_v25 = vld [vmem:[#allocation5 + $0x108] ss:$16 sps:$4 sm:$0xff]   ;;  %v7575_v51 = vld [vmem:[#allocation5 + $0x16c] ss:$16 sps:$4 sm:$0xff]  }
 0x2f7   : > { %3367 = vmatmul.mubr.bf16.gmra.mxu0 %v7497_v41  ;;  %v7542_v41 = vld [vmem:[#allocation5 + $0x1e4] ss:$16 sps:$4 sm:$0xff]  }
 0x2f8   : > { %3596 = vmatpush2.bf16.msra.mxu1 %v2387_v21  ;;  %3374 = vmatprep.mubr.bf16.mxu0 %v7498_v39  ;;  %v7540_v39 = vld [vmem:[#allocation5 + $0x1e0] ss:$16 sps:$4 sm:$0xff]   ;;  %v7549_v21 = vld [vmem:[#allocation5 + $0xe8] ss:$16 sps:$4 sm:$0xff]  }
 0x2f9   : > { %3597 = vmatprep.subr.bf16.mxu1 %v11726_v29 }
 0x2fa   : > { %2611 = vperm.xlu1 %7358, %v8069_v6   ;;  %2463 = vperm.xlu0 %7359, %v8072_v7   ;;  %v7578_v7 = vld [vmem:[#allocation5 + $0x2a4] ss:$16 sps:$4 sm:$0xff]  }
 0x2fc   : > { %3598 = vmatpush2.bf16.msra.mxu1 %v2386_v0  ;;  %v7566_v0 = vld [vmem:[#allocation5 + $0x264] ss:$16 sps:$4 sm:$0xff]  }
 0x2fd   : > { %3599 = vmatprep.subr.bf16.mxu1 %v11726_v29 }
 0x2fe   : > { %2475 = vperm.xlu1 %7358, %v8071_v24   ;;  %2591 = vperm.xlu0 %7359, %v8074_v32   ;;  %v7570_v24 = vld [vmem:[#allocation5 + $0x280] ss:$16 sps:$4 sm:$0xff]   ;;  %v7579_v32 = vld [vmem:[#allocation5 + $0x188] ss:$16 sps:$4 sm:$0xff]  }
 0x2ff   : > { %3375 = vmatmul.mubr.bf16.gmra.mxu0 %v7500_v58 }
 0x300   : > { %3600 = vmatpush2.bf16.msra.mxu1 %v2385_v22  ;;  %3382 = vmatprep.mubr.bf16.mxu0 %v7501_v61  ;;  %v9831_v6 = vpop.permute.xlu0 %2451  ;;  %v7564_v61 = vld [vmem:[#allocation5 + $0x260] ss:$16 sps:$4 sm:$0xff]  }
 0x301   : > { %3601 = vmatprep.subr.bf16.mxu1 %v11726_v29 }
 0x302   : > { %2603 = vperm.xlu1 %7358, %v8073_v57   ;;  %2455 = vperm.xlu0 %7359, %v8076_v63   ;;  %v7587_v63 = vld [vmem:[#allocation5 + $0x1ac] ss:$16 sps:$4 sm:$0xff]  }
 0x303   : > { %v9827_v4 = vpop.permute.xlu1 %2447 }
 0x304   : > { %3602 = vmatpush2.bf16.msra.mxu1 %v2384_v18  ;;  %v9835_v36 = vpop.permute.xlu0 %2439  ;;  %v7581_v18 = vld [vmem:[#allocation5 + $0x18c] ss:$16 sps:$4 sm:$0xff]  }
 0x305   : > { %3603 = vmatprep.subr.bf16.mxu1 %v11726_v29 }
 0x306   : > { %2467 = vperm.xlu1 %7358, %v8075_v60   ;;  %v7584_v60 = vld [vmem:[#allocation5 + $0x2c4] ss:$16 sps:$4 sm:$0xff]  }
 0x307   : > { %3383 = vmatmul.mubr.bf16.gmra.mxu0 %v7503_v56  ;;  %v9829_v58 = vpop.permute.xlu1 %2575 }
 0x308   : > { %3604 = vmatpush2.bf16.msra.mxu1 %v2383_v38  ;;  %3390 = vmatprep.mubr.bf16.mxu0 %v7506_v14  ;;  %v8078_v38 = vld [vmem:[%s11673_s7 + $0x180] sm:$0xff]  ;;  %11750 = vst [vmem:[#allocation25_spill] sm:$0xff] %v9829_v58 }
 0x309   : > { %3605 = vmatprep.subr.bf16.mxu1 %v11726_v29  ;;  %2583 = vperm.xlu0 %7359, %v8078_v38   ;;  %v7576_v14 = vld [vmem:[#allocation5 + $0x2a0] ss:$16 sps:$4 sm:$0xff]   ;;  %v7585_v38 = vld [vmem:[#allocation5 + $0x1a8] ss:$16 sps:$4 sm:$0xff]  }
 0x30a   : > { %2595 = vperm.xlu1 %7358, %v8077_v16  }
 0x30b   : > { %v9833_v22 = vpop.permute.xlu1 %2579 }
 0x30c   : > { %3606 = vmatpush2.bf16.msra.mxu1 %v2382_v20  ;;  %v7518_v20 = vld [vmem:[#allocation5 + $0x164] ss:$16 sps:$4 sm:$0xff]   ;;  %11751 = vst [vmem:[#allocation24_spill] sm:$0xff] %v9833_v22  ;;  %v9839_v57 = vpop.permute.xlu0 %2567 }
 0x30d   : > { %5401 = vmatprep.subr.bf16.mxu1 %v11726_v29  ;;  %11752 = vst [vmem:[#allocation23_spill] sm:$0xff] %v9839_v57 }
 0x30e   : > { %2459 = vperm.xlu1 %7358, %v8079_v2   ;;  %v7590_v2 = vld [vmem:[#allocation5 + $0x2e4] ss:$16 sps:$4 sm:$0xff]  }
 0x30f   : > { %3391 = vmatmul.mubr.bf16.gmra.mxu0 %v7504_v44  ;;  %3608 = vmatmul.mubr.bf16.vlgmr.msra.gmra.mxu1 %v7507_v33  ;;  %v9837_v56 = vpop.permute.xlu1 %2443 }
 0x310   : > { %3398 = vmatprep.mubr.bf16.mxu0 %v7512_v37  ;;  %3615 = vmatprep.mubr.bf16.mxu1 %v7513_v10  ;;  %v7582_v10 = vld [vmem:[#allocation5 + $0x2c0] ss:$16 sps:$4 sm:$0xff]  }
 0x312   : > { %2587 = vperm.xlu1 %7358, %v8080_v17   ;;  %v7591_v17 = vld [vmem:[#allocation5 + $0x1c8] ss:$16 sps:$4 sm:$0xff]  }
 0x313   : > { %v9841_v44 = vpop.permute.xlu1 %2571 }
 0x314   : > { %11753 = vst [vmem:[#allocation22_spill] sm:$0xff] %v9841_v44  ;;  %v9843_v33 = vpop.permute.xlu0 %2431 }
 0x317   : > { %3399 = vmatmul.mubr.bf16.gmra.mxu0 %v7510_v54  ;;  %3616 = vmatmul.mubr.bf16.gmra.mxu1 %v7515_v12  ;;  %v9845_v16 = vpop.permute.xlu1 %2435  ;;  %v7593_v54 = vld [vmem:[#allocation5 + $0x1cc] ss:$16 sps:$4 sm:$0xff]  }
 0x318   : > { %3406 = vmatprep.mubr.bf16.mxu0 %v7518_v20  ;;  %3623 = vmatprep.mubr.bf16.mxu1 %v7519_v11  ;;  %v9847_v37 = vpop.permute.xlu0 %2559  ;;  %v7588_v11 = vld [vmem:[#allocation5 + $0x2e0] ss:$16 sps:$4 sm:$0xff]  }
 0x319   : > { %11754 = vst [vmem:[#allocation28_spill] sm:$0xff] %v9847_v37 }
 0x31b   : > { %v9849_v12 = vpop.permute.xlu1 %2563 }
 0x31c   : > { %11755 = vst [vmem:[#allocation27_spill] sm:$0xff] %v9849_v12  ;;  %v9851_v20 = vpop.permute.xlu0 %2423 }
 0x31f   : > { %3407 = vmatmul.mubr.bf16.gmra.mxu0 %v7516_v49  ;;  %3624 = vmatmul.mubr.bf16.gmra.mxu1 %v7521_v34  ;;  %v7596_v49 = vld [vmem:[#allocation5 + $0x304] ss:$16 sps:$4 sm:$0xff]   ;;  %v7599_v34 = vld [vmem:[#allocation5 + $0x1ec] ss:$16 sps:$4 sm:$0xff]  }
 0x320   : > { %3414 = vmatprep.mubr.bf16.mxu0 %v7524_v46  ;;  %3631 = vmatprep.mubr.bf16.mxu1 %v7525_v55  ;;  %v9853_v46 = vpop.permute.xlu1 %2427  ;;  %v9855_v55 = vpop.permute.xlu0 %2551 }
 0x321   : > { %11756 = vst [vmem:[#allocation26_spill] sm:$0xff] %v9855_v55 }
 0x327   : > { %3415 = vmatmul.mubr.bf16.gmra.mxu0 %v7522_v19  ;;  %3632 = vmatmul.mubr.bf16.gmra.mxu1 %v7527_v28  ;;  %v7594_v19 = vld [vmem:[#allocation5 + $0x300] ss:$16 sps:$4 sm:$0xff]   ;;  %v7597_v28 = vld [vmem:[#allocation5 + $0x1e8] ss:$16 sps:$4 sm:$0xff]  }
 0x328   : > { %3422 = vmatprep.mubr.bf16.mxu0 %v7530_v26  ;;  %3639 = vmatprep.mubr.bf16.mxu1 %v7531_v30  ;;  %v7602_v26 = vld [vmem:[#allocation5 + $0x324] ss:$16 sps:$4 sm:$0xff]   ;;  %v7605_v30 = vld [vmem:[#allocation5 + $0x20c] ss:$16 sps:$4 sm:$0xff]  }
 0x32f   : > { %3423 = vmatmul.mubr.bf16.gmra.mxu0 %v7528_v59  ;;  %3640 = vmatmul.mubr.bf16.gmra.mxu1 %v7533_v47  ;;  %v9857_v59 = vpop.permute.xlu1 %2555  ;;  %v9859_v47 = vpop.permute.xlu0 %2415 }
 0x330   : > { %3430 = vmatprep.mubr.bf16.mxu0 %v7536_v48  ;;  %3647 = vmatprep.mubr.bf16.mxu1 %v7537_v40  ;;  %11757 = vst [vmem:[#allocation14_spill] sm:$0xff] %v9857_v59 }
 0x337   : > { %3431 = vmatmul.mubr.bf16.gmra.mxu0 %v7534_v1  ;;  %3648 = vmatmul.mubr.bf16.gmra.mxu1 %v7539_v52  ;;  %v9863_v1 = vpop.permute.xlu1 %2419  ;;  %v9865_v52 = vpop.permute.xlu0 %2543 }
 0x338   : > { %3438 = vmatprep.mubr.bf16.mxu0 %v7542_v41  ;;  %3655 = vmatprep.mubr.bf16.mxu1 %v7543_v3  ;;  %11758 = vst [vmem:[#allocation17_spill] sm:$0xff] %v9865_v52  ;;  %v7600_v3 = vld [vmem:[#allocation5 + $0x320] ss:$16 sps:$4 sm:$0xff]   ;;  %v7654_v52 = vld [vmem:[#allocation5 + $0x368] ss:$16 sps:$4 sm:$0xff]  }
 0x33f   : > { %3439 = vmatmul.mubr.bf16.gmra.mxu0 %v7540_v39  ;;  %3656 = vmatmul.mubr.bf16.gmra.mxu1 %v7545_v42  ;;  %v7603_v39 = vld [vmem:[#allocation5 + $0x208] ss:$16 sps:$4 sm:$0xff]   ;;  %v7608_v42 = vld [vmem:[#allocation5 + $0x344] ss:$16 sps:$4 sm:$0xff]  }
 0x340   : > { %3446 = vmatprep.mubr.bf16.mxu0 %v7548_v23  ;;  %3663 = vmatprep.mubr.bf16.mxu1 %v7551_v9  ;;  %v7611_v23 = vld [vmem:[#allocation5 + $0x22c] ss:$16 sps:$4 sm:$0xff]  }
 0x347   : > { %3447 = vmatmul.mubr.bf16.gmra.mxu0 %v7546_v53  ;;  %3664 = vmatmul.mubr.bf16.gmra.mxu1 %v7549_v21  ;;  %v9871_v21 = vpop.permute.xlu1 %2547 }
 0x348   : > { %3454 = vmatprep.mubr.bf16.mxu0 %v7554_v8  ;;  %3671 = vmatprep.mubr.bf16.mxu1 %v7557_v31  ;;  %11759 = vst [vmem:[#allocation16_spill] sm:$0xff] %v9871_v21  ;;  %v9873_v8 = vpop.permute.xlu0 %2407 }
 0x34f   : > { %3455 = vmatmul.mubr.bf16.gmra.mxu0 %v7552_v35  ;;  %3672 = vmatmul.mubr.bf16.gmra.mxu1 %v7555_v25  ;;  %v7606_v25 = vld [vmem:[#allocation5 + $0x340] ss:$16 sps:$4 sm:$0xff]  }
 0x350   : > { %3462 = vmatprep.mubr.bf16.mxu0 %v7560_v27  ;;  %3679 = vmatprep.mubr.bf16.mxu1 %v7563_v45  ;;  %v7609_v27 = vld [vmem:[#allocation5 + $0x228] ss:$16 sps:$4 sm:$0xff]   ;;  %v7614_v45 = vld [vmem:[#allocation5 + $0x364] ss:$16 sps:$4 sm:$0xff]  }
 0x357   : > { %3463 = vmatmul.mubr.bf16.gmra.mxu0 %v7558_v62  ;;  %3680 = vmatmul.mubr.bf16.gmra.mxu1 %v7561_v5  ;;  %v7617_v62 = vld [vmem:[#allocation5 + $0x24c] ss:$16 sps:$4 sm:$0xff]  }
 0x358   : > { %3470 = vmatprep.mubr.bf16.mxu0 %v7566_v0  ;;  %3687 = vmatprep.mubr.bf16.mxu1 %v7569_v43  ;;  %v9877_v0 = vpop.permute.xlu1 %2411  ;;  %v9879_v43 = vpop.permute.xlu0 %2535 }
 0x359   : > { %11760 = vst [vmem:[#allocation15_spill] sm:$0xff] %v9879_v43 }
 0x35f   : > { %3471 = vmatmul.mubr.bf16.gmra.mxu0 %v7564_v61  ;;  %3688 = vmatmul.mubr.bf16.gmra.mxu1 %v7567_v50 }
 0x360   : > { %3478 = vmatprep.mubr.bf16.mxu0 %v7572_v15  ;;  %3695 = vmatprep.mubr.bf16.mxu1 %v7575_v51  ;;  %v7612_v51 = vld [vmem:[#allocation5 + $0x360] ss:$16 sps:$4 sm:$0xff]  }
 0x367   : > { %3479 = vmatmul.mubr.bf16.gmra.mxu0 %v7570_v24  ;;  %3696 = vmatmul.mubr.bf16.gmra.mxu1 %v7573_v13  ;;  %v7615_v24 = vld [vmem:[#allocation5 + $0x248] ss:$16 sps:$4 sm:$0xff]   ;;  %v7620_v13 = vld [vmem:[#allocation5 + $0x384] ss:$16 sps:$4 sm:$0xff]  }
 0x368   : > { %3486 = vmatprep.mubr.bf16.mxu0 %v7578_v7  ;;  %3703 = vmatprep.mubr.bf16.mxu1 %v7581_v18  ;;  %v7623_v7 = vld [vmem:[#allocation5 + $0x26c] ss:$16 sps:$4 sm:$0xff]   ;;  %v9885_v18 = vpop.permute.xlu1 %2539 }
 0x369   : > { %11761 = vst [vmem:[#allocation19_spill] sm:$0xff] %v9885_v18 }
 0x36f   : > { %3487 = vmatmul.mubr.bf16.gmra.mxu0 %v7576_v14  ;;  %3704 = vmatmul.mubr.bf16.gmra.mxu1 %v7579_v32  ;;  %v9887_v14 = vpop.permute.xlu0 %2399 }
 0x370   : > { %3494 = vmatprep.mubr.bf16.mxu0 %v7584_v60  ;;  %3711 = vmatprep.mubr.bf16.mxu1 %v7587_v63 }
 0x377   : > { %3495 = vmatmul.mubr.bf16.gmra.mxu0 %v7582_v10  ;;  %3712 = vmatmul.mubr.bf16.gmra.mxu1 %v7585_v38  ;;  %v9891_v10 = vpop.permute.xlu1 %2403  ;;  %v9893_v38 = vpop.permute.xlu0 %2527 }
 0x378   : > { %3502 = vmatprep.mubr.bf16.mxu0 %v7590_v2  ;;  %3719 = vmatprep.mubr.bf16.mxu1 %v7593_v54  ;;  %11762 = vst [vmem:[#allocation18_spill] sm:$0xff] %v9893_v38  ;;  %v7618_v54 = vld [vmem:[#allocation5 + $0x380] ss:$16 sps:$4 sm:$0xff]   ;;  %v7663_v38 = vld [vmem:[#allocation5 + $0x3c8] ss:$16 sps:$4 sm:$0xff]  }
 0x37f   : > { %3503 = vmatmul.mubr.bf16.gmra.mxu0 %v7588_v11  ;;  %3720 = vmatmul.mubr.bf16.gmra.mxu1 %v7591_v17  ;;  %v7621_v11 = vld [vmem:[#allocation5 + $0x268] ss:$16 sps:$4 sm:$0xff]   ;;  %v7626_v17 = vld [vmem:[#allocation5 + $0x3a4] ss:$16 sps:$4 sm:$0xff]  }
 0x380   : > { %3510 = vmatprep.mubr.bf16.mxu0 %v7596_v49  ;;  %3727 = vmatprep.mubr.bf16.mxu1 %v7599_v34  ;;  %v7629_v49 = vld [vmem:[#allocation5 + $0x28c] ss:$16 sps:$4 sm:$0xff]  }
 0x387   : > { %v9861_v48 = vpop.f32.mrf.mxu0  ;;  %3511 = vmatmul.mubr.bf16.gmra.mxu0 %v7594_v19  ;;  %3728 = vmatmul.mubr.bf16.gmra.mxu1 %v7597_v28  ;;  %v9899_v28 = vpop.permute.xlu1 %2531 }
 0x388   : > { %3518 = vmatprep.mubr.bf16.mxu0 %v7602_v26  ;;  %3735 = vmatprep.mubr.bf16.mxu1 %v7605_v30  ;;  %11763 = vst [vmem:[#allocation21_spill] sm:$0xff] %v9899_v28  ;;  %v2392_v26 = vpop.permute.xlu0 %2391 }
 0x389   : > { %v3322_v40 = vpop.f32.mrf.mxu0 }
 0x38b   : > { %v9867_v41 = vpop.f32.mrf.mxu0 }
 0x38d   : > { %v3325_v9 = vpop.f32.mrf.mxu0 }
 0x38f   : > { %v9869_v53 = vpop.f32.mrf.mxu0  ;;  %3519 = vmatmul.mubr.bf16.gmra.mxu0 %v7600_v3  ;;  %3736 = vmatmul.mubr.bf16.gmra.mxu1 %v7603_v39  ;;  %v7624_v3 = vld [vmem:[#allocation5 + $0x3a0] ss:$16 sps:$4 sm:$0xff]   ;;  %v7627_v39 = vld [vmem:[#allocation5 + $0x288] ss:$16 sps:$4 sm:$0xff]  }
 0x390   : > { %3526 = vmatprep.mubr.bf16.mxu0 %v7608_v42  ;;  %3743 = vmatprep.mubr.bf16.mxu1 %v7611_v23  ;;  %v7632_v42 = vld [vmem:[#allocation5 + $0x3c4] ss:$16 sps:$4 sm:$0xff]   ;;  %v7635_v23 = vld [vmem:[#allocation5 + $0x2ac] ss:$16 sps:$4 sm:$0xff]  }
 0x391   : > { %v3330_v31 = vpop.f32.mrf.mxu0 }
 0x392   : > { %v2396_v31 = vpop.permute.xlu1 %2395 }
 0x393   : > { %v9875_v35 = vpop.f32.mrf.mxu0 }
 0x395   : > { %v3333_v5 = vpop.f32.mrf.mxu0 }
 0x396   : > { %v7630_v5 = vld [vmem:[#allocation5 + $0x3c0] ss:$16 sps:$4 sm:$0xff]  }
 0x397   : > { %v9881_v61 = vpop.f32.mrf.mxu0  ;;  %3527 = vmatmul.mubr.bf16.gmra.mxu0 %v7606_v25  ;;  %3744 = vmatmul.mubr.bf16.gmra.mxu1 %v7609_v27  ;;  %v9903_v25 = vpop.permute.xlu0 %2519 }
 0x398   : > { %3534 = vmatprep.mubr.bf16.mxu0 %v7614_v45  ;;  %3751 = vmatprep.mubr.bf16.mxu1 %v7617_v62  ;;  %11764 = vst [vmem:[#allocation20_spill] sm:$0xff] %v9903_v25 }
 0x399   : > { %v3338_v50 = vpop.f32.mrf.mxu0 }
 0x39a   : > { %v7633_v50 = vld [vmem:[#allocation5 + $0x2a8] ss:$16 sps:$4 sm:$0xff]  }
 0x39b   : > { %v9883_v15 = vpop.f32.mrf.mxu0 }
 0x39d   : > { %v3341_v32 = vpop.f32.mrf.mxu0 }
 0x39f   : > { %v9889_v60 = vpop.f32.mrf.mxu0  ;;  %3535 = vmatmul.mubr.bf16.gmra.mxu0 %v7612_v51  ;;  %3752 = vmatmul.mubr.bf16.gmra.mxu1 %v7615_v24  ;;  %v7638_v51 = vld [vmem:[#allocation5 + $0x3e4] ss:$16 sps:$4 sm:$0xff]   ;;  %v7641_v24 = vld [vmem:[#allocation5 + $0x2cc] ss:$16 sps:$4 sm:$0xff]  }
 0x3a0   : > { %3542 = vmatprep.mubr.bf16.mxu0 %v7620_v13  ;;  %3759 = vmatprep.mubr.bf16.mxu1 %v7623_v7  ;;  %v9909_v13 = vpop.permute.xlu1 %2523  ;;  %v9911_v7 = vpop.permute.xlu0 %2511 }
 0x3a1   : > { %v3346_v63 = vpop.f32.mrf.mxu0  ;;  %11765 = vst [vmem:[#allocation29_spill] sm:$0xff] %v9909_v13 }
 0x3a3   : > { %v9895_v2 = vpop.f32.mrf.mxu0 }
 0x3a5   : > { %v3349_v34 = vpop.f32.mrf.mxu0 }
 0x3a6   : > { %v7636_v34 = vld [vmem:[#allocation5 + $0x3e0] ss:$16 sps:$4 sm:$0xff]  }
 0x3a7   : > { %v9897_v19 = vpop.f32.mrf.mxu0  ;;  %3543 = vmatmul.mubr.bf16.gmra.mxu0 %v7618_v54  ;;  %3760 = vmatmul.mubr.bf16.gmra.mxu1 %v7621_v11  ;;  %v9915_v11 = vpop.permute.xlu1 %2515 }
 0x3a8   : > { %3550 = vmatprep.mubr.bf16.mxu0 %v7626_v17  ;;  %3767 = vmatprep.mubr.bf16.mxu1 %v7629_v49  ;;  %11766 = vst [vmem:[#allocation30_spill] sm:$0xff] %v9915_v11  ;;  %v9917_v17 = vpop.permute.xlu0 %2639 }
 0x3a9   : > { %v3354_v30 = vpop.f32.mrf.mxu0  ;;  %11767 = vst [vmem:[#allocation31_spill] sm:$0xff] %v9917_v17 }
 0x3aa   : > { %v7639_v30 = vld [vmem:[#allocation5 + $0x2c8] ss:$16 sps:$4 sm:$0xff]  }
 0x3ab   : > { %v9901_v40 = vpop.f32.mrf.mxu0 }
 0x3ad   : > { %v3357_v9 = vpop.f32.mrf.mxu0 }
 0x3ae   : > { %v9925_v9 = vpop.permute.xlu0 %2503 }
 0x3af   : > { %v9905_v27 = vpop.f32.mrf.mxu0  ;;  %3551 = vmatmul.mubr.bf16.gmra.mxu0 %v7624_v3  ;;  %3768 = vmatmul.mubr.bf16.gmra.mxu1 %v7627_v39  ;;  %v7644_v3 = vld [vmem:[#allocation5 + $0x2ec] ss:$16 sps:$4 sm:$0xff]  }
 0x3b0   : > { %3558 = vmatprep.mubr.bf16.mxu0 %v7632_v42  ;;  %3775 = vmatprep.mubr.bf16.mxu1 %v7635_v23  ;;  %v9923_v23 = vpop.permute.xlu1 %2643 }
 0x3b1   : > { %v3362_v45 = vpop.f32.mrf.mxu0  ;;  %11768 = vst [vmem:[#allocation32_spill] sm:$0xff] %v9923_v23  ;;  %v3321_v23 = vadd.f32 %v9861_v48, %v2392_v26 }
 0x3b3   : > { %v9907_v62 = vpop.f32.mrf.mxu0 }
 0x3b5   : > { %v3365_v32 = vpop.f32.mrf.mxu0 }
 0x3b6   : > { %v9929_v32 = vpop.permute.xlu1 %2507 }
 0x3b7   : > { %v9913_v63 = vpop.f32.mrf.mxu0  ;;  %3559 = vmatmul.mubr.bf16.gmra.mxu0 %v7630_v5  ;;  %3776 = vmatmul.mubr.bf16.gmra.mxu1 %v7633_v50  ;;  %v7642_v50 = vld [vmem:[#allocation5 + $0x2e8] ss:$16 sps:$4 sm:$0xff]  }
 0x3b8   : > { %3566 = vmatprep.mubr.bf16.mxu0 %v7638_v51  ;;  %3783 = vmatprep.mubr.bf16.mxu1 %v7641_v24  ;;  %v7647_v51 = vld [vmem:[#allocation5 + $0x30c] ss:$16 sps:$4 sm:$0xff]  }
 0x3b9   : > { %v3370_v54 = vpop.f32.mrf.mxu0 }
 0x3ba   : > { %v9931_v54 = vpop.permute.xlu0 %2631  ;;  %v9938_v17 = vpop.permute.xlu1 %2635 }
 0x3bb   : > { %v9919_v49 = vpop.f32.mrf.mxu0  ;;  %11769 = vst [vmem:[#allocation33_spill] sm:$0xff] %v9931_v54  ;;  %11770 = vst [vmem:[#allocation34_spill] sm:$0xff] %v9938_v17  ;;  %v7648_v17 = vld [vmem:[#allocation5 + $0x328] ss:$16 sps:$4 sm:$0xff]  }
 0x3bd   : > { %v3373_v39 = vpop.f32.mrf.mxu0 }
 0x3be   : > { %v9940_v22 = vpop.permute.xlu0 %2495  ;;  %v9945_v57 = vpop.permute.xlu1 %2499 }
 0x3bf   : > { %v9921_v42 = vpop.f32.mrf.mxu0  ;;  %3567 = vmatmul.mubr.bf16.gmra.mxu0 %v7636_v34  ;;  %3784 = vmatmul.mubr.bf16.gmra.mxu1 %v7639_v30 }
 0x3c0   : > { %3791 = vmatprep.mubr.bf16.mxu1 %v7644_v3  ;;  %v7645_v3 = vld [vmem:[#allocation5 + $0x308] ss:$16 sps:$4 sm:$0xff]  }
 0x3c1   : > { %v3378_v45 = vpop.f32.mrf.mxu0 }
 0x3c2   : > { %v7650_v45 = vld [vmem:[#allocation5 + $0x32c] ss:$16 sps:$4 sm:$0xff]   ;;  %v9947_v12 = vpop.permute.xlu0 %2623  ;;  %v9959_v55 = vpop.permute.xlu1 %2627 }
 0x3c3   : > { %v9927_v5 = vpop.f32.mrf.mxu0  ;;  %11771 = vst [vmem:[#allocation35_spill] sm:$0xff] %v9947_v12  ;;  %11772 = vst [vmem:[#allocation36_spill] sm:$0xff] %v9959_v55 }
 0x3c5   : > { %v3381_v24 = vpop.f32.mrf.mxu0 }
 0x3c7   : > { %v9933_v39 = vpop.f32.mrf.mxu0  ;;  %3792 = vmatmul.mubr.bf16.gmra.mxu1 %v7642_v50 }
 0x3c8   : > { %3799 = vmatprep.mubr.bf16.mxu1 %v7647_v51 }
 0x3c9   : > { %v3386_v34 = vpop.f32.mrf.mxu0 }
 0x3ca   : > { %v3324_v34 = vadd.f32 %v9867_v41, %v2396_v31 }
 0x3cb   : > { %v9935_v30 = vpop.f32.mrf.mxu0 }
 0x3cd   : > { %v3389_v24 = vpop.f32.mrf.mxu0 }
 0x3ce   : > { %v3329_v24 = vadd.f32 %v9869_v53, %v9887_v14  ;;  %v9961_v53 = vpop.permute.xlu0 %2487 }
 0x3cf   : > { %v9942_v58 = vpop.f32.mrf.mxu0  ;;  %v3609_v44 = vpop.f32.mrf.mxu1  ;;  %3800 = vmatmul.mubr.bf16.gmra.mxu1 %v7645_v3  ;;  %v7653_v3 = vld [vmem:[#allocation5 + $0x34c] ss:$16 sps:$4 sm:$0xff]  }
 0x3d0   : > { %v3610_v54 = vadd.f32 %v3609_v44, %v3321_v23  ;;  %3807 = vmatprep.mubr.bf16.mxu1 %v7650_v45 }
 0x3d1   : > { %v3394_v50 = vpop.f32.mrf.mxu0  ;;  %v3611_v51 = vpop.f32.mrf.mxu1 }
 0x3d2   : > { %v3928_v37 = vmul.f32 0.01, %v3610_v54  ;;  %vm3864_vm1 = vcmp.gt.f32.partialorder %v3610_v54, 0.0 }
 0x3d3   : > { %v9949_v48 = vpop.f32.mrf.mxu0  ;;  %v3612_v26 = vpop.f32.mrf.mxu1 }
 0x3d4   : > { %v3613_v59 = vadd.f32 %v3612_v26, %v3324_v34  ;;  %v9955_v50 = vsel %vm3864_vm1, %v3610_v54, %v3928_v37 }
 0x3d5   : > { %v3397_v44 = vpop.f32.mrf.mxu0  ;;  %v3614_v23 = vpop.f32.mrf.mxu1 }
 0x3d6   : > { %vm3865_vm2 = vcmp.gt.f32.partialorder %v3613_v59, 0.0  ;;  %v3929_v45 = vmul.f32 0.01, %v3613_v59  ;;  %v3332_v44 = vadd.f32 %v9875_v35, %v9891_v10 }
 0x3d7   : > { %v9953_v41 = vpop.f32.mrf.mxu0  ;;  %v3617_v31 = vpop.f32.mrf.mxu1  ;;  %3808 = vmatmul.mubr.bf16.gmra.mxu1 %v7648_v17  ;;  %v7651_v17 = vld [vmem:[#allocation5 + $0x348] ss:$16 sps:$4 sm:$0xff]  }
 0x3d8   : > { %v9957_v51 = vsel %vm3865_vm2, %v3613_v59, %v3929_v45  ;;  %v3618_v12 = vadd.f32 %v3617_v31, %v3329_v24  ;;  %3815 = vmatprep.mubr.bf16.mxu1 %v7653_v3  ;;  %v3337_v59 = vadd.f32 %v9881_v61, %v9873_v8  ;;  %v7656_v3 = vld [vmem:[#allocation5 + $0x36c] ss:$16 sps:$4 sm:$0xff]  }
 0x3d9   : > { %v3402_v34 = vpop.f32.mrf.mxu0  ;;  %v3619_v26 = vpop.f32.mrf.mxu1 }
 0x3da   : > { %v3930_v54 = vmul.f32 0.01, %v3618_v12  ;;  %vm3866_vm3 = vcmp.gt.f32.partialorder %v3618_v12, 0.0  ;;  %v9971_v34 = vpop.permute.xlu1 %2491  ;;  %v9973_v26 = vpop.permute.xlu0 %2615 }
 0x3db   : > { %v9967_v23 = vpop.f32.mrf.mxu0  ;;  %v3620_v37 = vpop.f32.mrf.mxu1  ;;  %11773 = vst [vmem:[#allocation37_spill] sm:$0xff] %v9973_v26 }
 0x3dc   : > { %v3621_v24 = vadd.f32 %v3620_v37, %v3332_v44  ;;  %v9977_v55 = vsel %vm3866_vm3, %v3618_v12, %v3930_v54  ;;  %v3345_v12 = vadd.f32 %v9889_v60, %v9859_v47  ;;  %v7659_v54 = vld [vmem:[#allocation5 + $0x38c] ss:$16 sps:$4 sm:$0xff]  }
 0x3dd   : > { %v3405_v45 = vpop.f32.mrf.mxu0  ;;  %v3622_v31 = vpop.f32.mrf.mxu1 }
 0x3de   : > { %vm3867_vm4 = vcmp.gt.f32.partialorder %v3621_v24, 0.0  ;;  %v3931_v14 = vmul.f32 0.01, %v3621_v24  ;;  %v3340_v45 = vadd.f32 %v9883_v15, %v9877_v0 }
 0x3df   : > { %v9975_v35 = vpop.f32.mrf.mxu0  ;;  %v3625_v10 = vpop.f32.mrf.mxu1  ;;  %3816 = vmatmul.mubr.bf16.gmra.mxu1 %v7651_v17 }
 0x3e0   : > { %v9979_v21 = vsel %vm3867_vm4, %v3621_v24, %v3931_v14  ;;  %v3626_v8 = vadd.f32 %v3625_v10, %v3337_v59  ;;  %3823 = vmatprep.mubr.bf16.mxu1 %v7656_v3  ;;  %v9989_v59 = vpop.permute.xlu1 %2619  ;;  %v9991_v24 = vpop.permute.xlu0 %2479 }
 0x3e1   : > { %v3410_v44 = vpop.f32.mrf.mxu0  ;;  %v3627_v37 = vpop.f32.mrf.mxu1  ;;  %11774 = vst [vmem:[#allocation38_spill] sm:$0xff] %v9989_v59 }
 0x3e2   : > { %v3932_v17 = vmul.f32 0.01, %v3626_v8  ;;  %vm3868_vm5 = vcmp.gt.f32.partialorder %v3626_v8, 0.0 }
 0x3e3   : > { %v9985_v31 = vpop.f32.mrf.mxu0  ;;  %v3628_v26 = vpop.f32.mrf.mxu1 }
 0x3e4   : > { %v3629_v14 = vadd.f32 %v3628_v26, %v3340_v45  ;;  %v9995_v37 = vsel %vm3868_vm5, %v3626_v8, %v3932_v17  ;;  %v10005_v59 = vpop.permute.xlu0 %2607  ;;  %v7657_v8 = vld [vmem:[#allocation5 + $0x388] ss:$16 sps:$4 sm:$0xff]  }
 0x3e5   : > { %v3413_v3 = vpop.f32.mrf.mxu0  ;;  %v3630_v10 = vpop.f32.mrf.mxu1  ;;  %11775 = vst [vmem:[#allocation39_spill] sm:$0xff] %v10005_v59 }
 0x3e6   : > { %vm3869_vm6 = vcmp.gt.f32.partialorder %v3629_v14, 0.0  ;;  %v3933_v44 = vmul.f32 0.01, %v3629_v14  ;;  %v3348_v3 = vadd.f32 %v9895_v2, %v9863_v1  ;;  %v10003_v10 = vpop.permute.xlu1 %2483 }
 0x3e7   : > { %v9993_v0 = vpop.f32.mrf.mxu0  ;;  %v3633_v15 = vpop.f32.mrf.mxu1  ;;  %3824 = vmatmul.mubr.bf16.gmra.mxu1 %v7654_v52 }
 0x3e8   : > { %v9997_v61 = vsel %vm3869_vm6, %v3629_v14, %v3933_v44  ;;  %v3634_v47 = vadd.f32 %v3633_v15, %v3345_v12  ;;  %3831 = vmatprep.mubr.bf16.mxu1 %v7659_v54  ;;  %v3353_v12 = vadd.f32 %v9897_v19, %v9851_v20  ;;  %v7662_v54 = vld [vmem:[#allocation5 + $0x3ac] ss:$16 sps:$4 sm:$0xff]   ;;  %v10019_v20 = vpop.permute.xlu0 %2471 }
 0x3e9   : > { %v3418_v26 = vpop.f32.mrf.mxu0  ;;  %v3635_v45 = vpop.f32.mrf.mxu1 }
 0x3ea   : > { %v3934_v17 = vmul.f32 0.01, %v3634_v47  ;;  %vm3870_vm7 = vcmp.gt.f32.partialorder %v3634_v47, 0.0  ;;  %v10017_v43 = vpop.permute.xlu1 %2611 }
 0x3eb   : > { %v10007_v18 = vpop.f32.mrf.mxu0  ;;  %v3636_v52 = vpop.f32.mrf.mxu1  ;;  %11776 = vst [vmem:[#allocation40_spill] sm:$0xff] %v10017_v43 }
 0x3ec   : > { %v3637_v14 = vadd.f32 %v3636_v52, %v3348_v3  ;;  %v10013_v45 = vsel %vm3870_vm7, %v3634_v47, %v3934_v17 }
 0x3ed   : > { %v3421_v44 = vpop.f32.mrf.mxu0  ;;  %v3638_v15 = vpop.f32.mrf.mxu1 }
 0x3ee   : > { %vm3871_vm8 = vcmp.gt.f32.partialorder %v3637_v14, 0.0  ;;  %v3935_v26 = vmul.f32 0.01, %v3637_v14  ;;  %v3356_v44 = vadd.f32 %v9901_v40, %v9853_v46 }
 0x3ef   : > { %v10011_v1 = vpop.f32.mrf.mxu0  ;;  %v3641_v2 = vpop.f32.mrf.mxu1  ;;  %3832 = vmatmul.mubr.bf16.gmra.mxu1 %v7657_v8  ;;  %v7660_v8 = vld [vmem:[#allocation5 + $0x3a8] ss:$16 sps:$4 sm:$0xff]  }
 0x3f0   : > { %v10015_v60 = vsel %vm3871_vm8, %v3637_v14, %v3935_v26  ;;  %v3642_v59 = vadd.f32 %v3641_v2, %v3353_v12  ;;  %3839 = vmatprep.mubr.bf16.mxu1 %v7662_v54  ;;  %v3361_v12 = vadd.f32 %v9905_v27, %v9843_v33  ;;  %v7665_v54 = vld [vmem:[#allocation5 + $0x3cc] ss:$16 sps:$4 sm:$0xff]  }
 0x3f1   : > { %v3426_v3 = vpop.f32.mrf.mxu0  ;;  %v3643_v52 = vpop.f32.mrf.mxu1 }
 0x3f2   : > { %v3936_v17 = vmul.f32 0.01, %v3642_v59  ;;  %vm3872_vm9 = vcmp.gt.f32.partialorder %v3642_v59, 0.0  ;;  %v10029_v3 = vpop.permute.xlu1 %2475  ;;  %v10031_v52 = vpop.permute.xlu0 %2599 }
 0x3f3   : > { %v10025_v15 = vpop.f32.mrf.mxu0  ;;  %v3644_v47 = vpop.f32.mrf.mxu1  ;;  %11777 = vst [vmem:[#allocation41_spill] sm:$0xff] %v10031_v52 }
 0x3f4   : > { %v3645_v14 = vadd.f32 %v3644_v47, %v3356_v44  ;;  %v10035_v43 = vsel %vm3872_vm9, %v3642_v59, %v3936_v17  ;;  %v3369_v59 = vadd.f32 %v9913_v63, %v9835_v36 }
 0x3f5   : > { %v3429_v26 = vpop.f32.mrf.mxu0  ;;  %v3646_v2 = vpop.f32.mrf.mxu1 }
 0x3f6   : > { %vm3873_vm10 = vcmp.gt.f32.partialorder %v3645_v14, 0.0  ;;  %v3937_v19 = vmul.f32 0.01, %v3645_v14  ;;  %v3364_v26 = vadd.f32 %v9907_v62, %v9845_v16  ;;  %v10047_v17 = vpop.permute.xlu1 %2603 }
 0x3f7   : > { %v10033_v46 = vpop.f32.mrf.mxu0  ;;  %v3649_v40 = vpop.f32.mrf.mxu1  ;;  %3840 = vmatmul.mubr.bf16.gmra.mxu1 %v7660_v8  ;;  %11778 = vst [vmem:[#allocation42_spill] sm:$0xff] %v10047_v17 }
 0x3f8   : > { %v10037_v28 = vsel %vm3873_vm10, %v3645_v14, %v3937_v19  ;;  %v3650_v33 = vadd.f32 %v3649_v40, %v3361_v12  ;;  %3847 = vmatprep.mubr.bf16.mxu1 %v7665_v54  ;;  %v10049_v12 = vpop.permute.xlu0 %2463  ;;  %v7668_v14 = vld [vmem:[#allocation5 + $0x3ec] ss:$16 sps:$4 sm:$0xff]  }
 0x3f9   : > { %v3434_v44 = vpop.f32.mrf.mxu0  ;;  %v3651_v47 = vpop.f32.mrf.mxu1 }
 0x3fa   : > { %v3938_v8 = vmul.f32 0.01, %v3650_v33  ;;  %vm3874_vm11 = vcmp.gt.f32.partialorder %v3650_v33, 0.0 }
 0x3fb   : > { %v10043_v2 = vpop.f32.mrf.mxu0  ;;  %v3652_v52 = vpop.f32.mrf.mxu1 }
 0x3fc   : > { %v3653_v19 = vadd.f32 %v3652_v52, %v3364_v26  ;;  %v10053_v47 = vsel %vm3874_vm11, %v3650_v33, %v3938_v8  ;;  %v10063_v17 = vpop.permute.xlu0 %2591  ;;  %v7666_v33 = vld [vmem:[#allocation5 + $0x3e8] ss:$16 sps:$4 sm:$0xff]  }
 0x3fd   : > { %v3437_v54 = vpop.f32.mrf.mxu0  ;;  %v3654_v40 = vpop.f32.mrf.mxu1  ;;  %11779 = vst [vmem:[#allocation43_spill] sm:$0xff] %v10063_v17 }
 0x3fe   : > { %vm3875_vm12 = vcmp.gt.f32.partialorder %v3653_v19, 0.0  ;;  %v3939_v44 = vmul.f32 0.01, %v3653_v19  ;;  %v3372_v54 = vadd.f32 %v9919_v49, %v9837_v56  ;;  %v10061_v40 = vpop.permute.xlu1 %2467 }
 0x3ff   : > { %v10051_v16 = vpop.f32.mrf.mxu0  ;;  %v3657_v62 = vpop.f32.mrf.mxu1  ;;  %3848 = vmatmul.mubr.bf16.gmra.mxu1 %v7663_v38 }
 0x400   : > { %v10055_v27 = vsel %vm3875_vm12, %v3653_v19, %v3939_v44  ;;  %v3658_v36 = vadd.f32 %v3657_v62, %v3369_v59  ;;  %3855 = vmatprep.mubr.bf16.mxu1 %v7668_v14  ;;  %v3377_v59 = vadd.f32 %v9921_v42, %v9827_v4  ;;  %v2456_v25 = vpop.permute.xlu0 %2455  ;;  %v3380_v42 = vadd.f32 %v9927_v5, %v9831_v6 }
 0x401   : > { %v3442_v52 = vpop.f32.mrf.mxu0  ;;  %v3659_v26 = vpop.f32.mrf.mxu1 }
 0x402   : > { %v3940_v8 = vmul.f32 0.01, %v3658_v36  ;;  %vm3876_vm13 = vcmp.gt.f32.partialorder %v3658_v36, 0.0  ;;  %v10071_v17 = vpop.permute.xlu1 %2595 }
 0x403   : > { %v10065_v13 = vpop.f32.mrf.mxu0  ;;  %v3660_v38 = vpop.f32.mrf.mxu1 }
 0x404   : > { %11780 = vst [vmem:[#allocation44_spill] sm:$0xff] %v10065_v13  ;;  %v3661_v19 = vadd.f32 %v3660_v38, %v3372_v54  ;;  %v4004_v49 = vsel %vm3876_vm13, %v3658_v36, %v3940_v8 }
 0x405   : > { %v3445_v14 = vpop.f32.mrf.mxu0  ;;  %v3662_v44 = vpop.f32.mrf.mxu1 }
 0x406   : > { %vm3877_vm14 = vcmp.gt.f32.partialorder %v3661_v19, 0.0  ;;  %v3941_v62 = vmul.f32 0.01, %v3661_v19  ;;  %v2460_v8 = vpop.permute.xlu1 %2459 }
 0x407   : > { %v10069_v52 = vpop.f32.mrf.mxu0  ;;  %v3665_v56 = vpop.f32.mrf.mxu1  ;;  %3856 = vmatmul.mubr.bf16.gmra.mxu1 %v7666_v33 }
 0x408   : > { %11781 = vst [vmem:[#allocation45_spill] sm:$0xff] %v10069_v52  ;;  %v4005_v26 = vsel %vm3877_vm14, %v3661_v19, %v3941_v62  ;;  %v3666_v63 = vadd.f32 %v3665_v56, %v3377_v59  ;;  %v3385_v52 = vadd.f32 %v9933_v39, %v2456_v25  ;;  %v7671_v19 = vld [vmem:[#allocation7 + $0x4] ss:$16 sps:$4 sm:$0xff]  }
 0x409   : > { %v4190_v13 = vpack.c.bf16 %v4005_v26, %v4004_v49  ;;  %v3450_v11 = vpop.f32.mrf.mxu0  ;;  %v3667_v4 = vpop.f32.mrf.mxu1  ;;  %5144 = vmatprep.mubr.bf16.mxu0 %v7671_v19 }
 0x40a   : > { %v3942_v14 = vmul.f32 0.01, %v3666_v63  ;;  %vm3878_vm15 = vcmp.gt.f32.partialorder %v3666_v63, 0.0 }
 0x40b   : > { %v10075_v54 = vpop.f32.mrf.mxu0  ;;  %v3668_v38 = vpop.f32.mrf.mxu1 }
 0x40c   : > { %v3669_v44 = vadd.f32 %v3668_v38, %v3380_v42  ;;  %v4006_v56 = vsel %vm3878_vm15, %v3666_v63, %v3942_v14  ;;  %v3388_v42 = vadd.f32 %v9935_v30, %v2460_v8  ;;  %v3393_v38 = vadd.f32 %v9942_v58, %v10049_v12 }
 0x40d   : > { %v3453_v36 = vpop.f32.mrf.mxu0  ;;  %v3670_v33 = vpop.f32.mrf.mxu1 }
 0x40e   : > { %vm3879_vm0 = vcmp.gt.f32.partialorder %v3669_v44, 0.0  ;;  %v3943_v59 = vmul.f32 0.01, %v3669_v44 }
 0x40f   : > { %v10078_v62 = vpop.f32.mrf.mxu0  ;;  %v3673_v11 = vpop.f32.mrf.mxu1 }
 0x410   : > { %v4007_v49 = vsel %vm3879_vm0, %v3669_v44, %v3943_v59  ;;  %v3674_v6 = vadd.f32 %v3673_v11, %v3385_v52 }
 0x411   : > { %v4191_v5 = vpack.c.bf16 %v4007_v49, %v4006_v56  ;;  %v3458_v26 = vpop.f32.mrf.mxu0  ;;  %v3675_v4 = vpop.f32.mrf.mxu1  ;;  %v3396_v56 = vadd.f32 %v9949_v48, %v10061_v40 }
 0x412   : > { %v3944_v36 = vmul.f32 0.01, %v3674_v6  ;;  %vm3880_vm1 = vcmp.gt.f32.partialorder %v3674_v6, 0.0 }
 0x413   : > { %v10081_v25 = vpop.f32.mrf.mxu0  ;;  %v3676_v39 = vpop.f32.mrf.mxu1  ;;  %5113 = vmatpush1.bf16.msra.mxu0 %v4191_v5 }
 0x414   : > { %v3677_v33 = vadd.f32 %v3676_v39, %v3388_v42  ;;  %5114 = vmatprep.subr.bf16.mxu0 %v11726_v29  ;;  %v10088_v30 = vsel %vm3880_vm1, %v3674_v6, %v3944_v36  ;;  %v3401_v6 = vadd.f32 %v9953_v41, %v10019_v20  ;;  %v11783_v36 = vpack.c.bf16 %v10037_v28, %v10035_v43 }
 0x415   : > { %v3461_v63 = vpop.f32.mrf.mxu0  ;;  %v3678_v52 = vpop.f32.mrf.mxu1  ;;  %v11784_v43 = vpack.c.bf16 %v10015_v60, %v10013_v45  ;;  %v3409_v28 = vadd.f32 %v9975_v35, %v9991_v24 }
 0x416   : > { %vm3881_vm2 = vcmp.gt.f32.partialorder %v3677_v33, 0.0  ;;  %v3945_v14 = vmul.f32 0.01, %v3677_v33  ;;  %v3404_v52 = vadd.f32 %v9967_v23, %v10029_v3 }
 0x417   : > { %v10086_v44 = vpop.f32.mrf.mxu0  ;;  %v3681_v59 = vpop.f32.mrf.mxu1  ;;  %5115 = vmatpush1.bf16.msra.mxu0 %v4190_v13  ;;  %v11782_v13 = vpack.c.bf16 %v10055_v27, %v10053_v47 }
 0x418   : > { %v10090_v8 = vsel %vm3881_vm2, %v3677_v33, %v3945_v14  ;;  %v3682_v19 = vadd.f32 %v3681_v59, %v3393_v38  ;;  %5116 = vmatprep.subr.bf16.mxu0 %v11726_v29 }
 0x419   : > { %v4192_v58 = vpack.c.bf16 %v10090_v8, %v10088_v30  ;;  %v3466_v12 = vpop.f32.mrf.mxu0  ;;  %v3683_v11 = vpop.f32.mrf.mxu1 }
 0x41a   : > { %v3946_v26 = vmul.f32 0.01, %v3682_v19  ;;  %vm3882_vm3 = vcmp.gt.f32.partialorder %v3682_v19, 0.0 }
 0x41b   : > { %v10097_v49 = vpop.f32.mrf.mxu0  ;;  %v3684_v5 = vpop.f32.mrf.mxu1  ;;  %5117 = vmatpush1.bf16.msra.mxu0 %v11782_v13  ;;  %v11785_v13 = vpack.c.bf16 %v9997_v61, %v9995_v37  ;;  %v11786_v61 = vpack.c.bf16 %v9979_v21, %v9977_v55  ;;  %v3417_v37 = vadd.f32 %v9993_v0, %v9961_v53 }
 0x41c   : > { %v3685_v4 = vadd.f32 %v3684_v5, %v3396_v56  ;;  %5118 = vmatprep.subr.bf16.mxu0 %v11726_v29  ;;  %v10110_v27 = vsel %vm3882_vm3, %v3682_v19, %v3946_v26 }
 0x41d   : > { %v3469_v42 = vpop.f32.mrf.mxu0  ;;  %v3686_v39 = vpop.f32.mrf.mxu1 }
 0x41e   : > { %vm3883_vm4 = vcmp.gt.f32.partialorder %v3685_v4, 0.0  ;;  %v3947_v38 = vmul.f32 0.01, %v3685_v4 }
 0x41f   : > { %v10105_v48 = vpop.f32.mrf.mxu0  ;;  %v3689_v40 = vpop.f32.mrf.mxu1  ;;  %5119 = vmatpush1.bf16.msra.mxu0 %v11783_v36 }
 0x420   : > { %v10112_v47 = vsel %vm3883_vm4, %v3685_v4, %v3947_v38  ;;  %v3690_v41 = vadd.f32 %v3689_v40, %v3401_v6  ;;  %5120 = vmatprep.subr.bf16.mxu0 %v11726_v29  ;;  %v3412_v4 = vadd.f32 %v9985_v31, %v10003_v10 }
 0x421   : > { %v4193_v20 = vpack.c.bf16 %v10112_v47, %v10110_v27  ;;  %v3474_v33 = vpop.f32.mrf.mxu0  ;;  %v3691_v63 = vpop.f32.mrf.mxu1  ;;  %v7674_v27 = vld [vmem:[#allocation7 + $0x24] ss:$16 sps:$4 sm:$0xff]   ;;  %v7710_v47 = vld [vmem:[#allocation7 + $0xc] ss:$16 sps:$4 sm:$0xff]  }
 0x422   : > { %v3948_v19 = vmul.f32 0.01, %v3690_v41  ;;  %vm3884_vm5 = vcmp.gt.f32.partialorder %v3690_v41, 0.0  ;;  %v11787_v63 = vpack.c.bf16 %v9957_v51, %v9955_v50  ;;  %v3425_v50 = vadd.f32 %v10011_v1, %v9940_v22  ;;  %5433 = vmatprep.mubr.bf16.mxu1 %v7710_v47 }
 0x423   : > { %v10119_v14 = vpop.f32.mrf.mxu0  ;;  %v3692_v59 = vpop.f32.mrf.mxu1  ;;  %5121 = vmatpush1.bf16.msra.mxu0 %v11784_v43  ;;  %v3420_v43 = vadd.f32 %v10007_v18, %v9971_v34  ;;  %v3428_v1 = vadd.f32 %v10025_v15, %v9945_v57 }
 0x424   : > { %v3693_v12 = vadd.f32 %v3692_v59, %v3404_v52  ;;  %5122 = vmatprep.subr.bf16.mxu0 %v11726_v29  ;;  %v10132_v60 = vsel %vm3884_vm5, %v3690_v41, %v3948_v19 }
 0x425   : > { %v3477_v11 = vpop.f32.mrf.mxu0  ;;  %v3694_v56 = vpop.f32.mrf.mxu1 }
 0x426   : > { %vm3885_vm6 = vcmp.gt.f32.partialorder %v3693_v12, 0.0  ;;  %v3949_v5 = vmul.f32 0.01, %v3693_v12 }
 0x427   : > { %v10127_v23 = vpop.f32.mrf.mxu0  ;;  %v3697_v3 = vpop.f32.mrf.mxu1  ;;  %5123 = vmatpush1.bf16.msra.mxu0 %v11785_v13 }
 0x428   : > { %v10134_v45 = vsel %vm3885_vm6, %v3693_v12, %v3949_v5  ;;  %v3698_v35 = vadd.f32 %v3697_v3, %v3409_v28  ;;  %5124 = vmatprep.subr.bf16.mxu0 %v11726_v29 }
 0x429   : > { %v4194_v24 = vpack.c.bf16 %v10134_v45, %v10132_v60  ;;  %v3482_v6 = vpop.f32.mrf.mxu0  ;;  %v3699_v26 = vpop.f32.mrf.mxu1  ;;  %v11799_v60 = vld [vmem:[#allocation26_spill] sm:$0xff] }
 0x42a   : > { %v3950_v38 = vmul.f32 0.01, %v3698_v35  ;;  %vm3886_vm7 = vcmp.gt.f32.partialorder %v3698_v35, 0.0  ;;  %v3481_v45 = vadd.f32 %v10127_v23, %v11799_v60 }
 0x42b   : > { %v10141_v42 = vpop.f32.mrf.mxu0  ;;  %v3700_v39 = vpop.f32.mrf.mxu1  ;;  %5125 = vmatpush1.bf16.msra.mxu0 %v11786_v61  ;;  %v3433_v61 = vadd.f32 %v10033_v46, %v9925_v9  ;;  %v3436_v46 = vadd.f32 %v10043_v2, %v9929_v32 }
 0x42c   : > { %v3701_v40 = vadd.f32 %v3700_v39, %v3412_v4  ;;  %5126 = vmatprep.subr.bf16.mxu0 %v11726_v29  ;;  %v10154_v55 = vsel %vm3886_vm7, %v3698_v35, %v3950_v38 }
 0x42d   : > { %v3485_v36 = vpop.f32.mrf.mxu0  ;;  %v3702_v41 = vpop.f32.mrf.mxu1 }
 0x42e   : > { %vm3887_vm8 = vcmp.gt.f32.partialorder %v3701_v40, 0.0  ;;  %v3951_v33 = vmul.f32 0.01, %v3701_v40 }
 0x42f   : > { %v10149_v31 = vpop.f32.mrf.mxu0  ;;  %v3705_v10 = vpop.f32.mrf.mxu1  ;;  %5127 = vmatpush1.bf16.msra.mxu0 %v11787_v63 }
 0x430   : > { %v10156_v21 = vsel %vm3887_vm8, %v3701_v40, %v3951_v33  ;;  %v3706_v53 = vadd.f32 %v3705_v10, %v3417_v37  ;;  %5128 = vmatprep.subr.bf16.mxu0 %v11726_v29 }
 0x431   : > { %v4195_v0 = vpack.c.bf16 %v10156_v21, %v10154_v55  ;;  %v3490_v52 = vpop.f32.mrf.mxu0  ;;  %v3707_v59 = vpop.f32.mrf.mxu1 }
 0x432   : > { %v3952_v51 = vmul.f32 0.01, %v3706_v53  ;;  %vm3888_vm9 = vcmp.gt.f32.partialorder %v3706_v53, 0.0 }
 0x433   : > { %v10163_v28 = vpop.f32.mrf.mxu0  ;;  %v3708_v19 = vpop.f32.mrf.mxu1 }
 0x434   : > { %v3709_v12 = vadd.f32 %v3708_v19, %v3420_v43  ;;  %v10169_v35 = vsel %vm3888_vm9, %v3706_v53, %v3952_v51  ;;  %v3441_v19 = vadd.f32 %v10051_v16, %v9911_v7 }
 0x435   : > { %v3493_v11 = vpop.f32.mrf.mxu0  ;;  %v3710_v56 = vpop.f32.mrf.mxu1 }
 0x436   : > { %vm3889_vm10 = vcmp.gt.f32.partialorder %v3709_v12, 0.0  ;;  %v3953_v5 = vmul.f32 0.01, %v3709_v12 }
 0x437   : > { %v10167_v3 = vpop.f32.mrf.mxu0  ;;  %v3713_v13 = vpop.f32.mrf.mxu1 }
 0x438   : > { %v10171_v6 = vsel %vm3889_vm10, %v3709_v12, %v3953_v5  ;;  %v3714_v18 = vadd.f32 %v3713_v13, %v3425_v50 }
 0x439   : > { %v4196_v34 = vpack.c.bf16 %v10171_v6, %v10169_v35  ;;  %v3498_v26 = vpop.f32.mrf.mxu0  ;;  %v3715_v22 = vpop.f32.mrf.mxu1  ;;  %v11797_v35 = vld [vmem:[#allocation17_spill] sm:$0xff] }
 0x43a   : > { %v3954_v37 = vmul.f32 0.01, %v3714_v18  ;;  %vm3890_vm11 = vcmp.gt.f32.partialorder %v3714_v18, 0.0  ;;  %v3473_v6 = vadd.f32 %v10105_v48, %v11797_v35 }
 0x43b   : > { %v10177_v4 = vpop.f32.mrf.mxu0  ;;  %v3716_v39 = vpop.f32.mrf.mxu1 }
 0x43c   : > { %v3717_v38 = vadd.f32 %v3716_v39, %v3428_v1  ;;  %v10183_v63 = vsel %vm3890_vm11, %v3714_v18, %v3954_v37  ;;  %v11788_v39 = vld [vmem:[#allocation30_spill] sm:$0xff] }
 0x43d   : > { %v3501_v40 = vpop.f32.mrf.mxu0  ;;  %v3718_v36 = vpop.f32.mrf.mxu1 }
 0x43e   : > { %vm3891_vm12 = vcmp.gt.f32.partialorder %v3717_v38, 0.0  ;;  %v3955_v41 = vmul.f32 0.01, %v3717_v38  ;;  %v11791_v40 = vld [vmem:[#allocation45_spill] sm:$0xff] }
 0x43f   : > { %v10181_v33 = vpop.f32.mrf.mxu0  ;;  %v3721_v10 = vpop.f32.mrf.mxu1 }
 0x440   : > { %v10185_v53 = vsel %vm3891_vm12, %v3717_v38, %v3955_v41  ;;  %v3722_v57 = vadd.f32 %v3721_v10, %v3433_v61  ;;  %v11789_v61 = vld [vmem:[#allocation44_spill] sm:$0xff] }
 0x441   : > { %v4197_v15 = vpack.c.bf16 %v10185_v53, %v10183_v63  ;;  %v3506_v52 = vpop.f32.mrf.mxu0  ;;  %v3723_v9 = vpop.f32.mrf.mxu1  ;;  %v3444_v37 = vadd.f32 %v11789_v61, %v11788_v39  ;;  %v11790_v38 = vld [vmem:[#allocation20_spill] sm:$0xff] }
 0x442   : > { %v3956_v50 = vmul.f32 0.01, %v3722_v57  ;;  %vm3892_vm13 = vcmp.gt.f32.partialorder %v3722_v57, 0.0  ;;  %v3449_v36 = vadd.f32 %v11791_v40, %v11790_v38 }
 0x443   : > { %v10191_v59 = vpop.f32.mrf.mxu0  ;;  %v3724_v43 = vpop.f32.mrf.mxu1 }
 0x444   : > { %v3725_v51 = vadd.f32 %v3724_v43, %v3436_v46  ;;  %v4020_v18 = vsel %vm3892_vm13, %v3722_v57, %v3956_v50 }
 0x445   : > { %v3509_v12 = vpop.f32.mrf.mxu0  ;;  %v3726_v11 = vpop.f32.mrf.mxu1 }
 0x446   : > { %vm3893_vm14 = vcmp.gt.f32.partialorder %v3725_v51, 0.0  ;;  %v3957_v56 = vmul.f32 0.01, %v3725_v51 }
 0x447   : > { %v10195_v5 = vpop.f32.mrf.mxu0  ;;  %v3729_v13 = vpop.f32.mrf.mxu1 }
 0x448   : > { %v4021_v26 = vsel %vm3893_vm14, %v3725_v51, %v3957_v56  ;;  %v3730_v22 = vadd.f32 %v3729_v13, %v3441_v19  ;;  %v11792_v13 = vld [vmem:[#allocation29_spill] sm:$0xff] }
 0x449   : > { %v4198_v32 = vpack.c.bf16 %v4021_v26, %v4020_v18  ;;  %v3514_v2 = vpop.f32.mrf.mxu0  ;;  %v3731_v1 = vpop.f32.mrf.mxu1  ;;  %v3452_v18 = vadd.f32 %v10075_v54, %v11792_v13 }
 0x44a   : > { %v3958_v41 = vmul.f32 0.01, %v3730_v22  ;;  %vm3894_vm15 = vcmp.gt.f32.partialorder %v3730_v22, 0.0  ;;  %v11793_v1 = vld [vmem:[#allocation18_spill] sm:$0xff] }
 0x44b   : > { %v10199_v7 = vpop.f32.mrf.mxu0  ;;  %v3732_v16 = vpop.f32.mrf.mxu1  ;;  %v3457_v39 = vadd.f32 %v10078_v62, %v11793_v1 }
 0x44c   : > { %v3733_v10 = vadd.f32 %v3732_v16, %v3444_v37  ;;  %v4022_v19 = vsel %vm3894_vm15, %v3730_v22, %v3958_v41 }
 0x44d   : > { %v3517_v52 = vpop.f32.mrf.mxu0  ;;  %v3734_v9 = vpop.f32.mrf.mxu1 }
 0x44e   : > { %vm3895_vm0 = vcmp.gt.f32.partialorder %v3733_v10, 0.0  ;;  %v3959_v57 = vmul.f32 0.01, %v3733_v10 }
 0x44f   : > { %v10203_v46 = vpop.f32.mrf.mxu0  ;;  %v3737_v43 = vpop.f32.mrf.mxu1 }
 0x450   : > { %v4023_v50 = vsel %vm3895_vm0, %v3733_v10, %v3959_v57  ;;  %v3738_v51 = vadd.f32 %v3737_v43, %v3449_v36  ;;  %v11794_v57 = vld [vmem:[#allocation21_spill] sm:$0xff] }
 0x451   : > { %v4199_v12 = vpack.c.bf16 %v4023_v50, %v4022_v19  ;;  %v3522_v11 = vpop.f32.mrf.mxu0  ;;  %v3739_v56 = vpop.f32.mrf.mxu1  ;;  %v3460_v43 = vadd.f32 %v10081_v25, %v11794_v57 }
 0x452   : > { %v3960_v61 = vmul.f32 0.01, %v3738_v51  ;;  %vm3896_vm1 = vcmp.gt.f32.partialorder %v3738_v51, 0.0 }
 0x453   : > { %v10207_v26 = vpop.f32.mrf.mxu0  ;;  %v3740_v2 = vpop.f32.mrf.mxu1  ;;  %5129 = vmatpush2.bf16.msra.mxu0 %v4199_v12 }
 0x454   : > { %v3741_v37 = vadd.f32 %v3740_v2, %v3452_v18  ;;  %5130 = vmatprep.subr.bf16.mxu0 %v11726_v29  ;;  %v10214_v54 = vsel %vm3896_vm1, %v3738_v51, %v3960_v61  ;;  %v11796_v61 = vld [vmem:[#allocation19_spill] sm:$0xff] }
 0x455   : > { %v3525_v22 = vpop.f32.mrf.mxu0  ;;  %v3742_v16 = vpop.f32.mrf.mxu1 }
 0x456   : > { %vm3897_vm2 = vcmp.gt.f32.partialorder %v3741_v37, 0.0  ;;  %v3961_v38 = vmul.f32 0.01, %v3741_v37 }
 0x457   : > { %v10212_v40 = vpop.f32.mrf.mxu0  ;;  %v3745_v36 = vpop.f32.mrf.mxu1  ;;  %5131 = vmatpush2.bf16.msra.mxu0 %v4198_v32  ;;  %v11795_v32 = vld [vmem:[#allocation15_spill] sm:$0xff] }
 0x458   : > { %v10216_v41 = vsel %vm3897_vm2, %v3741_v37, %v3961_v38  ;;  %v3746_v10 = vadd.f32 %v3745_v36, %v3457_v39  ;;  %5132 = vmatprep.subr.bf16.mxu0 %v11726_v29  ;;  %v3465_v51 = vadd.f32 %v10086_v44, %v11795_v32  ;;  %v3468_v37 = vadd.f32 %v10097_v49, %v11796_v61 }
 0x459   : > { %v4200_v62 = vpack.c.bf16 %v10216_v41, %v10214_v54  ;;  %v3530_v52 = vpop.f32.mrf.mxu0  ;;  %v3747_v9 = vpop.f32.mrf.mxu1  ;;  %v8110_v54 = vld [vmem:[%s11673_s7 + $0x88] sm:$0xff] }
 0x45a   : > { %v3962_v12 = vmul.f32 0.01, %v3746_v10  ;;  %vm3898_vm3 = vcmp.gt.f32.partialorder %v3746_v10, 0.0  ;;  %v11813_v41 = vld [vmem:[#allocation38_spill] sm:$0xff] }
 0x45b   : > { %v10223_v19 = vpop.f32.mrf.mxu0  ;;  %v3748_v50 = vpop.f32.mrf.mxu1  ;;  %5133 = vmatpush2.bf16.msra.mxu0 %v4197_v15 }
 0x45c   : > { %v3749_v11 = vadd.f32 %v3748_v50, %v3460_v43  ;;  %5134 = vmatprep.subr.bf16.mxu0 %v11726_v29  ;;  %v10236_v63 = vsel %vm3898_vm3, %v3746_v10, %v3962_v12  ;;  %v11798_v50 = vld [vmem:[#allocation16_spill] sm:$0xff] }
 0x45d   : > { %v3533_v56 = vpop.f32.mrf.mxu0  ;;  %v3750_v13 = vpop.f32.mrf.mxu1  ;;  %v3476_v32 = vadd.f32 %v10119_v14, %v11798_v50  ;;  %v7669_v14 = vld [vmem:[#allocation7] ss:$16 sps:$4 sm:$0xff]  }
 0x45e   : > { %vm3899_vm4 = vcmp.gt.f32.partialorder %v3749_v11, 0.0  ;;  %v3963_v18 = vmul.f32 0.01, %v3749_v11 }
 0x45f   : > { %v10231_v25 = vpop.f32.mrf.mxu0  ;;  %v3753_v2 = vpop.f32.mrf.mxu1  ;;  %5135 = vmatpush2.bf16.msra.mxu0 %v4196_v34 }
 0x460   : > { %v10238_v53 = vsel %vm3899_vm4, %v3749_v11, %v3963_v18  ;;  %v3754_v44 = vadd.f32 %v3753_v2, %v3465_v51  ;;  %5136 = vmatprep.subr.bf16.mxu0 %v11726_v29 }
 0x461   : > { %v4201_v15 = vpack.c.bf16 %v10238_v53, %v10236_v63  ;;  %v3538_v1 = vpop.f32.mrf.mxu0  ;;  %v3755_v39 = vpop.f32.mrf.mxu1 }
 0x462   : > { %v3964_v34 = vmul.f32 0.01, %v3754_v44  ;;  %vm3900_vm5 = vcmp.gt.f32.partialorder %v3754_v44, 0.0 }
 0x463   : > { %v10245_v22 = vpop.f32.mrf.mxu0  ;;  %v3756_v16 = vpop.f32.mrf.mxu1  ;;  %5137 = vmatpush2.bf16.msra.mxu0 %v4195_v0 }
 0x464   : > { %v3757_v38 = vadd.f32 %v3756_v16, %v3468_v37  ;;  %5138 = vmatprep.subr.bf16.mxu0 %v11726_v29  ;;  %v10258_v55 = vsel %vm3900_vm5, %v3754_v44, %v3964_v34  ;;  %v11800_v16 = vld [vmem:[#allocation14_spill] sm:$0xff] }
 0x465   : > { %v3541_v36 = vpop.f32.mrf.mxu0  ;;  %v3758_v10 = vpop.f32.mrf.mxu1  ;;  %v3484_v35 = vadd.f32 %v10141_v42, %v11800_v16  ;;  %v7677_v42 = vld [vmem:[#allocation7 + $0x44] ss:$16 sps:$4 sm:$0xff]  }
 0x466   : > { %vm3901_vm6 = vcmp.gt.f32.partialorder %v3757_v38, 0.0  ;;  %v3965_v52 = vmul.f32 0.01, %v3757_v38  ;;  %v11801_v36 = vld [vmem:[#allocation28_spill] sm:$0xff] }
 0x467   : > { %v10253_v49 = vpop.f32.mrf.mxu0  ;;  %v3761_v9 = vpop.f32.mrf.mxu1  ;;  %5139 = vmatpush2.bf16.msra.mxu0 %v4194_v24  ;;  %v3489_v10 = vadd.f32 %v10149_v31, %v11801_v36 }
 0x468   : > { %v10260_v21 = vsel %vm3901_vm6, %v3757_v38, %v3965_v52  ;;  %v3762_v48 = vadd.f32 %v3761_v9, %v3473_v6  ;;  %5140 = vmatprep.subr.bf16.mxu0 %v11726_v29  ;;  %v7672_v9 = vld [vmem:[#allocation7 + $0x20] ss:$16 sps:$4 sm:$0xff]  }
 0x469   : > { %v4202_v0 = vpack.c.bf16 %v10260_v21, %v10258_v55  ;;  %v3546_v57 = vpop.f32.mrf.mxu0  ;;  %v3763_v43 = vpop.f32.mrf.mxu1  ;;  %v8106_v55 = vld [vmem:[%s11673_s7 + $0x98] sm:$0xff] }
 0x46a   : > { %v3966_v24 = vmul.f32 0.01, %v3762_v48  ;;  %vm3902_vm7 = vcmp.gt.f32.partialorder %v3762_v48, 0.0  ;;  %v11811_v21 = vld [vmem:[#allocation40_spill] sm:$0xff] }
 0x46b   : > { %v10267_v51 = vpop.f32.mrf.mxu0  ;;  %v3764_v12 = vpop.f32.mrf.mxu1  ;;  %5141 = vmatpush2.bf16.msra.mxu0 %v4193_v20 }
 0x46c   : > { %v3765_v11 = vadd.f32 %v3764_v12, %v3476_v32  ;;  %5142 = vmatprep.subr.bf16.mxu0 %v11726_v29  ;;  %v10280_v20 = vsel %vm3902_vm7, %v3762_v48, %v3966_v24  ;;  %v8305_v12 = vmov 3   ;;  %v8081_v24 = vld [vmem:[%s11673_s7 + $0xf8] sm:$0xff] }
 0x46d   : > { %v3549_v56 = vpop.f32.mrf.mxu0  ;;  %v3766_v13 = vpop.f32.mrf.mxu1  ;;  %7361 = vset.pattern.permute.xlu1 %v8305_v12  ;;  %7360 = vset.pattern.permute.xlu0 %v8305_v12 }
 0x46e   : > { %vm3903_vm8 = vcmp.gt.f32.partialorder %v3765_v11, 0.0  ;;  %v3967_v18 = vmul.f32 0.01, %v3765_v11  ;;  %4341 = vperm.xlu1 %7361, %v8081_v24   ;;  %v11802_v56 = vld [vmem:[#allocation27_spill] sm:$0xff] }
 0x46f   : > { %v10275_v2 = vpop.f32.mrf.mxu0  ;;  %v3769_v44 = vpop.f32.mrf.mxu1  ;;  %5143 = vmatpush2.bf16.msra.mxu0 %v4192_v58  ;;  %v3492_v13 = vadd.f32 %v10163_v28, %v11802_v56  ;;  %v11803_v28 = vld [vmem:[#allocation23_spill] sm:$0xff] }
 0x470   : > { %v10282_v23 = vsel %vm3903_vm8, %v3765_v11, %v3967_v18  ;;  %v3770_v1 = vadd.f32 %v3769_v44, %v3481_v45  ;;  %v8082_v11 = vld [vmem:[%s11673_s7 + $0xf0] sm:$0xff]  ;;  %v3497_v16 = vadd.f32 %v10167_v3, %v11803_v28  ;;  %v8085_v3 = vld [vmem:[%s11673_s7 + $0xe0] sm:$0xff] }
 0x471   : > { %v4203_v39 = vpack.c.bf16 %v10282_v23, %v10280_v20  ;;  %v3554_v61 = vpop.f32.mrf.mxu0  ;;  %v3771_v37 = vpop.f32.mrf.mxu1  ;;  %4337 = vperm.xlu0 %7360, %v8082_v11  }
 0x472   : > { %5145 = vmatmul.mubr.bf16.vlgmr.msra.gmra.mxu0 %v7669_v14  ;;  %v3968_v8 = vmul.f32 0.01, %v3770_v1  ;;  %vm3904_vm9 = vcmp.gt.f32.partialorder %v3770_v1, 0.0  ;;  %v8083_v61 = vld [vmem:[%s11673_s7 + $0x70] sm:$0xff]  ;;  %v8084_v37 = vld [vmem:[%s11673_s7 + $0x78] sm:$0xff] }
 0x473   : > { %v10288_v6 = vpop.f32.mrf.mxu0  ;;  %v3772_v30 = vpop.f32.mrf.mxu1  ;;  %5152 = vmatprep.mubr.bf16.mxu0 %v7674_v27  ;;  %4273 = vperm.xlu1 %7361, %v8083_v61  }
 0x474   : > { %v3773_v58 = vadd.f32 %v3772_v30, %v3484_v35  ;;  %v10294_v43 = vsel %vm3904_vm9, %v3770_v1, %v3968_v8  ;;  %v7675_v30 = vld [vmem:[#allocation7 + $0x40] ss:$16 sps:$4 sm:$0xff]  }
 0x475   : > { %v3557_v34 = vpop.f32.mrf.mxu0  ;;  %v3774_v38 = vpop.f32.mrf.mxu1  ;;  %4277 = vperm.xlu0 %7360, %v8084_v37   ;;  %v7683_v37 = vld [vmem:[#allocation7 + $0x84] ss:$16 sps:$4 sm:$0xff]  }
 0x476   : > { %vm3905_vm10 = vcmp.gt.f32.partialorder %v3773_v58, 0.0  ;;  %v3969_v52 = vmul.f32 0.01, %v3773_v58  ;;  %v7680_v34 = vld [vmem:[#allocation7 + $0x64] ss:$16 sps:$4 sm:$0xff]  }
 0x477   : > { %v10292_v48 = vpop.f32.mrf.mxu0  ;;  %v3777_v57 = vpop.f32.mrf.mxu1  ;;  %4329 = vperm.xlu1 %7361, %v8085_v3  }
 0x478   : > { %v10296_v50 = vsel %vm3905_vm10, %v3773_v58, %v3969_v52  ;;  %v3778_v32 = vadd.f32 %v3777_v57, %v3489_v10  ;;  %v2584_v3 = vpop.permute.xlu0 %2583 }
 0x479   : > { %v4204_v60 = vpack.c.bf16 %v10296_v50, %v10294_v43  ;;  %v3562_v45 = vpop.f32.mrf.mxu0  ;;  %v3779_v31 = vpop.f32.mrf.mxu1  ;;  %v8102_v43 = vld [vmem:[%s11673_s7 + $0xa8] sm:$0xff] }
 0x47a   : > { %5153 = vmatmul.mubr.bf16.gmra.mxu0 %v7672_v9  ;;  %v3970_v44 = vmul.f32 0.01, %v3778_v32  ;;  %vm3906_vm11 = vcmp.gt.f32.partialorder %v3778_v32, 0.0  ;;  %v11809_v50 = vld [vmem:[#allocation42_spill] sm:$0xff] }
 0x47b   : > { %v10308_v18 = vpop.f32.mrf.mxu0  ;;  %v3780_v14 = vpop.f32.mrf.mxu1  ;;  %5160 = vmatprep.mubr.bf16.mxu0 %v7677_v42  ;;  %v8086_v42 = vld [vmem:[%s11673_s7 + $0xe8] sm:$0xff] }
 0x47c   : > { %v3781_v27 = vadd.f32 %v3780_v14, %v3492_v13  ;;  %v10320_v38 = vsel %vm3906_vm11, %v3778_v32, %v3970_v44  ;;  %4333 = vperm.xlu0 %7360, %v8086_v42   ;;  %v11804_v32 = vld [vmem:[#allocation22_spill] sm:$0xff] }
 0x47d   : > { %v3565_v47 = vpop.f32.mrf.mxu0  ;;  %v3782_v1 = vpop.f32.mrf.mxu1  ;;  %v3500_v12 = vadd.f32 %v10177_v4, %v11804_v32  ;;  %v8087_v14 = vld [vmem:[%s11673_s7 + $0x60] sm:$0xff]  ;;  %v8088_v44 = vld [vmem:[%s11673_s7 + $0x68] sm:$0xff] }
 0x47e   : > { %vm3907_vm12 = vcmp.gt.f32.partialorder %v3781_v27, 0.0  ;;  %v3971_v35 = vmul.f32 0.01, %v3781_v27  ;;  %4265 = vperm.xlu1 %7361, %v8087_v14   ;;  %v11805_v4 = vld [vmem:[#allocation25_spill] sm:$0xff] }
 0x47f   : > { %v10318_v8 = vpop.f32.mrf.mxu0  ;;  %v3785_v58 = vpop.f32.mrf.mxu1  ;;  %v7678_v1 = vld [vmem:[#allocation7 + $0x60] ss:$16 sps:$4 sm:$0xff]  }
 0x480   : > { %v10322_v36 = vsel %vm3907_vm12, %v3781_v27, %v3971_v35  ;;  %v3786_v10 = vadd.f32 %v3785_v58, %v3497_v16  ;;  %4269 = vperm.xlu0 %7360, %v8088_v44   ;;  %v3505_v27 = vadd.f32 %v10181_v33, %v11805_v4  ;;  %v11806_v33 = vld [vmem:[#allocation24_spill] sm:$0xff] }
 0x481   : > { %v4205_v52 = vpack.c.bf16 %v10322_v36, %v10320_v38  ;;  %v3570_v9 = vpop.f32.mrf.mxu0  ;;  %v3787_v57 = vpop.f32.mrf.mxu1  ;;  %v7686_v44 = vld [vmem:[#allocation7 + $0xa4] ss:$16 sps:$4 sm:$0xff]  }
 0x482   : > { %5161 = vmatmul.mubr.bf16.gmra.mxu0 %v7675_v30  ;;  %v3972_v24 = vmul.f32 0.01, %v3786_v10  ;;  %vm3908_vm13 = vcmp.gt.f32.partialorder %v3786_v10, 0.0  ;;  %v8090_v9 = vld [vmem:[%s11673_s7 + $0xd8] sm:$0xff]  ;;  %v3508_v57 = vadd.f32 %v10191_v59, %v11806_v33  ;;  %v3513_v59 = vadd.f32 %v10195_v5, %v2584_v3  ;;  %v8094_v5 = vld [vmem:[%s11673_s7 + $0xc8] sm:$0xff] }
 0x483   : > { %v10334_v45 = vpop.f32.mrf.mxu0  ;;  %v3788_v31 = vpop.f32.mrf.mxu1  ;;  %5168 = vmatprep.mubr.bf16.mxu0 %v7680_v34  ;;  %v8089_v34 = vld [vmem:[%s11673_s7 + $0xd0] sm:$0xff]  ;;  %v8096_v33 = vld [vmem:[%s11673_s7 + $0x48] sm:$0xff] }
 0x484   : > { %v3789_v11 = vadd.f32 %v3788_v31, %v3500_v12  ;;  %v4036_v28 = vsel %vm3908_vm13, %v3786_v10, %v3972_v24  ;;  %4321 = vperm.xlu1 %7361, %v8089_v34   ;;  %4325 = vperm.xlu0 %7360, %v8090_v9   ;;  %v8091_v31 = vld [vmem:[%s11673_s7 + $0x50] sm:$0xff]  ;;  %v8092_v24 = vld [vmem:[%s11673_s7 + $0x58] sm:$0xff]  ;;  %v8095_v9 = vld [vmem:[%s11673_s7 + $0x40] sm:$0xff] }
 0x485   : > { %v3790_v56 = vpop.f32.mrf.mxu1  ;;  %v3573_v13 = vpop.f32.mrf.mxu0 }
 0x486   : > { %vm3909_vm14 = vcmp.gt.f32.partialorder %v3789_v11, 0.0  ;;  %v3973_v47 = vmul.f32 0.01, %v3789_v11  ;;  %v7681_v56 = vld [vmem:[#allocation7 + $0x80] ss:$16 sps:$4 sm:$0xff]   ;;  %v2588_v13 = vpop.permute.xlu1 %2587 }
 0x487   : > { %v3793_v61 = vpop.f32.mrf.mxu1 }
 0x488   : > { %v4037_v16 = vsel %vm3909_vm14, %v3789_v11, %v3973_v47  ;;  %v3794_v35 = vadd.f32 %v3793_v61, %v3505_v27  ;;  %4257 = vperm.xlu1 %7361, %v8091_v31   ;;  %4261 = vperm.xlu0 %7360, %v8092_v24  }
 0x489   : > { %v4206_v30 = vpack.c.bf16 %v4037_v16, %v4036_v28  ;;  %v3795_v58 = vpop.f32.mrf.mxu1  ;;  %v3516_v28 = vadd.f32 %v10199_v7, %v2588_v13  ;;  %v11807_v7 = vld [vmem:[#allocation43_spill] sm:$0xff] }
 0x48a   : > { %5169 = vmatmul.mubr.bf16.gmra.mxu0 %v7678_v1  ;;  %v3974_v42 = vmul.f32 0.01, %v3794_v35  ;;  %vm3910_vm15 = vcmp.gt.f32.partialorder %v3794_v35, 0.0 }
 0x48b   : > { %v3796_v10 = vpop.f32.mrf.mxu1  ;;  %5176 = vmatprep.mubr.bf16.mxu0 %v7683_v37  ;;  %v8093_v37 = vld [vmem:[%s11673_s7 + $0xc0] sm:$0xff] }
 0x48c   : > { %v3797_v32 = vadd.f32 %v3796_v10, %v3508_v57  ;;  %v4038_v4 = vsel %vm3910_vm15, %v3794_v35, %v3974_v42  ;;  %4313 = vperm.xlu1 %7361, %v8093_v37   ;;  %4317 = vperm.xlu0 %7360, %v8094_v5   ;;  %v3521_v57 = vadd.f32 %v10203_v46, %v11807_v7  ;;  %v7684_v10 = vld [vmem:[#allocation7 + $0xa0] ss:$16 sps:$4 sm:$0xff]  }
 0x48d   : > { %v3798_v12 = vpop.f32.mrf.mxu1  ;;  %v8097_v46 = vld [vmem:[%s11673_s7 + $0xb0] sm:$0xff] }
 0x48e   : > { %vm3911_vm0 = vcmp.gt.f32.partialorder %v3797_v32, 0.0  ;;  %v3975_v11 = vmul.f32 0.01, %v3797_v32  ;;  %v11810_v7 = vld [vmem:[#allocation39_spill] sm:$0xff] }
 0x48f   : > { %v3801_v14 = vpop.f32.mrf.mxu1  ;;  %v3537_v20 = vadd.f32 %v10231_v25, %v11810_v7 }
 0x490   : > { %v4039_v27 = vsel %vm3911_vm0, %v3797_v32, %v3975_v11  ;;  %v3802_v47 = vadd.f32 %v3801_v14, %v3513_v59  ;;  %4249 = vperm.xlu1 %7361, %v8095_v9   ;;  %4253 = vperm.xlu0 %7360, %v8096_v33   ;;  %v7689_v32 = vld [vmem:[#allocation7 + $0xc4] ss:$16 sps:$4 sm:$0xff]  }
 0x491   : > { %v4207_v1 = vpack.c.bf16 %v4039_v27, %v4038_v4  ;;  %v3803_v61 = vpop.f32.mrf.mxu1  ;;  %v8099_v27 = vld [vmem:[%s11673_s7 + $0x30] sm:$0xff]  ;;  %v8103_v33 = vld [vmem:[%s11673_s7 + $0x20] sm:$0xff] }
 0x492   : > { %5177 = vmatmul.mubr.bf16.gmra.mxu0 %v7681_v56  ;;  %v3976_v35 = vmul.f32 0.01, %v3802_v47  ;;  %vm3912_vm1 = vcmp.gt.f32.partialorder %v3802_v47, 0.0  ;;  %v3524_v56 = vadd.f32 %v10207_v26, %v10071_v17  ;;  %v8100_v17 = vld [vmem:[%s11673_s7 + $0x38] sm:$0xff] }
 0x493   : > { %v3804_v16 = vpop.f32.mrf.mxu1  ;;  %5402 = vmatpush1.bf16.msra.mxu1 %v4207_v1  ;;  %5184 = vmatprep.mubr.bf16.mxu0 %v7686_v44  ;;  %v11808_v26 = vld [vmem:[#allocation41_spill] sm:$0xff]  ;;  %v7692_v1 = vld [vmem:[#allocation7 + $0xe4] ss:$16 sps:$4 sm:$0xff]  }
 0x494   : > { %v3805_v58 = vadd.f32 %v3804_v16, %v3516_v28  ;;  %5403 = vmatprep.subr.bf16.mxu1 %v11726_v29  ;;  %v10375_v12 = vsel %vm3912_vm1, %v3802_v47, %v3976_v35  ;;  %4305 = vperm.xlu1 %7361, %v8097_v46   ;;  %v3529_v38 = vadd.f32 %v10212_v40, %v11808_v26  ;;  %v8101_v16 = vld [vmem:[%s11673_s7 + $0xa0] sm:$0xff] }
 0x495   : > { %v3806_v34 = vpop.f32.mrf.mxu1 }
 0x496   : > { %vm3913_vm2 = vcmp.gt.f32.partialorder %v3805_v58, 0.0  ;;  %v3977_v3 = vmul.f32 0.01, %v3805_v58 }
 0x497   : > { %v3809_v42 = vpop.f32.mrf.mxu1  ;;  %5404 = vmatpush1.bf16.msra.mxu1 %v4206_v30  ;;  %v8098_v30 = vld [vmem:[%s11673_s7 + $0xb8] sm:$0xff] }
 0x498   : > { %v10377_v31 = vsel %vm3913_vm2, %v3805_v58, %v3977_v3  ;;  %v3810_v24 = vadd.f32 %v3809_v42, %v3521_v57  ;;  %5405 = vmatprep.subr.bf16.mxu1 %v11726_v29  ;;  %4309 = vperm.xlu0 %7360, %v8098_v30   ;;  %v7695_v3 = vld [vmem:[#allocation7 + $0x104] ss:$16 sps:$4 sm:$0xff]  }
 0x499   : > { %v4208_v59 = vpack.c.bf16 %v10377_v31, %v10375_v12  ;;  %v3811_v11 = vpop.f32.mrf.mxu1  ;;  %4241 = vperm.xlu1 %7361, %v8099_v27   ;;  %v7698_v27 = vld [vmem:[#allocation7 + $0x124] ss:$16 sps:$4 sm:$0xff]   ;;  %v8144_v31 = vld [vmem:[%s11673_s7 + $0x108] sm:$0xff] }
 0x49a   : > { %5185 = vmatmul.mubr.bf16.gmra.mxu0 %v7684_v10  ;;  %v3978_v14 = vmul.f32 0.01, %v3810_v24  ;;  %vm3914_vm3 = vcmp.gt.f32.partialorder %v3810_v24, 0.0  ;;  %v8105_v11 = vld [vmem:[%s11673_s7 + $0x90] sm:$0xff]  ;;  %v8143_v12 = vld [vmem:[%s11673_s7 + $0x100] sm:$0xff] }
 0x49b   : > { %v3812_v13 = vpop.f32.mrf.mxu1  ;;  %5406 = vmatpush1.bf16.msra.mxu1 %v4205_v52  ;;  %5192 = vmatprep.mubr.bf16.mxu0 %v7689_v32  ;;  %v7687_v52 = vld [vmem:[#allocation7 + $0xc0] ss:$16 sps:$4 sm:$0xff]  }
 0x49c   : > { %v3813_v44 = vadd.f32 %v3812_v13, %v3524_v56  ;;  %5407 = vmatprep.subr.bf16.mxu1 %v11726_v29  ;;  %4245 = vperm.xlu0 %7360, %v8100_v17   ;;  %v10405_v61 = vsel %vm3914_vm3, %v3810_v24, %v3978_v14  ;;  %v8107_v14 = vld [vmem:[%s11673_s7 + $0x10] sm:$0xff] }
 0x49d   : > { %v3814_v4 = vpop.f32.mrf.mxu1  ;;  %4297 = vperm.xlu1 %7361, %v8101_v16   ;;  %v8111_v16 = vld [vmem:[%s11673_s7] sm:$0xff] }
 0x49e   : > { %vm3915_vm4 = vcmp.gt.f32.partialorder %v3813_v44, 0.0  ;;  %v3979_v36 = vmul.f32 0.01, %v3813_v44 }
 0x49f   : > { %v3817_v47 = vpop.f32.mrf.mxu1  ;;  %5408 = vmatpush1.bf16.msra.mxu1 %v4204_v60  ;;  %v3532_v60 = vadd.f32 %v10223_v19, %v11809_v50  ;;  %v8104_v19 = vld [vmem:[%s11673_s7 + $0x28] sm:$0xff] }
 0x4a0   : > { %v10407_v37 = vsel %vm3915_vm4, %v3813_v44, %v3979_v36  ;;  %v3818_v5 = vadd.f32 %v3817_v47, %v3529_v38  ;;  %5409 = vmatprep.subr.bf16.mxu1 %v11726_v29  ;;  %4301 = vperm.xlu0 %7360, %v8102_v43   ;;  %v11812_v44 = vld [vmem:[#allocation37_spill] sm:$0xff]  ;;  %v8112_v43 = vld [vmem:[%s11673_s7 + $0x8] sm:$0xff] }
 0x4a1   : > { %v4209_v28 = vpack.c.bf16 %v10407_v37, %v10405_v61  ;;  %v3819_v40 = vpop.f32.mrf.mxu1  ;;  %4233 = vperm.xlu1 %7361, %v8103_v33   ;;  %v3545_v63 = vadd.f32 %v10253_v49, %v11812_v44  ;;  %v11814_v50 = vld [vmem:[#allocation35_spill] sm:$0xff]  ;;  %v7737_v37 = vld [vmem:[#allocation7 + $0x224] ss:$16 sps:$4 sm:$0xff]  }
 0x4a2   : > { %5193 = vmatmul.mubr.bf16.gmra.mxu0 %v7687_v52  ;;  %v3980_v58 = vmul.f32 0.01, %v3818_v5  ;;  %vm3916_vm5 = vcmp.gt.f32.partialorder %v3818_v5, 0.0  ;;  %v8109_v52 = vld [vmem:[%s11673_s7 + $0x80] sm:$0xff]  ;;  %v7716_v61 = vld [vmem:[#allocation7 + $0x2c] ss:$16 sps:$4 sm:$0xff]  }
 0x4a3   : > { %v3820_v35 = vpop.f32.mrf.mxu1  ;;  %5410 = vmatpush1.bf16.msra.mxu1 %v4203_v39  ;;  %5200 = vmatprep.mubr.bf16.mxu0 %v7692_v1  ;;  %v7690_v39 = vld [vmem:[#allocation7 + $0xe0] ss:$16 sps:$4 sm:$0xff]  }
 0x4a4   : > { %v3821_v34 = vadd.f32 %v3820_v35, %v3532_v60  ;;  %5411 = vmatprep.subr.bf16.mxu1 %v11726_v29  ;;  %4237 = vperm.xlu0 %7360, %v8104_v19   ;;  %v10435_v10 = vsel %vm3916_vm5, %v3818_v5, %v3980_v58  ;;  %v7696_v35 = vld [vmem:[#allocation7 + $0x120] ss:$16 sps:$4 sm:$0xff]  }
 0x4a5   : > { %v3822_v9 = vpop.f32.mrf.mxu1  ;;  %4289 = vperm.xlu1 %7361, %v8105_v11  }
 0x4a6   : > { %vm3917_vm6 = vcmp.gt.f32.partialorder %v3821_v34, 0.0  ;;  %v3981_v23 = vmul.f32 0.01, %v3821_v34 }
 0x4a7   : > { %v3825_v57 = vpop.f32.mrf.mxu1  ;;  %5412 = vmatpush1.bf16.msra.mxu1 %v4202_v0  ;;  %v3540_v0 = vadd.f32 %v10245_v22, %v11811_v21  ;;  %v8108_v22 = vld [vmem:[%s11673_s7 + $0x18] sm:$0xff] }
 0x4a8   : > { %v10437_v42 = vsel %vm3917_vm6, %v3821_v34, %v3981_v23  ;;  %v3826_v32 = vadd.f32 %v3825_v57, %v3537_v20  ;;  %5413 = vmatprep.subr.bf16.mxu1 %v11726_v29  ;;  %4293 = vperm.xlu0 %7360, %v8106_v55   ;;  %v7701_v34 = vld [vmem:[#allocation7 + $0x144] ss:$16 sps:$4 sm:$0xff]   ;;  %v8116_v21 = vld [vmem:[%s11673_s7 + $0x178] sm:$0xff] }
 0x4a9   : > { %v4210_v24 = vpack.c.bf16 %v10437_v42, %v10435_v10  ;;  %v3827_v25 = vpop.f32.mrf.mxu1  ;;  %4225 = vperm.xlu1 %7361, %v8107_v14   ;;  %v8113_v23 = vld [vmem:[%s11673_s7 + $0x1f0] sm:$0xff]  ;;  %v8140_v42 = vld [vmem:[%s11673_s7 + $0x118] sm:$0xff] }
 0x4aa   : > { %5201 = vmatmul.mubr.bf16.gmra.mxu0 %v7690_v39  ;;  %v3982_v30 = vmul.f32 0.01, %v3826_v32  ;;  %vm3918_vm7 = vcmp.gt.f32.partialorder %v3826_v32, 0.0  ;;  %v11815_v39 = vld [vmem:[#allocation36_spill] sm:$0xff] }
 0x4ab   : > { %v3828_v46 = vpop.f32.mrf.mxu1  ;;  %5414 = vmatpush1.bf16.msra.mxu1 %v4201_v15  ;;  %5208 = vmatprep.mubr.bf16.mxu0 %v7695_v3  ;;  %v7693_v15 = vld [vmem:[#allocation7 + $0x100] ss:$16 sps:$4 sm:$0xff]   ;;  %v3556_v57 = vadd.f32 %v10288_v6, %v11815_v39 }
 0x4ac   : > { %v3829_v56 = vadd.f32 %v3828_v46, %v3540_v0  ;;  %5415 = vmatprep.subr.bf16.mxu1 %v11726_v29  ;;  %4229 = vperm.xlu0 %7360, %v8108_v22   ;;  %v10465_v17 = vsel %vm3918_vm7, %v3826_v32, %v3982_v30  ;;  %v8115_v55 = vld [vmem:[%s11673_s7 + $0x170] sm:$0xff]  ;;  %v11816_v0 = vld [vmem:[#allocation33_spill] sm:$0xff] }
 0x4ad   : > { %v3830_v13 = vpop.f32.mrf.mxu1  ;;  %4281 = vperm.xlu1 %7361, %v8109_v52   ;;  %v3561_v6 = vadd.f32 %v10292_v48, %v11816_v0  ;;  %v7699_v30 = vld [vmem:[#allocation7 + $0x140] ss:$16 sps:$4 sm:$0xff]   ;;  %v8118_v48 = vld [vmem:[%s11673_s7 + $0x1e8] sm:$0xff] }
 0x4ae   : > { %vm3919_vm8 = vcmp.gt.f32.partialorder %v3829_v56, 0.0  ;;  %v3983_v53 = vmul.f32 0.01, %v3829_v56  ;;  %v7704_v13 = vld [vmem:[#allocation7 + $0x164] ss:$16 sps:$4 sm:$0xff]  }
 0x4af   : > { %v3833_v4 = vpop.f32.mrf.mxu1  ;;  %5416 = vmatpush1.bf16.msra.mxu1 %v4200_v62  ;;  %v3548_v62 = vadd.f32 %v10267_v51, %v11813_v41  ;;  %v3553_v51 = vadd.f32 %v10275_v2, %v11814_v50  ;;  %v8114_v2 = vld [vmem:[%s11673_s7 + $0x1f8] sm:$0xff]  ;;  %v8119_v41 = vld [vmem:[%s11673_s7 + $0x160] sm:$0xff]  ;;  %v8139_v10 = vld [vmem:[%s11673_s7 + $0x110] sm:$0xff] }
 0x4b0   : > { %v10467_v26 = vsel %vm3919_vm8, %v3829_v56, %v3983_v53  ;;  %v3834_v38 = vadd.f32 %v3833_v4, %v3545_v63  ;;  %5417 = vmatprep.subr.bf16.mxu1 %v11726_v29  ;;  %4285 = vperm.xlu0 %7360, %v8110_v54   ;;  %v11817_v4 = vld [vmem:[#allocation34_spill] sm:$0xff] }
 0x4b1   : > { %v4211_v36 = vpack.c.bf16 %v10467_v26, %v10465_v17  ;;  %v3835_v49 = vpop.f32.mrf.mxu1  ;;  %4217 = vperm.xlu1 %7361, %v8111_v16   ;;  %v7707_v16 = vld [vmem:[#allocation7 + $0x184] ss:$16 sps:$4 sm:$0xff]  }
 0x4b2   : > { %5209 = vmatmul.mubr.bf16.gmra.mxu0 %v7693_v15  ;;  %v3984_v1 = vmul.f32 0.01, %v3834_v38  ;;  %vm3920_vm9 = vcmp.gt.f32.partialorder %v3834_v38, 0.0  ;;  %v8117_v15 = vld [vmem:[%s11673_s7 + $0x1e0] sm:$0xff]  ;;  %v8137_v26 = vld [vmem:[%s11673_s7 + $0x190] sm:$0xff] }
 0x4b3   : > { %v3836_v47 = vpop.f32.mrf.mxu1  ;;  %5216 = vmatprep.mubr.bf16.mxu0 %v7698_v27  ;;  %v3564_v27 = vadd.f32 %v10308_v18, %v11817_v4  ;;  %v8125_v0 = vld [vmem:[%s11673_s7 + $0x1c0] sm:$0xff] }
 0x4b4   : > { %v3837_v5 = vadd.f32 %v3836_v47, %v3548_v62  ;;  %4221 = vperm.xlu0 %7360, %v8112_v43   ;;  %v10488_v9 = vsel %vm3920_vm9, %v3834_v38, %v3984_v1  ;;  %v8120_v62 = vld [vmem:[%s11673_s7 + $0x168] sm:$0xff]  ;;  %v7717_v4 = vld [vmem:[#allocation7 + $0x1c0] ss:$16 sps:$4 sm:$0xff]   ;;  %v7731_v17 = vld [vmem:[#allocation7 + $0x204] ss:$16 sps:$4 sm:$0xff]  }
 0x4b5   : > { %v3838_v40 = vpop.f32.mrf.mxu1  ;;  %4465 = vperm.xlu1 %7361, %v8113_v23   ;;  %v11818_v47 = vld [vmem:[#allocation31_spill] sm:$0xff] }
 0x4b6   : > { %vm3921_vm10 = vcmp.gt.f32.partialorder %v3837_v5, 0.0  ;;  %v3985_v60 = vmul.f32 0.01, %v3837_v5  ;;  %v3569_v18 = vadd.f32 %v10318_v8, %v11818_v47  ;;  %v11819_v8 = vld [vmem:[#allocation32_spill] sm:$0xff] }
 0x4b7   : > { %v3841_v58 = vpop.f32.mrf.mxu1  ;;  %v7749_v47 = vld [vmem:[#allocation7 + $0x264] ss:$16 sps:$4 sm:$0xff]  }
 0x4b8   : > { %v10490_v33 = vsel %vm3921_vm10, %v3837_v5, %v3985_v60  ;;  %v3842_v19 = vadd.f32 %v3841_v58, %v3553_v51  ;;  %4469 = vperm.xlu0 %7360, %v8114_v2   ;;  %v7702_v5 = vld [vmem:[#allocation7 + $0x160] ss:$16 sps:$4 sm:$0xff]  }
 0x4b9   : > { %v4212_v7 = vpack.c.bf16 %v10490_v33, %v10488_v9  ;;  %v3843_v20 = vpop.f32.mrf.mxu1  ;;  %4401 = vperm.xlu1 %7361, %v8115_v55   ;;  %v8121_v58 = vld [vmem:[%s11673_s7 + $0x1d0] sm:$0xff]  ;;  %v8135_v9 = vld [vmem:[%s11673_s7 + $0x120] sm:$0xff]  ;;  %v8136_v33 = vld [vmem:[%s11673_s7 + $0x128] sm:$0xff] }
 0x4ba   : > { %5217 = vmatmul.mubr.bf16.gmra.mxu0 %v7696_v35  ;;  %v3986_v32 = vmul.f32 0.01, %v3842_v19  ;;  %vm3922_vm11 = vcmp.gt.f32.partialorder %v3842_v19, 0.0 }
 0x4bb   : > { %v3844_v3 = vpop.f32.mrf.mxu1  ;;  %5224 = vmatprep.mubr.bf16.mxu0 %v7701_v34  ;;  %v8122_v34 = vld [vmem:[%s11673_s7 + $0x1d8] sm:$0xff] }
 0x4bc   : > { %v3845_v25 = vadd.f32 %v3844_v3, %v3556_v57  ;;  %4405 = vperm.xlu0 %7360, %v8116_v21   ;;  %v10510_v14 = vsel %vm3922_vm11, %v3842_v19, %v3986_v32  ;;  %v3572_v19 = vadd.f32 %v10334_v45, %v11819_v8  ;;  %v8123_v57 = vld [vmem:[%s11673_s7 + $0x150] sm:$0xff]  ;;  %v8124_v3 = vld [vmem:[%s11673_s7 + $0x158] sm:$0xff] }
 0x4bd   : > { %v3846_v11 = vpop.f32.mrf.mxu1  ;;  %4457 = vperm.xlu1 %7361, %v8117_v15   ;;  %v7705_v45 = vld [vmem:[#allocation7 + $0x180] ss:$16 sps:$4 sm:$0xff]   ;;  %v7744_v8 = vld [vmem:[#allocation7 + $0xc8] ss:$16 sps:$4 sm:$0xff]  }
 0x4be   : > { %vm3923_vm12 = vcmp.gt.f32.partialorder %v3845_v25, 0.0  ;;  %v3987_v46 = vmul.f32 0.01, %v3845_v25  ;;  %v8131_v15 = vld [vmem:[%s11673_s7 + $0x130] sm:$0xff] }
 0x4bf   : > { %v3849_v56 = vpop.f32.mrf.mxu1 }
 0x4c0   : > { %v10512_v22 = vsel %vm3923_vm12, %v3845_v25, %v3987_v46  ;;  %v3850_v44 = vadd.f32 %v3849_v56, %v3561_v6  ;;  %4461 = vperm.xlu0 %7360, %v8118_v48   ;;  %v7713_v25 = vld [vmem:[#allocation7 + $0x1a4] ss:$16 sps:$4 sm:$0xff]   ;;  %v8126_v6 = vld [vmem:[%s11673_s7 + $0x1c8] sm:$0xff]  ;;  %v7711_v56 = vld [vmem:[#allocation7 + $0x1a0] ss:$16 sps:$4 sm:$0xff]  }
 0x4c1   : > { %v4213_v63 = vpack.c.bf16 %v10512_v22, %v10510_v14  ;;  %v3851_v53 = vpop.f32.mrf.mxu1  ;;  %4393 = vperm.xlu1 %7361, %v8119_v41   ;;  %v8127_v46 = vld [vmem:[%s11673_s7 + $0x140] sm:$0xff]  ;;  %v8132_v48 = vld [vmem:[%s11673_s7 + $0x138] sm:$0xff] }
 0x4c2   : > { %5225 = vmatmul.mubr.bf16.gmra.mxu0 %v7699_v30  ;;  %v3988_v49 = vmul.f32 0.01, %v3850_v44  ;;  %vm3924_vm13 = vcmp.gt.f32.partialorder %v3850_v44, 0.0  ;;  %v8128_v30 = vld [vmem:[%s11673_s7 + $0x148] sm:$0xff]  ;;  %v8130_v53 = vld [vmem:[%s11673_s7 + $0x1b8] sm:$0xff]  ;;  %v8133_v22 = vld [vmem:[%s11673_s7 + $0x1a0] sm:$0xff] }
 0x4c3   : > { %v3852_v38 = vpop.f32.mrf.mxu1  ;;  %5232 = vmatprep.mubr.bf16.mxu0 %v7704_v13  ;;  %v7719_v13 = vld [vmem:[#allocation7 + $0x1c4] ss:$16 sps:$4 sm:$0xff]   ;;  %v7741_v41 = vld [vmem:[#allocation7 + $0x240] ss:$16 sps:$4 sm:$0xff]  }
 0x4c4   : > { %v3853_v52 = vadd.f32 %v3852_v38, %v3564_v27  ;;  %4397 = vperm.xlu0 %7360, %v8120_v62   ;;  %v4052_v43 = vsel %vm3924_vm13, %v3850_v44, %v3988_v49  ;;  %v8129_v44 = vld [vmem:[%s11673_s7 + $0x1b0] sm:$0xff]  ;;  %v7722_v49 = vld [vmem:[#allocation7 + $0x4c] ss:$16 sps:$4 sm:$0xff]  }
 0x4c5   : > { %v3854_v54 = vpop.f32.mrf.mxu1  ;;  %4449 = vperm.xlu1 %7361, %v8121_v58   ;;  %v7725_v14 = vld [vmem:[#allocation7 + $0x1e4] ss:$16 sps:$4 sm:$0xff]   ;;  %v7729_v27 = vld [vmem:[#allocation7 + $0x200] ss:$16 sps:$4 sm:$0xff]   ;;  %v7728_v62 = vld [vmem:[#allocation7 + $0x6c] ss:$16 sps:$4 sm:$0xff]  }
 0x4c6   : > { %vm3925_vm14 = vcmp.gt.f32.partialorder %v3853_v52, 0.0  ;;  %v3989_v1 = vmul.f32 0.01, %v3853_v52  ;;  %v7735_v38 = vld [vmem:[#allocation7 + $0x220] ss:$16 sps:$4 sm:$0xff]  }
 0x4c7   : > { %v3857_v40 = vpop.f32.mrf.mxu1  ;;  %v7720_v54 = vld [vmem:[#allocation7 + $0x48] ss:$16 sps:$4 sm:$0xff]   ;;  %v7746_v58 = vld [vmem:[#allocation7 + $0xcc] ss:$16 sps:$4 sm:$0xff]  }
 0x4c8   : > { %v4053_v50 = vsel %vm3925_vm14, %v3853_v52, %v3989_v1  ;;  %v3858_v51 = vadd.f32 %v3857_v40, %v3569_v18  ;;  %4453 = vperm.xlu0 %7360, %v8122_v34   ;;  %v7743_v52 = vld [vmem:[#allocation7 + $0x244] ss:$16 sps:$4 sm:$0xff]   ;;  %v7726_v18 = vld [vmem:[#allocation7 + $0x68] ss:$16 sps:$4 sm:$0xff]   ;;  %v7747_v1 = vld [vmem:[#allocation7 + $0x260] ss:$16 sps:$4 sm:$0xff]  }
 0x4c9   : > { %v4214_v60 = vpack.c.bf16 %v4053_v50, %v4052_v43  ;;  %v3859_v35 = vpop.f32.mrf.mxu1  ;;  %4385 = vperm.xlu1 %7361, %v8123_v57   ;;  %v7755_v40 = vld [vmem:[#allocation7 + $0x284] ss:$16 sps:$4 sm:$0xff]   ;;  %v7753_v43 = vld [vmem:[#allocation7 + $0x280] ss:$16 sps:$4 sm:$0xff]   ;;  %v7740_v50 = vld [vmem:[#allocation7 + $0xac] ss:$16 sps:$4 sm:$0xff]  }
 0x4ca   : > { %5233 = vmatmul.mubr.bf16.gmra.mxu0 %v7702_v5  ;;  %v3990_v23 = vmul.f32 0.01, %v3858_v51  ;;  %vm3926_vm15 = vcmp.gt.f32.partialorder %v3858_v51, 0.0  ;;  %v7734_v5 = vld [vmem:[#allocation7 + $0x8c] ss:$16 sps:$4 sm:$0xff]  }
 0x4cb   : > { %v3860_v20 = vpop.f32.mrf.mxu1  ;;  %5240 = vmatprep.mubr.bf16.mxu0 %v7707_v16  ;;  %v7732_v16 = vld [vmem:[#allocation7 + $0x88] ss:$16 sps:$4 sm:$0xff]   ;;  %v7759_v35 = vld [vmem:[#allocation7 + $0x2a0] ss:$16 sps:$4 sm:$0xff]   ;;  %v7767_v34 = vld [vmem:[#allocation7 + $0x2c4] ss:$16 sps:$4 sm:$0xff]  }
 0x4cc   : > { %v3861_v2 = vadd.f32 %v3860_v20, %v3572_v19  ;;  %4389 = vperm.xlu0 %7360, %v8124_v3   ;;  %v4054_v11 = vsel %vm3926_vm15, %v3858_v51, %v3990_v23  ;;  %v7761_v51 = vld [vmem:[#allocation7 + $0x2a4] ss:$16 sps:$4 sm:$0xff]   ;;  %v7765_v19 = vld [vmem:[#allocation7 + $0x2c0] ss:$16 sps:$4 sm:$0xff]   ;;  %v7752_v20 = vld [vmem:[#allocation7 + $0xec] ss:$16 sps:$4 sm:$0xff]  }
 0x4cd   : > { %v3862_v39 = vpop.f32.mrf.mxu1  ;;  %4441 = vperm.xlu1 %7361, %v8125_v0   ;;  %v7773_v23 = vld [vmem:[#allocation7 + $0x2e4] ss:$16 sps:$4 sm:$0xff]   ;;  %v7758_v57 = vld [vmem:[#allocation7 + $0x10c] ss:$16 sps:$4 sm:$0xff]   ;;  %v7762_v0 = vld [vmem:[#allocation7 + $0x128] ss:$16 sps:$4 sm:$0xff]  }
 0x4ce   : > { %vm3927_vm0 = vcmp.gt.f32.partialorder %v3861_v2, 0.0  ;;  %v3991_v32 = vmul.f32 0.01, %v3861_v2  ;;  %v7771_v39 = vld [vmem:[#allocation7 + $0x2e0] ss:$16 sps:$4 sm:$0xff]  }
 0x4cf   : > { %v7779_v3 = vld [vmem:[#allocation7 + $0x304] ss:$16 sps:$4 sm:$0xff]  }
 0x4d0   : > { %v4055_v55 = vsel %vm3927_vm0, %v3861_v2, %v3991_v32  ;;  %4445 = vperm.xlu0 %7360, %v8126_v6   ;;  %v7750_v2 = vld [vmem:[#allocation7 + $0xe8] ss:$16 sps:$4 sm:$0xff]  }
 0x4d1   : > { %v4215_v21 = vpack.c.bf16 %v4055_v55, %v4054_v11  ;;  %4377 = vperm.xlu1 %7361, %v8127_v46   ;;  %v7756_v32 = vld [vmem:[#allocation7 + $0x108] ss:$16 sps:$4 sm:$0xff]   ;;  %v7785_v11 = vld [vmem:[#allocation7 + $0x324] ss:$16 sps:$4 sm:$0xff]   ;;  %v7783_v46 = vld [vmem:[#allocation7 + $0x320] ss:$16 sps:$4 sm:$0xff]  }
 0x4d2   : > { %5241 = vmatmul.mubr.bf16.gmra.mxu0 %v7705_v45  ;;  %v7777_v45 = vld [vmem:[#allocation7 + $0x300] ss:$16 sps:$4 sm:$0xff]  }
 0x4d3   : > { %5418 = vmatpush2.bf16.msra.mxu1 %v4215_v21  ;;  %5248 = vmatprep.mubr.bf16.mxu0 %v7713_v25  ;;  %v7764_v25 = vld [vmem:[#allocation7 + $0x12c] ss:$16 sps:$4 sm:$0xff]  }
 0x4d4   : > { %5419 = vmatprep.subr.bf16.mxu1 %v11726_v29  ;;  %4381 = vperm.xlu0 %7360, %v8128_v30   ;;  %v7770_v30 = vld [vmem:[#allocation7 + $0x14c] ss:$16 sps:$4 sm:$0xff]  }
 0x4d5   : > { %4433 = vperm.xlu1 %7361, %v8129_v44  }
 0x4d7   : > { %5420 = vmatpush2.bf16.msra.mxu1 %v4214_v60  ;;  %v7738_v60 = vld [vmem:[#allocation7 + $0xa8] ss:$16 sps:$4 sm:$0xff]  }
 0x4d8   : > { %5421 = vmatprep.subr.bf16.mxu1 %v11726_v29  ;;  %4437 = vperm.xlu0 %7360, %v8130_v53  }
 0x4d9   : > { %4369 = vperm.xlu1 %7361, %v8131_v15   ;;  %v7768_v15 = vld [vmem:[#allocation7 + $0x148] ss:$16 sps:$4 sm:$0xff]  }
 0x4da   : > { %5249 = vmatmul.mubr.bf16.gmra.mxu0 %v7711_v56  ;;  %v7791_v56 = vld [vmem:[#allocation7 + $0x344] ss:$16 sps:$4 sm:$0xff]  }
 0x4db   : > { %5422 = vmatpush2.bf16.msra.mxu1 %v4213_v63  ;;  %5256 = vmatprep.mubr.bf16.mxu0 %v7719_v13  ;;  %v8134_v63 = vld [vmem:[%s11673_s7 + $0x1a8] sm:$0xff] }
 0x4dc   : > { %5423 = vmatprep.subr.bf16.mxu1 %v11726_v29  ;;  %4373 = vperm.xlu0 %7360, %v8132_v48  }
 0x4dd   : > { %4425 = vperm.xlu1 %7361, %v8133_v22   ;;  %v7797_v22 = vld [vmem:[#allocation7 + $0x364] ss:$16 sps:$4 sm:$0xff]  }
 0x4df   : > { %5424 = vmatpush2.bf16.msra.mxu1 %v4212_v7  ;;  %v7723_v7 = vld [vmem:[#allocation7 + $0x1e0] ss:$16 sps:$4 sm:$0xff]  }
 0x4e0   : > { %5425 = vmatprep.subr.bf16.mxu1 %v11726_v29  ;;  %4429 = vperm.xlu0 %7360, %v8134_v63  }
 0x4e1   : > { %4361 = vperm.xlu1 %7361, %v8135_v9  }
 0x4e2   : > { %5257 = vmatmul.mubr.bf16.gmra.mxu0 %v7717_v4  ;;  %v7789_v4 = vld [vmem:[#allocation7 + $0x340] ss:$16 sps:$4 sm:$0xff]  }
 0x4e3   : > { %5426 = vmatpush2.bf16.msra.mxu1 %v4211_v36  ;;  %5264 = vmatprep.mubr.bf16.mxu0 %v7725_v14  ;;  %v8138_v36 = vld [vmem:[%s11673_s7 + $0x198] sm:$0xff] }
 0x4e4   : > { %5427 = vmatprep.subr.bf16.mxu1 %v11726_v29  ;;  %4365 = vperm.xlu0 %7360, %v8136_v33   ;;  %v7776_v14 = vld [vmem:[#allocation7 + $0x16c] ss:$16 sps:$4 sm:$0xff]  }
 0x4e5   : > { %4417 = vperm.xlu1 %7361, %v8137_v26   ;;  %v7795_v26 = vld [vmem:[#allocation7 + $0x360] ss:$16 sps:$4 sm:$0xff]  }
 0x4e7   : > { %5428 = vmatpush2.bf16.msra.mxu1 %v4210_v24  ;;  %v7708_v24 = vld [vmem:[#allocation7 + $0x8] ss:$16 sps:$4 sm:$0xff]  }
 0x4e8   : > { %5429 = vmatprep.subr.bf16.mxu1 %v11726_v29  ;;  %4421 = vperm.xlu0 %7360, %v8138_v36   ;;  %v7782_v36 = vld [vmem:[#allocation7 + $0x18c] ss:$16 sps:$4 sm:$0xff]  }
 0x4e9   : > { %4353 = vperm.xlu1 %7361, %v8139_v10   ;;  %v7803_v10 = vld [vmem:[#allocation7 + $0x384] ss:$16 sps:$4 sm:$0xff]  }
 0x4ea   : > { %5265 = vmatmul.mubr.bf16.gmra.mxu0 %v7723_v7  ;;  %v7774_v7 = vld [vmem:[#allocation7 + $0x168] ss:$16 sps:$4 sm:$0xff]  }
 0x4eb   : > { %5430 = vmatpush2.bf16.msra.mxu1 %v4209_v28  ;;  %5272 = vmatprep.mubr.bf16.mxu0 %v7731_v17  ;;  %v8142_v28 = vld [vmem:[%s11673_s7 + $0x188] sm:$0xff] }
 0x4ec   : > { %5431 = vmatprep.subr.bf16.mxu1 %v11726_v29  ;;  %4357 = vperm.xlu0 %7360, %v8140_v42   ;;  %v8141_v29 = vld [vmem:[%s11673_s7 + $0x180] sm:$0xff] }
 0x4ed   : > { %4409 = vperm.xlu1 %7361, %v8141_v29   ;;  %v7801_v29 = vld [vmem:[#allocation7 + $0x380] ss:$16 sps:$4 sm:$0xff]  }
 0x4ef   : > { %5432 = vmatpush2.bf16.msra.mxu1 %v4208_v59  ;;  %v7714_v59 = vld [vmem:[#allocation7 + $0x28] ss:$16 sps:$4 sm:$0xff]  }
 0x4f0   : > { %4413 = vperm.xlu0 %7360, %v8142_v28   ;;  %v7788_v28 = vld [vmem:[#allocation7 + $0x1ac] ss:$16 sps:$4 sm:$0xff]  }
 0x4f1   : > { %4345 = vperm.xlu1 %7361, %v8143_v12   ;;  %v7809_v12 = vld [vmem:[#allocation7 + $0x3a4] ss:$16 sps:$4 sm:$0xff]  }
 0x4f2   : > { %5434 = vmatmul.mubr.bf16.vlgmr.msra.gmra.mxu1 %v7708_v24  ;;  %5273 = vmatmul.mubr.bf16.gmra.mxu0 %v7729_v27 }
 0x4f3   : > { %5441 = vmatprep.mubr.bf16.mxu1 %v7716_v61  ;;  %5280 = vmatprep.mubr.bf16.mxu0 %v7737_v37  ;;  %v7780_v61 = vld [vmem:[#allocation7 + $0x188] ss:$16 sps:$4 sm:$0xff]  }
 0x4f4   : > { %4349 = vperm.xlu0 %7360, %v8144_v31  }
 0x4fa   : > { %5442 = vmatmul.mubr.bf16.gmra.mxu1 %v7714_v59  ;;  %5281 = vmatmul.mubr.bf16.gmra.mxu0 %v7735_v38  ;;  %v10649_v38 = vpop.permute.xlu1 %4341 }
 0x4fb   : > { %5449 = vmatprep.mubr.bf16.mxu1 %v7722_v49  ;;  %5288 = vmatprep.mubr.bf16.mxu0 %v7743_v52  ;;  %11820 = vst [vmem:[#allocation30_spill] sm:$0xff] %v10649_v38  ;;  %v7786_v52 = vld [vmem:[#allocation7 + $0x1a8] ss:$16 sps:$4 sm:$0xff]  }
 0x502   : > { %5450 = vmatmul.mubr.bf16.gmra.mxu1 %v7720_v54  ;;  %5289 = vmatmul.mubr.bf16.gmra.mxu0 %v7741_v41  ;;  %v7807_v41 = vld [vmem:[#allocation7 + $0x3a0] ss:$16 sps:$4 sm:$0xff]  }
 0x503   : > { %5457 = vmatprep.mubr.bf16.mxu1 %v7728_v62  ;;  %5296 = vmatprep.mubr.bf16.mxu0 %v7749_v47  ;;  %v7794_v62 = vld [vmem:[#allocation7 + $0x1cc] ss:$16 sps:$4 sm:$0xff]   ;;  %v7815_v47 = vld [vmem:[#allocation7 + $0x3c4] ss:$16 sps:$4 sm:$0xff]  }
 0x50a   : > { %5458 = vmatmul.mubr.bf16.gmra.mxu1 %v7726_v18  ;;  %5297 = vmatmul.mubr.bf16.gmra.mxu0 %v7747_v1  ;;  %v10653_v18 = vpop.permute.xlu0 %4337 }
 0x50b   : > { %5465 = vmatprep.mubr.bf16.mxu1 %v7734_v5  ;;  %5304 = vmatprep.mubr.bf16.mxu0 %v7755_v40  ;;  %11821 = vst [vmem:[#allocation44_spill] sm:$0xff] %v10653_v18  ;;  %v10655_v5 = vpop.permute.xlu1 %4273 }
 0x512   : > { %5466 = vmatmul.mubr.bf16.gmra.mxu1 %v7732_v16  ;;  %5305 = vmatmul.mubr.bf16.gmra.mxu0 %v7753_v43  ;;  %v10659_v43 = vpop.permute.xlu0 %4277 }
 0x513   : > { %5473 = vmatprep.mubr.bf16.mxu1 %v7740_v50  ;;  %5312 = vmatprep.mubr.bf16.mxu0 %v7761_v51  ;;  %v7792_v50 = vld [vmem:[#allocation7 + $0x1c8] ss:$16 sps:$4 sm:$0xff]  }
 0x51a   : > { %5474 = vmatmul.mubr.bf16.gmra.mxu1 %v7738_v60  ;;  %5313 = vmatmul.mubr.bf16.gmra.mxu0 %v7759_v35  ;;  %v7813_v60 = vld [vmem:[#allocation7 + $0x3c0] ss:$16 sps:$4 sm:$0xff]   ;;  %v10663_v35 = vpop.permute.xlu1 %4329 }
 0x51b   : > { %5481 = vmatprep.mubr.bf16.mxu1 %v7746_v58  ;;  %5320 = vmatprep.mubr.bf16.mxu0 %v7767_v34  ;;  %11822 = vst [vmem:[#allocation20_spill] sm:$0xff] %v10663_v35  ;;  %v7800_v58 = vld [vmem:[#allocation7 + $0x1ec] ss:$16 sps:$4 sm:$0xff]   ;;  %v7821_v34 = vld [vmem:[#allocation7 + $0x3e4] ss:$16 sps:$4 sm:$0xff]  }
 0x522   : > { %5482 = vmatmul.mubr.bf16.gmra.mxu1 %v7744_v8  ;;  %5321 = vmatmul.mubr.bf16.gmra.mxu0 %v7765_v19 }
 0x523   : > { %5489 = vmatprep.mubr.bf16.mxu1 %v7752_v20  ;;  %5328 = vmatprep.mubr.bf16.mxu0 %v7773_v23  ;;  %v10667_v20 = vpop.permute.xlu0 %4333 }
 0x524   : > { %11823 = vst [vmem:[#allocation45_spill] sm:$0xff] %v10667_v20 }
 0x52a   : > { %5490 = vmatmul.mubr.bf16.gmra.mxu1 %v7750_v2  ;;  %5329 = vmatmul.mubr.bf16.gmra.mxu0 %v7771_v39  ;;  %v10669_v2 = vpop.permute.xlu1 %4265  ;;  %v7798_v39 = vld [vmem:[#allocation7 + $0x1e8] ss:$16 sps:$4 sm:$0xff]  }
 0x52b   : > { %5497 = vmatprep.mubr.bf16.mxu1 %v7758_v57  ;;  %5336 = vmatprep.mubr.bf16.mxu0 %v7779_v3  ;;  %v7819_v3 = vld [vmem:[#allocation7 + $0x3e0] ss:$16 sps:$4 sm:$0xff]  }
 0x532   : > { %5498 = vmatmul.mubr.bf16.gmra.mxu1 %v7756_v32  ;;  %v10631_v55 = vpop.f32.mrf.mxu0  ;;  %5337 = vmatmul.mubr.bf16.gmra.mxu0 %v7777_v45  ;;  %v7806_v32 = vld [vmem:[#allocation7 + $0x20c] ss:$16 sps:$4 sm:$0xff]  }
 0x533   : > { %5505 = vmatprep.mubr.bf16.mxu1 %v7764_v25  ;;  %5344 = vmatprep.mubr.bf16.mxu0 %v7785_v11  ;;  %v10673_v25 = vpop.permute.xlu0 %4269 }
 0x534   : > { %v5148_v21 = vpop.f32.mrf.mxu0 }
 0x535   : > { %v10677_v21 = vpop.permute.xlu1 %4321 }
 0x536   : > { %v10633_v6 = vpop.f32.mrf.mxu0  ;;  %11824 = vst [vmem:[#allocation29_spill] sm:$0xff] %v10677_v21 }
 0x538   : > { %v5151_v13 = vpop.f32.mrf.mxu0 }
 0x539   : > { %v10681_v13 = vpop.permute.xlu0 %4325 }
 0x53a   : > { %5506 = vmatmul.mubr.bf16.gmra.mxu1 %v7762_v0  ;;  %v10635_v44 = vpop.f32.mrf.mxu0  ;;  %5345 = vmatmul.mubr.bf16.gmra.mxu0 %v7783_v46  ;;  %v7804_v46 = vld [vmem:[#allocation7 + $0x208] ss:$16 sps:$4 sm:$0xff]   ;;  %11825 = vst [vmem:[#allocation18_spill] sm:$0xff] %v10681_v13 }
 0x53b   : > { %5513 = vmatprep.mubr.bf16.mxu1 %v7770_v30  ;;  %5352 = vmatprep.mubr.bf16.mxu0 %v7791_v56  ;;  %v7812_v56 = vld [vmem:[#allocation7 + $0x22c] ss:$16 sps:$4 sm:$0xff]  }
 0x53c   : > { %v5156_v53 = vpop.f32.mrf.mxu0 }
 0x53e   : > { %v10637_v48 = vpop.f32.mrf.mxu0 }
 0x540   : > { %v5159_v63 = vpop.f32.mrf.mxu0 }
 0x541   : > { %v7810_v63 = vld [vmem:[#allocation7 + $0x228] ss:$16 sps:$4 sm:$0xff]  }
 0x542   : > { %5514 = vmatmul.mubr.bf16.gmra.mxu1 %v7768_v15  ;;  %v10639_v9 = vpop.f32.mrf.mxu0  ;;  %5353 = vmatmul.mubr.bf16.gmra.mxu0 %v7789_v4  ;;  %v10683_v15 = vpop.permute.xlu1 %4257 }
 0x543   : > { %5521 = vmatprep.mubr.bf16.mxu1 %v7776_v14  ;;  %5360 = vmatprep.mubr.bf16.mxu0 %v7797_v22  ;;  %v10687_v22 = vpop.permute.xlu0 %4261 }
 0x544   : > { %v5164_v33 = vpop.f32.mrf.mxu0 }
 0x546   : > { %v10641_v17 = vpop.f32.mrf.mxu0 }
 0x548   : > { %v5167_v42 = vpop.f32.mrf.mxu0 }
 0x549   : > { %v10695_v42 = vpop.permute.xlu0 %4317 }
 0x54a   : > { %5522 = vmatmul.mubr.bf16.gmra.mxu1 %v7774_v7  ;;  %v10643_v24 = vpop.f32.mrf.mxu0  ;;  %5361 = vmatmul.mubr.bf16.gmra.mxu0 %v7795_v26  ;;  %v10691_v7 = vpop.permute.xlu1 %4313  ;;  %v7818_v26 = vld [vmem:[#allocation7 + $0x24c] ss:$16 sps:$4 sm:$0xff]   ;;  %11826 = vst [vmem:[#allocation21_spill] sm:$0xff] %v10695_v42 }
 0x54b   : > { %5529 = vmatprep.mubr.bf16.mxu1 %v7782_v36  ;;  %5368 = vmatprep.mubr.bf16.mxu0 %v7803_v10 }
 0x54c   : > { %v5172_v27 = vpop.f32.mrf.mxu0 }
 0x54e   : > { %v10645_v37 = vpop.f32.mrf.mxu0 }
 0x550   : > { %v5175_v31 = vpop.f32.mrf.mxu0 }
 0x552   : > { %5530 = vmatmul.mubr.bf16.gmra.mxu1 %v7780_v61  ;;  %v10647_v59 = vpop.f32.mrf.mxu0  ;;  %5369 = vmatmul.mubr.bf16.gmra.mxu0 %v7801_v29  ;;  %v10697_v61 = vpop.permute.xlu1 %4249  ;;  %v7816_v29 = vld [vmem:[#allocation7 + $0x248] ss:$16 sps:$4 sm:$0xff]  }
 0x553   : > { %5537 = vmatprep.mubr.bf16.mxu1 %v7788_v28  ;;  %5376 = vmatprep.mubr.bf16.mxu0 %v7809_v12  ;;  %v7824_v12 = vld [vmem:[#allocation7 + $0x26c] ss:$16 sps:$4 sm:$0xff]  }
 0x554   : > { %v5180_v49 = vpop.f32.mrf.mxu0 }
 0x555   : > { %v10701_v49 = vpop.permute.xlu0 %4253 }
 0x556   : > { %v10651_v54 = vpop.f32.mrf.mxu0 }
 0x558   : > { %v5183_v1 = vpop.f32.mrf.mxu0 }
 0x55a   : > { %5538 = vmatmul.mubr.bf16.gmra.mxu1 %v7786_v52  ;;  %v10657_v40 = vpop.f32.mrf.mxu0  ;;  %5377 = vmatmul.mubr.bf16.gmra.mxu0 %v7807_v41  ;;  %v10705_v41 = vpop.permute.xlu1 %4305 }
 0x55b   : > { %5545 = vmatprep.mubr.bf16.mxu1 %v7794_v62  ;;  %5384 = vmatprep.mubr.bf16.mxu0 %v7815_v47  ;;  %v7822_v47 = vld [vmem:[#allocation7 + $0x268] ss:$16 sps:$4 sm:$0xff]  }
 0x55c   : > { %v5188_v16 = vpop.f32.mrf.mxu0 }
 0x55d   : > { %v7827_v16 = vld [vmem:[#allocation7 + $0x28c] ss:$16 sps:$4 sm:$0xff]  }
 0x55e   : > { %v10661_v51 = vpop.f32.mrf.mxu0 }
 0x560   : > { %v5191_v8 = vpop.f32.mrf.mxu0 }
 0x562   : > { %5546 = vmatmul.mubr.bf16.gmra.mxu1 %v7792_v50  ;;  %v10665_v19 = vpop.f32.mrf.mxu0  ;;  %5385 = vmatmul.mubr.bf16.gmra.mxu0 %v7813_v60  ;;  %v10709_v50 = vpop.permute.xlu0 %4309 }
 0x563   : > { %5553 = vmatprep.mubr.bf16.mxu1 %v7800_v58  ;;  %5392 = vmatprep.mubr.bf16.mxu0 %v7821_v34  ;;  %v10711_v58 = vpop.permute.xlu1 %4241 }
 0x564   : > { %v5196_v23 = vpop.f32.mrf.mxu0 }
 0x566   : > { %v10671_v57 = vpop.f32.mrf.mxu0  ;;  %v10715_v23 = vpop.permute.xlu0 %4245 }
 0x568   : > { %v5199_v45 = vpop.f32.mrf.mxu0 }
 0x569   : > { %v7830_v45 = vld [vmem:[#allocation7 + $0x2ac] ss:$16 sps:$4 sm:$0xff]  }
 0x56a   : > { %5554 = vmatmul.mubr.bf16.gmra.mxu1 %v7798_v39  ;;  %v10675_v11 = vpop.f32.mrf.mxu0  ;;  %5393 = vmatmul.mubr.bf16.gmra.mxu0 %v7819_v3  ;;  %v7825_v39 = vld [vmem:[#allocation7 + $0x288] ss:$16 sps:$4 sm:$0xff]   ;;  %v10717_v3 = vpop.permute.xlu1 %4297 }
 0x56b   : > { %5561 = vmatprep.mubr.bf16.mxu1 %v7806_v32 }
 0x56c   : > { %v5204_v0 = vpop.f32.mrf.mxu0 }
 0x56e   : > { %v10679_v30 = vpop.f32.mrf.mxu0 }
 0x570   : > { %v5207_v53 = vpop.f32.mrf.mxu0 }
 0x571   : > { %v10725_v53 = vpop.permute.xlu1 %4233 }
 0x572   : > { %5562 = vmatmul.mubr.bf16.gmra.mxu1 %v7804_v46  ;;  %v10685_v4 = vpop.f32.mrf.mxu0 }
 0x573   : > { %5569 = vmatprep.mubr.bf16.mxu1 %v7812_v56  ;;  %v10723_v56 = vpop.permute.xlu0 %4301 }
 0x574   : > { %v5212_v14 = vpop.f32.mrf.mxu0 }
 0x576   : > { %v10689_v33 = vpop.f32.mrf.mxu0 }
 0x578   : > { %v5215_v36 = vpop.f32.mrf.mxu0 }
 0x579   : > { %v7833_v36 = vld [vmem:[#allocation7 + $0x2cc] ss:$16 sps:$4 sm:$0xff]  }
 0x57a   : > { %5570 = vmatmul.mubr.bf16.gmra.mxu1 %v7810_v63  ;;  %v10693_v10 = vpop.f32.mrf.mxu0  ;;  %v7828_v63 = vld [vmem:[#allocation7 + $0x2a8] ss:$16 sps:$4 sm:$0xff]  }
 0x57b   : > { %5577 = vmatprep.mubr.bf16.mxu1 %v7818_v26 }
 0x57c   : > { %v5220_v27 = vpop.f32.mrf.mxu0 }
 0x57e   : > { %v10699_v28 = vpop.f32.mrf.mxu0 }
 0x580   : > { %v5223_v31 = vpop.f32.mrf.mxu0 }
 0x582   : > { %5578 = vmatmul.mubr.bf16.gmra.mxu1 %v7816_v29  ;;  %v10703_v52 = vpop.f32.mrf.mxu0  ;;  %v10729_v29 = vpop.permute.xlu0 %4237 }
 0x583   : > { %5585 = vmatprep.mubr.bf16.mxu1 %v7824_v12  ;;  %v10731_v12 = vpop.permute.xlu1 %4289 }
 0x584   : > { %v5228_v62 = vpop.f32.mrf.mxu0 }
 0x586   : > { %v10707_v1 = vpop.f32.mrf.mxu0 }
 0x588   : > { %v5231_v60 = vpop.f32.mrf.mxu0 }
 0x589   : > { %v7836_v60 = vld [vmem:[#allocation7 + $0x2ec] ss:$16 sps:$4 sm:$0xff]  }
 0x58a   : > { %5586 = vmatmul.mubr.bf16.gmra.mxu1 %v7822_v47  ;;  %v10713_v34 = vpop.f32.mrf.mxu0  ;;  %v7831_v47 = vld [vmem:[#allocation7 + $0x2c8] ss:$16 sps:$4 sm:$0xff]  }
 0x58b   : > { %5593 = vmatprep.mubr.bf16.mxu1 %v7827_v16 }
 0x58c   : > { %v5236_v8 = vpop.f32.mrf.mxu0 }
 0x58d   : > { %v10737_v8 = vpop.permute.xlu0 %4293 }
 0x58e   : > { %v10719_v32 = vpop.f32.mrf.mxu0 }
 0x590   : > { %v5239_v0 = vpop.f32.mrf.mxu0 }
 0x592   : > { %5594 = vmatmul.mubr.bf16.gmra.mxu1 %v7825_v39  ;;  %v10721_v46 = vpop.f32.mrf.mxu0  ;;  %v4226_v39 = vpop.permute.xlu1 %4225 }
 0x593   : > { %5601 = vmatprep.mubr.bf16.mxu1 %v7830_v45 }
 0x594   : > { %v5244_v14 = vpop.f32.mrf.mxu0 }
 0x596   : > { %v10727_v26 = vpop.f32.mrf.mxu0  ;;  %v10741_v38 = vpop.permute.xlu1 %4281 }
 0x597   : > { %11827 = vst [vmem:[#allocation15_spill] sm:$0xff] %v10727_v26 }
 0x598   : > { %v5247_v27 = vpop.f32.mrf.mxu0 }
 0x599   : > { %v7834_v27 = vld [vmem:[#allocation7 + $0x2e8] ss:$16 sps:$4 sm:$0xff]  }
 0x59a   : > { %5602 = vmatmul.mubr.bf16.gmra.mxu1 %v7828_v63  ;;  %v10733_v31 = vpop.f32.mrf.mxu0  ;;  %v4230_v63 = vpop.permute.xlu0 %4229 }
 0x59b   : > { %11828 = vst [vmem:[#allocation19_spill] sm:$0xff] %v10733_v31  ;;  %5609 = vmatprep.mubr.bf16.mxu1 %v7833_v36  ;;  %v7839_v36 = vld [vmem:[#allocation7 + $0x30c] ss:$16 sps:$4 sm:$0xff]  }
 0x59c   : > { %v5252_v62 = vpop.f32.mrf.mxu0 }
 0x59e   : > { %v10735_v16 = vpop.f32.mrf.mxu0  ;;  %v10747_v35 = vpop.permute.xlu0 %4285 }
 0x59f   : > { %11829 = vst [vmem:[#allocation17_spill] sm:$0xff] %v10735_v16  ;;  %v7837_v16 = vld [vmem:[#allocation7 + $0x308] ss:$16 sps:$4 sm:$0xff]  }
 0x5a0   : > { %v5255_v45 = vpop.f32.mrf.mxu0 }
 0x5a1   : > { %v4218_v45 = vpop.permute.xlu1 %4217 }
 0x5a2   : > { %5610 = vmatmul.mubr.bf16.gmra.mxu1 %v7831_v47  ;;  %v10739_v0 = vpop.f32.mrf.mxu0  ;;  %v4222_v31 = vpop.permute.xlu0 %4221 }
 0x5a3   : > { %11830 = vst [vmem:[#allocation16_spill] sm:$0xff] %v10739_v0  ;;  %5617 = vmatprep.mubr.bf16.mxu1 %v7836_v60  ;;  %v7842_v60 = vld [vmem:[#allocation7 + $0x32c] ss:$16 sps:$4 sm:$0xff]  }
 0x5a4   : > { %v5260_v14 = vpop.f32.mrf.mxu0 }
 0x5a5   : > { %v5147_v14 = vadd.f32 %v10631_v55, %v4218_v45  ;;  %v5155_v55 = vadd.f32 %v10635_v44, %v4226_v39  ;;  %v5158_v44 = vadd.f32 %v10637_v48, %v4230_v63  ;;  %v7843_v39 = vld [vmem:[#allocation7 + $0x348] ss:$16 sps:$4 sm:$0xff]  }
 0x5a6   : > { %v10743_v18 = vpop.f32.mrf.mxu0 }
 0x5a7   : > { %11831 = vst [vmem:[#allocation26_spill] sm:$0xff] %v10743_v18 }
 0x5a8   : > { %v5263_v62 = vpop.f32.mrf.mxu0 }
 0x5aa   : > { %5618 = vmatmul.mubr.bf16.gmra.mxu1 %v7834_v27  ;;  %v10745_v20 = vpop.f32.mrf.mxu0 }
 0x5ab   : > { %11832 = vst [vmem:[#allocation14_spill] sm:$0xff] %v10745_v20  ;;  %5625 = vmatprep.mubr.bf16.mxu1 %v7839_v36 }
 0x5ac   : > { %v5268_v47 = vpop.f32.mrf.mxu0 }
 0x5ad   : > { %v5150_v47 = vadd.f32 %v10633_v6, %v4222_v31 }
 0x5ae   : > { %v10749_v0 = vpop.f32.mrf.mxu0 }
 0x5af   : > { %11833 = vst [vmem:[#allocation28_spill] sm:$0xff] %v10749_v0  ;;  %v7840_v0 = vld [vmem:[#allocation7 + $0x328] ss:$16 sps:$4 sm:$0xff]  }
 0x5b0   : > { %v5271_v13 = vpop.f32.mrf.mxu0 }
 0x5b2   : > { %v5435_v21 = vpop.f32.mrf.mxu1  ;;  %5626 = vmatmul.mubr.bf16.gmra.mxu1 %v7837_v16  ;;  %v10752_v18 = vpop.f32.mrf.mxu0  ;;  %v7845_v16 = vld [vmem:[#allocation7 + $0x34c] ss:$16 sps:$4 sm:$0xff]  }
 0x5b3   : > { %5633 = vmatprep.mubr.bf16.mxu1 %v7842_v60  ;;  %v10754_v27 = vadd.f32 %v5435_v21, %v5147_v14 }
 0x5b4   : > { %v5437_v36 = vpop.f32.mrf.mxu1  ;;  %v5276_v62 = vpop.f32.mrf.mxu0 }
 0x5b5   : > { %v5754_v20 = vmul.f32 1.442695, %v10754_v27  ;;  %vm5690_vm1 = vcmp.gt.f32.partialorder %v10754_v27, 0.0 }
 0x5b6   : > { %v5438_v26 = vpop.f32.mrf.mxu1  ;;  %v10758_v42 = vpop.f32.mrf.mxu0 }
 0x5b7   : > { %7885 = vpow2.f32 %v5754_v20  ;;  %v10761_v13 = vadd.f32 %v5438_v26, %v5150_v47 }
 0x5b8   : > { %v5440_v45 = vpop.f32.mrf.mxu1  ;;  %v5279_v60 = vpop.f32.mrf.mxu0 }
 0x5b9   : > { %v5756_v21 = vmul.f32 1.442695, %v10761_v13  ;;  %v5163_v45 = vadd.f32 %v10639_v9, %v10725_v53  ;;  %v5166_v9 = vadd.f32 %v10641_v17, %v10729_v29  ;;  %vm5691_vm2 = vcmp.gt.f32.partialorder %v10761_v13, 0.0 }
 0x5ba   : > { %v5443_v14 = vpop.f32.mrf.mxu1  ;;  %5634 = vmatmul.mubr.bf16.gmra.mxu1 %v7840_v0  ;;  %v10764_v36 = vpop.f32.mrf.mxu0 }
 0x5bb   : > { %v10766_v62 = vadd.f32 %v5443_v14, %v5155_v55  ;;  %7887 = vpow2.f32 %v5756_v21  ;;  %5641 = vmatprep.mubr.bf16.mxu1 %v7845_v16  ;;  %v7848_v55 = vld [vmem:[#allocation7 + $0x36c] ss:$16 sps:$4 sm:$0xff]  }
 0x5bc   : > { %v5445_v6 = vpop.f32.mrf.mxu1  ;;  %v5284_v31 = vpop.f32.mrf.mxu0 }
 0x5bd   : > { %v5758_v20 = vmul.f32 1.442695, %v10766_v62  ;;  %vm5692_vm3 = vcmp.gt.f32.partialorder %v10766_v62, 0.0 }
 0x5be   : > { %v5446_v26 = vpop.f32.mrf.mxu1  ;;  %v10770_v47 = vpop.f32.mrf.mxu0 }
 0x5bf   : > { %11834 = vst [vmem:[#allocation27_spill] sm:$0xff] %v10770_v47  ;;  %7889 = vpow2.f32 %v5758_v20  ;;  %v10774_v0 = vadd.f32 %v5446_v26, %v5158_v44  ;;  %v7846_v26 = vld [vmem:[#allocation7 + $0x368] ss:$16 sps:$4 sm:$0xff]  }
 0x5c0   : > { %v5448_v60 = vpop.f32.mrf.mxu1  ;;  %v5287_v21 = vpop.f32.mrf.mxu0 }
 0x5c1   : > { %v5760_v16 = vmul.f32 1.442695, %v10774_v0  ;;  %vm5693_vm4 = vcmp.gt.f32.partialorder %v10774_v0, 0.0 }
 0x5c2   : > { %v5451_v14 = vpop.f32.mrf.mxu1  ;;  %5642 = vmatmul.mubr.bf16.gmra.mxu1 %v7843_v39  ;;  %v10777_v48 = vpop.f32.mrf.mxu0  ;;  %v5171_v39 = vadd.f32 %v10643_v24, %v10711_v58 }
 0x5c3   : > { %7891 = vpow2.f32 %v5760_v16  ;;  %v10779_v63 = vadd.f32 %v5451_v14, %v5163_v45  ;;  %5649 = vmatprep.mubr.bf16.mxu1 %v7848_v55  ;;  %v7851_v55 = vld [vmem:[#allocation7 + $0x38c] ss:$16 sps:$4 sm:$0xff]  }
 0x5c4   : > { %v7886_v6 = vpop.eup %7885  ;;  %v5453_v31 = vpop.f32.mrf.mxu1 }
 0x5c5   : > { %v5292_v47 = vpop.f32.mrf.mxu0  ;;  %v7000_v53 = vadd.f32 -1.0, %v7886_v6  ;;  %v5762_v44 = vmul.f32 1.442695, %v10779_v63  ;;  %vm5694_vm5 = vcmp.gt.f32.partialorder %v10779_v63, 0.0 }
 0x5c6   : > { %v5454_v20 = vpop.f32.mrf.mxu1 }
 0x5c7   : > { %v10784_v60 = vpop.f32.mrf.mxu0  ;;  %v5946_v21 = vmul.f32 1.6732632, %v7000_v53  ;;  %7893 = vpow2.f32 %v5762_v44  ;;  %v10788_v45 = vadd.f32 %v5454_v20, %v5166_v9  ;;  %v5174_v20 = vadd.f32 %v10645_v37, %v10715_v23  ;;  %v7854_v37 = vld [vmem:[#allocation7 + $0x3ac] ss:$16 sps:$4 sm:$0xff]  }
 0x5c8   : > { %11835 = vst [vmem:[#allocation23_spill] sm:$0xff] %v10784_v60  ;;  %v7888_v16 = vpop.eup %7887  ;;  %v5456_v47 = vpop.f32.mrf.mxu1 }
 0x5c9   : > { %v5295_v14 = vpop.f32.mrf.mxu0  ;;  %v7001_v31 = vadd.f32 -1.0, %v7888_v16  ;;  %v5764_v17 = vmul.f32 1.442695, %v10788_v45  ;;  %v6010_v60 = vsel %vm5690_vm1, %v10754_v27, %v5946_v21  ;;  %v7849_v21 = vld [vmem:[#allocation7 + $0x388] ss:$16 sps:$4 sm:$0xff]   ;;  %vm5695_vm6 = vcmp.gt.f32.partialorder %v10788_v45, 0.0 }
 0x5ca   : > { %v5459_v29 = vpop.f32.mrf.mxu1  ;;  %5650 = vmatmul.mubr.bf16.gmra.mxu1 %v7846_v26  ;;  %v10802_v14 = vmul.f32 1.050701, %v6010_v60 }
 0x5cb   : > { %v10792_v6 = vpop.f32.mrf.mxu0  ;;  %v5947_v24 = vmul.f32 1.6732632, %v7001_v31  ;;  %7895 = vpow2.f32 %v5764_v17  ;;  %v10795_v58 = vadd.f32 %v5459_v29, %v5171_v39  ;;  %5657 = vmatprep.mubr.bf16.mxu1 %v7851_v55  ;;  %v5179_v31 = vadd.f32 %v10647_v59, %v10697_v61 }
 0x5cc   : > { %v7890_v9 = vpop.eup %7889  ;;  %v5461_v53 = vpop.f32.mrf.mxu1  ;;  %11836 = vst [vmem:[#allocation22_spill] sm:$0xff] %v10802_v14 }
 0x5cd   : > { %v5300_v44 = vpop.f32.mrf.mxu0  ;;  %v7002_v16 = vadd.f32 -1.0, %v7890_v9  ;;  %v6011_v26 = vsel %vm5691_vm2, %v10761_v13, %v5947_v24  ;;  %v5766_v47 = vmul.f32 1.442695, %v10795_v58  ;;  %vm5696_vm7 = vcmp.gt.f32.partialorder %v10795_v58, 0.0 }
 0x5ce   : > { %v10804_v27 = vmul.f32 1.050701, %v6011_v26  ;;  %v5462_v39 = vpop.f32.mrf.mxu1  ;;  %v10815_v44 = vpop.permute.xlu1 %4465 }
 0x5cf   : > { %v10806_v55 = vpop.f32.mrf.mxu0  ;;  %v5948_v17 = vmul.f32 1.6732632, %v7002_v16  ;;  %7897 = vpow2.f32 %v5766_v47  ;;  %v10810_v29 = vadd.f32 %v5462_v39, %v5174_v20  ;;  %11838 = vst [vmem:[#allocation24_spill] sm:$0xff] %v10815_v44 }
 0x5d0   : > { %11837 = vst [vmem:[#allocation25_spill] sm:$0xff] %v10804_v27  ;;  %v7892_v23 = vpop.eup %7891  ;;  %v5464_v13 = vpop.f32.mrf.mxu1 }
 0x5d1   : > { %v5303_v24 = vpop.f32.mrf.mxu0  ;;  %v7003_v9 = vadd.f32 -1.0, %v7892_v23  ;;  %v5768_v53 = vmul.f32 1.442695, %v10810_v29  ;;  %v6012_v61 = vsel %vm5692_vm3, %v10766_v62, %v5948_v17  ;;  %v5182_v13 = vadd.f32 %v10651_v54, %v10701_v49  ;;  %v7852_v17 = vld [vmem:[#allocation7 + $0x3a8] ss:$16 sps:$4 sm:$0xff]   ;;  %v10838_v49 = vpop.permute.xlu0 %4469 }
 0x5d2   : > { %v5467_v26 = vpop.f32.mrf.mxu1  ;;  %5658 = vmatmul.mubr.bf16.gmra.mxu1 %v7849_v21  ;;  %v10828_v44 = vmul.f32 1.050701, %v6012_v61  ;;  %v7857_v54 = vld [vmem:[#allocation7 + $0x3cc] ss:$16 sps:$4 sm:$0xff]   ;;  %11841 = vst [vmem:[#allocation42_spill] sm:$0xff] %v10838_v49  ;;  %vm5697_vm8 = vcmp.gt.f32.partialorder %v10810_v29, 0.0 }
 0x5d3   : > { %v10818_v59 = vpop.f32.mrf.mxu0  ;;  %v5949_v20 = vmul.f32 1.6732632, %v7003_v9  ;;  %7899 = vpow2.f32 %v5768_v53  ;;  %v10821_v16 = vadd.f32 %v5467_v26, %v5179_v31  ;;  %5665 = vmatprep.mubr.bf16.mxu1 %v7854_v37  ;;  %v5187_v9 = vadd.f32 %v10657_v40, %v10683_v15 }
 0x5d4   : > { %v7894_v47 = vpop.eup %7893  ;;  %v5469_v39 = vpop.f32.mrf.mxu1  ;;  %11839 = vst [vmem:[#allocation43_spill] sm:$0xff] %v10828_v44 }
 0x5d5   : > { %v5308_v23 = vpop.f32.mrf.mxu0  ;;  %v6013_v24 = vsel %vm5693_vm4, %v10774_v0, %v5949_v20  ;;  %v7004_v21 = vadd.f32 -1.0, %v7894_v47  ;;  %v5770_v60 = vmul.f32 1.442695, %v10821_v16  ;;  %v10840_v0 = vpop.permute.xlu1 %4401  ;;  %vm5698_vm9 = vcmp.gt.f32.partialorder %v10821_v16, 0.0 }
 0x5d6   : > { %v10830_v62 = vmul.f32 1.050701, %v6013_v24  ;;  %v5470_v31 = vpop.f32.mrf.mxu1  ;;  %11842 = vst [vmem:[#allocation39_spill] sm:$0xff] %v10840_v0  ;;  %v10856_v0 = vpop.permute.xlu0 %4405 }
 0x5d7   : > { %v10832_v37 = vpop.f32.mrf.mxu0  ;;  %v5950_v53 = vmul.f32 1.6732632, %v7004_v21  ;;  %7901 = vpow2.f32 %v5770_v60  ;;  %v10836_v26 = vadd.f32 %v5470_v31, %v5182_v13  ;;  %11843 = vst [vmem:[#allocation40_spill] sm:$0xff] %v10856_v0 }
 0x5d8   : > { %11840 = vst [vmem:[#allocation41_spill] sm:$0xff] %v10830_v62  ;;  %v7896_v61 = vpop.eup %7895  ;;  %v5472_v47 = vpop.f32.mrf.mxu1 }
 0x5d9   : > { %v5311_v39 = vpop.f32.mrf.mxu0  ;;  %v7005_v23 = vadd.f32 -1.0, %v7896_v61  ;;  %v5772_v24 = vmul.f32 1.442695, %v10836_v26  ;;  %v6014_v60 = vsel %vm5694_vm5, %v10779_v63, %v5950_v53  ;;  %v10858_v63 = vpop.permute.xlu1 %4457  ;;  %vm5699_vm10 = vcmp.gt.f32.partialorder %v10836_v26, 0.0 }
 0x5da   : > { %v5475_v40 = vpop.f32.mrf.mxu1  ;;  %5666 = vmatmul.mubr.bf16.gmra.mxu1 %v7852_v17  ;;  %v5190_v39 = vadd.f32 %v10661_v51, %v10687_v22  ;;  %11844 = vst [vmem:[#allocation37_spill] sm:$0xff] %v10858_v63  ;;  %v5195_v51 = vadd.f32 %v10665_v19, %v10669_v2 }
 0x5db   : > { %v10846_v15 = vpop.f32.mrf.mxu0  ;;  %v5951_v13 = vmul.f32 1.6732632, %v7005_v23  ;;  %7903 = vpow2.f32 %v5772_v24  ;;  %v10849_v21 = vadd.f32 %v5475_v40, %v5187_v9  ;;  %5673 = vmatprep.mubr.bf16.mxu1 %v7857_v54  ;;  %v10860_v9 = vmul.f32 1.050701, %v6014_v60  ;;  %v7855_v23 = vld [vmem:[#allocation7 + $0x3c8] ss:$16 sps:$4 sm:$0xff]  }
 0x5dc   : > { %v7898_v31 = vpop.eup %7897  ;;  %v5477_v47 = vpop.f32.mrf.mxu1  ;;  %v7860_v40 = vld [vmem:[#allocation7 + $0x3ec] ss:$16 sps:$4 sm:$0xff]  }
 0x5dd   : > { %v5316_v61 = vpop.f32.mrf.mxu0  ;;  %v6015_v20 = vsel %vm5695_vm6, %v10788_v45, %v5951_v13  ;;  %v7006_v17 = vadd.f32 -1.0, %v7898_v31  ;;  %v5774_v49 = vmul.f32 1.442695, %v10849_v21  ;;  %vm5700_vm11 = vcmp.gt.f32.partialorder %v10849_v21, 0.0 }
 0x5de   : > { %v10862_v53 = vmul.f32 1.050701, %v6015_v20  ;;  %v5478_v54 = vpop.f32.mrf.mxu1 }
 0x5df   : > { %v10864_v24 = vpop.f32.mrf.mxu0  ;;  %v5952_v22 = vmul.f32 1.6732632, %v7006_v17  ;;  %7905 = vpow2.f32 %v5774_v49  ;;  %v10868_v45 = vadd.f32 %v5478_v54, %v5190_v39  ;;  %v10879_v39 = vpop.permute.xlu0 %4461 }
 0x5e0   : > { %v7900_v13 = vpop.eup %7899  ;;  %v5480_v60 = vpop.f32.mrf.mxu1  ;;  %11845 = vst [vmem:[#allocation38_spill] sm:$0xff] %v10879_v39 }
 0x5e1   : > { %v5319_v47 = vpop.f32.mrf.mxu0  ;;  %v7007_v20 = vadd.f32 -1.0, %v7900_v13  ;;  %v5776_v61 = vmul.f32 1.442695, %v10868_v45  ;;  %v6016_v19 = vsel %vm5696_vm7, %v10795_v58, %v5952_v22  ;;  %v10881_v17 = vpop.permute.xlu1 %4393  ;;  %vm5701_vm12 = vcmp.gt.f32.partialorder %v10868_v45, 0.0 }
 0x5e2   : > { %v5483_v63 = vpop.f32.mrf.mxu1  ;;  %5674 = vmatmul.mubr.bf16.gmra.mxu1 %v7855_v23  ;;  %v5198_v23 = vadd.f32 %v10671_v57, %v10673_v25 }
 0x5e3   : > { %v10874_v0 = vpop.f32.mrf.mxu0  ;;  %v5953_v2 = vmul.f32 1.6732632, %v7007_v20  ;;  %7907 = vpow2.f32 %v5776_v61  ;;  %v10877_v49 = vadd.f32 %v5483_v63, %v5195_v51  ;;  %5681 = vmatprep.mubr.bf16.mxu1 %v7860_v40  ;;  %v10888_v63 = vmul.f32 1.050701, %v6016_v19  ;;  %v7858_v20 = vld [vmem:[#allocation7 + $0x3e8] ss:$16 sps:$4 sm:$0xff]  }
 0x5e4   : > { %v7902_v54 = vpop.eup %7901  ;;  %v5485_v13 = vpop.f32.mrf.mxu1 }
 0x5e5   : > { %v5324_v60 = vpop.f32.mrf.mxu0  ;;  %v6017_v47 = vsel %vm5697_vm8, %v10810_v29, %v5953_v2  ;;  %v7008_v58 = vadd.f32 -1.0, %v7902_v54  ;;  %v5778_v22 = vmul.f32 1.442695, %v10877_v49  ;;  %v5203_v13 = vadd.f32 %v10675_v11, %v10655_v5  ;;  %v10903_v39 = vpop.permute.xlu1 %4449 }
 0x5e6   : > { %v10890_v51 = vmul.f32 1.050701, %v6017_v47  ;;  %v5486_v40 = vpop.f32.mrf.mxu1  ;;  %v10901_v47 = vpop.permute.xlu0 %4397  ;;  %11848 = vst [vmem:[#allocation33_spill] sm:$0xff] %v10903_v39  ;;  %vm5702_vm13 = vcmp.gt.f32.partialorder %v10877_v49, 0.0 }
 0x5e7   : > { %v10892_v61 = vpop.f32.mrf.mxu0  ;;  %v5954_v60 = vmul.f32 1.6732632, %v7008_v58  ;;  %7909 = vpow2.f32 %v5778_v22  ;;  %v10896_v31 = vadd.f32 %v5486_v40, %v5198_v23  ;;  %11847 = vst [vmem:[#allocation36_spill] sm:$0xff] %v10901_v47 }
 0x5e8   : > { %11846 = vst [vmem:[#allocation35_spill] sm:$0xff] %v10892_v61  ;;  %v7904_v57 = vpop.eup %7903  ;;  %v5488_v29 = vpop.f32.mrf.mxu1 }
 0x5e9   : > { %v5327_v19 = vpop.f32.mrf.mxu0  ;;  %v7009_v2 = vadd.f32 -1.0, %v7904_v57  ;;  %v5780_v54 = vmul.f32 1.442695, %v10896_v31  ;;  %v6018_v23 = vsel %vm5698_vm9, %v10821_v16, %v5954_v60  ;;  %vm5703_vm14 = vcmp.gt.f32.partialorder %v10896_v31, 0.0 }
 0x5ea   : > { %v5491_v5 = vpop.f32.mrf.mxu1  ;;  %5682 = vmatmul.mubr.bf16.gmra.mxu1 %v7858_v20  ;;  %v5206_v19 = vadd.f32 %v10679_v30, %v10659_v43  ;;  %v10926_v43 = vpop.permute.xlu0 %4453 }
 0x5eb   : > { %v10906_v11 = vpop.f32.mrf.mxu0  ;;  %v5955_v58 = vmul.f32 1.6732632, %v7009_v2  ;;  %7911 = vpow2.f32 %v5780_v54  ;;  %v10909_v22 = vadd.f32 %v5491_v5, %v5203_v13  ;;  %v5211_v2 = vadd.f32 %v10685_v4, %v10741_v38  ;;  %11851 = vst [vmem:[#allocation32_spill] sm:$0xff] %v10926_v43  ;;  %v10928_v30 = vpop.permute.xlu1 %4385 }
 0x5ec   : > { %11849 = vst [vmem:[#allocation34_spill] sm:$0xff] %v10906_v11  ;;  %v7906_v40 = vpop.eup %7905  ;;  %v5493_v57 = vpop.f32.mrf.mxu1  ;;  %v10916_v11 = vmul.f32 1.050701, %v6018_v23 }
 0x5ed   : > { %v5332_v29 = vpop.f32.mrf.mxu0  ;;  %v6019_v25 = vsel %vm5699_vm10, %v10836_v26, %v5955_v58  ;;  %v7010_v39 = vadd.f32 -1.0, %v7906_v40  ;;  %v5782_v20 = vmul.f32 1.442695, %v10909_v22  ;;  %vm5704_vm15 = vcmp.gt.f32.partialorder %v10909_v22, 0.0 }
 0x5ee   : > { %v10918_v16 = vmul.f32 1.050701, %v6019_v25  ;;  %v5494_v60 = vpop.f32.mrf.mxu1 }
 0x5ef   : > { %v10920_v13 = vpop.f32.mrf.mxu0  ;;  %v5956_v54 = vmul.f32 1.6732632, %v7010_v39  ;;  %7913 = vpow2.f32 %v5782_v20  ;;  %v10924_v5 = vadd.f32 %v5494_v60, %v5206_v19 }
 0x5f0   : > { %11850 = vst [vmem:[#allocation31_spill] sm:$0xff] %v10920_v13  ;;  %v7908_v26 = vpop.eup %7907  ;;  %v5496_v25 = vpop.f32.mrf.mxu1 }
 0x5f1   : > { %v5335_v58 = vpop.f32.mrf.mxu0  ;;  %v7011_v40 = vadd.f32 -1.0, %v7908_v26  ;;  %v5784_v57 = vmul.f32 1.442695, %v10924_v5  ;;  %v6020_v39 = vsel %vm5700_vm11, %v10849_v21, %v5956_v54  ;;  %v5214_v26 = vadd.f32 %v10689_v33, %v10747_v35  ;;  %v10946_v21 = vpop.permute.xlu1 %4441 }
 0x5f2   : > { %v5499_v38 = vpop.f32.mrf.mxu1  ;;  %11853 = vst [vmem:[#allocation47_spill] sm:$0xff] %v10946_v21  ;;  %v10948_v54 = vmul.f32 1.050701, %v6020_v39  ;;  %vm5705_vm0 = vcmp.gt.f32.partialorder %v10924_v5, 0.0 }
 0x5f3   : > { %v10934_v4 = vpop.f32.mrf.mxu0  ;;  %v5957_v29 = vmul.f32 1.6732632, %v7011_v40  ;;  %7915 = vpow2.f32 %v5784_v57  ;;  %v10937_v19 = vadd.f32 %v5499_v38, %v5211_v2  ;;  %v5219_v38 = vadd.f32 %v10693_v10, %v10731_v12 }
 0x5f4   : > { %11852 = vst [vmem:[#allocation46_spill] sm:$0xff] %v10934_v4  ;;  %v7910_v20 = vpop.eup %7909  ;;  %v5501_v60 = vpop.f32.mrf.mxu1 }
 0x5f5   : > { %v5340_v25 = vpop.f32.mrf.mxu0  ;;  %v6021_v58 = vsel %vm5701_vm12, %v10868_v45, %v5957_v29  ;;  %v7012_v23 = vadd.f32 -1.0, %v7910_v20  ;;  %v5786_v43 = vmul.f32 1.442695, %v10937_v19  ;;  %v10944_v4 = vpop.permute.xlu0 %4389  ;;  %vm5706_vm1 = vcmp.gt.f32.partialorder %v10937_v19, 0.0 }
 0x5f6   : > { %v10950_v2 = vmul.f32 1.050701, %v6021_v58  ;;  %v5502_v40 = vpop.f32.mrf.mxu1 }
 0x5f7   : > { %v10952_v57 = vpop.f32.mrf.mxu0  ;;  %v5958_v35 = vmul.f32 1.6732632, %v7012_v23  ;;  %7917 = vpow2.f32 %v5786_v43  ;;  %v10956_v33 = vadd.f32 %v5502_v40, %v5214_v26  ;;  %v10969_v26 = vpop.permute.xlu1 %4377 }
 0x5f8   : > { %11854 = vst [vmem:[#allocation48_spill] sm:$0xff] %v10952_v57  ;;  %v7912_v45 = vpop.eup %7911  ;;  %v5504_v20 = vpop.f32.mrf.mxu1 }
 0x5f9   : > { %v5343_v60 = vpop.f32.mrf.mxu0  ;;  %v7013_v39 = vadd.f32 -1.0, %v7912_v45  ;;  %v5788_v25 = vmul.f32 1.442695, %v10956_v33  ;;  %v6022_v10 = vsel %vm5702_vm13, %v10877_v49, %v5958_v35  ;;  %v10967_v23 = vpop.permute.xlu0 %4445  ;;  %vm5707_vm2 = vcmp.gt.f32.partialorder %v10956_v33, 0.0 }
 0x5fa   : > { %v5507_v58 = vpop.f32.mrf.mxu1  ;;  %11856 = vst [vmem:[#allocation50_spill] sm:$0xff] %v10967_v23  ;;  %v5222_v60 = vadd.f32 %v10699_v28, %v10737_v8  ;;  %v10976_v35 = vmul.f32 1.050701, %v6022_v10 }
 0x5fb   : > { %v10962_v21 = vpop.f32.mrf.mxu0  ;;  %v5959_v12 = vmul.f32 1.6732632, %v7013_v39  ;;  %7919 = vpow2.f32 %v5788_v25  ;;  %v10965_v43 = vadd.f32 %v5507_v58, %v5219_v38  ;;  %v5227_v58 = vadd.f32 %v10703_v52, %v10717_v3  ;;  %v10991_v23 = vpop.permute.xlu1 %4433 }
 0x5fc   : > { %11855 = vst [vmem:[#allocation49_spill] sm:$0xff] %v10962_v21  ;;  %v7914_v40 = vpop.eup %7913  ;;  %v5509_v45 = vpop.f32.mrf.mxu1  ;;  %11858 = vst [vmem:[#allocation52_spill] sm:$0xff] %v10991_v23 }
 0x5fd   : > { %v5348_v20 = vpop.f32.mrf.mxu0  ;;  %v6023_v29 = vsel %vm5703_vm14, %v10896_v31, %v5959_v12  ;;  %v7014_v21 = vadd.f32 -1.0, %v7914_v40  ;;  %v5790_v49 = vmul.f32 1.442695, %v10965_v43  ;;  %v10989_v40 = vpop.permute.xlu0 %4381  ;;  %vm5708_vm3 = vcmp.gt.f32.partialorder %v10965_v43, 0.0 }
 0x5fe   : > { %v10978_v38 = vmul.f32 1.050701, %v6023_v29  ;;  %v5510_v39 = vpop.f32.mrf.mxu1 }
 0x5ff   : > { %v10980_v25 = vpop.f32.mrf.mxu0  ;;  %v5960_v45 = vmul.f32 1.6732632, %v7014_v21  ;;  %7921 = vpow2.f32 %v5790_v49  ;;  %v10984_v20 = vadd.f32 %v5510_v39, %v5222_v60 }
 0x600   : > { %11857 = vst [vmem:[#allocation51_spill] sm:$0xff] %v10980_v25  ;;  %v7916_v28 = vpop.eup %7915  ;;  %v5512_v31 = vpop.f32.mrf.mxu1 }
 0x601   : > { %v5351_v12 = vpop.f32.mrf.mxu0  ;;  %v7015_v10 = vadd.f32 -1.0, %v7916_v28  ;;  %v5792_v29 = vmul.f32 1.442695, %v10984_v20  ;;  %v6024_v21 = vsel %vm5704_vm15, %v10909_v22, %v5960_v45  ;;  %vm5709_vm4 = vcmp.gt.f32.partialorder %v10984_v20, 0.0 }
 0x602   : > { %v5515_v52 = vpop.f32.mrf.mxu1  ;;  %v5230_v12 = vadd.f32 %v10707_v1, %v10723_v56  ;;  %v11014_v1 = vpop.permute.xlu0 %4437 }
 0x603   : > { %v10994_v3 = vpop.f32.mrf.mxu0  ;;  %v5961_v60 = vmul.f32 1.6732632, %v7015_v10  ;;  %7923 = vpow2.f32 %v5792_v29  ;;  %v10997_v49 = vadd.f32 %v5515_v52, %v5227_v58  ;;  %v5235_v10 = vadd.f32 %v10713_v34, %v10705_v41  ;;  %11861 = vst [vmem:[#allocation55_spill] sm:$0xff] %v11014_v1  ;;  %v11016_v56 = vpop.permute.xlu1 %4369 }
 0x604   : > { %11859 = vst [vmem:[#allocation53_spill] sm:$0xff] %v10994_v3  ;;  %v7918_v39 = vpop.eup %7917  ;;  %v5517_v28 = vpop.f32.mrf.mxu1  ;;  %v11004_v3 = vmul.f32 1.050701, %v6024_v21 }
 0x605   : > { %v5356_v31 = vpop.f32.mrf.mxu0  ;;  %v6025_v8 = vsel %vm5705_vm0, %v10924_v5, %v5961_v60  ;;  %v7016_v23 = vadd.f32 -1.0, %v7918_v39  ;;  %v5794_v25 = vmul.f32 1.442695, %v10997_v49  ;;  %vm5710_vm5 = vcmp.gt.f32.partialorder %v10997_v49, 0.0 }
 0x606   : > { %v11006_v22 = vmul.f32 1.050701, %v6025_v8  ;;  %v5518_v45 = vpop.f32.mrf.mxu1 }
 0x607   : > { %v11008_v58 = vpop.f32.mrf.mxu0  ;;  %v5962_v29 = vmul.f32 1.6732632, %v7016_v23  ;;  %7925 = vpow2.f32 %v5794_v25  ;;  %v11012_v52 = vadd.f32 %v5518_v45, %v5230_v12 }
 0x608   : > { %11860 = vst [vmem:[#allocation54_spill] sm:$0xff] %v11008_v58  ;;  %v7920_v5 = vpop.eup %7919  ;;  %v5520_v8 = vpop.f32.mrf.mxu1 }
 0x609   : > { %v5359_v60 = vpop.f32.mrf.mxu0  ;;  %v7017_v39 = vadd.f32 -1.0, %v7920_v5  ;;  %v5796_v28 = vmul.f32 1.442695, %v11012_v52  ;;  %v6026_v23 = vsel %vm5706_vm1, %v10937_v19, %v5962_v29  ;;  %v5238_v5 = vadd.f32 %v10719_v32, %v10709_v50  ;;  %v11034_v19 = vpop.permute.xlu1 %4425 }
 0x60a   : > { %v5523_v41 = vpop.f32.mrf.mxu1  ;;  %11863 = vst [vmem:[#allocation57_spill] sm:$0xff] %v11034_v19  ;;  %v11036_v29 = vmul.f32 1.050701, %v6026_v23  ;;  %vm5711_vm6 = vcmp.gt.f32.partialorder %v11012_v52, 0.0 }
 0x60b   : > { %v11022_v34 = vpop.f32.mrf.mxu0  ;;  %v5963_v25 = vmul.f32 1.6732632, %v7017_v39  ;;  %7927 = vpow2.f32 %v5796_v28  ;;  %v11025_v31 = vadd.f32 %v5523_v41, %v5235_v10  ;;  %v5243_v41 = vadd.f32 %v10721_v46, %v10691_v7 }
 0x60c   : > { %11862 = vst [vmem:[#allocation56_spill] sm:$0xff] %v11022_v34  ;;  %v7922_v12 = vpop.eup %7921  ;;  %v5525_v45 = vpop.f32.mrf.mxu1  ;;  %11864 = vst [vmem:[#allocation58_spill] sm:$0xff] %v11036_v29 }
 0x60d   : > { %v5364_v8 = vpop.f32.mrf.mxu0  ;;  %v6027_v60 = vsel %vm5707_vm2, %v10956_v33, %v5963_v25  ;;  %v7018_v21 = vadd.f32 -1.0, %v7922_v12  ;;  %v5798_v1 = vmul.f32 1.442695, %v11025_v31  ;;  %v11032_v34 = vpop.permute.xlu0 %4373  ;;  %v11870_v45 = vld [vmem:[#allocation15_spill] sm:$0xff]  ;;  %vm5712_vm7 = vcmp.gt.f32.partialorder %v11025_v31, 0.0 }
 0x60e   : > { %v11038_v10 = vmul.f32 1.050701, %v6027_v60  ;;  %v5526_v39 = vpop.f32.mrf.mxu1 }
 0x60f   : > { %v11040_v28 = vpop.f32.mrf.mxu0  ;;  %v5964_v50 = vmul.f32 1.6732632, %v7018_v21  ;;  %7929 = vpow2.f32 %v5798_v1  ;;  %v11044_v32 = vadd.f32 %v5526_v39, %v5238_v5  ;;  %v11057_v5 = vpop.permute.xlu1 %4361 }
 0x610   : > { %11865 = vst [vmem:[#allocation59_spill] sm:$0xff] %v11038_v10  ;;  %11866 = vst [vmem:[#allocation60_spill] sm:$0xff] %v11040_v28  ;;  %v7924_v33 = vpop.eup %7923  ;;  %v5528_v25 = vpop.f32.mrf.mxu1 }
 0x611   : > { %v5367_v12 = vpop.f32.mrf.mxu0  ;;  %v7019_v23 = vadd.f32 -1.0, %v7924_v33  ;;  %v5800_v8 = vmul.f32 1.442695, %v11044_v32  ;;  %v6028_v7 = vsel %vm5708_vm3, %v10965_v43, %v5964_v50  ;;  %v11055_v21 = vpop.permute.xlu0 %4429  ;;  %vm5713_vm8 = vcmp.gt.f32.partialorder %v11044_v32, 0.0 }
 0x612   : > { %v5531_v60 = vpop.f32.mrf.mxu1  ;;  %11868 = vst [vmem:[#allocation62_spill] sm:$0xff] %v11055_v21  ;;  %v11869_v12 = vld [vmem:[#allocation21_spill] sm:$0xff]  ;;  %v11064_v50 = vmul.f32 1.050701, %v6028_v7  ;;  %v11873_v21 = vld [vmem:[#allocation19_spill] sm:$0xff] }
 0x613   : > { %v11050_v28 = vpop.f32.mrf.mxu0  ;;  %v5965_v46 = vmul.f32 1.6732632, %v7019_v23  ;;  %7931 = vpow2.f32 %v5800_v8  ;;  %v11053_v1 = vadd.f32 %v5531_v60, %v5243_v41  ;;  %v5246_v58 = vadd.f32 %v11870_v45, %v11869_v12  ;;  %v11872_v60 = vld [vmem:[#allocation29_spill] sm:$0xff]  ;;  %v11079_v13 = vpop.permute.xlu1 %4417 }
 0x614   : > { %11867 = vst [vmem:[#allocation61_spill] sm:$0xff] %v11050_v28  ;;  %v7926_v39 = vpop.eup %7925  ;;  %v5533_v33 = vpop.f32.mrf.mxu1  ;;  %v5251_v57 = vadd.f32 %v11873_v21, %v11872_v60  ;;  %11874 = vst [vmem:[#allocation15_spill] sm:$0xff] %v11079_v13 }
 0x615   : > { %v5372_v25 = vpop.f32.mrf.mxu0  ;;  %v6029_v28 = vsel %vm5709_vm4, %v10984_v20, %v5965_v46  ;;  %v7020_v19 = vadd.f32 -1.0, %v7926_v39  ;;  %v5802_v43 = vmul.f32 1.442695, %v11053_v1  ;;  %v11077_v39 = vpop.permute.xlu0 %4365  ;;  %v11877_v46 = vld [vmem:[#allocation17_spill] sm:$0xff]  ;;  %vm5714_vm9 = vcmp.gt.f32.partialorder %v11053_v1, 0.0 }
 0x616   : > { %v11066_v41 = vmul.f32 1.050701, %v6029_v28  ;;  %v5534_v23 = vpop.f32.mrf.mxu1 }
 0x617   : > { %v11068_v8 = vpop.f32.mrf.mxu0  ;;  %v5966_v33 = vmul.f32 1.6732632, %v7020_v19  ;;  %7933 = vpow2.f32 %v5802_v43  ;;  %v11072_v25 = vadd.f32 %v5534_v23, %v5246_v58 }
 0x618   : > { %11871 = vst [vmem:[#allocation21_spill] sm:$0xff] %v11068_v8  ;;  %v7928_v45 = vpop.eup %7927  ;;  %v5536_v12 = vpop.f32.mrf.mxu1 }
 0x619   : > { %v5375_v20 = vpop.f32.mrf.mxu0  ;;  %v7021_v7 = vadd.f32 -1.0, %v7928_v45  ;;  %v5804_v28 = vmul.f32 1.442695, %v11072_v25  ;;  %v6030_v58 = vsel %vm5710_vm5, %v10997_v49, %v5966_v33  ;;  %vm5715_vm10 = vcmp.gt.f32.partialorder %v11072_v25, 0.0 }
 0x61a   : > { %v5539_v21 = vpop.f32.mrf.mxu1  ;;  %v11876_v20 = vld [vmem:[#allocation18_spill] sm:$0xff] }
 0x61b   : > { %v11082_v19 = vpop.f32.mrf.mxu0  ;;  %v5967_v43 = vmul.f32 1.6732632, %v7021_v7  ;;  %7935 = vpow2.f32 %v5804_v28  ;;  %v11085_v23 = vadd.f32 %v5539_v21, %v5251_v57  ;;  %v5254_v8 = vadd.f32 %v11877_v46, %v11876_v20  ;;  %v11879_v7 = vld [vmem:[#allocation20_spill] sm:$0xff]  ;;  %v11102_v46 = vpop.permute.xlu0 %4421 }
 0x61c   : > { %11875 = vst [vmem:[#allocation29_spill] sm:$0xff] %v11082_v19  ;;  %v7930_v60 = vpop.eup %7929  ;;  %v5541_v45 = vpop.f32.mrf.mxu1  ;;  %v11092_v19 = vmul.f32 1.050701, %v6030_v58  ;;  %v11880_v28 = vld [vmem:[#allocation16_spill] sm:$0xff]  ;;  %11881 = vst [vmem:[#allocation18_spill] sm:$0xff] %v11102_v46 }
 0x61d   : > { %v5380_v12 = vpop.f32.mrf.mxu0  ;;  %v6031_v13 = vsel %vm5711_vm6, %v11012_v52, %v5967_v43  ;;  %v7022_v14 = vadd.f32 -1.0, %v7930_v60  ;;  %v5806_v27 = vmul.f32 1.442695, %v11085_v23  ;;  %v5259_v21 = vadd.f32 %v11880_v28, %v11879_v7  ;;  %v11104_v52 = vpop.permute.xlu1 %4353 }
 0x61e   : > { %v11094_v49 = vmul.f32 1.050701, %v6031_v13  ;;  %v5542_v33 = vpop.f32.mrf.mxu1  ;;  %v11883_v13 = vld [vmem:[#allocation45_spill] sm:$0xff]  ;;  %vm5716_vm11 = vcmp.gt.f32.partialorder %v11085_v23, 0.0 }
 0x61f   : > { %v11096_v57 = vpop.f32.mrf.mxu0  ;;  %v5968_v45 = vmul.f32 1.6732632, %v7022_v14  ;;  %7937 = vpow2.f32 %v5806_v27  ;;  %v11100_v12 = vadd.f32 %v5542_v33, %v5254_v8 }
 0x620   : > { %11878 = vst [vmem:[#allocation19_spill] sm:$0xff] %v11096_v57  ;;  %v7932_v43 = vpop.eup %7931  ;;  %v5544_v60 = vpop.f32.mrf.mxu1 }
 0x621   : > { %v5383_v58 = vpop.f32.mrf.mxu0  ;;  %v7023_v20 = vadd.f32 -1.0, %v7932_v43  ;;  %v5808_v57 = vmul.f32 1.442695, %v11100_v12  ;;  %v6032_v27 = vsel %vm5712_vm7, %v11025_v31, %v5968_v45  ;;  %v11884_v43 = vld [vmem:[#allocation26_spill] sm:$0xff]  ;;  %v11122_v31 = vpop.permute.xlu1 %4409  ;;  %vm5717_vm12 = vcmp.gt.f32.partialorder %v11100_v12, 0.0 }
 0x622   : > { %v5547_v7 = vpop.f32.mrf.mxu1  ;;  %v5262_v46 = vadd.f32 %v11884_v43, %v11883_v13  ;;  %11885 = vst [vmem:[#allocation20_spill] sm:$0xff] %v11122_v31  ;;  %v11892_v31 = vld [vmem:[#allocation28_spill] sm:$0xff] }
 0x623   : > { %v11110_v14 = vpop.f32.mrf.mxu0  ;;  %v5969_v8 = vmul.f32 1.6732632, %v7023_v20  ;;  %7939 = vpow2.f32 %v5808_v57  ;;  %v11113_v33 = vadd.f32 %v5547_v7, %v5259_v21  ;;  %v11124_v57 = vmul.f32 1.050701, %v6032_v27  ;;  %v11887_v7 = vld [vmem:[#allocation44_spill] sm:$0xff] }
 0x624   : > { %11882 = vst [vmem:[#allocation17_spill] sm:$0xff] %v11110_v14  ;;  %v7934_v28 = vpop.eup %7933  ;;  %v5549_v60 = vpop.f32.mrf.mxu1 }
 0x625   : > { %v5388_v58 = vpop.f32.mrf.mxu0  ;;  %v6033_v61 = vsel %vm5713_vm8, %v11044_v32, %v5969_v8  ;;  %v7024_v47 = vadd.f32 -1.0, %v7934_v28  ;;  %v5810_v29 = vmul.f32 1.442695, %v11113_v33  ;;  %v11120_v14 = vpop.permute.xlu0 %4357  ;;  %v11888_v60 = vld [vmem:[#allocation14_spill] sm:$0xff]  ;;  %vm5718_vm13 = vcmp.gt.f32.partialorder %v11113_v33, 0.0 }
 0x626   : > { %v11126_v21 = vmul.f32 1.050701, %v6033_v61  ;;  %v5550_v45 = vpop.f32.mrf.mxu1  ;;  %v5267_v58 = vadd.f32 %v11888_v60, %v11887_v7 }
 0x627   : > { %v11128_v20 = vpop.f32.mrf.mxu0  ;;  %v5970_v13 = vmul.f32 1.6732632, %v7024_v47  ;;  %7941 = vpow2.f32 %v5810_v29  ;;  %v11132_v32 = vadd.f32 %v5550_v45, %v5262_v46  ;;  %v4346_v45 = vpop.permute.xlu1 %4345 }
 0x628   : > { %11886 = vst [vmem:[#allocation16_spill] sm:$0xff] %v11128_v20  ;;  %v7936_v8 = vpop.eup %7935  ;;  %v5552_v28 = vpop.f32.mrf.mxu1 }
 0x629   : > { %v5391_v43 = vpop.f32.mrf.mxu0  ;;  %v7025_v27 = vadd.f32 -1.0, %v7936_v8  ;;  %v5812_v61 = vmul.f32 1.442695, %v11132_v32  ;;  %v6034_v7 = vsel %vm5714_vm9, %v11053_v1, %v5970_v13  ;;  %v11143_v46 = vpop.permute.xlu0 %4413  ;;  %vm5719_vm14 = vcmp.gt.f32.partialorder %v11132_v32, 0.0 }
 0x62a   : > { %v5555_v10 = vpop.f32.mrf.mxu1  ;;  %11890 = vst [vmem:[#allocation26_spill] sm:$0xff] %v11143_v46  ;;  %v11891_v43 = vld [vmem:[#allocation30_spill] sm:$0xff]  ;;  %v11150_v13 = vmul.f32 1.050701, %v6034_v7 }
 0x62b   : > { %v11138_v20 = vpop.f32.mrf.mxu0  ;;  %v5971_v47 = vmul.f32 1.6732632, %v7025_v27  ;;  %7943 = vpow2.f32 %v5812_v61  ;;  %v11141_v29 = vadd.f32 %v5555_v10, %v5267_v58  ;;  %v5270_v44 = vadd.f32 %v11892_v31, %v11891_v43 }
 0x62c   : > { %11889 = vst [vmem:[#allocation45_spill] sm:$0xff] %v11138_v20  ;;  %v7938_v60 = vpop.eup %7937  ;;  %v5557_v8 = vpop.f32.mrf.mxu1 }
 0x62d   : > { %v5396_v28 = vpop.f32.mrf.mxu0  ;;  %v6035_v62 = vsel %vm5715_vm10, %v11072_v25, %v5971_v47  ;;  %v7026_v20 = vadd.f32 -1.0, %v7938_v60  ;;  %v5814_v1 = vmul.f32 1.442695, %v11141_v29  ;;  %v5275_v8 = vadd.f32 %v10752_v18, %v4346_v45  ;;  %v4350_v43 = vpop.permute.xlu0 %4349 }
 0x62e   : > { %v11152_v10 = vmul.f32 1.050701, %v6035_v62  ;;  %v5558_v58 = vpop.f32.mrf.mxu1  ;;  %vm5720_vm15 = vcmp.gt.f32.partialorder %v11141_v29, 0.0 }
 0x62f   : > { %v11154_v27 = vpop.f32.mrf.mxu0  ;;  %v5972_v61 = vmul.f32 1.6732632, %v7026_v20  ;;  %7945 = vpow2.f32 %v5814_v1  ;;  %v11156_v46 = vadd.f32 %v5558_v58, %v5270_v44 }
 0x630   : > { %11893 = vst [vmem:[#allocation44_spill] sm:$0xff] %v11154_v27  ;;  %v7940_v28 = vpop.eup %7939  ;;  %v5560_v31 = vpop.f32.mrf.mxu1 }
 0x631   : > { %v5399_v47 = vpop.f32.mrf.mxu0  ;;  %v7027_v60 = vadd.f32 -1.0, %v7940_v28  ;;  %v5816_v7 = vmul.f32 1.442695, %v11156_v46  ;;  %v6036_v20 = vsel %vm5716_vm11, %v11085_v23, %v5972_v61  ;;  %vm5721_vm0 = vcmp.gt.f32.partialorder %v11156_v46, 0.0 }
 0x632   : > { %v5563_v62 = vpop.f32.mrf.mxu1  ;;  %v5278_v47 = vadd.f32 %v10758_v42, %v4350_v43  ;;  %v11170_v25 = vmul.f32 1.050701, %v6036_v20 }
 0x633   : > { %v5973_v1 = vmul.f32 1.6732632, %v7027_v60  ;;  %7947 = vpow2.f32 %v5816_v7  ;;  %v11164_v44 = vadd.f32 %v5563_v62, %v5275_v8  ;;  %v5283_v8 = vadd.f32 %v10764_v36, %v11104_v52 }
 0x634   : > { %v7942_v18 = vpop.eup %7941  ;;  %v5565_v45 = vpop.f32.mrf.mxu1 }
 0x635   : > { %v6037_v58 = vsel %vm5717_vm12, %v11100_v12, %v5973_v1  ;;  %v7028_v31 = vadd.f32 -1.0, %v7942_v18  ;;  %v5818_v28 = vmul.f32 1.442695, %v11164_v44  ;;  %vm5722_vm1 = vcmp.gt.f32.partialorder %v11164_v44, 0.0 }
 0x636   : > { %v11172_v27 = vmul.f32 1.050701, %v6037_v58  ;;  %v5566_v23 = vpop.f32.mrf.mxu1 }
 0x637   : > { %v5974_v61 = vmul.f32 1.6732632, %v7028_v31  ;;  %7949 = vpow2.f32 %v5818_v28  ;;  %v11176_v60 = vadd.f32 %v5566_v23, %v5278_v47  ;;  %v11894_v28 = vld [vmem:[#allocation27_spill] sm:$0xff] }
 0x638   : > { %v7944_v7 = vpop.eup %7943  ;;  %v5568_v62 = vpop.f32.mrf.mxu1  ;;  %v5286_v47 = vadd.f32 %v11894_v28, %v11120_v14  ;;  %v7863_v14 = vld [vmem:[%s11671_s5 + $0x4] ss:$16 sps:$4 sm:$0xff]  }
 0x639   : > { %v7029_v1 = vadd.f32 -1.0, %v7944_v7  ;;  %v5820_v42 = vmul.f32 1.442695, %v11176_v60  ;;  %v6038_v20 = vsel %vm5718_vm13, %v11113_v33, %v5974_v61  ;;  %v5291_v33 = vadd.f32 %v10777_v48, %v11057_v5  ;;  %6346 = vmatprep.mubr.bf16.mxu0 %v7863_v14 }
 0x63a   : > { %v5571_v43 = vpop.f32.mrf.mxu1  ;;  %v6102_v7 = vmul.f32 1.050701, %v6038_v20  ;;  %vm5723_vm2 = vcmp.gt.f32.partialorder %v11176_v60, 0.0 }
 0x63b   : > { %v5975_v18 = vmul.f32 1.6732632, %v7029_v1  ;;  %7951 = vpow2.f32 %v5820_v42  ;;  %v11183_v45 = vadd.f32 %v5571_v43, %v5283_v8 }
 0x63c   : > { %v7946_v36 = vpop.eup %7945  ;;  %v5573_v52 = vpop.f32.mrf.mxu1 }
 0x63d   : > { %v6039_v58 = vsel %vm5719_vm14, %v11132_v32, %v5975_v18  ;;  %v7030_v31 = vadd.f32 -1.0, %v7946_v36  ;;  %v5822_v23 = vmul.f32 1.442695, %v11183_v45  ;;  %vm5724_vm3 = vcmp.gt.f32.partialorder %v11183_v45, 0.0 }
 0x63e   : > { %v6103_v62 = vmul.f32 1.050701, %v6039_v58  ;;  %v5574_v12 = vpop.f32.mrf.mxu1  ;;  %v11895_v58 = vld [vmem:[#allocation23_spill] sm:$0xff] }
 0x63f   : > { %v5976_v61 = vmul.f32 1.6732632, %v7030_v31  ;;  %7953 = vpow2.f32 %v5822_v23  ;;  %v11192_v8 = vadd.f32 %v5574_v12, %v5286_v47  ;;  %v5294_v31 = vadd.f32 %v11895_v58, %v11077_v39 }
 0x640   : > { %v7948_v1 = vpop.eup %7947  ;;  %v5576_v42 = vpop.f32.mrf.mxu1  ;;  %v6168_v43 = vpack.c.bf16 %v6103_v62, %v6102_v7 }
 0x641   : > { %v7031_v32 = vadd.f32 -1.0, %v7948_v1  ;;  %v5824_v18 = vmul.f32 1.442695, %v11192_v8  ;;  %v6040_v36 = vsel %vm5720_vm15, %v11141_v29, %v5976_v61  ;;  %vm5725_vm4 = vcmp.gt.f32.partialorder %v11192_v8, 0.0 }
 0x642   : > { %v5579_v20 = vpop.f32.mrf.mxu1  ;;  %v6104_v7 = vmul.f32 1.050701, %v6040_v36 }
 0x643   : > { %v5977_v48 = vmul.f32 1.6732632, %v7031_v32  ;;  %7955 = vpow2.f32 %v5824_v18  ;;  %v11200_v5 = vadd.f32 %v5579_v20, %v5291_v33  ;;  %v5299_v33 = vadd.f32 %v10792_v6, %v11016_v56 }
 0x644   : > { %v7950_v12 = vpop.eup %7949  ;;  %v5581_v52 = vpop.f32.mrf.mxu1  ;;  %v11896_v6 = vpack.c.bf16 %v11006_v22, %v11004_v3 }
 0x645   : > { %v6041_v28 = vsel %vm5721_vm0, %v11156_v46, %v5977_v48  ;;  %v7032_v47 = vadd.f32 -1.0, %v7950_v12  ;;  %v5826_v23 = vmul.f32 1.442695, %v11200_v5  ;;  %v5302_v52 = vadd.f32 %v10806_v55, %v11032_v34 }
 0x646   : > { %v6105_v62 = vmul.f32 1.050701, %v6041_v28  ;;  %v5582_v29 = vpop.f32.mrf.mxu1  ;;  %vm5726_vm5 = vcmp.gt.f32.partialorder %v11200_v5, 0.0 }
 0x647   : > { %v5978_v61 = vmul.f32 1.6732632, %v7032_v47  ;;  %7957 = vpow2.f32 %v5826_v23  ;;  %v11209_v1 = vadd.f32 %v5582_v29, %v5294_v31 }
 0x648   : > { %v7952_v42 = vpop.eup %7951  ;;  %v5584_v32 = vpop.f32.mrf.mxu1  ;;  %v6169_v18 = vpack.c.bf16 %v6105_v62, %v6104_v7  ;;  %v5307_v62 = vadd.f32 %v10818_v59, %v10969_v26  ;;  %v11900_v26 = vpack.c.bf16 %v11152_v10, %v11150_v13  ;;  %v11901_v13 = vpack.c.bf16 %v10918_v16, %v10916_v11 }
 0x649   : > { %v7033_v14 = vadd.f32 -1.0, %v7952_v42  ;;  %v5828_v39 = vmul.f32 1.442695, %v11209_v1  ;;  %v6042_v20 = vsel %vm5722_vm1, %v11164_v44, %v5978_v61  ;;  %v11899_v32 = vpack.c.bf16 %v10950_v2, %v10948_v54 }
 0x64a   : > { %v5587_v46 = vpop.f32.mrf.mxu1  ;;  %7101 = vmatprep.subr.bf16.mxu0 %v6169_v18  ;;  %v11224_v28 = vmul.f32 1.050701, %v6042_v20  ;;  %vm5727_vm6 = vcmp.gt.f32.partialorder %v11209_v1, 0.0 }
 0x64b   : > { %v5979_v36 = vmul.f32 1.6732632, %v7033_v14  ;;  %7959 = vpow2.f32 %v5828_v39  ;;  %v11214_v48 = vadd.f32 %v5587_v46, %v5299_v33  ;;  %7102 = vmatpush3.bf16.msra.mxu0 %v11896_v6 }
 0x64c   : > { %v7954_v56 = vpop.eup %7953  ;;  %v5589_v12 = vpop.f32.mrf.mxu1  ;;  %7103 = vmatprep.subr.bf16.mxu0 %v6168_v43  ;;  %v11897_v43 = vpack.c.bf16 %v10978_v38, %v10976_v35 }
 0x64d   : > { %v6043_v58 = vsel %vm5723_vm2, %v11176_v60, %v5979_v36  ;;  %v7034_v31 = vadd.f32 -1.0, %v7954_v56  ;;  %v5830_v44 = vmul.f32 1.442695, %v11214_v48  ;;  %v11898_v60 = vpack.c.bf16 %v11172_v27, %v11170_v25 }
 0x64e   : > { %v11226_v47 = vmul.f32 1.050701, %v6043_v58  ;;  %v5590_v23 = vpop.f32.mrf.mxu1  ;;  %v5310_v25 = vadd.f32 %v10832_v37, %v10989_v40  ;;  %v5315_v36 = vadd.f32 %v10846_v15, %v10928_v30  ;;  %v11903_v58 = vpack.c.bf16 %v10890_v51, %v10888_v63 }
 0x64f   : > { %v5980_v3 = vmul.f32 1.6732632, %v7034_v31  ;;  %7961 = vpow2.f32 %v5830_v44  ;;  %v11228_v22 = vadd.f32 %v5590_v23, %v5302_v52  ;;  %7104 = vmatpush3.bf16.msra.mxu0 %v11897_v43  ;;  %v11904_v30 = vpack.c.bf16 %v11094_v49, %v11092_v19 }
 0x650   : > { %v7956_v7 = vpop.eup %7955  ;;  %v6170_v55 = vpack.c.bf16 %v11226_v47, %v11224_v28  ;;  %v5592_v34 = vpop.f32.mrf.mxu1  ;;  %7105 = vmatprep.subr.bf16.mxu0 %v11898_v60  ;;  %v11905_v19 = vpack.c.bf16 %v10862_v53, %v10860_v9  ;;  %vm5728_vm7 = vcmp.gt.f32.partialorder %v11214_v48, 0.0  ;;  %v7879_v28 = vld [vmem:[%s11671_s5 + $0x48] ss:$16 sps:$4 sm:$0xff]   ;;  %v7884_v47 = vld [vmem:[%s11671_s5 + $0x6c] ss:$16 sps:$4 sm:$0xff]  }
 0x651   : > { %v7035_v29 = vadd.f32 -1.0, %v7956_v7  ;;  %v5832_v33 = vmul.f32 1.442695, %v11228_v22  ;;  %v6044_v35 = vsel %vm5724_vm3, %v11183_v45, %v5980_v3  ;;  %v5323_v7 = vadd.f32 %v10874_v0, %v10881_v17  ;;  %v11910_v17 = vld [vmem:[#allocation59_spill] sm:$0xff] }
 0x652   : > { %v5595_v61 = vpop.f32.mrf.mxu1  ;;  %v11256_v39 = vmul.f32 1.050701, %v6044_v35  ;;  %vm5729_vm8 = vcmp.gt.f32.partialorder %v11228_v22, 0.0 }
 0x653   : > { %v5981_v38 = vmul.f32 1.6732632, %v7035_v29  ;;  %7963 = vpow2.f32 %v5832_v33  ;;  %v11243_v42 = vadd.f32 %v5595_v61, %v5307_v62  ;;  %7106 = vmatpush3.bf16.msra.mxu0 %v11899_v32  ;;  %v11907_v33 = vld [vmem:[#allocation41_spill] sm:$0xff]  ;;  %v11908_v61 = vld [vmem:[#allocation43_spill] sm:$0xff]  ;;  %v11913_v32 = vld [vmem:[#allocation36_spill] sm:$0xff] }
 0x654   : > { %v7958_v27 = vpop.eup %7957  ;;  %v5597_v59 = vpop.f32.mrf.mxu1  ;;  %7107 = vmatprep.subr.bf16.mxu0 %v11900_v26  ;;  %v11909_v35 = vpack.c.bf16 %v11907_v33, %v11908_v61 }
 0x655   : > { %v6045_v45 = vsel %vm5725_vm4, %v11192_v8, %v5981_v38  ;;  %v7036_v18 = vadd.f32 -1.0, %v7958_v27  ;;  %v5834_v14 = vmul.f32 1.442695, %v11243_v42  ;;  %v11902_v8 = vpack.c.bf16 %v11126_v21, %v11124_v57  ;;  %v11914_v27 = vld [vmem:[#allocation35_spill] sm:$0xff] }
 0x656   : > { %v11258_v54 = vmul.f32 1.050701, %v6045_v45  ;;  %v5598_v2 = vpop.f32.mrf.mxu1  ;;  %v5318_v21 = vadd.f32 %v10864_v24, %v10944_v4  ;;  %v5326_v59 = vadd.f32 %v11914_v27, %v11913_v32  ;;  %vm5730_vm9 = vcmp.gt.f32.partialorder %v11243_v42, 0.0 }
 0x657   : > { %v5982_v46 = vmul.f32 1.6732632, %v7036_v18  ;;  %7965 = vpow2.f32 %v5834_v14  ;;  %v11260_v20 = vadd.f32 %v5598_v2, %v5310_v25  ;;  %7108 = vmatpush3.bf16.msra.mxu0 %v11901_v13  ;;  %v7861_v2 = vld [vmem:[%s11671_s5] ss:$16 sps:$4 sm:$0xff]  }
 0x658   : > { %v7960_v10 = vpop.eup %7959  ;;  %v6171_v37 = vpack.c.bf16 %v11258_v54, %v11256_v39  ;;  %v5600_v40 = vpop.f32.mrf.mxu1  ;;  %7109 = vmatprep.subr.bf16.mxu0 %v11902_v8  ;;  %v7876_v39 = vld [vmem:[%s11671_s5 + $0x28] ss:$16 sps:$4 sm:$0xff]   ;;  %v7881_v54 = vld [vmem:[%s11671_s5 + $0x4c] ss:$16 sps:$4 sm:$0xff]  }
 0x659   : > { %v7037_v6 = vadd.f32 -1.0, %v7960_v10  ;;  %v5836_v56 = vmul.f32 1.442695, %v11260_v20  ;;  %v6046_v11 = vsel %vm5726_vm5, %v11200_v5, %v5982_v46  ;;  %v11915_v10 = vld [vmem:[#allocation25_spill] sm:$0xff]  ;;  %v11916_v40 = vld [vmem:[#allocation22_spill] sm:$0xff]  ;;  %vm5731_vm10 = vcmp.gt.f32.partialorder %v11260_v20, 0.0 }
 0x65a   : > { %v5603_v12 = vpop.f32.mrf.mxu1  ;;  %v11288_v23 = vmul.f32 1.050701, %v6046_v11  ;;  %v11917_v8 = vpack.c.bf16 %v11915_v10, %v11916_v40  ;;  %v11919_v11 = vld [vmem:[#allocation34_spill] sm:$0xff] }
 0x65b   : > { %v5983_v16 = vmul.f32 1.6732632, %v7037_v6  ;;  %7967 = vpow2.f32 %v5836_v56  ;;  %v11275_v52 = vadd.f32 %v5603_v12, %v5315_v36  ;;  %7110 = vmatpush3.bf16.msra.mxu0 %v11903_v58  ;;  %v11918_v12 = vld [vmem:[#allocation39_spill] sm:$0xff] }
 0x65c   : > { %v7962_v57 = vpop.eup %7961  ;;  %v5605_v15 = vpop.f32.mrf.mxu1  ;;  %7111 = vmatprep.subr.bf16.mxu0 %v11904_v30 }
 0x65d   : > { %v6047_v5 = vsel %vm5727_vm6, %v11209_v1, %v5983_v16  ;;  %v7038_v31 = vadd.f32 -1.0, %v7962_v57  ;;  %v5838_v44 = vmul.f32 1.442695, %v11275_v52  ;;  %v11906_v1 = vpack.c.bf16 %v11066_v41, %v11064_v50  ;;  %v11911_v41 = vld [vmem:[#allocation58_spill] sm:$0xff] }
 0x65e   : > { %v11290_v63 = vmul.f32 1.050701, %v6047_v5  ;;  %v5606_v51 = vpop.f32.mrf.mxu1  ;;  %v11912_v38 = vpack.c.bf16 %v11910_v17, %v11911_v41  ;;  %v5331_v16 = vadd.f32 %v11919_v11, %v11918_v12  ;;  %vm5732_vm11 = vcmp.gt.f32.partialorder %v11275_v52, 0.0 }
 0x65f   : > { %v5984_v3 = vmul.f32 1.6732632, %v7038_v31  ;;  %7969 = vpow2.f32 %v5838_v44  ;;  %v11292_v43 = vadd.f32 %v5606_v51, %v5318_v21  ;;  %7112 = vmatpush3.bf16.msra.mxu0 %v11905_v19  ;;  %v11920_v51 = vld [vmem:[#allocation40_spill] sm:$0xff] }
 0x660   : > { %v7964_v49 = vpop.eup %7963  ;;  %v6172_v24 = vpack.c.bf16 %v11290_v63, %v11288_v23  ;;  %v5608_v4 = vpop.f32.mrf.mxu1  ;;  %7113 = vmatprep.subr.bf16.mxu0 %v11906_v1  ;;  %v7878_v23 = vld [vmem:[%s11671_s5 + $0x2c] ss:$16 sps:$4 sm:$0xff]  }
 0x661   : > { %v7039_v34 = vadd.f32 -1.0, %v7964_v49  ;;  %v5840_v60 = vmul.f32 1.442695, %v11292_v43  ;;  %v6048_v9 = vsel %vm5728_vm7, %v11214_v48, %v5984_v3  ;;  %v11921_v3 = vld [vmem:[#allocation31_spill] sm:$0xff]  ;;  %vm5733_vm12 = vcmp.gt.f32.partialorder %v11292_v43, 0.0 }
 0x662   : > { %v5611_v62 = vpop.f32.mrf.mxu1  ;;  %v11320_v45 = vmul.f32 1.050701, %v6048_v9  ;;  %v5334_v19 = vadd.f32 %v11921_v3, %v11920_v51 }
 0x663   : > { %v5985_v53 = vmul.f32 1.6732632, %v7039_v34  ;;  %7971 = vpow2.f32 %v5840_v60  ;;  %v11307_v29 = vadd.f32 %v5611_v62, %v5323_v7  ;;  %7114 = vmatpush3.bf16.msra.mxu0 %v11909_v35  ;;  %v7864_v60 = vld [vmem:[%s11671_s5 + $0x20] ss:$16 sps:$4 sm:$0xff]  }
 0x664   : > { %v7966_v50 = vpop.eup %7965  ;;  %v5613_v0 = vpop.f32.mrf.mxu1  ;;  %7115 = vmatprep.subr.bf16.mxu0 %v11912_v38  ;;  %v11922_v35 = vld [vmem:[#allocation20_spill] sm:$0xff] }
 0x665   : > { %v6049_v48 = vsel %vm5729_vm8, %v11228_v22, %v5985_v53  ;;  %v7040_v26 = vadd.f32 -1.0, %v7966_v50  ;;  %v5842_v25 = vmul.f32 1.442695, %v11307_v29  ;;  %v7866_v22 = vld [vmem:[%s11671_s5 + $0x24] ss:$16 sps:$4 sm:$0xff]   ;;  %vm5734_vm13 = vcmp.gt.f32.partialorder %v11307_v29, 0.0 }
 0x666   : > { %v11322_v18 = vmul.f32 1.050701, %v6049_v48  ;;  %v5614_v14 = vpop.f32.mrf.mxu1  ;;  %v11923_v50 = vld [vmem:[#allocation46_spill] sm:$0xff] }
 0x667   : > { %v5986_v46 = vmul.f32 1.6732632, %v7040_v26  ;;  %7973 = vpow2.f32 %v5842_v25  ;;  %v11327_v13 = vadd.f32 %v5614_v14, %v5326_v59  ;;  %7116 = vmatpush3.bf16.msra.mxu0 %v11917_v8  ;;  %v5339_v0 = vadd.f32 %v11923_v50, %v11922_v35  ;;  %v11924_v25 = vld [vmem:[#allocation26_spill] sm:$0xff]  ;;  %v11925_v14 = vld [vmem:[#allocation48_spill] sm:$0xff] }
 0x668   : > { %v7968_v36 = vpop.eup %7967  ;;  %v6173_v6 = vpack.c.bf16 %v11322_v18, %v11320_v45  ;;  %v5616_v56 = vpop.f32.mrf.mxu1  ;;  %v7870_v50 = vld [vmem:[%s11671_s5 + $0x60] ss:$16 sps:$4 sm:$0xff]   ;;  %v7873_v45 = vld [vmem:[%s11671_s5 + $0x8] ss:$16 sps:$4 sm:$0xff]  }
 0x669   : > { %v7041_v58 = vadd.f32 -1.0, %v7968_v36  ;;  %v5844_v57 = vmul.f32 1.442695, %v11327_v13  ;;  %v6050_v30 = vsel %vm5730_vm9, %v11243_v42, %v5986_v46  ;;  %v7867_v36 = vld [vmem:[%s11671_s5 + $0x40] ss:$16 sps:$4 sm:$0xff]   ;;  %vm5735_vm14 = vcmp.gt.f32.partialorder %v11327_v13, 0.0 }
 0x66a   : > { %v5619_v15 = vpop.f32.mrf.mxu1  ;;  %6347 = vmatmul.mubr.bf16.vlgmr.msra.gmra.mxu0 %v7861_v2  ;;  %v11349_v7 = vmul.f32 1.050701, %v6050_v30  ;;  %v5342_v2 = vadd.f32 %v11925_v14, %v11924_v25  ;;  %v11931_v25 = vld [vmem:[#allocation53_spill] sm:$0xff] }
 0x66b   : > { %v5987_v21 = vmul.f32 1.6732632, %v7041_v58  ;;  %7975 = vpow2.f32 %v5844_v57  ;;  %v11342_v5 = vadd.f32 %v5619_v15, %v5331_v16  ;;  %6354 = vmatprep.mubr.bf16.mxu0 %v7866_v22  ;;  %v11926_v57 = vld [vmem:[#allocation15_spill] sm:$0xff]  ;;  %v11927_v15 = vld [vmem:[#allocation49_spill] sm:$0xff] }
 0x66c   : > { %v7970_v31 = vpop.eup %7969  ;;  %v5621_v44 = vpop.f32.mrf.mxu1  ;;  %v5347_v30 = vadd.f32 %v11927_v15, %v11926_v57  ;;  %v6189_v57 = vld [vmem:[%s11673_s7 + $0x18] sm:$0xff]  ;;  %v11932_v15 = vld [vmem:[#allocation62_spill] sm:$0xff] }
 0x66d   : > { %v6051_v49 = vsel %vm5731_vm10, %v11260_v20, %v5987_v21  ;;  %v7042_v4 = vadd.f32 -1.0, %v7970_v31  ;;  %v5846_v1 = vmul.f32 1.442695, %v11342_v5  ;;  %v7869_v20 = vld [vmem:[%s11671_s5 + $0x44] ss:$16 sps:$4 sm:$0xff]   ;;  %vm5736_vm15 = vcmp.gt.f32.partialorder %v11342_v5, 0.0 }
 0x66e   : > { %v11351_v42 = vmul.f32 1.050701, %v6051_v49  ;;  %v5622_v34 = vpop.f32.mrf.mxu1 }
 0x66f   : > { %v5988_v62 = vmul.f32 1.6732632, %v7042_v4  ;;  %7977 = vpow2.f32 %v5846_v1  ;;  %v11356_v9 = vadd.f32 %v5622_v34, %v5334_v19  ;;  %v11928_v1 = vld [vmem:[#allocation18_spill] sm:$0xff]  ;;  %v11929_v34 = vld [vmem:[#allocation51_spill] sm:$0xff] }
 0x670   : > { %v7972_v53 = vpop.eup %7971  ;;  %v6174_v33 = vpack.c.bf16 %v11351_v42, %v11349_v7  ;;  %v5624_v61 = vpop.f32.mrf.mxu1  ;;  %v8307_v42 = vmov 0.0  }
 0x671   : > { %v7043_v17 = vadd.f32 -1.0, %v7972_v53  ;;  %v5848_v41 = vmul.f32 1.442695, %v11356_v9  ;;  %v6052_v32 = vsel %vm5732_vm11, %v11275_v52, %v5988_v62  ;;  %vm5737_vm0 = vcmp.gt.f32.partialorder %v11356_v9, 0.0 }
 0x672   : > { %v5627_v38 = vpop.f32.mrf.mxu1  ;;  %6355 = vmatmul.mubr.bf16.gmra.mxu0 %v7864_v60  ;;  %v11375_v8 = vmul.f32 1.050701, %v6052_v32  ;;  %v5350_v60 = vadd.f32 %v11929_v34, %v11928_v1 }
 0x673   : > { %v5989_v27 = vmul.f32 1.6732632, %v7043_v17  ;;  %7979 = vpow2.f32 %v5848_v41  ;;  %v11368_v59 = vadd.f32 %v5627_v38, %v5339_v0  ;;  %6362 = vmatprep.mubr.bf16.mxu0 %v7869_v20 }
 0x674   : > { %v7974_v48 = vpop.eup %7973  ;;  %v5629_v26 = vpop.f32.mrf.mxu1 }
 0x675   : > { %v6053_v46 = vsel %vm5733_vm12, %v11292_v43, %v5989_v27  ;;  %v7044_v10 = vadd.f32 -1.0, %v7974_v48  ;;  %v5850_v40 = vmul.f32 1.442695, %v11368_v59  ;;  %v7872_v43 = vld [vmem:[%s11671_s5 + $0x64] ss:$16 sps:$4 sm:$0xff]   ;;  %v8306_v27 = vmov 4  }
 0x676   : > { %v11377_v52 = vmul.f32 1.050701, %v6053_v46  ;;  %v5630_v22 = vpop.f32.mrf.mxu1  ;;  %7362 = vset.pattern.permute.xlu1 %v8306_v27  ;;  %v6193_v48 = vld [vmem:[%s11673_s7 + $0x38] sm:$0xff]  ;;  %7363 = vset.pattern.permute.xlu0 %v8306_v27  ;;  %vm5738_vm1 = vcmp.gt.f32.partialorder %v11368_v59, 0.0 }
 0x677   : > { %v5990_v56 = vmul.f32 1.6732632, %v7044_v10  ;;  %7981 = vpow2.f32 %v5850_v40  ;;  %v11382_v12 = vadd.f32 %v5630_v22, %v5342_v2  ;;  %v11930_v26 = vld [vmem:[#allocation57_spill] sm:$0xff]  ;;  %6231 = vperm.xlu1 %7362, %v6193_v48   ;;  %v6191_v40 = vld [vmem:[%s11673_s7 + $0x28] sm:$0xff]  ;;  %v6192_v22 = vld [vmem:[%s11673_s7 + $0x30] sm:$0xff] }
 0x678   : > { %v7976_v11 = vpop.eup %7975  ;;  %v6175_v16 = vpack.c.bf16 %v11377_v52, %v11375_v8  ;;  %v5632_v58 = vpop.f32.mrf.mxu1  ;;  %v5355_v14 = vadd.f32 %v11931_v25, %v11930_v26  ;;  %6226 = vperm.xlu0 %7363, %v6192_v22   ;;  %v8309_v8 = vmov 5  }
 0x679   : > { %v7045_v21 = vadd.f32 -1.0, %v7976_v11  ;;  %v5852_v31 = vmul.f32 1.442695, %v11382_v12  ;;  %v6054_v51 = vsel %vm5734_vm13, %v11307_v29, %v5990_v56  ;;  %vm5739_vm2 = vcmp.gt.f32.partialorder %v11382_v12, 0.0 }
 0x67a   : > { %v5635_v44 = vpop.f32.mrf.mxu1  ;;  %6363 = vmatmul.mubr.bf16.gmra.mxu0 %v7867_v36  ;;  %v11401_v61 = vmul.f32 1.050701, %v6054_v51 }
 0x67b   : > { %v5991_v3 = vmul.f32 1.6732632, %v7045_v21  ;;  %7983 = vpow2.f32 %v5852_v31  ;;  %v11394_v19 = vadd.f32 %v5635_v44, %v5347_v30  ;;  %6370 = vmatprep.mubr.bf16.mxu0 %v7872_v43  ;;  %v11933_v30 = vld [vmem:[#allocation54_spill] sm:$0xff]  ;;  %6221 = vperm.xlu1 %7362, %v6191_v40  }
 0x67c   : > { %v7978_v49 = vpop.eup %7977  ;;  %v5637_v4 = vpop.f32.mrf.mxu1  ;;  %v5358_v21 = vadd.f32 %v11933_v30, %v11932_v15  ;;  %6211 = vperm.xlu0 %7363, %v6189_v57  }
 0x67d   : > { %v6055_v62 = vsel %vm5735_vm14, %v11327_v13, %v5991_v3  ;;  %v7046_v20 = vadd.f32 -1.0, %v7978_v49  ;;  %v5854_v53 = vmul.f32 1.442695, %v11394_v19  ;;  %v7875_v13 = vld [vmem:[%s11671_s5 + $0xc] ss:$16 sps:$4 sm:$0xff]   ;;  %v6190_v4 = vld [vmem:[%s11673_s7 + $0x20] sm:$0xff] }
 0x67e   : > { %v11403_v29 = vmul.f32 1.050701, %v6055_v62  ;;  %v5638_v35 = vpop.f32.mrf.mxu1  ;;  %vm5740_vm3 = vcmp.gt.f32.partialorder %v11394_v19, 0.0 }
 0x67f   : > { %v5992_v0 = vmul.f32 1.6732632, %v7046_v20  ;;  %7985 = vpow2.f32 %v5854_v53  ;;  %v11408_v17 = vadd.f32 %v5638_v35, %v5350_v60  ;;  %v6187_v20 = vld [vmem:[%s11673_s7 + $0x8] sm:$0xff]  ;;  %v11934_v53 = vld [vmem:[#allocation52_spill] sm:$0xff]  ;;  %6216 = vperm.xlu1 %7362, %v6190_v4  }
 0x680   : > { %v7980_v41 = vpop.eup %7979  ;;  %v6176_v38 = vpack.c.bf16 %v11403_v29, %v11401_v61  ;;  %v5640_v32 = vpop.f32.mrf.mxu1  ;;  %v11935_v35 = vld [vmem:[#allocation56_spill] sm:$0xff]  ;;  %6201 = vperm.xlu0 %7363, %v6187_v20  }
 0x681   : > { %v7047_v2 = vadd.f32 -1.0, %v7980_v41  ;;  %v5856_v46 = vmul.f32 1.442695, %v11408_v17  ;;  %v6056_v36 = vsel %vm5736_vm15, %v11342_v5, %v5992_v0  ;;  %v6188_v32 = vld [vmem:[%s11673_s7 + $0x10] sm:$0xff]  ;;  %vm5741_vm4 = vcmp.gt.f32.partialorder %v11408_v17, 0.0 }
 0x682   : > { %v5643_v10 = vpop.f32.mrf.mxu1  ;;  %6371 = vmatmul.mubr.bf16.gmra.mxu0 %v7870_v50  ;;  %v11439_v51 = vmul.f32 1.050701, %v6056_v36  ;;  %v5363_v50 = vadd.f32 %v11935_v35, %v11934_v53 }
 0x683   : > { %v5993_v56 = vmul.f32 1.6732632, %v7047_v2  ;;  %7987 = vpow2.f32 %v5856_v46  ;;  %v11429_v43 = vadd.f32 %v5643_v10, %v5355_v14  ;;  %6411 = vmatprep.mubr.bf16.mxu0 %v7875_v13  ;;  %v11936_v2 = vld [vmem:[#allocation55_spill] sm:$0xff]  ;;  %v11937_v46 = vld [vmem:[#allocation60_spill] sm:$0xff]  ;;  %6206 = vperm.xlu1 %7362, %v6188_v32  }
 0x684   : > { %v7982_v11 = vpop.eup %7981  ;;  %v5645_v58 = vpop.f32.mrf.mxu1  ;;  %v5366_v10 = vadd.f32 %v11937_v46, %v11936_v2  ;;  %7364 = vset.pattern.permute.xlu0 %v8309_v8 }
 0x685   : > { %v6057_v31 = vsel %vm5737_vm0, %v11356_v9, %v5993_v56  ;;  %v7048_v5 = vadd.f32 -1.0, %v7982_v11  ;;  %v5858_v44 = vmul.f32 1.442695, %v11429_v43  ;;  %v6186_v58 = vld [vmem:[%s11673_s7] sm:$0xff]  ;;  %vm5742_vm5 = vcmp.gt.f32.partialorder %v11429_v43, 0.0 }
 0x686   : > { %v11441_v3 = vmul.f32 1.050701, %v6057_v31  ;;  %v5646_v49 = vpop.f32.mrf.mxu1  ;;  %v11938_v31 = vld [vmem:[#allocation47_spill] sm:$0xff] }
 0x687   : > { %v5994_v1 = vmul.f32 1.6732632, %v7048_v5  ;;  %7989 = vpow2.f32 %v5858_v44  ;;  %v11446_v34 = vadd.f32 %v5646_v49, %v5358_v21  ;;  %v11939_v5 = vld [vmem:[#allocation61_spill] sm:$0xff]  ;;  %6196 = vperm.xlu1 %7362, %v6186_v58  }
 0x688   : > { %v7984_v60 = vpop.eup %7983  ;;  %v6177_v9 = vpack.c.bf16 %v11441_v3, %v11439_v51  ;;  %v5648_v62 = vpop.f32.mrf.mxu1  ;;  %v5371_v44 = vadd.f32 %v11939_v5, %v11938_v31 }
 0x689   : > { %v7049_v0 = vadd.f32 -1.0, %v7984_v60  ;;  %v5860_v13 = vmul.f32 1.442695, %v11446_v34  ;;  %v6058_v27 = vsel %vm5738_vm1, %v11368_v59, %v5994_v1  ;;  %vm5743_vm6 = vcmp.gt.f32.partialorder %v11446_v34, 0.0 }
 0x68a   : > { %v5651_v41 = vpop.f32.mrf.mxu1  ;;  %v11468_v56 = vmul.f32 1.050701, %v6058_v27  ;;  %vm8308_vm1 = vmmov 0  }
 0x68b   : > { %v5995_v48 = vmul.f32 1.6732632, %v7049_v0  ;;  %7991 = vpow2.f32 %v5860_v13  ;;  %v11461_v26 = vadd.f32 %v5651_v41, %v5363_v50  ;;  %v11940_v50 = vld [vmem:[#allocation50_spill] sm:$0xff]  ;;  %v11941_v0 = vld [vmem:[#allocation21_spill] sm:$0xff] }
 0x68c   : > { %v7986_v25 = vpop.eup %7985  ;;  %v5653_v14 = vpop.f32.mrf.mxu1  ;;  %v5374_v13 = vadd.f32 %v11941_v0, %v11940_v50 }
 0x68d   : > { %v6059_v40 = vsel %vm5739_vm2, %v11382_v12, %v5995_v48  ;;  %v7050_v22 = vadd.f32 -1.0, %v7986_v25  ;;  %v5862_v36 = vmul.f32 1.442695, %v11461_v26  ;;  %vm5744_vm7 = vcmp.gt.f32.partialorder %v11461_v26, 0.0 }
 0x68e   : > { %v11470_v59 = vmul.f32 1.050701, %v6059_v40  ;;  %v5654_v11 = vpop.f32.mrf.mxu1  ;;  %vm6459_vm2 = vcmask 523264  }
 0x68f   : > { %v5996_v57 = vmul.f32 1.6732632, %v7050_v22  ;;  %7993 = vpow2.f32 %v5862_v36  ;;  %v11475_v15 = vadd.f32 %v5654_v11, %v5366_v10  ;;  %v11942_v22 = vld [vmem:[#allocation33_spill] sm:$0xff] }
 0x690   : > { %v7988_v30 = vpop.eup %7987  ;;  %v5656_v21 = vpop.f32.mrf.mxu1  ;;  %v6178_v12 = vpack.c.bf16 %v11470_v59, %v11468_v56  ;;  %v11943_v36 = vld [vmem:[#allocation29_spill] sm:$0xff] }
 0x691   : > { %v7051_v49 = vadd.f32 -1.0, %v7988_v30  ;;  %v5864_v4 = vmul.f32 1.442695, %v11475_v15  ;;  %v6060_v60 = vsel %vm5740_vm3, %v11394_v19, %v5996_v57  ;;  %vm5745_vm8 = vcmp.gt.f32.partialorder %v11475_v15, 0.0 }
 0x692   : > { %v5659_v1 = vpop.f32.mrf.mxu1  ;;  %v11491_v48 = vmul.f32 1.050701, %v6060_v60 }
 0x693   : > { %v5997_v62 = vmul.f32 1.6732632, %v7051_v49  ;;  %7995 = vpow2.f32 %v5864_v4  ;;  %v11484_v20 = vadd.f32 %v5659_v1, %v5371_v44  ;;  %v11944_v49 = vld [vmem:[#allocation32_spill] sm:$0xff]  ;;  %v11945_v4 = vld [vmem:[#allocation19_spill] sm:$0xff] }
 0x694   : > { %v7990_v53 = vpop.eup %7989  ;;  %v5661_v35 = vpop.f32.mrf.mxu1  ;;  %v5382_v1 = vadd.f32 %v11945_v4, %v11944_v49 }
 0x695   : > { %v6061_v41 = vsel %vm5741_vm4, %v11408_v17, %v5997_v62  ;;  %v7052_v32 = vadd.f32 -1.0, %v7990_v53  ;;  %v5866_v27 = vmul.f32 1.442695, %v11484_v20  ;;  %v5379_v17 = vadd.f32 %v11943_v36, %v11942_v22 }
 0x696   : > { %v11493_v25 = vmul.f32 1.050701, %v6061_v41  ;;  %v5662_v19 = vpop.f32.mrf.mxu1  ;;  %vm5746_vm9 = vcmp.gt.f32.partialorder %v11484_v20, 0.0 }
 0x697   : > { %v5998_v14 = vmul.f32 1.6732632, %v7052_v32  ;;  %7997 = vpow2.f32 %v5866_v27  ;;  %v11495_v2 = vadd.f32 %v5662_v19, %v5374_v13  ;;  %v11946_v19 = vld [vmem:[#allocation37_spill] sm:$0xff] }
 0x698   : > { %v7992_v46 = vpop.eup %7991  ;;  %v5664_v10 = vpop.f32.mrf.mxu1  ;;  %v6179_v40 = vpack.c.bf16 %v11493_v25, %v11491_v48 }
 0x699   : > { %v7053_v11 = vadd.f32 -1.0, %v7992_v46  ;;  %v5868_v58 = vmul.f32 1.442695, %v11495_v2  ;;  %v6062_v30 = vsel %vm5742_vm5, %v11429_v43, %v5998_v14  ;;  %v11947_v14 = vld [vmem:[#allocation17_spill] sm:$0xff]  ;;  %vm5747_vm10 = vcmp.gt.f32.partialorder %v11495_v2, 0.0 }
 0x69a   : > { %v5667_v57 = vpop.f32.mrf.mxu1  ;;  %v11511_v35 = vmul.f32 1.050701, %v6062_v30  ;;  %v11948_v30 = vld [vmem:[#allocation38_spill] sm:$0xff] }
 0x69b   : > { %v5999_v21 = vmul.f32 1.6732632, %v7053_v11  ;;  %7999 = vpow2.f32 %v5868_v58  ;;  %v11504_v31 = vadd.f32 %v5667_v57, %v5379_v17 }
 0x69c   : > { %v7994_v5 = vpop.eup %7993  ;;  %v5669_v44 = vpop.f32.mrf.mxu1 }
 0x69d   : > { %v6063_v60 = vsel %vm5743_vm6, %v11446_v34, %v5999_v21  ;;  %v7054_v62 = vadd.f32 -1.0, %v7994_v5  ;;  %v5870_v53 = vmul.f32 1.442695, %v11504_v31  ;;  %v5387_v34 = vadd.f32 %v11947_v14, %v11946_v19  ;;  %v11949_v21 = vld [vmem:[#allocation16_spill] sm:$0xff]  ;;  %v11951_v19 = vld [vmem:[#allocation45_spill] sm:$0xff] }
 0x69e   : > { %v11513_v50 = vmul.f32 1.050701, %v6063_v60  ;;  %v5670_v43 = vpop.f32.mrf.mxu1  ;;  %v5390_v5 = vadd.f32 %v11949_v21, %v11948_v30  ;;  %v11953_v30 = vld [vmem:[#allocation44_spill] sm:$0xff]  ;;  %vm5748_vm11 = vcmp.gt.f32.partialorder %v11504_v31, 0.0 }
 0x69f   : > { %v6000_v0 = vmul.f32 1.6732632, %v7054_v62  ;;  %8001 = vpow2.f32 %v5870_v53  ;;  %v11515_v13 = vadd.f32 %v5670_v43, %v5382_v1 }
 0x6a0   : > { %v7996_v41 = vpop.eup %7995  ;;  %v5672_v32 = vpop.f32.mrf.mxu1  ;;  %v6180_v27 = vpack.c.bf16 %v11513_v50, %v11511_v35 }
 0x6a1   : > { %v7055_v46 = vadd.f32 -1.0, %v7996_v41  ;;  %v5872_v10 = vmul.f32 1.442695, %v11515_v13  ;;  %v6064_v36 = vsel %vm5744_vm7, %v11461_v26, %v6000_v0  ;;  %v11950_v32 = vld [vmem:[#allocation24_spill] sm:$0xff]  ;;  %vm5749_vm12 = vcmp.gt.f32.partialorder %v11515_v13, 0.0 }
 0x6a2   : > { %v5675_v22 = vpop.f32.mrf.mxu1  ;;  %v11528_v1 = vmul.f32 1.050701, %v6064_v36  ;;  %v5395_v14 = vadd.f32 %v11951_v19, %v11950_v32 }
 0x6a3   : > { %v6001_v17 = vmul.f32 1.6732632, %v7055_v46  ;;  %8003 = vpow2.f32 %v5872_v10  ;;  %v5676_v11 = vadd.f32 %v5675_v22, %v5387_v34 }
 0x6a4   : > { %v7998_v58 = vpop.eup %7997  ;;  %v5677_v57 = vpop.f32.mrf.mxu1 }
 0x6a5   : > { %v6065_v44 = vsel %vm5745_vm8, %v11475_v15, %v6001_v17  ;;  %v7056_v49 = vadd.f32 -1.0, %v7998_v58  ;;  %v5874_v4 = vmul.f32 1.442695, %v5676_v11  ;;  %v11952_v57 = vld [vmem:[#allocation42_spill] sm:$0xff]  ;;  %vm5750_vm13 = vcmp.gt.f32.partialorder %v5676_v11, 0.0 }
 0x6a6   : > { %v11530_v60 = vmul.f32 1.050701, %v6065_v44  ;;  %v5678_v62 = vpop.f32.mrf.mxu1  ;;  %v5398_v21 = vadd.f32 %v11953_v30, %v11952_v57 }
 0x6a7   : > { %v6002_v26 = vmul.f32 1.6732632, %v7056_v49  ;;  %8005 = vpow2.f32 %v5874_v4  ;;  %v5679_v53 = vadd.f32 %v5678_v62, %v5390_v5 }
 0x6a8   : > { %v8000_v43 = vpop.eup %7999  ;;  %v5680_v0 = vpop.f32.mrf.mxu1  ;;  %v6181_v41 = vpack.c.bf16 %v11530_v60, %v11528_v1 }
 0x6a9   : > { %v7057_v34 = vadd.f32 -1.0, %v8000_v43  ;;  %v5876_v15 = vmul.f32 1.442695, %v5679_v53  ;;  %v6066_v10 = vsel %vm5746_vm9, %v11484_v20, %v6002_v26  ;;  %vm5751_vm14 = vcmp.gt.f32.partialorder %v5679_v53, 0.0 }
 0x6aa   : > { %v5683_v46 = vpop.f32.mrf.mxu1  ;;  %v6130_v4 = vmul.f32 1.050701, %v6066_v10 }
 0x6ab   : > { %v6003_v22 = vmul.f32 1.6732632, %v7057_v34  ;;  %8007 = vpow2.f32 %v5876_v15  ;;  %v5684_v36 = vadd.f32 %v5683_v46, %v5395_v14 }
 0x6ac   : > { %v8002_v17 = vpop.eup %8001  ;;  %v5685_v58 = vpop.f32.mrf.mxu1 }
 0x6ad   : > { %v6067_v5 = vsel %vm5747_vm10, %v11495_v2, %v6003_v22  ;;  %v7058_v44 = vadd.f32 -1.0, %v8002_v17  ;;  %v5878_v49 = vmul.f32 1.442695, %v5684_v36  ;;  %vm5752_vm15 = vcmp.gt.f32.partialorder %v5684_v36, 0.0 }
 0x6ae   : > { %v6131_v62 = vmul.f32 1.050701, %v6067_v5  ;;  %v5686_v43 = vpop.f32.mrf.mxu1 }
 0x6af   : > { %v6004_v0 = vmul.f32 1.6732632, %v7058_v44  ;;  %8009 = vpow2.f32 %v5878_v49  ;;  %v5687_v20 = vadd.f32 %v5686_v43, %v5398_v21 }
 0x6b0   : > { %v8004_v26 = vpop.eup %8003  ;;  %v6182_v32 = vpack.c.bf16 %v6131_v62, %v6130_v4  ;;  %v5688_v19 = vpop.f32.mrf.mxu1 }
 0x6b1   : > { %v7059_v14 = vadd.f32 -1.0, %v8004_v26  ;;  %v5880_v34 = vmul.f32 1.442695, %v5687_v20  ;;  %v6068_v15 = vsel %vm5748_vm11, %v11504_v31, %v6004_v0  ;;  %vm5753_vm0 = vcmp.gt.f32.partialorder %v5687_v20, 0.0 }
 0x6b2   : > { %v6132_v17 = vmul.f32 1.050701, %v6068_v15 }
 0x6b3   : > { %v6005_v46 = vmul.f32 1.6732632, %v7059_v14  ;;  %8011 = vpow2.f32 %v5880_v34 }
 0x6b4   : > { %v8006_v2 = vpop.eup %8005 }
 0x6b5   : > { %v6069_v10 = vsel %vm5749_vm12, %v11515_v13, %v6005_v46  ;;  %v7060_v22 = vadd.f32 -1.0, %v8006_v2 }
 0x6b6   : > { %v6133_v58 = vmul.f32 1.050701, %v6069_v10 }
 0x6b7   : > { %v6006_v57 = vmul.f32 1.6732632, %v7060_v22 }
 0x6b8   : > { %v8008_v30 = vpop.eup %8007  ;;  %v6183_v21 = vpack.c.bf16 %v6133_v58, %v6132_v17 }
 0x6b9   : > { %v7061_v5 = vadd.f32 -1.0, %v8008_v30  ;;  %v6070_v44 = vsel %vm5750_vm13, %v5676_v11, %v6006_v57 }
 0x6ba   : > { %v6134_v43 = vmul.f32 1.050701, %v6070_v44 }
 0x6bb   : > { %v6007_v49 = vmul.f32 1.6732632, %v7061_v5 }
 0x6bc   : > { %v8010_v4 = vpop.eup %8009 }
 0x6bd   : > { %v6071_v31 = vsel %vm5751_vm14, %v5679_v53, %v6007_v49  ;;  %v7062_v62 = vadd.f32 -1.0, %v8010_v4 }
 0x6be   : > { %v6135_v0 = vmul.f32 1.050701, %v6071_v31 }
 0x6bf   : > { %v6008_v26 = vmul.f32 1.6732632, %v7062_v62 }
 0x6c0   : > { %v8012_v19 = vpop.eup %8011  ;;  %v6184_v14 = vpack.c.bf16 %v6135_v0, %v6134_v43 }
 0x6c1   : > { %v7063_v13 = vadd.f32 -1.0, %v8012_v19  ;;  %v6072_v34 = vsel %vm5752_vm15, %v5684_v36, %v6008_v26 }
 0x6c2   : > { %v6136_v2 = vmul.f32 1.050701, %v6072_v34 }
 0x6c3   : > { %v6009_v15 = vmul.f32 1.6732632, %v7063_v13 }
 0x6c5   : > { %v6073_v46 = vsel %vm5753_vm0, %v5687_v20, %v6009_v15 }
 0x6c6   : > { %v6137_v10 = vmul.f32 1.050701, %v6073_v46 }
 0x6c8   : > { %v6185_v22 = vpack.c.bf16 %v6137_v10, %v6136_v2 }
 0x6ca   : > { %7141 = vmatprep.subr.bf16.mxu0 %v6185_v22 }
 0x6cb   : > { %7142 = vmatpush3.bf16.msra.mxu0 %v6177_v9 }
 0x6cc   : > { %7143 = vmatprep.subr.bf16.mxu0 %v6184_v14 }
 0x6cf   : > { %7144 = vmatpush3.bf16.msra.mxu0 %v6176_v38 }
 0x6d0   : > { %7145 = vmatprep.subr.bf16.mxu0 %v6183_v21 }
 0x6d3   : > { %7146 = vmatpush3.bf16.msra.mxu0 %v6175_v16 }
 0x6d4   : > { %7147 = vmatprep.subr.bf16.mxu0 %v6182_v32 }
 0x6d7   : > { %7148 = vmatpush3.bf16.msra.mxu0 %v6174_v33  ;;  %v6453_v33 = vld [vmem:[%s11673_s7] sm:$0x1] }
 0x6d8   : > { %7149 = vmatprep.subr.bf16.mxu0 %v6181_v41  ;;  %6456 = vperm.xlu0 %7364, %v6453_v33  }
 0x6db   : > { %7150 = vmatpush3.bf16.msra.mxu0 %v6173_v6 }
 0x6dc   : > { %7151 = vmatprep.subr.bf16.mxu0 %v6180_v27 }
 0x6df   : > { %7152 = vmatpush3.bf16.msra.mxu0 %v6172_v24 }
 0x6e0   : > { %7153 = vmatprep.subr.bf16.mxu0 %v6179_v40 }
 0x6e3   : > { %7154 = vmatpush3.bf16.msra.mxu0 %v6171_v37 }
 0x6e4   : > { %7155 = vmatprep.subr.bf16.mxu0 %v6178_v12 }
 0x6e7   : > { %7156 = vmatpush3.bf16.msra.mxu0 %v6170_v55  ;;  %v7882_v55 = vld [vmem:[%s11671_s5 + $0x68] ss:$16 sps:$4 sm:$0xff]  }
 0x6e8   : > { %7224 = vmatprep.subr.mxu0 %v8307_v42 }
 0x6ea   : > { %6412 = vmatmul.mubr.bf16.vlgmr.msra.gmra.mxu0 %v7873_v45 }
 0x6eb   : > { %6419 = vmatprep.mubr.bf16.mxu0 %v7878_v23 }
 0x6f2   : > { %6420 = vmatmul.mubr.bf16.gmra.mxu0 %v7876_v39  ;;  %v6232_v41 = vpop.permute.xlu1 %6231 }
 0x6f3   : > { %6427 = vmatprep.mubr.bf16.mxu0 %v7881_v54  ;;  %v6227_v30 = vpop.permute.xlu0 %6226 }
 0x6f6   : > { %v6222_v17 = vpop.permute.xlu1 %6221 }
 0x6f7   : > { %v6212_v34 = vpop.permute.xlu0 %6211 }
 0x6fa   : > { %6428 = vmatmul.mubr.bf16.gmra.mxu0 %v7879_v28  ;;  %v6217_v49 = vpop.permute.xlu1 %6216 }
 0x6fb   : > { %6435 = vmatprep.mubr.bf16.mxu0 %v7884_v47 }
 0x6fe   : > { %v6207_v45 = vpop.permute.xlu1 %6206 }
 0x702   : > { %6436 = vmatmul.mubr.bf16.gmra.mxu0 %v7882_v55 }
 0x703   : > { %7240 = vmatprep.mubr.msk.f32.mxu0 %vm8308_vm1, %v8307_v42 }
 0x72a   : > { %v7117_v37 = vpop.f32.mrf.mxu0 }
 0x72c   : > { %v7118_v63 = vpop.f32.mrf.mxu0 }
 0x72d   : > { %v11603_v24 = vadd.f32 %v7118_v63, %v7117_v37 }
 0x72e   : > { %v7120_v18 = vpop.f32.mrf.mxu0 }
 0x730   : > { %v7121_v6 = vpop.f32.mrf.mxu0 }
 0x731   : > { %v11605_v7 = vadd.f32 %v7121_v6, %v7120_v18  ;;  %v6202_v18 = vpop.permute.xlu0 %6201 }
 0x732   : > { %v7123_v52 = vpop.f32.mrf.mxu0 }
 0x734   : > { %v7124_v16 = vpop.f32.mrf.mxu0 }
 0x735   : > { %v7125_v22 = vadd.f32 %v7124_v16, %v7123_v52  ;;  %v6197_v52 = vpop.permute.xlu1 %6196 }
 0x736   : > { %v7126_v61 = vpop.f32.mrf.mxu0 }
 0x738   : > { %v7127_v29 = vpop.f32.mrf.mxu0 }
 0x739   : > { %v7128_v13 = vadd.f32 %v7127_v29, %v7126_v61  ;;  %v6357_v61 = vadd.f32 %v7125_v22, %v6207_v45 }
 0x73a   : > { %v7129_v38 = vpop.f32.mrf.mxu0 }
 0x73b   : > { %v6360_v63 = vadd.f32 %v7128_v13, %v6212_v34 }
 0x73c   : > { %v7130_v51 = vpop.f32.mrf.mxu0 }
 0x73d   : > { %v7131_v62 = vadd.f32 %v7130_v51, %v7129_v38  ;;  %v6352_v51 = vadd.f32 %v11605_v7, %v6202_v18  ;;  %v6452_v7 = vld [vmem:[%s11672_s6] sm:$0x1] }
 0x73e   : > { %v7132_v3 = vpop.f32.mrf.mxu0 }
 0x73f   : > { %v6365_v28 = vadd.f32 %v7131_v62, %v6217_v49 }
 0x740   : > { %v7133_v9 = vpop.f32.mrf.mxu0 }
 0x741   : > { %v7134_v4 = vadd.f32 %v7133_v9, %v7132_v3 }
 0x742   : > { %v7135_v56 = vpop.f32.mrf.mxu0 }
 0x743   : > { %v6368_v2 = vadd.f32 %v7134_v4, %v6222_v17 }
 0x744   : > { %v7136_v59 = vpop.f32.mrf.mxu0 }
 0x745   : > { %v7137_v21 = vadd.f32 %v7136_v59, %v7135_v56  ;;  %v6349_v56 = vadd.f32 %v11603_v24, %v6197_v52 }
 0x746   : > { %v7138_v12 = vpop.f32.mrf.mxu0 }
 0x747   : > { %v6373_v14 = vadd.f32 %v7137_v21, %v6227_v30 }
 0x748   : > { %v7139_v48 = vpop.f32.mrf.mxu0 }
 0x749   : > { %v7140_v5 = vadd.f32 %v7139_v48, %v7138_v12 }
 0x74b   : > { %v6376_v26 = vadd.f32 %v7140_v5, %v6232_v41 }
 0x753   : > { %v6457_v24 = vpop.permute.xlu0 %6456 }
 0x7aa   : > { %v7157_v25 = vpop.f32.mrf.mxu0 }
 0x7ac   : > { %v7158_v40 = vpop.f32.mrf.mxu0 }
 0x7ad   : > { %v7159_v16 = vadd.f32 %v7158_v40, %v7157_v25 }
 0x7ae   : > { %v7160_v35 = vpop.f32.mrf.mxu0 }
 0x7af   : > { %v6414_v12 = vadd.f32 %v7159_v16, %v6349_v56 }
 0x7b0   : > { %v7161_v50 = vpop.f32.mrf.mxu0 }
 0x7b1   : > { %v7162_v6 = vadd.f32 %v7161_v50, %v7160_v35  ;;  %v6444_v25 = vmax.f32 %v6414_v12, 0.0 }
 0x7b2   : > { %v7163_v27 = vpop.f32.mrf.mxu0 }
 0x7b3   : > { %v6417_v9 = vadd.f32 %v7162_v6, %v6352_v51 }
 0x7b4   : > { %v7164_v11 = vpop.f32.mrf.mxu0 }
 0x7b5   : > { %v7165_v47 = vadd.f32 %v7164_v11, %v7163_v27  ;;  %v6445_v48 = vmax.f32 %v6417_v9, 0.0 }
 0x7b6   : > { %v7166_v1 = vpop.f32.mrf.mxu0 }
 0x7b7   : > { %v6422_v38 = vadd.f32 %v7165_v47, %v6357_v61 }
 0x7b8   : > { %v7167_v60 = vpop.f32.mrf.mxu0 }
 0x7b9   : > { %v7168_v23 = vadd.f32 %v7167_v60, %v7166_v1  ;;  %v6446_v59 = vmax.f32 %v6422_v38, 0.0 }
 0x7ba   : > { %v7169_v53 = vpop.f32.mrf.mxu0 }
 0x7bb   : > { %v6425_v8 = vadd.f32 %v7168_v23, %v6360_v63 }
 0x7bc   : > { %v7170_v36 = vpop.f32.mrf.mxu0 }
 0x7bd   : > { %v7171_v15 = vadd.f32 %v7170_v36, %v7169_v53  ;;  %v6447_v3 = vmax.f32 %v6425_v8, 0.0 }
 0x7be   : > { %v7172_v20 = vpop.f32.mrf.mxu0 }
 0x7bf   : > { %v6430_v37 = vadd.f32 %v7171_v15, %v6365_v28 }
 0x7c0   : > { %v7173_v32 = vpop.f32.mrf.mxu0 }
 0x7c1   : > { %v7174_v0 = vadd.f32 %v7173_v32, %v7172_v20  ;;  %v6448_v29 = vmax.f32 %v6430_v37, 0.0 }
 0x7c2   : > { %v7175_v58 = vpop.f32.mrf.mxu0 }
 0x7c3   : > { %v6433_v54 = vadd.f32 %v7174_v0, %v6368_v2 }
 0x7c4   : > { %v7176_v57 = vpop.f32.mrf.mxu0 }
 0x7c5   : > { %v7177_v31 = vadd.f32 %v7176_v57, %v7175_v58  ;;  %v6449_v33 = vmax.f32 %v6433_v54, 0.0 }
 0x7c6   : > { %v7178_v44 = vpop.f32.mrf.mxu0 }
 0x7c7   : > { %v6438_v10 = vadd.f32 %v7177_v31, %v6373_v14 }
 0x7c8   : > { %v7179_v43 = vpop.f32.mrf.mxu0 }
 0x7c9   : > { %v7180_v19 = vadd.f32 %v7179_v43, %v7178_v44  ;;  %v6450_v55 = vmax.f32 %v6438_v10, 0.0 }
 0x7cb   : > { %v6441_v46 = vadd.f32 %v7180_v19, %v6376_v26 }
 0x7cd   : > { %v6451_v39 = vmax.f32 %v6441_v46, 0.0 }
 0x7cf   : > { %7225 = vmatpush3.msra.mxu0 %v6451_v39 }
 0x7d0   : > { %7226 = vmatprep.subr.mxu0 %v8307_v42 }
 0x7d1   : > { %7227 = vmatpush3.msra.mxu0 %v6450_v55 }
 0x7d2   : > { %7228 = vmatprep.subr.mxu0 %v8307_v42 }
 0x7d3   : > { %7229 = vmatpush3.msra.mxu0 %v6449_v33 }
 0x7d4   : > { %7230 = vmatprep.subr.mxu0 %v8307_v42 }
 0x7d5   : > { %7231 = vmatpush3.msra.mxu0 %v6448_v29 }
 0x7d6   : > { %7232 = vmatprep.subr.mxu0 %v8307_v42 }
 0x7d7   : > { %7233 = vmatpush3.msra.mxu0 %v6447_v3 }
 0x7d8   : > { %7234 = vmatprep.subr.mxu0 %v8307_v42 }
 0x7d9   : > { %7235 = vmatpush3.msra.mxu0 %v6446_v59 }
 0x7da   : > { %7236 = vmatprep.subr.mxu0 %v8307_v42 }
 0x7db   : > { %7237 = vmatpush3.msra.mxu0 %v6445_v48 }
 0x7dc   : > { %7238 = vmatprep.subr.mxu0 %v8307_v42 }
 0x7dd   : > { %7239 = vmatpush3.msra.mxu0 %v6444_v25 }
 0x7de   : > { %7241 = vmatmul.mubr.msk.f32.vlgmr.msra.gmra.mxu0 %vm6459_vm2, %v6452_v7 }
 0x89e   : > { %v6529_v40 = vpop.f32.mrf.mxu0 }
 0x89f   : > { %v6530_v35 = vadd.f32 %v6529_v40, %v6457_v24 }
 0x8a0   : > { %v7242_v50 = vpop.f32.mrf.mxu0 }
 0x8a1   : > { %v6533_v27 = vsub.f32 0.0, %v6530_v35 }
 0x8a3   : > { %v6534_v11 = vmul.f32 1.442695, %v6533_v27 }
 0x8a5   : > { %8013 = vpow2.f32 %v6534_v11 }
 0x8b2   : > { %v8014_v1 = vpop.eup %8013 }
 0x8b3   : > { %v6536_v60 = vadd.f32 1.0, %v8014_v1 }
 0x8b5   : > { %8015 = vrcp.f32 %v6536_v60 }
 0x8c2   : > { %v8016_v42 = vpop.eup %8015 }
 0x8c3   : > { %6538 = vst [vmem:[%s350_s24] sm:$0x1] %v8016_v42 }
 0x8c4   : > { %8238 = shalt.err (!%p8235_p1)
}
 0x8c5   : > { %s8239_s26 = scalar_lea.hbm %s11629_s13, 16  ;;  %s8243_s23 = scalar_lea.hbm %s11674_s8, 32 }
 0x8c6   : > { %p8240_p5 = scmp.ne.s32.totalorder %s11629_s13, %s8239_s26  ;;  %p8244_p6 = scmp.lt.s32.totalorder %s11629_s13, %s11674_s8 }
 0x8c7   : > { %p8245_p13 = scmp.lt.s32.totalorder %s8243_s23, %s8239_s26 }
 0x8c8   : > { %p8241_p0 = pnand %p8240_p5, %p11954_p7 }
 0x8c9   : > { %p8246_p8 = por %p8245_p13, %p8244_p6 }
 0x8ca   : > { %p8242_p2 = pneg %p8241_p0 }
 0x8cc   : > { %p8247_p3 = pnand %p8246_p8, %p8242_p2 }
 0x8ce   : > { %8250 = shalt.err (!%p8247_p3)
}
 0x8cf   : > { %7285 = dma.vmem_to_hbm [thread:$0]  (%p11954_p7), %s6553_s21, 16, %s11629_s13, %s6540_s25  }
 0x8d0 PF: > { %s6564_s22 = sand.u32 1, %s8281_s27   ;;  %p11955_p4 = scmp.ne.s32.totalorder %s11702_s18, 0 }
 0x8d1   : > { %p11956_p11 = scmp.ge.s32.totalorder %s8293_s30, 2  ;;  %s6565_s24 = scalar_lea.sflag [#allocation4], %s6564_s22 }
 0x8d3   : > { %p7299_p12 = pnand %p11956_p11, %p11955_p4 }
 0x8d5   : > { %p7300_p9 = pneg %p7299_p12 }
 0x8d7   : > { %8276 = dma.done.wait (%p7300_p9), %s6565_s24, 16  }
 0x8d8   : > { %8278 = vsyncadd (%p7300_p9), %s6565_s24, 4294967280  ;;  %s11957_s30 = sld [smem:[#allocation12_spill]]  ;;  %s11959_s27 = smov %s8285_s28 }
 0x8d9   : > { %s11958_s10 = sld [smem:[#allocation13_spill]]  ;;  %s11960_s28 = smov %s8289_s29 }
 0x8de   : > { %p22_p10 = scmp.ge.s32.totalorder %s11957_s30, 4  }
 0x8df   : > { %s11961_s29 = smov %s11958_s10 }
 0x8e0   :  { %24 = sbr.rel (!%p22_p10) target bundleno = 8 (0x8), region = 105 }
 0x8e5   :  { %6569 = vsyncpa [#allocation3], 1 }
 0x8e6   :  { %6571 = vsyncpa [#allocation3 + $0x1], 1 }
 0x8e7   :  { %6572 = vsyncpa [#allocation6], 1 }
 0x8e8   :  { %6573 = vsyncpa [#allocation4], 1 }
 0x8e9   :  { %6575 = vsyncpa [#allocation4 + $0x1], 1 }

</bundles_post_ra>
